<compile_context>
chip_gen: v7x
topology: tpu7x:2x2x1
jax: 0.10.0
libtpu: 0.0.40
codegen_flags: <defaults>
</compile_context>

<pallas_src>
import math

import jax
import jax.numpy as jnp
from jax.experimental import pallas as pl
from jax.experimental.pallas import tpu as pltpu

LAYER_SIZES = [1, 256, 256, 256, 1]
HID_BIAS = 16  # bias_layer1 output width


# -----------------------------------------------------------------------------
# Pallas kernel: one batch tile of the full MyNet forward.
# -----------------------------------------------------------------------------
def mynet_kernel(x_ref,
                 w0_ref, b0_ref,
                 w1_ref, b1_ref,
                 w2_ref, b2_ref,
                 w3_ref,
                 wb1_ref, bb1_ref,
                 wb2_ref, bb2_ref,
                 eps_ref,
                 out_ref):
    x = x_ref[...]                                                # (tm, 1) f32

    # ---- Fcl_Net trunk ------------------------------------------------------
    # Layer 0 has contraction dim K=1: a broadcast FMA on the VPU is cheaper
    # than pushing a lane-sparse operand through the MXU.
    h = jnp.maximum(x * w0_ref[...] + b0_ref[...], 0.0)          # (tm, 256) f32

    # Layers 1 & 2: bf16 operands, f32 accumulation on the MXU.
    h = jnp.dot(h.astype(jnp.bfloat16), w1_ref[...],
                preferred_element_type=jnp.float32) + b1_ref[...]
    h = jnp.maximum(h, 0.0)                                       # (tm, 256) f32
    h = jnp.dot(h.astype(jnp.bfloat16), w2_ref[...],
                preferred_element_type=jnp.float32) + b2_ref[...]
    h = jnp.maximum(h, 0.0)                                       # (tm, 256) f32

    # Output layer (256 -> 1, no bias): weighted lane reduce instead of an
    # MXU matmul with a single output column.
    trunk = jnp.sum(h * w3_ref[...], axis=-1)                     # (tm,) f32

    # ---- bias branch (16-wide): stays on the VPU ----------------------------
    pre = x * wb1_ref[...] + bb1_ref[...]                         # (tm, 16) f32
    # relu(pre) + eps * heaviside(pre, 0)  ==  where(pre > 0, pre + eps, 0)
    # (heaviside(0, values=0.) == 0, so pre == 0 maps to 0 in both forms).
    hb = jnp.where(pre > 0.0, pre + eps_ref[...], 0.0)            # (tm, 16) f32
    branch = jnp.sum(hb * wb2_ref[...], axis=-1)                  # (tm,) f32

    # ---- lane-dense store: one (1, 1, tm) row per grid step -----------------
    out = (trunk + branch)[None, None, :] + bb2_ref[...][None]    # (1, 1, tm)
    out_ref[...] = out.astype(out_ref.dtype)


# -----------------------------------------------------------------------------
# Wrapper
# -----------------------------------------------------------------------------
def mynet_forward(x, params, *, tm=None):
    (w0, b0, w1, b1, w2, b2, w3_row, wb1, bb1, wb2_row, bb2, eps) = params
    N = x.shape[0]

    if tm is None:
        # Big tiles amortize per-step overhead; keep >= 2 grid steps when the
        # batch allows it so v7x's 2 TensorCores both get a "parallel" slice.
        tm = N if N <= 256 else N // 2
    assert N % tm == 0 and tm % 8 == 0, "batch tile must divide N and be 8-aligned"
    grid_len = N // tm

    # bf16 weights for the two FLOP-dominant layers (f32 accumulation in-kernel).
    w1b = w1.astype(jnp.bfloat16)
    w2b = w2.astype(jnp.bfloat16)

    def full_spec(arr):
        # Whole array, constant index_map: DMA'd once, resident across all steps.
        return pl.BlockSpec(arr.shape, lambda i: (0,) * arr.ndim)

    call_args = (x, w0, b0, w1b, b1, w2b, b2, w3_row, wb1, bb1, wb2_row, bb2, eps)

    # Scheduling hint: the two 256x256 matmuls dominate.
    flops = 2 * N * (2 * LAYER_SIZES[1] * LAYER_SIZES[2]
                     + LAYER_SIZES[1] + LAYER_SIZES[2] + 2 * HID_BIAS)
    bytes_accessed = int(sum(a.size * a.dtype.itemsize for a in call_args)
                         + N * 4)  # + output
    cost = pl.CostEstimate(flops=flops, transcendentals=0,
                           bytes_accessed=bytes_accessed)

    out = pl.pallas_call(
        mynet_kernel,
        out_shape=jax.ShapeDtypeStruct((grid_len, 1, tm), jnp.float32),
        grid_spec=pltpu.PrefetchScalarGridSpec(
            num_scalar_prefetch=0,
            grid=(grid_len,),
            in_specs=[
                pl.BlockSpec((tm, LAYER_SIZES[0]), lambda i: (i, 0)),  # x tile
                full_spec(w0), full_spec(b0),
                full_spec(w1b), full_spec(b1),
                full_spec(w2b), full_spec(b2),
                full_spec(w3_row),
                full_spec(wb1), full_spec(bb1),
                full_spec(wb2_row), full_spec(bb2),
                full_spec(eps),
            ],
            out_specs=pl.BlockSpec((1, 1, tm), lambda i: (i, 0, 0)),
        ),
        compiler_params=pltpu.CompilerParams(
            dimension_semantics=("parallel",)),
        cost_estimate=cost,
    )(*call_args)

    # (G, 1, tm) row-major -> (N, 1); row j of tile i is batch element i*tm + j.
    return out.reshape(N, 1)


# -----------------------------------------------------------------------------
# Deterministic parameter init (xavier_normal weights, zero biases),
# matching the shapes declared in MyNet.__init__ / Fcl_Net.__init__.
# -----------------------------------------------------------------------------
def xavier_normal(key, fan_in, fan_out, shape):
    std = math.sqrt(2.0 / (fan_in + fan_out))
    return std * jax.random.normal(key, shape, dtype=jnp.float32)


def init_params(key):
    ks = jax.random.split(key, 7)
    # Fcl_Net: Linear(1,256), Linear(256,256), Linear(256,256), Linear(256,1,bias=False)
    w0 = xavier_normal(ks[0], 1, 256, (1, 256))
    b0 = jnp.zeros((1, 256), jnp.float32)
    w1 = xavier_normal(ks[1], 256, 256, (256, 256))
    b1 = jnp.zeros((1, 256), jnp.float32)
    w2 = xavier_normal(ks[2], 256, 256, (256, 256))
    b2 = jnp.zeros((1, 256), jnp.float32)
    w3_row = xavier_normal(ks[3], 256, 1, (1, 256))          # no bias, stored as row
    # bias_layer1: Linear(1,16); bias_layer2: Linear(16,1); epsilon1: (1,16)
    wb1 = xavier_normal(ks[4], 1, 16, (1, 16))
    bb1 = jnp.zeros((1, 16), jnp.float32)
    wb2_row = xavier_normal(ks[5], 16, 1, (1, 16))           # stored as row
    bb2 = jnp.zeros((1, 1), jnp.float32)
    eps = xavier_normal(ks[6], 16, 1, (1, 16))               # torch xavier on (1,16)
    return (w0, b0, w1, b1, w2, b2, w3_row, wb1, bb1, wb2_row, bb2, eps)


# Pure-JAX reference. mixed=True mirrors the kernel's bf16 matmul inputs so the
# kernel can be checked tightly; mixed=False is the full-f32 torch-equivalent.
def mynet_ref(x, params, *, mixed=False):
    (w0, b0, w1, b1, w2, b2, w3_row, wb1, bb1, wb2_row, bb2, eps) = params
    cast = (lambda a: a.astype(jnp.bfloat16)) if mixed else (lambda a: a)
    h = jnp.maximum(x * w0 + b0, 0.0)
    h = jnp.maximum(jnp.dot(cast(h), cast(w1),
                            preferred_element_type=jnp.float32) + b1, 0.0)
    h = jnp.maximum(jnp.dot(cast(h), cast(w2),
                            preferred_element_type=jnp.float32) + b2, 0.0)
    trunk = jnp.sum(h * w3_row, axis=-1, keepdims=True)
    pre = x * wb1 + bb1
    hb = jnp.maximum(pre, 0.0) + eps * jnp.where(pre > 0.0, 1.0, 0.0)
    branch = jnp.sum(hb * wb2_row, axis=-1, keepdims=True) + bb2
    return trunk + branch


if __name__ == "__main__":
    key = jax.random.PRNGKey(0)
    pkey, xkey = jax.random.split(key)
    params = init_params(pkey)

    N = 1024  # input feature dim is 1 (layer_sizes[0]); tm defaults to N//2 -> grid=(2,)
    x = jax.random.normal(xkey, (N, LAYER_SIZES[0]), dtype=jnp.float32)

    out = mynet_forward(x, params)
    out = jax.block_until_ready(out)
    assert out.shape == (N, LAYER_SIZES[-1])

    # Tight check vs. a reference that mirrors the kernel's bf16 matmul inputs.
    ref_mixed = mynet_ref(x, params, mixed=True)
    assert jnp.allclose(out, ref_mixed, atol=1e-4, rtol=1e-4), \
        "mismatch vs bf16-mirrored reference"
    # Loose check vs. the full-f32 PyTorch-equivalent math (bf16 weight cast).
    ref_f32 = mynet_ref(x, params, mixed=False)
    assert jnp.allclose(out, ref_f32, atol=2e-2, rtol=2e-2), \
        "mismatch vs f32 reference"

    print("KERNEL_OK")
</pallas_src>

<mosaic_0001>
module attributes {stable_mosaic.version = 11 : i64} {
  func.func @mynet_kernel(%arg0: i32, %arg1: memref<512x1xf32, #tpu.memory_space<vmem>>, %arg2: memref<1x256xf32, #tpu.memory_space<vmem>>, %arg3: memref<1x256xf32, #tpu.memory_space<vmem>>, %arg4: memref<256x256xbf16, #tpu.memory_space<vmem>>, %arg5: memref<1x256xf32, #tpu.memory_space<vmem>>, %arg6: memref<256x256xbf16, #tpu.memory_space<vmem>>, %arg7: memref<1x256xf32, #tpu.memory_space<vmem>>, %arg8: memref<1x256xf32, #tpu.memory_space<vmem>>, %arg9: memref<1x16xf32, #tpu.memory_space<vmem>>, %arg10: memref<1x16xf32, #tpu.memory_space<vmem>>, %arg11: memref<1x16xf32, #tpu.memory_space<vmem>>, %arg12: memref<1x1xf32, #tpu.memory_space<vmem>>, %arg13: memref<1x16xf32, #tpu.memory_space<vmem>>, %arg14: memref<1x1x512xf32, #tpu.memory_space<vmem>>) attributes {dimension_semantics = [#tpu.dimension_semantics<parallel>], iteration_bounds = array<i64: 2>, scalar_prefetch = 0 : i64, scratch_operands = 0 : i64, tpu.core_type = #tpu.core_type<tc>, window_params = [{transform_indices = @transform_0, window_bounds = array<i64: 512, 1>}, {pipeline_mode = #tpu.pipeline_mode<synchronous>, transform_indices = @transform_1, window_bounds = array<i64: 1, 256>}, {pipeline_mode = #tpu.pipeline_mode<synchronous>, transform_indices = @transform_2, window_bounds = array<i64: 1, 256>}, {pipeline_mode = #tpu.pipeline_mode<synchronous>, transform_indices = @transform_3, window_bounds = array<i64: 256, 256>}, {pipeline_mode = #tpu.pipeline_mode<synchronous>, transform_indices = @transform_4, window_bounds = array<i64: 1, 256>}, {pipeline_mode = #tpu.pipeline_mode<synchronous>, transform_indices = @transform_5, window_bounds = array<i64: 256, 256>}, {pipeline_mode = #tpu.pipeline_mode<synchronous>, transform_indices = @transform_6, window_bounds = array<i64: 1, 256>}, {pipeline_mode = #tpu.pipeline_mode<synchronous>, transform_indices = @transform_7, window_bounds = array<i64: 1, 256>}, {pipeline_mode = #tpu.pipeline_mode<synchronous>, transform_indices = @transform_8, window_bounds = array<i64: 1, 16>}, {pipeline_mode = #tpu.pipeline_mode<synchronous>, transform_indices = @transform_9, window_bounds = array<i64: 1, 16>}, {pipeline_mode = #tpu.pipeline_mode<synchronous>, transform_indices = @transform_10, window_bounds = array<i64: 1, 16>}, {pipeline_mode = #tpu.pipeline_mode<synchronous>, transform_indices = @transform_11, window_bounds = array<i64: 1, 1>}, {pipeline_mode = #tpu.pipeline_mode<synchronous>, transform_indices = @transform_12, window_bounds = array<i64: 1, 16>}, {transform_indices = @transform_13, window_bounds = array<i64: 1, 1, 512>}]} {
    %c0 = arith.constant 0 : index
    %c0_0 = arith.constant 0 : index
    %0 = vector.load %arg1[%c0, %c0_0] : memref<512x1xf32, #tpu.memory_space<vmem>>, vector<512x1xf32>
    %c0_1 = arith.constant 0 : index
    %c0_2 = arith.constant 0 : index
    %1 = vector.load %arg2[%c0_1, %c0_2] : memref<1x256xf32, #tpu.memory_space<vmem>>, vector<1x256xf32>
    %2 = vector.broadcast %0 : vector<512x1xf32> to vector<512x256xf32>
    %3 = vector.broadcast %1 : vector<1x256xf32> to vector<512x256xf32>
    %4 = arith.mulf %2, %3 : vector<512x256xf32>
    %c0_3 = arith.constant 0 : index
    %c0_4 = arith.constant 0 : index
    %5 = vector.load %arg3[%c0_3, %c0_4] : memref<1x256xf32, #tpu.memory_space<vmem>>, vector<1x256xf32>
    %6 = vector.broadcast %5 : vector<1x256xf32> to vector<512x256xf32>
    %7 = arith.addf %4, %6 : vector<512x256xf32>
    %cst = arith.constant 0.000000e+00 : f32
    %8 = vector.broadcast %cst : f32 to vector<512x256xf32>
    %9 = arith.maximumf %7, %8 : vector<512x256xf32>
    %10 = arith.truncf %9 : vector<512x256xf32> to vector<512x256xbf16>
    %c0_5 = arith.constant 0 : index
    %c0_6 = arith.constant 0 : index
    %11 = vector.load %arg4[%c0_5, %c0_6] : memref<256x256xbf16, #tpu.memory_space<vmem>>, vector<256x256xbf16>
    %cst_7 = arith.constant dense<0.000000e+00> : vector<512x256xf32>
    %12 = tpu.matmul %10, %11, %cst_7 {dimension_numbers = #tpu.dot_dimension_numbers<[1], [0], [0], [1], [0, 0, 1, 1], [], []>} : vector<512x256xbf16>, vector<256x256xbf16>, vector<512x256xf32> -> vector<512x256xf32>
    %c0_8 = arith.constant 0 : index
    %c0_9 = arith.constant 0 : index
    %13 = vector.load %arg5[%c0_8, %c0_9] : memref<1x256xf32, #tpu.memory_space<vmem>>, vector<1x256xf32>
    %14 = vector.broadcast %13 : vector<1x256xf32> to vector<512x256xf32>
    %15 = arith.addf %12, %14 : vector<512x256xf32>
    %cst_10 = arith.constant 0.000000e+00 : f32
    %16 = vector.broadcast %cst_10 : f32 to vector<512x256xf32>
    %17 = arith.maximumf %15, %16 : vector<512x256xf32>
    %18 = arith.truncf %17 : vector<512x256xf32> to vector<512x256xbf16>
    %c0_11 = arith.constant 0 : index
    %c0_12 = arith.constant 0 : index
    %19 = vector.load %arg6[%c0_11, %c0_12] : memref<256x256xbf16, #tpu.memory_space<vmem>>, vector<256x256xbf16>
    %cst_13 = arith.constant dense<0.000000e+00> : vector<512x256xf32>
    %20 = tpu.matmul %18, %19, %cst_13 {dimension_numbers = #tpu.dot_dimension_numbers<[1], [0], [0], [1], [0, 0, 1, 1], [], []>} : vector<512x256xbf16>, vector<256x256xbf16>, vector<512x256xf32> -> vector<512x256xf32>
    %c0_14 = arith.constant 0 : index
    %c0_15 = arith.constant 0 : index
    %21 = vector.load %arg7[%c0_14, %c0_15] : memref<1x256xf32, #tpu.memory_space<vmem>>, vector<1x256xf32>
    %22 = vector.broadcast %21 : vector<1x256xf32> to vector<512x256xf32>
    %23 = arith.addf %20, %22 : vector<512x256xf32>
    %cst_16 = arith.constant 0.000000e+00 : f32
    %24 = vector.broadcast %cst_16 : f32 to vector<512x256xf32>
    %25 = arith.maximumf %23, %24 : vector<512x256xf32>
    %c0_17 = arith.constant 0 : index
    %c0_18 = arith.constant 0 : index
    %26 = vector.load %arg8[%c0_17, %c0_18] : memref<1x256xf32, #tpu.memory_space<vmem>>, vector<1x256xf32>
    %27 = vector.broadcast %26 : vector<1x256xf32> to vector<512x256xf32>
    %28 = arith.mulf %25, %27 : vector<512x256xf32>
    %cst_19 = arith.constant dense<0.000000e+00> : vector<512xf32>
    %29 = vector.multi_reduction <add>, %28, %cst_19 [1] : vector<512x256xf32> to vector<512xf32>
    %c0_20 = arith.constant 0 : index
    %c0_21 = arith.constant 0 : index
    %30 = vector.load %arg9[%c0_20, %c0_21] : memref<1x16xf32, #tpu.memory_space<vmem>>, vector<1x16xf32>
    %31 = vector.broadcast %0 : vector<512x1xf32> to vector<512x16xf32>
    %32 = vector.broadcast %30 : vector<1x16xf32> to vector<512x16xf32>
    %33 = arith.mulf %31, %32 : vector<512x16xf32>
    %c0_22 = arith.constant 0 : index
    %c0_23 = arith.constant 0 : index
    %34 = vector.load %arg10[%c0_22, %c0_23] : memref<1x16xf32, #tpu.memory_space<vmem>>, vector<1x16xf32>
    %35 = vector.broadcast %34 : vector<1x16xf32> to vector<512x16xf32>
    %36 = arith.addf %33, %35 : vector<512x16xf32>
    %cst_24 = arith.constant 0.000000e+00 : f32
    %37 = vector.broadcast %cst_24 : f32 to vector<512x16xf32>
    %38 = arith.cmpf ogt, %36, %37 : vector<512x16xf32>
    %c0_25 = arith.constant 0 : index
    %c0_26 = arith.constant 0 : index
    %39 = vector.load %arg13[%c0_25, %c0_26] : memref<1x16xf32, #tpu.memory_space<vmem>>, vector<1x16xf32>
    %40 = vector.broadcast %39 : vector<1x16xf32> to vector<512x16xf32>
    %41 = arith.addf %36, %40 : vector<512x16xf32>
    %cst_27 = arith.constant 0.000000e+00 : f32
    %42 = vector.broadcast %cst_27 : f32 to vector<512x16xf32>
    %43 = arith.select %38, %41, %42 : vector<512x16xi1>, vector<512x16xf32>
    %c0_28 = arith.constant 0 : index
    %c0_29 = arith.constant 0 : index
    %44 = vector.load %arg11[%c0_28, %c0_29] : memref<1x16xf32, #tpu.memory_space<vmem>>, vector<1x16xf32>
    %45 = vector.broadcast %44 : vector<1x16xf32> to vector<512x16xf32>
    %46 = arith.mulf %43, %45 : vector<512x16xf32>
    %cst_30 = arith.constant dense<0.000000e+00> : vector<512xf32>
    %47 = vector.multi_reduction <add>, %46, %cst_30 [1] : vector<512x16xf32> to vector<512xf32>
    %48 = arith.addf %29, %47 : vector<512xf32>
    %49 = vector.shape_cast %48 : vector<512xf32> to vector<1x1x512xf32>
    %c0_31 = arith.constant 0 : index
    %c0_32 = arith.constant 0 : index
    %50 = vector.load %arg12[%c0_31, %c0_32] : memref<1x1xf32, #tpu.memory_space<vmem>>, vector<1x1xf32>
    %51 = vector.shape_cast %50 : vector<1x1xf32> to vector<1x1x1xf32>
    %52 = vector.broadcast %51 : vector<1x1x1xf32> to vector<1x1x512xf32>
    %53 = arith.addf %49, %52 : vector<1x1x512xf32>
    %c0_33 = arith.constant 0 : index
    %c0_34 = arith.constant 0 : index
    %c0_35 = arith.constant 0 : index
    %54 = vector.load %arg14[%c0_33, %c0_34, %c0_35] : memref<1x1x512xf32, #tpu.memory_space<vmem>>, vector<1x1x512xf32>
    tpu.vector_store %arg14[%c0_33, %c0_34, %c0_35], %53 {strides = array<i32>} : memref<1x1x512xf32, #tpu.memory_space<vmem>>, vector<1x1x512xf32>,
    return
  }
  func.func @transform_0(%arg0: i32) -> (i32, i32) {
    %c0_i32 = arith.constant 0 : i32
    %c0_i32_0 = arith.constant 0 : i32
    return %arg0, %c0_i32 : i32, i32
  }
  func.func @transform_1(%arg0: i32) -> (i32, i32) {
    %c0_i32 = arith.constant 0 : i32
    %c0_i32_0 = arith.constant 0 : i32
    %c0_i32_1 = arith.constant 0 : i32
    return %c0_i32, %c0_i32_0 : i32, i32
  }
  func.func @transform_2(%arg0: i32) -> (i32, i32) {
    %c0_i32 = arith.constant 0 : i32
    %c0_i32_0 = arith.constant 0 : i32
    %c0_i32_1 = arith.constant 0 : i32
    return %c0_i32, %c0_i32_0 : i32, i32
  }
  func.func @transform_3(%arg0: i32) -> (i32, i32) {
    %c0_i32 = arith.constant 0 : i32
    %c0_i32_0 = arith.constant 0 : i32
    %c0_i32_1 = arith.constant 0 : i32
    return %c0_i32, %c0_i32_0 : i32, i32
  }
  func.func @transform_4(%arg0: i32) -> (i32, i32) {
    %c0_i32 = arith.constant 0 : i32
    %c0_i32_0 = arith.constant 0 : i32
    %c0_i32_1 = arith.constant 0 : i32
    return %c0_i32, %c0_i32_0 : i32, i32
  }
  func.func @transform_5(%arg0: i32) -> (i32, i32) {
    %c0_i32 = arith.constant 0 : i32
    %c0_i32_0 = arith.constant 0 : i32
    %c0_i32_1 = arith.constant 0 : i32
    return %c0_i32, %c0_i32_0 : i32, i32
  }
  func.func @transform_6(%arg0: i32) -> (i32, i32) {
    %c0_i32 = arith.constant 0 : i32
    %c0_i32_0 = arith.constant 0 : i32
    %c0_i32_1 = arith.constant 0 : i32
    return %c0_i32, %c0_i32_0 : i32, i32
  }
  func.func @transform_7(%arg0: i32) -> (i32, i32) {
    %c0_i32 = arith.constant 0 : i32
    %c0_i32_0 = arith.constant 0 : i32
    %c0_i32_1 = arith.constant 0 : i32
    return %c0_i32, %c0_i32_0 : i32, i32
  }
  func.func @transform_8(%arg0: i32) -> (i32, i32) {
    %c0_i32 = arith.constant 0 : i32
    %c0_i32_0 = arith.constant 0 : i32
    %c0_i32_1 = arith.constant 0 : i32
    return %c0_i32, %c0_i32_0 : i32, i32
  }
  func.func @transform_9(%arg0: i32) -> (i32, i32) {
    %c0_i32 = arith.constant 0 : i32
    %c0_i32_0 = arith.constant 0 : i32
    %c0_i32_1 = arith.constant 0 : i32
    return %c0_i32, %c0_i32_0 : i32, i32
  }
  func.func @transform_10(%arg0: i32) -> (i32, i32) {
    %c0_i32 = arith.constant 0 : i32
    %c0_i32_0 = arith.constant 0 : i32
    %c0_i32_1 = arith.constant 0 : i32
    return %c0_i32, %c0_i32_0 : i32, i32
  }
  func.func @transform_11(%arg0: i32) -> (i32, i32) {
    %c0_i32 = arith.constant 0 : i32
    %c0_i32_0 = arith.constant 0 : i32
    %c0_i32_1 = arith.constant 0 : i32
    return %c0_i32, %c0_i32_0 : i32, i32
  }
  func.func @transform_12(%arg0: i32) -> (i32, i32) {
    %c0_i32 = arith.constant 0 : i32
    %c0_i32_0 = arith.constant 0 : i32
    %c0_i32_1 = arith.constant 0 : i32
    return %c0_i32, %c0_i32_0 : i32, i32
  }
  func.func @transform_13(%arg0: i32) -> (i32, i32, i32) {
    %c0_i32 = arith.constant 0 : i32
    %c0_i32_0 = arith.constant 0 : i32
    %c0_i32_1 = arith.constant 0 : i32
    return %arg0, %c0_i32, %c0_i32_0 : i32, i32, i32
  }
}

</mosaic_0001>

<bundles_post_ra>
// kernel: tpu_custom_call.1
= control target key start
LH: loop header
LB: loop body
LE: loop exit
PB: predicated region body
PF: predicated region fallthrough
CT: control target
= control target key end

     0   :  { %s14150_s0 = inlined_call_operand.vmem [shape: f32[1024,1], index: 0, kind: input, shape index: {}]   ;;  %s14151_s1 = inlined_call_operand.vmem [shape: f32[1,256], index: 1, kind: input, shape index: {}]   ;;  %s14152_s2 = inlined_call_operand.vmem [shape: f32[1,256], index: 2, kind: input, shape index: {}]   ;;  %s14153_s3 = inlined_call_operand.vmem [shape: bf16[256,256], index: 3, kind: input, shape index: {}]   ;;  %s14154_s4 = inlined_call_operand.vmem [shape: f32[1,256], index: 4, kind: input, shape index: {}]   ;;  %s14155_s5 = inlined_call_operand.vmem [shape: bf16[256,256], index: 5, kind: input, shape index: {}]   ;;  %s14156_s6 = inlined_call_operand.vmem [shape: f32[1,256], index: 6, kind: input, shape index: {}]   ;;  %s14157_s7 = inlined_call_operand.vmem [shape: f32[1,256], index: 7, kind: input, shape index: {}]   ;;  %s14158_s8 = inlined_call_operand.vmem [shape: f32[1,16], index: 8, kind: input, shape index: {}]   ;;  %s14159_s9 = inlined_call_operand.vmem [shape: f32[1,16], index: 9, kind: input, shape index: {}]   ;;  %s14160_s10 = inlined_call_operand.vmem [shape: f32[1,16], index: 10, kind: input, shape index: {}]   ;;  %s14161_s11 = inlined_call_operand.<no memory space> [shape: f32[1,1], index: 11, kind: input, shape index: {}]   ;;  %s14162_s12 = inlined_call_operand.vmem [shape: f32[1,16], index: 12, kind: input, shape index: {}]   ;;  %s14163_s13 = inlined_call_operand.hbm [shape: f32[2,1,512], index: 13, kind: output, shape index: {}]  }
   0x1   :  { %v18_v0 = vstv %s14161_s11 }
   0x2   :  { %19 = vst [vmem:[#allocation2] sm:$0x1] %v18_v0 }
   0x3   :  { %20 = vsyncpa [#allocation4], 0 }
   0x4   :  { %22 = vsyncpa [#allocation4 + $0x1], 0  ;;  %s10068_s27 = smov 0   ;;  %s10070_s28 = smov 0  }
   0x5   :  { %s10072_s29 = smov 0   ;;  %s10074_s30 = smov 0  }
   0x6 LB: > { %14241 = sst [smem:[#allocation6_spill]] %s9986_s29  ;;  %s9699_s11 = sadd.s32 4294967295, %s9990_s30   ;;  %s9990_s30 = sphi %s10074_s30, %s14575_s30   ;;  %s9986_s29 = sphi %s10072_s29, %s14572_s29   ;;  %s9982_s28 = sphi %s10070_s28, %s14574_s28   ;;  %s9978_s27 = sphi %s10068_s27, %s14573_s27  }
   0x7   : > { %s9700_s14 = sadd.s32 4294967294, %s9990_s30   ;;  %s10091_s15 = sadd.s32 1, %s9990_s30  }
   0x8   : > { %s313_s16 = sadd.s32 1, %s9986_s29  ;;  %s310_s17 = ssub.s32 %s9990_s30, %s10091_s15 }
   0x9   : > { %p323_p0 = scmp.ne.s32.totalorder %s9986_s29, %s9982_s28  ;;  %p311_p1 = scmp.eq.s32.totalorder %s310_s17, 0 }
   0xa   : > { %p324_p2 = scmp.eq.s32.totalorder %s9699_s11, 1  ;;  %p329_p3 = scmp.ne.s32.totalorder %s9982_s28, %s9978_s27 }
   0xb   : > { %p330_p4 = scmp.eq.s32.totalorder %s9700_s14, 1  ;;  %p9703_p7 = scmp.ge.s32.totalorder %s9990_s30, 1 }
   0xc   : > { %s10101_s18 = scalar_select %p311_p1, %s9986_s29, %s313_s16  }
   0xd   : > { %p10103_p5 = por %p324_p2, %p323_p0  ;;  %p10107_p6 = por %p330_p4, %p329_p3 }
   0xe   : > { %14242 = sst [smem:[#allocation7_spill]] %s10101_s18  ;;  %p393_p8 = scmp.lt.s32.totalorder %s9990_s30, 3 }
  0x10   : > { %p394_p9 = pnand %p9703_p7, %p393_p8 }
  0x12   : > { %397 = sbr.rel (%p394_p9) target bundleno = 1747 (0x6d3), region = 72 }
  0x19   : > { %s10113_s21 = sshll.u32 %s9699_s11, 6  ;;  %v9824_v1 = vld [vmem:[%s14153_s3 + $0x4] ss:$8 sps:$4 sm:$0xff]   ;;  %v9992_v2 = vmov 0   ;;  %v9826_v3 = vld [vmem:[%s14153_s3] ss:$8 sps:$4 sm:$0xff]  }
  0x1a   : > { %9823 = vset.pattern.permute.xlu1 %v9992_v2  ;;  %9822 = vset.pattern.permute.xlu0 %v9992_v2  ;;  %p438_p10 = scmp.lt.s32.totalorder %s10113_s21, 127  ;;  %v9827_v4 = vld [vmem:[%s14153_s3 + $0x14] ss:$8 sps:$4 sm:$0xff]   ;;  %v9829_v5 = vld [vmem:[%s14153_s3 + $0x10] ss:$8 sps:$4 sm:$0xff]   ;;  %vm3477_vm2 = vcmask 130048   ;;  %s14108_s17 = scalar_lea.hbm %s14163_s13, %s10113_s21 }
  0x1b   : > { %1503 = vmatprep.subr.bf16.mxu0 %v9824_v1  ;;  %v9830_v6 = vld [vmem:[%s14153_s3 + $0x24] ss:$8 sps:$4 sm:$0xff]   ;;  %v9832_v9 = vld [vmem:[%s14153_s3 + $0x20] ss:$8 sps:$4 sm:$0xff]   ;;  %v9833_v12 = vld [vmem:[%s14153_s3 + $0x34] ss:$8 sps:$4 sm:$0xff]  }
  0x1c   : > { %s439_s11 = scalar_select %p438_p10, %s10113_s21, 127  ;;  %1504 = vmatpush1.bf16.msra.mxu0 %v9826_v3  ;;  %v9835_v13 = vld [vmem:[%s14153_s3 + $0x30] ss:$8 sps:$4 sm:$0xff]   ;;  %v9836_v16 = vld [vmem:[%s14153_s3 + $0x44] ss:$8 sps:$4 sm:$0xff]  }
  0x1d   : > { %1505 = vmatprep.subr.bf16.mxu0 %v9827_v4  ;;  %v9838_v17 = vld [vmem:[%s14153_s3 + $0x40] ss:$8 sps:$4 sm:$0xff]   ;;  %v9839_v23 = vld [vmem:[%s14153_s3 + $0x54] ss:$8 sps:$4 sm:$0xff]   ;;  %v9841_v24 = vld [vmem:[%s14153_s3 + $0x50] ss:$8 sps:$4 sm:$0xff]  }
  0x1e   : > { %s9706_s22 = sshll.u32 %s439_s11, 3  ;;  %v9842_v26 = vld [vmem:[%s14153_s3 + $0x64] ss:$8 sps:$4 sm:$0xff]   ;;  %v9844_v27 = vld [vmem:[%s14153_s3 + $0x60] ss:$8 sps:$4 sm:$0xff]   ;;  %s434_s26 = sand.u32 1, %s9982_s28  }
  0x1f   : > { %s10135_s25 = scalar_lea.vmem %s14150_s0, %s9706_s22  ;;  %v9845_v30 = vld [vmem:[%s14153_s3 + $0x74] ss:$8 sps:$4 sm:$0xff]   ;;  %v9847_v31 = vld [vmem:[%s14153_s3 + $0x70] ss:$8 sps:$4 sm:$0xff]   ;;  %v9848_v34 = vld [vmem:[%s14153_s3 + $0x84] ss:$8 sps:$4 sm:$0xff]  }
  0x20   : > { %v445_v7 = vld [vmem:[%s10135_s25 + $0x10] sm:$0xff]  ;;  %v443_v8 = vld [vmem:[%s10135_s25] sm:$0xff]  ;;  %1506 = vmatpush1.bf16.msra.mxu0 %v9829_v5  ;;  %v446_v10 = vld [vmem:[%s10135_s25 + $0x18] sm:$0xff]  ;;  %s9704_s14 = sshll.u32 %s434_s26, 2  ;;  %s9627_s22 = scalar_lea.sflag [#allocation4], %s434_s26 }
  0x21   : > { %520 = vperm.xlu1 %9823, %v445_v7   ;;  %510 = vperm.xlu0 %9822, %v443_v8   ;;  %v444_v11 = vld [vmem:[%s10135_s25 + $0x8] sm:$0xff]  ;;  %v447_v15 = vld [vmem:[%s10135_s25 + $0x20] sm:$0xff]  ;;  %v450_v18 = vld [vmem:[%s10135_s25 + $0x38] sm:$0xff]  ;;  %s436_s29 = scalar_lea.vmem [#allocation3], %s9704_s14  ;;  %s9994_s23 = smov [#allocation3]  }
  0x22   : > { %1507 = vmatprep.subr.bf16.mxu0 %v9830_v6  ;;  %v448_v14 = vld [vmem:[%s10135_s25 + $0x28] sm:$0xff]  ;;  %v449_v19 = vld [vmem:[%s10135_s25 + $0x30] sm:$0xff]  ;;  %v451_v21 = vld [vmem:[%s10135_s25 + $0x40] sm:$0xff]  ;;  %s9641_s18 = sshll.u32 %s436_s29, 4  ;;  %s9932_s24 = sshll.u32 %s9994_s23, 4  ;;  %s14110_s18 = int_to_ptr.vmem [resolvable:$true] %s9641_s18  ;;  %s9933_s24 = int_to_ptr.vmem [resolvable:$false] %s9932_s24 }
  0x23   : > { %v452_v20 = vld [vmem:[%s10135_s25 + $0x48] sm:$0xff]  ;;  %v454_v22 = vld [vmem:[%s10135_s25 + $0x58] sm:$0xff]  ;;  %v453_v25 = vld [vmem:[%s10135_s25 + $0x50] sm:$0xff]  ;;  %s9934_s14 = scalar_lea.vmem %s9933_s24, 128  ;;  %p9935_p0 = scmp.lt.s32.totalorder %s14110_s18, %s9933_s24 }
  0x24   : > { %1508 = vmatpush1.bf16.msra.mxu0 %v9832_v9  ;;  %v456_v28 = vld [vmem:[%s10135_s25 + $0x68] sm:$0xff]  ;;  %v455_v29 = vld [vmem:[%s10135_s25 + $0x60] sm:$0xff]  ;;  %v458_v32 = vld [vmem:[%s10135_s25 + $0x78] sm:$0xff] }
  0x25   : > { %525 = vperm.xlu1 %9823, %v446_v10   ;;  %515 = vperm.xlu0 %9822, %v444_v11   ;;  %v457_v33 = vld [vmem:[%s10135_s25 + $0x70] sm:$0xff]  ;;  %v9850_v35 = vld [vmem:[%s14153_s3 + $0x80] ss:$8 sps:$4 sm:$0xff]   ;;  %v462_v40 = vld [vmem:[%s10135_s25 + $0x98] sm:$0xff] }
  0x26   : > { %1509 = vmatprep.subr.bf16.mxu0 %v9833_v12  ;;  %v460_v36 = vld [vmem:[%s10135_s25 + $0x88] sm:$0xff]  ;;  %v459_v37 = vld [vmem:[%s10135_s25 + $0x80] sm:$0xff]  ;;  %v9851_v38 = vld [vmem:[%s14153_s3 + $0x94] ss:$8 sps:$4 sm:$0xff]  }
  0x27   : > { %v9853_v39 = vld [vmem:[%s14153_s3 + $0x90] ss:$8 sps:$4 sm:$0xff]   ;;  %v9854_v42 = vld [vmem:[%s14153_s3 + $0xa4] ss:$8 sps:$4 sm:$0xff]   ;;  %v9856_v45 = vld [vmem:[%s14153_s3 + $0xa0] ss:$8 sps:$4 sm:$0xff]  }
  0x28   : > { %1510 = vmatpush1.bf16.msra.mxu0 %v9835_v13  ;;  %v461_v41 = vld [vmem:[%s10135_s25 + $0x90] sm:$0xff]  ;;  %v464_v43 = vld [vmem:[%s10135_s25 + $0xa8] sm:$0xff]  ;;  %v463_v44 = vld [vmem:[%s10135_s25 + $0xa0] sm:$0xff] }
  0x29   : > { %535 = vperm.xlu1 %9823, %v448_v14   ;;  %530 = vperm.xlu0 %9822, %v447_v15   ;;  %v9857_v46 = vld [vmem:[%s14153_s3 + $0xb4] ss:$8 sps:$4 sm:$0xff]   ;;  %v9859_v47 = vld [vmem:[%s14153_s3 + $0xb0] ss:$8 sps:$4 sm:$0xff]   ;;  %v9860_v50 = vld [vmem:[%s14153_s3 + $0xc4] ss:$8 sps:$4 sm:$0xff]  }
  0x2a   : > { %1511 = vmatprep.subr.bf16.mxu0 %v9836_v16  ;;  %v466_v48 = vld [vmem:[%s10135_s25 + $0xb8] sm:$0xff]  ;;  %v465_v49 = vld [vmem:[%s10135_s25 + $0xb0] sm:$0xff]  ;;  %v9862_v51 = vld [vmem:[%s14153_s3 + $0xc0] ss:$8 sps:$4 sm:$0xff]  }
  0x2b   : > { %v468_v52 = vld [vmem:[%s10135_s25 + $0xc8] sm:$0xff]  ;;  %v467_v53 = vld [vmem:[%s10135_s25 + $0xc0] sm:$0xff]  ;;  %v9863_v54 = vld [vmem:[%s14153_s3 + $0xd4] ss:$8 sps:$4 sm:$0xff]  }
  0x2c   : > { %1512 = vmatpush1.bf16.msra.mxu0 %v9838_v17  ;;  %v9865_v55 = vld [vmem:[%s14153_s3 + $0xd0] ss:$8 sps:$4 sm:$0xff]   ;;  %v9866_v58 = vld [vmem:[%s14153_s3 + $0xe4] ss:$8 sps:$4 sm:$0xff]   ;;  %v9868_v59 = vld [vmem:[%s14153_s3 + $0xe0] ss:$8 sps:$4 sm:$0xff]  }
  0x2d   : > { %545 = vperm.xlu1 %9823, %v450_v18   ;;  %540 = vperm.xlu0 %9822, %v449_v19   ;;  %v470_v56 = vld [vmem:[%s10135_s25 + $0xd8] sm:$0xff]  ;;  %v469_v57 = vld [vmem:[%s10135_s25 + $0xd0] sm:$0xff]  ;;  %v472_v60 = vld [vmem:[%s10135_s25 + $0xe8] sm:$0xff] }
  0x2e   : > { %1513 = vmatprep.subr.bf16.mxu0 %v9839_v23  ;;  %v471_v61 = vld [vmem:[%s10135_s25 + $0xe0] sm:$0xff]  ;;  %v9869_v62 = vld [vmem:[%s14153_s3 + $0xf4] ss:$8 sps:$4 sm:$0xff]   ;;  %v9871_v63 = vld [vmem:[%s14153_s3 + $0xf0] ss:$8 sps:$4 sm:$0xff]  }
  0x2f   : > { %v474_v0 = vld [vmem:[%s10135_s25 + $0xf8] sm:$0xff]  ;;  %v473_v1 = vld [vmem:[%s10135_s25 + $0xf0] sm:$0xff]  ;;  %v476_v2 = vld [vmem:[%s10135_s25 + $0x108] sm:$0xff] }
  0x30   : > { %1514 = vmatpush1.bf16.msra.mxu0 %v9841_v24  ;;  %v475_v3 = vld [vmem:[%s10135_s25 + $0x100] sm:$0xff]  ;;  %v478_v4 = vld [vmem:[%s10135_s25 + $0x118] sm:$0xff]  ;;  %v477_v5 = vld [vmem:[%s10135_s25 + $0x110] sm:$0xff] }
  0x31   : > { %555 = vperm.xlu1 %9823, %v452_v20   ;;  %550 = vperm.xlu0 %9822, %v451_v21   ;;  %v480_v6 = vld [vmem:[%s10135_s25 + $0x128] sm:$0xff]  ;;  %v479_v7 = vld [vmem:[%s10135_s25 + $0x120] sm:$0xff]  ;;  %v482_v8 = vld [vmem:[%s10135_s25 + $0x138] sm:$0xff] }
  0x32   : > { %1515 = vmatprep.subr.bf16.mxu0 %v9842_v26  ;;  %v481_v9 = vld [vmem:[%s10135_s25 + $0x130] sm:$0xff]  ;;  %v484_v10 = vld [vmem:[%s10135_s25 + $0x148] sm:$0xff]  ;;  %v483_v11 = vld [vmem:[%s10135_s25 + $0x140] sm:$0xff] }
  0x33   : > { %v486_v12 = vld [vmem:[%s10135_s25 + $0x158] sm:$0xff]  ;;  %v485_v13 = vld [vmem:[%s10135_s25 + $0x150] sm:$0xff]  ;;  %v488_v14 = vld [vmem:[%s10135_s25 + $0x168] sm:$0xff] }
  0x34   : > { %1516 = vmatpush1.bf16.msra.mxu0 %v9844_v27  ;;  %v487_v15 = vld [vmem:[%s10135_s25 + $0x160] sm:$0xff]  ;;  %v490_v16 = vld [vmem:[%s10135_s25 + $0x178] sm:$0xff]  ;;  %v489_v17 = vld [vmem:[%s10135_s25 + $0x170] sm:$0xff] }
  0x35   : > { %565 = vperm.xlu1 %9823, %v454_v22   ;;  %560 = vperm.xlu0 %9822, %v453_v25   ;;  %v492_v18 = vld [vmem:[%s10135_s25 + $0x188] sm:$0xff]  ;;  %v491_v19 = vld [vmem:[%s10135_s25 + $0x180] sm:$0xff]  ;;  %v494_v20 = vld [vmem:[%s10135_s25 + $0x198] sm:$0xff] }
  0x36   : > { %1517 = vmatprep.subr.bf16.mxu0 %v9845_v30  ;;  %v493_v21 = vld [vmem:[%s10135_s25 + $0x190] sm:$0xff]  ;;  %v496_v22 = vld [vmem:[%s10135_s25 + $0x1a8] sm:$0xff]  ;;  %v495_v23 = vld [vmem:[%s10135_s25 + $0x1a0] sm:$0xff] }
  0x37   : > { %v498_v24 = vld [vmem:[%s10135_s25 + $0x1b8] sm:$0xff]  ;;  %v497_v25 = vld [vmem:[%s10135_s25 + $0x1b0] sm:$0xff]  ;;  %v500_v26 = vld [vmem:[%s10135_s25 + $0x1c8] sm:$0xff] }
  0x38   : > { %1518 = vmatpush1.bf16.msra.mxu0 %v9847_v31  ;;  %v499_v27 = vld [vmem:[%s10135_s25 + $0x1c0] sm:$0xff]  ;;  %v501_v30 = vld [vmem:[%s10135_s25 + $0x1d0] sm:$0xff] }
  0x39   : > { %575 = vperm.xlu1 %9823, %v456_v28   ;;  %570 = vperm.xlu0 %9822, %v455_v29   ;;  %v14165_v28 = vlaneseq  ;;  %v502_v29 = vld [vmem:[%s10135_s25 + $0x1d8] sm:$0xff] }
  0x3a   : > { %1519 = vmatprep.subr.bf16.mxu0 %v9848_v34 }
  0x3b   : > { %v10279_v31 = vshrl.u32 %v14165_v28, 7 }
  0x3c   : > { %1520 = vmatpush1.bf16.msra.mxu0 %v9850_v35  ;;  %v505_v35 = vld [vmem:[%s10135_s25 + $0x1f0] sm:$0xff] }
  0x3d   : > { %585 = vperm.xlu1 %9823, %v458_v32   ;;  %580 = vperm.xlu0 %9822, %v457_v33   ;;  %14245 = vst [vmem:[#allocation8_spill] sm:$0xff] %v10279_v31  ;;  %v504_v32 = vld [vmem:[%s10135_s25 + $0x1e8] sm:$0xff]  ;;  %v503_v33 = vld [vmem:[%s10135_s25 + $0x1e0] sm:$0xff]  ;;  %v10284_v34 = vsub.s32 0, %v10279_v31 }
  0x3e   : > { %1521 = vmatprep.subr.bf16.mxu0 %v9851_v38 }
  0x3f   : > { %14246 = vst [vmem:[#allocation9_spill] sm:$0xff] %v10284_v34 }
  0x40   : > { %1522 = vmatpush1.bf16.msra.mxu0 %v9853_v39  ;;  %v967_v39 = vld [vmem:[%s14152_s2] sm:$0x3] }
  0x41   : > { %595 = vperm.xlu1 %9823, %v460_v36   ;;  %590 = vperm.xlu0 %9822, %v459_v37   ;;  %v507_v36 = vld [vmem:[%s14151_s1] sm:$0x3]  ;;  %v10291_v37 = vsub.s32 1, %v10279_v31 }
  0x42   : > { %1523 = vmatprep.subr.bf16.mxu0 %v9854_v42  ;;  %v10294_v38 = vrot.slane %v507_v36, %v10284_v34 }
  0x43   : > { %14247 = vst [vmem:[#allocation10_spill] sm:$0xff] %v10291_v37 }
  0x44   : > { %1524 = vmatpush1.bf16.msra.mxu0 %v9856_v45 }
  0x45   : > { %605 = vperm.xlu1 %9823, %v462_v40   ;;  %600 = vperm.xlu0 %9822, %v461_v41   ;;  %v10300_v40 = vrot.slane %v507_v36, %v10291_v37 }
  0x46   : > { %1525 = vmatprep.subr.bf16.mxu0 %v9857_v46  ;;  %v10308_v46 = vrot.slane %v967_v39, %v10291_v37 }
  0x48   : > { %1526 = vmatpush1.bf16.msra.mxu0 %v9859_v47 }
  0x49   : > { %615 = vperm.xlu1 %9823, %v464_v43   ;;  %610 = vperm.xlu0 %9822, %v463_v44   ;;  %v10303_v43 = vrot.slane %v967_v39, %v10284_v34 }
  0x4a   : > { %1527 = vmatprep.subr.bf16.mxu0 %v9860_v50 }
  0x4c   : > { %1528 = vmatpush1.bf16.msra.mxu0 %v9862_v51  ;;  %v10315_v51 = vld [vmem:[%s14158_s8] ss:$0 sm:$0xff] }
  0x4d   : > { %625 = vperm.xlu1 %9823, %v466_v48   ;;  %620 = vperm.xlu0 %9822, %v465_v49  }
  0x4e   : > { %1529 = vmatprep.subr.bf16.mxu0 %v9863_v54 }
  0x50   : > { %1530 = vmatpush1.bf16.msra.mxu0 %v9865_v55 }
  0x51   : > { %635 = vperm.xlu1 %9823, %v468_v52   ;;  %630 = vperm.xlu0 %9822, %v467_v53  }
  0x52   : > { %1531 = vmatprep.subr.bf16.mxu0 %v9866_v58 }
  0x54   : > { %1532 = vmatpush1.bf16.msra.mxu0 %v9868_v59 }
  0x55   : > { %645 = vperm.xlu1 %9823, %v470_v56   ;;  %640 = vperm.xlu0 %9822, %v469_v57  }
  0x56   : > { %1533 = vmatprep.subr.bf16.mxu0 %v9869_v62 }
  0x58   : > { %1534 = vmatpush1.bf16.msra.mxu0 %v9871_v63 }
  0x59   : > { %655 = vperm.xlu1 %9823, %v472_v60   ;;  %650 = vperm.xlu0 %9822, %v471_v61  }
  0x5d   : > { %665 = vperm.xlu1 %9823, %v474_v0   ;;  %660 = vperm.xlu0 %9822, %v473_v1  }
  0x61   : > { %675 = vperm.xlu1 %9823, %v476_v2   ;;  %670 = vperm.xlu0 %9822, %v475_v3  }
  0x65   : > { %685 = vperm.xlu1 %9823, %v478_v4   ;;  %680 = vperm.xlu0 %9822, %v477_v5   ;;  %v10332_v5 = vld [vmem:[%s14159_s9] ss:$0 sm:$0xff] }
  0x69   : > { %695 = vperm.xlu1 %9823, %v480_v6   ;;  %690 = vperm.xlu0 %9822, %v479_v7  }
  0x6d   : > { %705 = vperm.xlu1 %9823, %v482_v8   ;;  %700 = vperm.xlu0 %9822, %v481_v9  }
  0x71   : > { %715 = vperm.xlu1 %9823, %v484_v10   ;;  %710 = vperm.xlu0 %9822, %v483_v11  }
  0x75   : > { %725 = vperm.xlu1 %9823, %v486_v12   ;;  %720 = vperm.xlu0 %9822, %v485_v13  }
  0x79   : > { %735 = vperm.xlu1 %9823, %v488_v14   ;;  %730 = vperm.xlu0 %9822, %v487_v15  }
  0x7d   : > { %745 = vperm.xlu1 %9823, %v490_v16   ;;  %740 = vperm.xlu0 %9822, %v489_v17  }
  0x81   : > { %755 = vperm.xlu1 %9823, %v492_v18   ;;  %750 = vperm.xlu0 %9822, %v491_v19   ;;  %v10347_v19 = vld [vmem:[%s14162_s12] ss:$0 sm:$0xff] }
  0x85   : > { %765 = vperm.xlu1 %9823, %v494_v20   ;;  %760 = vperm.xlu0 %9822, %v493_v21  }
  0x89   : > { %775 = vperm.xlu1 %9823, %v496_v22   ;;  %770 = vperm.xlu0 %9822, %v495_v23  }
  0x8d   : > { %785 = vperm.xlu1 %9823, %v498_v24   ;;  %780 = vperm.xlu0 %9822, %v497_v25  }
  0x91   : > { %795 = vperm.xlu1 %9823, %v500_v26   ;;  %790 = vperm.xlu0 %9822, %v499_v27  }
  0x95   : > { %805 = vperm.xlu1 %9823, %v502_v29   ;;  %800 = vperm.xlu0 %9822, %v501_v30  }
  0x99   : > { %815 = vperm.xlu1 %9823, %v504_v32   ;;  %810 = vperm.xlu0 %9822, %v503_v33  }
  0x9d   : > { %820 = vperm.xlu0 %9822, %v505_v35  }
  0xa0   : > { %v521_v41 = vpop.permute.xlu1 %520  ;;  %v511_v42 = vpop.permute.xlu0 %510 }
  0xa1   : > { %v844_v44 = vmul.f32 %v10300_v40, %v521_v41  ;;  %v839_v45 = vmul.f32 %v10294_v38, %v511_v42  ;;  %v840_v47 = vmul.f32 %v10300_v40, %v511_v42  ;;  %v843_v60 = vmul.f32 %v10294_v38, %v521_v41 }
  0xa2   : > { %v3072_v61 = vmul.f32 %v10315_v51, %v511_v42  ;;  %v3074_v23 = vmul.f32 %v10315_v51, %v521_v41 }
  0xa3   : > { %v979_v50 = vadd.f32 %v10303_v43, %v839_v45  ;;  %v980_v54 = vadd.f32 %v10308_v46, %v840_v47  ;;  %v984_v55 = vadd.f32 %v10308_v46, %v844_v44  ;;  %v983_v16 = vadd.f32 %v10303_v43, %v843_v60 }
  0xa4   : > { %v526_v48 = vpop.permute.xlu1 %525  ;;  %v516_v49 = vpop.permute.xlu0 %515  ;;  %v3143_v17 = vadd.f32 %v10332_v5, %v3072_v61  ;;  %v3145_v45 = vadd.f32 %v10332_v5, %v3074_v23 }
  0xa5   : > { %v846_v52 = vmul.f32 %v10300_v40, %v526_v48  ;;  %v841_v53 = vmul.f32 %v10294_v38, %v516_v49  ;;  %v842_v56 = vmul.f32 %v10300_v40, %v516_v49  ;;  %v3073_v57 = vmul.f32 %v10315_v51, %v516_v49 }
  0xa6   : > { %v845_v1 = vmul.f32 %v10294_v38, %v526_v48  ;;  %v1108_v2 = vmax.f32 %v980_v54, 0.0  ;;  %v1107_v3 = vmax.f32 %v979_v50, 0.0  ;;  %v1112_v4 = vmax.f32 %v984_v55, 0.0 }
  0xa7   : > { %v981_v58 = vadd.f32 %v10303_v43, %v841_v53  ;;  %v986_v59 = vadd.f32 %v10308_v46, %v846_v52  ;;  %v982_v0 = vadd.f32 %v10308_v46, %v842_v56  ;;  %v3144_v11 = vadd.f32 %v10332_v5, %v3073_v57  ;;  %v10375_v52 = vld [vmem:[%s14160_s10] ss:$0 sm:$0xff] }
  0xa8   : > { %v536_v62 = vpop.permute.xlu1 %535  ;;  %v531_v63 = vpop.permute.xlu0 %530  ;;  %v985_v18 = vadd.f32 %v10303_v43, %v845_v1  ;;  %v3075_v25 = vmul.f32 %v10315_v51, %v526_v48  ;;  %v1111_v29 = vmax.f32 %v983_v16, 0.0  ;;  %v3278_v30 = vadd.f32 %v10347_v19, %v3143_v17 }
  0xa9   : > { %v850_v6 = vmul.f32 %v10300_v40, %v536_v62  ;;  %v848_v7 = vmul.f32 %v10300_v40, %v531_v63  ;;  %v1110_v8 = vmax.f32 %v982_v0, 0.0  ;;  %v1109_v9 = vmax.f32 %v981_v58, 0.0 }
  0xaa   : > { %v1114_v10 = vmax.f32 %v986_v59, 0.0  ;;  %v3279_v24 = vadd.f32 %v10347_v19, %v3144_v11  ;;  %vm3208_vm0 = vcmp.gt.f32.partialorder %v3144_v11, 0.0  ;;  %v849_v32 = vmul.f32 %v10294_v38, %v536_v62 }
  0xab   : > { %v1236_v14 = vpack.c.bf16 %v1110_v8, %v1108_v2  ;;  %v1235_v15 = vpack.c.bf16 %v1109_v9, %v1107_v3  ;;  %v988_v21 = vadd.f32 %v10308_v46, %v848_v7  ;;  %v990_v22 = vadd.f32 %v10308_v46, %v850_v6 }
  0xac   : > { %v10337_v12 = vpop.permute.xlu1 %545  ;;  %v10339_v13 = vpop.permute.xlu0 %540  ;;  %v1238_v20 = vpack.c.bf16 %v1114_v10, %v1112_v4  ;;  %v847_v33 = vmul.f32 %v10294_v38, %v531_v63  ;;  %v1113_v35 = vmax.f32 %v985_v18, 0.0  ;;  %vm3207_vm1 = vcmp.gt.f32.partialorder %v3143_v17, 0.0 }
  0xad   : > { %1535 = vmatprep.mubr.bf16.mxu0 %v1236_v14  ;;  %v854_v36 = vmul.f32 %v10300_v40, %v10337_v12  ;;  %v852_v39 = vmul.f32 %v10300_v40, %v10339_v13  ;;  %v1116_v41 = vmax.f32 %v988_v21, 0.0  ;;  %v1118_v42 = vmax.f32 %v990_v22, 0.0 }
  0xae   : > { %1536 = vmatmul.mubr.bf16.vlgmr.msra.gmra.mrb[0].mxu0 %v1235_v15  ;;  %v3343_v44 = vsel %vm3208_vm0, %v3279_v24, 0.0  ;;  %v3077_v47 = vmul.f32 %v10315_v51, %v536_v62  ;;  %v3076_v48 = vmul.f32 %v10315_v51, %v531_v63  ;;  %v3342_v53 = vsel %vm3207_vm1, %v3278_v30, 0.0 }
  0xaf   : > { %1545 = vmatprep.mubr.bf16.mxu0 %v1238_v20  ;;  %v3146_v54 = vadd.f32 %v10332_v5, %v3075_v25  ;;  %v853_v55 = vmul.f32 %v10294_v38, %v10337_v12  ;;  %v1237_v56 = vpack.c.bf16 %v1113_v35, %v1111_v29  ;;  %v987_v57 = vadd.f32 %v10303_v43, %v847_v33 }
  0xb0   : > { %v10354_v26 = vpop.permute.xlu1 %555  ;;  %v10356_v27 = vpop.permute.xlu0 %550  ;;  %v989_v58 = vadd.f32 %v10303_v43, %v849_v32  ;;  %v1240_v59 = vpack.c.bf16 %v1118_v42, %v1116_v41  ;;  %v3414_v60 = vmul.f32 %v10375_v52, %v3343_v44  ;;  %v992_v61 = vadd.f32 %v10308_v46, %v852_v39 }
  0xb1   : > { %v994_v62 = vadd.f32 %v10308_v46, %v854_v36  ;;  %v3413_v63 = vmul.f32 %v10375_v52, %v3342_v53  ;;  %vm3210_vm3 = vcmp.gt.f32.partialorder %v3146_v54, 0.0  ;;  %v3281_v0 = vadd.f32 %v10347_v19, %v3146_v54 }
  0xb2   : > { %v3280_v1 = vadd.f32 %v10347_v19, %v3145_v45  ;;  %v851_v2 = vmul.f32 %v10294_v38, %v10339_v13  ;;  %vm3209_vm4 = vcmp.gt.f32.partialorder %v3145_v45, 0.0  ;;  %v3148_v6 = vadd.f32 %v10332_v5, %v3077_v47 }
  0xb3   : > { %v3147_v7 = vadd.f32 %v10332_v5, %v3076_v48  ;;  %v858_v8 = vmul.f32 %v10300_v40, %v10354_v26  ;;  %v856_v9 = vmul.f32 %v10300_v40, %v10356_v27  ;;  %v1115_v10 = vmax.f32 %v987_v57, 0.0 }
  0xb4   : > { %v10368_v49 = vpop.permute.xlu1 %565  ;;  %v10370_v50 = vpop.permute.xlu0 %560  ;;  %v1117_v11 = vmax.f32 %v989_v58, 0.0  ;;  %v3481_v14 = vsel %vm3477_vm2, %v3414_v60, 0.0  ;;  %v1120_v15 = vmax.f32 %v992_v61, 0.0  ;;  %v1122_v16 = vmax.f32 %v994_v62, 0.0 }
  0xb5   : > { %v3345_v17 = vsel %vm3210_vm3, %v3281_v0, 0.0  ;;  %v3478_v18 = vsel %vm3477_vm2, %v3413_v63, 0.0  ;;  %v3344_v21 = vsel %vm3209_vm4, %v3280_v1, 0.0  ;;  %v3283_v22 = vadd.f32 %v10347_v19, %v3148_v6 }
  0xb6   : > { %1546 = vmatmul.mubr.bf16.gmra.mrb[4].mxu0 %v1237_v56  ;;  %v3416_v20 = vmul.f32 %v10375_v52, %v3345_v17  ;;  %v3415_v25 = vmul.f32 %v10375_v52, %v3344_v21  ;;  %vm3212_vm5 = vcmp.gt.f32.partialorder %v3148_v6, 0.0  ;;  %vm3211_vm6 = vcmp.gt.f32.partialorder %v3147_v7, 0.0 }
  0xb7   : > { %1555 = vmatprep.mubr.bf16.mxu0 %v1240_v59  ;;  %v3282_v29 = vadd.f32 %v10347_v19, %v3147_v7  ;;  %v3079_v30 = vmul.f32 %v10315_v51, %v10337_v12  ;;  %v1239_v32 = vpack.c.bf16 %v1117_v11, %v1115_v10  ;;  %v991_v33 = vadd.f32 %v10303_v43, %v851_v2 }
  0xb8   : > { %v10390_v3 = vpop.permute.xlu1 %575  ;;  %v10392_v4 = vpop.permute.xlu0 %570  ;;  %v993_v35 = vadd.f32 %v10303_v43, %v853_v55  ;;  %v3078_v36 = vmul.f32 %v10315_v51, %v10339_v13  ;;  %v3081_v39 = vmul.f32 %v10315_v51, %v10354_v26  ;;  %v3080_v41 = vmul.f32 %v10315_v51, %v10356_v27 }
  0xb9   : > { %v1242_v42 = vpack.c.bf16 %v1122_v16, %v1120_v15  ;;  %v3487_v44 = vsel %vm3477_vm2, %v3416_v20, 0.0  ;;  %v3347_v12 = vsel %vm3212_vm5, %v3283_v22, 0.0  ;;  %v3346_v45 = vsel %vm3211_vm6, %v3282_v29, 0.0 }
  0xba   : > { %v996_v47 = vadd.f32 %v10308_v46, %v856_v9  ;;  %v3484_v13 = vsel %vm3477_vm2, %v3415_v25, 0.0  ;;  %v3418_v54 = vmul.f32 %v10375_v52, %v3347_v12  ;;  %v3417_v55 = vmul.f32 %v10375_v52, %v3346_v45 }
  0xbb   : > { %v998_v56 = vadd.f32 %v10308_v46, %v858_v8  ;;  %v1119_v57 = vmax.f32 %v991_v33, 0.0  ;;  %v1121_v58 = vmax.f32 %v993_v35, 0.0  ;;  %v3150_v62 = vadd.f32 %v10332_v5, %v3079_v30 }
  0xbc   : > { %v10405_v23 = vpop.permute.xlu1 %585  ;;  %3482 = vadd.xlane.f32.xlu0 %v3481_v14  ;;  %v10407_v24 = vpop.permute.xlu0 %580  ;;  %v3493_v59 = vsel %vm3477_vm2, %v3418_v54, 0.0  ;;  %v1124_v60 = vmax.f32 %v996_v47, 0.0  ;;  %v3490_v1 = vsel %vm3477_vm2, %v3417_v55, 0.0  ;;  %v3149_v2 = vadd.f32 %v10332_v5, %v3078_v36 }
  0xbd   : > { %3479 = vadd.xlane.f32.xlu1 %v3478_v18  ;;  %v1126_v61 = vmax.f32 %v998_v56, 0.0  ;;  %v3152_v6 = vadd.f32 %v10332_v5, %v3081_v39  ;;  %v3151_v7 = vadd.f32 %v10332_v5, %v3080_v41  ;;  %v855_v8 = vmul.f32 %v10294_v38, %v10356_v27 }
  0xbe   : > { %1556 = vmatmul.mubr.bf16.gmra.mrb[8].mxu0 %v1239_v32  ;;  %v1241_v9 = vpack.c.bf16 %v1121_v58, %v1119_v57  ;;  %vm3214_vm7 = vcmp.gt.f32.partialorder %v3150_v62, 0.0  ;;  %v857_v11 = vmul.f32 %v10294_v38, %v10354_v26  ;;  %v3285_v14 = vadd.f32 %v10347_v19, %v3150_v62 }
  0xbf   : > { %1565 = vmatprep.mubr.bf16.mxu0 %v1242_v42  ;;  %v1244_v10 = vpack.c.bf16 %v1126_v61, %v1124_v60  ;;  %vm3213_vm8 = vcmp.gt.f32.partialorder %v3149_v2, 0.0  ;;  %v3284_v15 = vadd.f32 %v10347_v19, %v3149_v2  ;;  %vm3216_vm9 = vcmp.gt.f32.partialorder %v3152_v6, 0.0 }
  0xc0   : > { %v10423_v48 = vpop.permute.xlu1 %595  ;;  %3488 = vadd.xlane.f32.xlu0 %v3487_v44  ;;  %v10425_v53 = vpop.permute.xlu0 %590  ;;  %v3287_v27 = vadd.f32 %v10347_v19, %v3152_v6  ;;  %vm3215_vm10 = vcmp.gt.f32.partialorder %v3151_v7, 0.0  ;;  %v3286_v18 = vadd.f32 %v10347_v19, %v3151_v7  ;;  %v3349_v20 = vsel %vm3214_vm7, %v3285_v14, 0.0 }
  0xc1   : > { %3485 = vadd.xlane.f32.xlu1 %v3484_v13  ;;  %v995_v26 = vadd.f32 %v10303_v43, %v855_v8  ;;  %v862_v21 = vmul.f32 %v10300_v40, %v10368_v49  ;;  %v3083_v22 = vmul.f32 %v10315_v51, %v10368_v49  ;;  %v860_v25 = vmul.f32 %v10300_v40, %v10370_v50 }
  0xc2   : > { %v3420_v29 = vmul.f32 %v10375_v52, %v3349_v20  ;;  %v3348_v30 = vsel %vm3213_vm8, %v3284_v15, 0.0  ;;  %v3351_v32 = vsel %vm3216_vm9, %v3287_v27, 0.0  ;;  %v3350_v33 = vsel %vm3215_vm10, %v3286_v18, 0.0 }
  0xc3   : > { %v997_v35 = vadd.f32 %v10303_v43, %v857_v11  ;;  %v3082_v36 = vmul.f32 %v10315_v51, %v10370_v50  ;;  %v3419_v41 = vmul.f32 %v10375_v52, %v3348_v30  ;;  %v3422_v44 = vmul.f32 %v10375_v52, %v3351_v32 }
  0xc4   : > { %v10433_v63 = vpop.permute.xlu1 %605  ;;  %3494 = vadd.xlane.f32.xlu0 %v3493_v59  ;;  %v10435_v0 = vpop.permute.xlu0 %600  ;;  %v3499_v39 = vsel %vm3477_vm2, %v3420_v29, 0.0  ;;  %v3085_v45 = vmul.f32 %v10315_v51, %v10390_v3  ;;  %v1123_v47 = vmax.f32 %v995_v26, 0.0  ;;  %v3421_v54 = vmul.f32 %v10375_v52, %v3350_v33 }
  0xc5   : > { %3491 = vadd.xlane.f32.xlu1 %v3490_v1  ;;  %v3496_v13 = vsel %vm3477_vm2, %v3419_v41, 0.0  ;;  %v3084_v55 = vmul.f32 %v10315_v51, %v10392_v4  ;;  %v1125_v56 = vmax.f32 %v997_v35, 0.0  ;;  %v1000_v57 = vadd.f32 %v10308_v46, %v860_v25 }
  0xc6   : > { %1566 = vmatmul.mubr.bf16.gmra.mrb[12].mxu0 %v1241_v9  ;;  %v1002_v58 = vadd.f32 %v10308_v46, %v862_v21  ;;  %v3505_v59 = vsel %vm3477_vm2, %v3422_v44, 0.0  ;;  %v3154_v61 = vadd.f32 %v10332_v5, %v3083_v22  ;;  %v3153_v1 = vadd.f32 %v10332_v5, %v3082_v36 }
  0xc7   : > { %1575 = vmatprep.mubr.bf16.mxu0 %v1244_v10  ;;  %v1243_v2 = vpack.c.bf16 %v1125_v56, %v1123_v47  ;;  %v1128_v6 = vmax.f32 %v1000_v57, 0.0  ;;  %v3156_v8 = vadd.f32 %v10332_v5, %v3085_v45  ;;  %v3502_v9 = vsel %vm3477_vm2, %v3421_v54, 0.0 }
  0xc8   : > { %v10447_v16 = vpop.permute.xlu1 %615  ;;  %v10449_v17 = vpop.permute.xlu0 %610  ;;  %3500 = vadd.xlane.f32.xlu0 %v3499_v39  ;;  %v1130_v7 = vmax.f32 %v1002_v58, 0.0  ;;  %vm3218_vm11 = vcmp.gt.f32.partialorder %v3154_v61, 0.0  ;;  %v3289_v10 = vadd.f32 %v10347_v19, %v3154_v61  ;;  %vm3217_vm12 = vcmp.gt.f32.partialorder %v3153_v1, 0.0 }
  0xc9   : > { %3497 = vadd.xlane.f32.xlu1 %v3496_v13  ;;  %v3155_v14 = vadd.f32 %v10332_v5, %v3084_v55  ;;  %v861_v15 = vmul.f32 %v10294_v38, %v10368_v49  ;;  %v859_v27 = vmul.f32 %v10294_v38, %v10370_v50  ;;  %v3288_v20 = vadd.f32 %v10347_v19, %v3153_v1 }
  0xca   : > { %v1246_v11 = vpack.c.bf16 %v1130_v7, %v1128_v6  ;;  %v3353_v18 = vsel %vm3218_vm11, %v3289_v10, 0.0  ;;  %v866_v22 = vmul.f32 %v10300_v40, %v10390_v3  ;;  %v864_v25 = vmul.f32 %v10300_v40, %v10392_v4 }
  0xcb   : > { %v3424_v29 = vmul.f32 %v10375_v52, %v3353_v18  ;;  %vm3220_vm13 = vcmp.gt.f32.partialorder %v3156_v8, 0.0  ;;  %v3087_v49 = vmul.f32 %v10315_v51, %v10405_v23  ;;  %v3352_v50 = vsel %vm3217_vm12, %v3288_v20, 0.0 }
  0xcc   : > { %v10466_v42 = vpop.permute.xlu1 %625  ;;  %v10469_v12 = vpop.permute.xlu0 %620  ;;  %3506 = vadd.xlane.f32.xlu0 %v3505_v59  ;;  %v3291_v30 = vadd.f32 %v10347_v19, %v3156_v8  ;;  %v3086_v32 = vmul.f32 %v10315_v51, %v10407_v24  ;;  %v3423_v35 = vmul.f32 %v10375_v52, %v3352_v50  ;;  %vm3219_vm14 = vcmp.gt.f32.partialorder %v3155_v14, 0.0 }
  0xcd   : > { %3503 = vadd.xlane.f32.xlu1 %v3502_v9  ;;  %v3511_v33 = vsel %vm3477_vm2, %v3424_v29, 0.0  ;;  %v3290_v39 = vadd.f32 %v10347_v19, %v3155_v14  ;;  %v999_v41 = vadd.f32 %v10303_v43, %v859_v27  ;;  %v1001_v44 = vadd.f32 %v10303_v43, %v861_v15 }
  0xce   : > { %1576 = vmatmul.mubr.bf16.gmra.mrb[16].mxu0 %v1243_v2  ;;  %v3355_v36 = vsel %vm3220_vm13, %v3291_v30, 0.0  ;;  %v3508_v13 = vsel %vm3477_vm2, %v3423_v35, 0.0  ;;  %v1004_v55 = vadd.f32 %v10308_v46, %v864_v25  ;;  %v1006_v56 = vadd.f32 %v10308_v46, %v866_v22 }
  0xcf   : > { %1585 = vmatprep.mubr.bf16.mxu0 %v1246_v11  ;;  %v3426_v54 = vmul.f32 %v10375_v52, %v3355_v36  ;;  %v3089_v57 = vmul.f32 %v10315_v51, %v10423_v48  ;;  %v3354_v58 = vsel %vm3219_vm14, %v3290_v39, 0.0  ;;  %v1127_v59 = vmax.f32 %v999_v41, 0.0 }
  0xd0   : > { %v10480_v60 = vpop.permute.xlu1 %635  ;;  %v10483_v62 = vpop.permute.xlu0 %630  ;;  %3512 = vadd.xlane.f32.xlu0 %v3511_v33  ;;  %v1129_v61 = vmax.f32 %v1001_v44, 0.0  ;;  %v3425_v2 = vmul.f32 %v10375_v52, %v3354_v58  ;;  %v1132_v6 = vmax.f32 %v1004_v55, 0.0  ;;  %v1134_v7 = vmax.f32 %v1006_v56, 0.0 }
  0xd1   : > { %3509 = vadd.xlane.f32.xlu1 %v3508_v13  ;;  %v3517_v1 = vsel %vm3477_vm2, %v3426_v54, 0.0  ;;  %v3158_v9 = vadd.f32 %v10332_v5, %v3087_v49  ;;  %v863_v11 = vmul.f32 %v10294_v38, %v10392_v4  ;;  %v3088_v18 = vmul.f32 %v10315_v51, %v10425_v53 }
  0xd2   : > { %v1245_v8 = vpack.c.bf16 %v1129_v61, %v1127_v59  ;;  %v3514_v14 = vsel %vm3477_vm2, %v3425_v2, 0.0  ;;  %v1248_v15 = vpack.c.bf16 %v1134_v7, %v1132_v6  ;;  %v3157_v22 = vadd.f32 %v10332_v5, %v3086_v32 }
  0xd3   : > { %vm3222_vm15 = vcmp.gt.f32.partialorder %v3158_v9, 0.0  ;;  %v3293_v20 = vadd.f32 %v10347_v19, %v3158_v9  ;;  %v865_v25 = vmul.f32 %v10294_v38, %v10390_v3  ;;  %v870_v4 = vmul.f32 %v10300_v40, %v10405_v23 }
  0xd4   : > { %v10495_v26 = vpop.permute.xlu1 %645  ;;  %v10497_v21 = vpop.permute.xlu0 %640  ;;  %3518 = vadd.xlane.f32.xlu0 %v3517_v1  ;;  %v3160_v29 = vadd.f32 %v10332_v5, %v3089_v57  ;;  %v868_v49 = vmul.f32 %v10300_v40, %v10407_v24  ;;  %vm3221_vm0 = vcmp.gt.f32.partialorder %v3157_v22, 0.0  ;;  %v3292_v30 = vadd.f32 %v10347_v19, %v3157_v22 }
  0xd5   : > { %3515 = vadd.xlane.f32.xlu1 %v3514_v14  ;;  %v3357_v50 = vsel %vm3222_vm15, %v3293_v20, 0.0  ;;  %v3091_v32 = vmul.f32 %v10315_v51, %v10433_v63  ;;  %v3090_v36 = vmul.f32 %v10315_v51, %v10435_v0  ;;  %v3159_v41 = vadd.f32 %v10332_v5, %v3088_v18 }
  0xd6   : > { %1586 = vmatmul.mubr.bf16.gmra.mrb[20].mxu0 %v1245_v8  ;;  %v3428_v3 = vmul.f32 %v10375_v52, %v3357_v50  ;;  %vm3224_vm1 = vcmp.gt.f32.partialorder %v3160_v29, 0.0  ;;  %v3295_v35 = vadd.f32 %v10347_v19, %v3160_v29  ;;  %v3356_v39 = vsel %vm3221_vm0, %v3292_v30, 0.0 }
  0xd7   : > { %1595 = vmatprep.mubr.bf16.mxu0 %v1248_v15  ;;  %v1003_v44 = vadd.f32 %v10303_v43, %v863_v11  ;;  %v3427_v54 = vmul.f32 %v10375_v52, %v3356_v39  ;;  %v1005_v56 = vadd.f32 %v10303_v43, %v865_v25  ;;  %vm3223_vm3 = vcmp.gt.f32.partialorder %v3159_v41, 0.0 }
  0xd8   : > { %v10514_v45 = vpop.permute.xlu1 %655  ;;  %v10516_v47 = vpop.permute.xlu0 %650  ;;  %v3523_v13 = vsel %vm3477_vm2, %v3428_v3, 0.0  ;;  %v3359_v55 = vsel %vm3224_vm1, %v3295_v35, 0.0  ;;  %v3294_v59 = vadd.f32 %v10347_v19, %v3159_v41  ;;  %v1008_v7 = vadd.f32 %v10308_v46, %v868_v49 }
  0xd9   : > { %3524 = vadd.xlane.f32.xlu0 %v3523_v13  ;;  %v3430_v58 = vmul.f32 %v10375_v52, %v3359_v55  ;;  %v1131_v61 = vmax.f32 %v1003_v44, 0.0  ;;  %v3520_v2 = vsel %vm3477_vm2, %v3427_v54, 0.0  ;;  %v1133_v6 = vmax.f32 %v1005_v56, 0.0 }
  0xda   : > { %v1010_v8 = vadd.f32 %v10308_v46, %v870_v4  ;;  %v3093_v9 = vmul.f32 %v10315_v51, %v10447_v16  ;;  %3521 = vadd.xlane.f32.xlu1 %v3520_v2  ;;  %v3358_v14 = vsel %vm3223_vm3, %v3294_v59, 0.0  ;;  %v1136_v20 = vmax.f32 %v1008_v7, 0.0 }
  0xdb   : > { %v3529_v11 = vsel %vm3477_vm2, %v3430_v58, 0.0  ;;  %v3429_v15 = vmul.f32 %v10375_v52, %v3358_v14  ;;  %v1247_v18 = vpack.c.bf16 %v1133_v6, %v1131_v61  ;;  %v869_v25 = vmul.f32 %v10294_v38, %v10405_v23 }
  0xdc   : > { %v10527_v10 = vpop.permute.xlu0 %660  ;;  %v10532_v27 = vpop.permute.xlu1 %665  ;;  %v1138_v22 = vmax.f32 %v1010_v8, 0.0  ;;  %v867_v29 = vmul.f32 %v10294_v38, %v10407_v24  ;;  %v3162_v4 = vadd.f32 %v10332_v5, %v3091_v32  ;;  %v10579_v49 = vmul.f32 %v10294_v38, %v10423_v48 }
  0xdd   : > { %3530 = vadd.xlane.f32.xlu0 %v3529_v11  ;;  %v3526_v50 = vsel %vm3477_vm2, %v3429_v15, 0.0  ;;  %v3161_v3 = vadd.f32 %v10332_v5, %v3090_v36  ;;  %v874_v23 = vmul.f32 %v10300_v40, %v10423_v48  ;;  %v3092_v24 = vmul.f32 %v10315_v51, %v10449_v17 }
  0xde   : > { %1596 = vmatmul.mubr.bf16.gmra.mrb[24].mxu0 %v1247_v18  ;;  %v1250_v30 = vpack.c.bf16 %v1138_v22, %v1136_v20  ;;  %3527 = vadd.xlane.f32.xlu1 %v3526_v50  ;;  %vm3226_vm4 = vcmp.gt.f32.partialorder %v3162_v4, 0.0  ;;  %v3297_v32 = vadd.f32 %v10347_v19, %v3162_v4  ;;  %v872_v41 = vmul.f32 %v10300_v40, %v10425_v53 }
  0xdf   : > { %vm3225_vm5 = vcmp.gt.f32.partialorder %v3161_v3, 0.0  ;;  %v3296_v36 = vadd.f32 %v10347_v19, %v3161_v3  ;;  %v3164_v44 = vadd.f32 %v10332_v5, %v3093_v9  ;;  %v10598_v48 = vmul.f32 %v10294_v38, %v10425_v53 }
  0xe0   : > { %v10546_v33 = vpop.permute.xlu0 %670  ;;  %v10559_v57 = vpop.permute.xlu1 %675  ;;  %1605 = vmatprep.mubr.bf16.mxu0 %v1250_v30  ;;  %v3095_v13 = vmul.f32 %v10315_v51, %v10466_v42  ;;  %v3094_v54 = vmul.f32 %v10315_v51, %v10469_v12  ;;  %v3361_v55 = vsel %vm3226_vm4, %v3297_v32, 0.0  ;;  %v3163_v2 = vadd.f32 %v10332_v5, %v3092_v24 }
  0xe1   : > { %v3432_v56 = vmul.f32 %v10375_v52, %v3361_v55  ;;  %v3360_v58 = vsel %vm3225_vm5, %v3296_v36, 0.0  ;;  %vm3228_vm6 = vcmp.gt.f32.partialorder %v3164_v44, 0.0  ;;  %v3299_v59 = vadd.f32 %v10347_v19, %v3164_v44 }
  0xe2   : > { %v3431_v61 = vmul.f32 %v10375_v52, %v3360_v58  ;;  %v1007_v53 = vadd.f32 %v10303_v43, %v867_v29  ;;  %v1009_v6 = vadd.f32 %v10303_v43, %v869_v25  ;;  %v1012_v9 = vadd.f32 %v10308_v46, %v872_v41 }
  0xe3   : > { %v3535_v7 = vsel %vm3477_vm2, %v3432_v56, 0.0  ;;  %v3363_v8 = vsel %vm3228_vm6, %v3299_v59, 0.0  ;;  %v1014_v11 = vadd.f32 %v10308_v46, %v874_v23  ;;  %vm3227_vm7 = vcmp.gt.f32.partialorder %v3163_v2, 0.0  ;;  %v9872_v59 = vld [vmem:[%s14155_s5 + $0x4] ss:$8 sps:$4 sm:$0xff]  }
  0xe4   : > { %v10563_v1 = vpop.permute.xlu0 %680  ;;  %v10583_v35 = vpop.permute.xlu1 %685  ;;  %3536 = vadd.xlane.f32.xlu0 %v3535_v7  ;;  %v3532_v15 = vsel %vm3477_vm2, %v3431_v61, 0.0  ;;  %v3434_v18 = vmul.f32 %v10375_v52, %v3363_v8  ;;  %v3298_v20 = vadd.f32 %v10347_v19, %v3163_v2  ;;  %v1135_v25 = vmax.f32 %v1007_v53, 0.0  ;;  %v9874_v61 = vld [vmem:[%s14155_s5] ss:$8 sps:$4 sm:$0xff]   ;;  %2252 = vmatprep.subr.bf16.mxu1 %v9872_v59 }
  0xe5   : > { %3533 = vadd.xlane.f32.xlu1 %v3532_v15  ;;  %v1137_v29 = vmax.f32 %v1009_v6, 0.0  ;;  %v1140_v4 = vmax.f32 %v1012_v9, 0.0  ;;  %v1142_v50 = vmax.f32 %v1014_v11, 0.0  ;;  %v10622_v30 = vmul.f32 %v10294_v38, %v10433_v63  ;;  %2253 = vmatpush1.bf16.msra.mxu1 %v9874_v61 }
  0xe6   : > { %v878_v3 = vmul.f32 %v10300_v40, %v10433_v63  ;;  %v3097_v23 = vmul.f32 %v10315_v51, %v10480_v60  ;;  %v3362_v24 = vsel %vm3227_vm7, %v3298_v20, 0.0  ;;  %v10630_v32 = vmul.f32 %v10294_v38, %v10435_v0 }
  0xe7   : > { %v3541_v41 = vsel %vm3477_vm2, %v3434_v18, 0.0  ;;  %v3433_v36 = vmul.f32 %v10375_v52, %v3362_v24  ;;  %v1249_v44 = vpack.c.bf16 %v1137_v29, %v1135_v25  ;;  %v876_v55 = vmul.f32 %v10300_v40, %v10435_v0  ;;  %v9877_v29 = vld [vmem:[%s14155_s5 + $0x10] ss:$8 sps:$4 sm:$0xff]  }
  0xe8   : > { %v10590_v39 = vpop.permute.xlu0 %690  ;;  %v10613_v14 = vpop.permute.xlu1 %695  ;;  %v10638_v56 = vmul.f32 %v10294_v38, %v10447_v16  ;;  %3542 = vadd.xlane.f32.xlu0 %v3541_v41  ;;  %v1252_v63 = vpack.c.bf16 %v1142_v50, %v1140_v4  ;;  %v3166_v58 = vadd.f32 %v10332_v5, %v3095_v13  ;;  %v10649_v2 = vmul.f32 %v10300_v40, %v10447_v16  ;;  %v9878_v41 = vld [vmem:[%s14155_s5 + $0x24] ss:$8 sps:$4 sm:$0xff]  }
  0xe9   : > { %v3096_v0 = vmul.f32 %v10315_v51, %v10483_v62  ;;  %v3538_v53 = vsel %vm3477_vm2, %v3433_v36, 0.0  ;;  %1606 = vmatmul.mubr.bf16.gmra.mrb[28].mxu0 %v1249_v44  ;;  %v3165_v13 = vadd.f32 %v10332_v5, %v3094_v54  ;;  %v10659_v7 = vmul.f32 %v10294_v38, %v10449_v17 }
  0xea   : > { %3539 = vadd.xlane.f32.xlu1 %v3538_v53  ;;  %1615 = vmatprep.mubr.bf16.mxu0 %v1252_v63  ;;  %vm3230_vm8 = vcmp.gt.f32.partialorder %v3166_v58, 0.0  ;;  %v3301_v16 = vadd.f32 %v10347_v19, %v3166_v58  ;;  %v3168_v8 = vadd.f32 %v10332_v5, %v3097_v23  ;;  %v10667_v11 = vmul.f32 %v10300_v40, %v10449_v17  ;;  %v9875_v17 = vld [vmem:[%s14155_s5 + $0x14] ss:$8 sps:$4 sm:$0xff]  }
  0xeb   : > { %v3099_v54 = vmul.f32 %v10315_v51, %v10495_v26  ;;  %vm3229_vm9 = vcmp.gt.f32.partialorder %v3165_v13, 0.0  ;;  %v3300_v15 = vadd.f32 %v10347_v19, %v3165_v13  ;;  %v3098_v18 = vmul.f32 %v10315_v51, %v10497_v21  ;;  %2254 = vmatprep.subr.bf16.mxu1 %v9875_v17  ;;  %v9880_v17 = vld [vmem:[%s14155_s5 + $0x20] ss:$8 sps:$4 sm:$0xff]  }
  0xec   : > { %v10618_v22 = vpop.permute.xlu0 %700  ;;  %v10655_v6 = vpop.permute.xlu1 %705  ;;  %v3365_v20 = vsel %vm3230_vm8, %v3301_v16, 0.0  ;;  %vm3232_vm10 = vcmp.gt.f32.partialorder %v3168_v8, 0.0  ;;  %v3303_v25 = vadd.f32 %v10347_v19, %v3168_v8  ;;  %v3167_v23 = vadd.f32 %v10332_v5, %v3096_v0  ;;  %2255 = vmatpush1.bf16.msra.mxu1 %v9877_v29 }
  0xed   : > { %v3436_v4 = vmul.f32 %v10375_v52, %v3365_v20  ;;  %v3364_v50 = vsel %vm3229_vm9, %v3300_v15, 0.0  ;;  %v1011_v24 = vadd.f32 %v10303_v43, %v10598_v48  ;;  %v1013_v63 = vadd.f32 %v10303_v43, %v10579_v49  ;;  %2256 = vmatprep.subr.bf16.mxu1 %v9878_v41 }
  0xee   : > { %v3435_v36 = vmul.f32 %v10375_v52, %v3364_v50  ;;  %v3367_v44 = vsel %vm3232_vm10, %v3303_v25, 0.0  ;;  %v1016_v58 = vadd.f32 %v10308_v46, %v876_v55  ;;  %vm3231_vm11 = vcmp.gt.f32.partialorder %v3167_v23, 0.0 }
  0xef   : > { %v3547_v59 = vsel %vm3477_vm2, %v3436_v4, 0.0  ;;  %v3438_v61 = vmul.f32 %v10375_v52, %v3367_v44  ;;  %v3302_v48 = vadd.f32 %v10347_v19, %v3167_v23  ;;  %v1139_v13 = vmax.f32 %v1011_v24, 0.0 }
  0xf0   : > { %v10663_v9 = vpop.permute.xlu0 %710  ;;  %v10695_v0 = vpop.permute.xlu1 %715  ;;  %3548 = vadd.xlane.f32.xlu0 %v3547_v59  ;;  %v3544_v53 = vsel %vm3477_vm2, %v3435_v36, 0.0  ;;  %v1141_v16 = vmax.f32 %v1013_v63, 0.0  ;;  %v1018_v8 = vadd.f32 %v10308_v46, %v878_v3  ;;  %v10703_v55 = vmul.f32 %v10294_v38, %v10466_v42  ;;  %v9881_v36 = vld [vmem:[%s14155_s5 + $0x34] ss:$8 sps:$4 sm:$0xff]   ;;  %2257 = vmatpush1.bf16.msra.mxu1 %v9880_v17 }
  0xf1   : > { %14248 = vst [vmem:[#allocation11_spill] sm:$0xff] %v10663_v9  ;;  %14249 = vst [vmem:[#allocation12_spill] sm:$0xff] %v10695_v0  ;;  %v10707_v15 = vmul.f32 %v10300_v40, %v10466_v42  ;;  %3545 = vadd.xlane.f32.xlu1 %v3544_v53  ;;  %v3366_v20 = vsel %vm3231_vm11, %v3302_v48, 0.0  ;;  %v1144_v25 = vmax.f32 %v1016_v58, 0.0  ;;  %v3101_v3 = vmul.f32 %v10315_v51, %v10514_v45  ;;  %v9883_v53 = vld [vmem:[%s14155_s5 + $0x30] ss:$8 sps:$4 sm:$0xff]  }
  0xf2   : > { %v3437_v29 = vmul.f32 %v10375_v52, %v3366_v20  ;;  %v1251_v4 = vpack.c.bf16 %v1141_v16, %v1139_v13  ;;  %v1146_v50 = vmax.f32 %v1018_v8, 0.0  ;;  %v10717_v23 = vmul.f32 %v10294_v38, %v10469_v12  ;;  %2258 = vmatprep.subr.bf16.mxu1 %v9881_v36  ;;  %v9884_v8 = vld [vmem:[%s14155_s5 + $0x44] ss:$8 sps:$4 sm:$0xff]  }
  0xf3   : > { %v10721_v42 = vmul.f32 %v10300_v40, %v10469_v12  ;;  %v3553_v24 = vsel %vm3477_vm2, %v3438_v61, 0.0  ;;  %v3170_v41 = vadd.f32 %v10332_v5, %v3099_v54  ;;  %v10730_v44 = vmul.f32 %v10294_v38, %v10480_v60 }
  0xf4   : > { %v10699_v49 = vpop.permute.xlu0 %720  ;;  %3554 = vadd.xlane.f32.xlu0 %v3553_v24  ;;  %v3550_v63 = vsel %vm3477_vm2, %v3437_v29, 0.0  ;;  %1616 = vmatmul.mubr.bf16.gmra.mrb[32].mxu0 %v1251_v4  ;;  %v1254_v58 = vpack.c.bf16 %v1146_v50, %v1144_v25  ;;  %v3169_v12 = vadd.f32 %v10332_v5, %v3098_v18  ;;  %v10736_v59 = vmul.f32 %v10300_v40, %v10480_v60  ;;  %v10741_v48 = vpop.permute.xlu1 %725 }
  0xf5   : > { %14250 = vst [vmem:[#allocation13_spill] sm:$0xff] %v10699_v49  ;;  %v3100_v54 = vmul.f32 %v10315_v51, %v10516_v47  ;;  %3551 = vadd.xlane.f32.xlu1 %v3550_v63  ;;  %vm3234_vm12 = vcmp.gt.f32.partialorder %v3170_v41, 0.0  ;;  %v3305_v61 = vadd.f32 %v10347_v19, %v3170_v41  ;;  %14251 = vst [vmem:[#allocation14_spill] sm:$0xff] %v10741_v48  ;;  %2259 = vmatpush1.bf16.msra.mxu1 %v9883_v53  ;;  %v9886_v41 = vld [vmem:[%s14155_s5 + $0x40] ss:$8 sps:$4 sm:$0xff]  }
  0xf6   : > { %v10748_v18 = vmul.f32 %v10294_v38, %v10483_v62  ;;  %1625 = vmatprep.mubr.bf16.mxu0 %v1254_v58  ;;  %vm3233_vm13 = vcmp.gt.f32.partialorder %v3169_v12, 0.0  ;;  %v3304_v60 = vadd.f32 %v10347_v19, %v3169_v12  ;;  %v3172_v13 = vadd.f32 %v10332_v5, %v3101_v3  ;;  %2260 = vmatprep.subr.bf16.mxu1 %v9884_v8 }
  0xf7   : > { %v10759_v20 = vmul.f32 %v10300_v40, %v10483_v62  ;;  %v3103_v25 = vmul.f32 %v10315_v51, %v10532_v27  ;;  %v3102_v17 = vmul.f32 %v10315_v51, %v10527_v10  ;;  %v3369_v29 = vsel %vm3234_vm12, %v3305_v61, 0.0 }
  0xf8   : > { %v10752_v16 = vpop.permute.xlu0 %730  ;;  %v3440_v3 = vmul.f32 %v10375_v52, %v3369_v29  ;;  %v3368_v4 = vsel %vm3233_vm13, %v3304_v60, 0.0  ;;  %vm3236_vm14 = vcmp.gt.f32.partialorder %v3172_v13, 0.0  ;;  %v3307_v50 = vadd.f32 %v10347_v19, %v3172_v13  ;;  %v10785_v60 = vpop.permute.xlu1 %735  ;;  %v9887_v13 = vld [vmem:[%s14155_s5 + $0x54] ss:$8 sps:$4 sm:$0xff]  }
  0xf9   : > { %14252 = vst [vmem:[#allocation15_spill] sm:$0xff] %v10752_v16  ;;  %v3439_v24 = vmul.f32 %v10375_v52, %v3368_v4  ;;  %v3171_v36 = vadd.f32 %v10332_v5, %v3100_v54  ;;  %v1015_v62 = vadd.f32 %v10303_v43, %v10630_v32  ;;  %v1017_v63 = vadd.f32 %v10303_v43, %v10622_v30 }
  0xfa   : > { %v3559_v58 = vsel %vm3477_vm2, %v3440_v3, 0.0  ;;  %v3371_v12 = vsel %vm3236_vm14, %v3307_v50, 0.0  ;;  %v1020_v61 = vadd.f32 %v10308_v46, %v10667_v11  ;;  %v1022_v54 = vadd.f32 %v10308_v46, %v10649_v2  ;;  %2261 = vmatpush1.bf16.msra.mxu1 %v9886_v41 }
  0xfb   : > { %3560 = vadd.xlane.f32.xlu0 %v3559_v58  ;;  %v3556_v32 = vsel %vm3477_vm2, %v3439_v24, 0.0  ;;  %v3442_v30 = vmul.f32 %v10375_v52, %v3371_v12  ;;  %vm3235_vm15 = vcmp.gt.f32.partialorder %v3171_v36, 0.0  ;;  %v3306_v53 = vadd.f32 %v10347_v19, %v3171_v36  ;;  %2262 = vmatprep.subr.bf16.mxu1 %v9887_v13 }
  0xfc   : > { %3557 = vadd.xlane.f32.xlu1 %v3556_v32  ;;  %v1143_v11 = vmax.f32 %v1015_v62, 0.0  ;;  %v1145_v29 = vmax.f32 %v1017_v63, 0.0  ;;  %v1148_v3 = vmax.f32 %v1020_v61, 0.0  ;;  %v1150_v2 = vmax.f32 %v1022_v54, 0.0  ;;  %v10790_v8 = vpop.permute.xlu0 %740 }
  0xfd   : > { %v10794_v4 = vmul.f32 %v10294_v38, %v10495_v26  ;;  %v10798_v50 = vmul.f32 %v10300_v40, %v10495_v26  ;;  %v3105_v24 = vmul.f32 %v10315_v51, %v10559_v57  ;;  %v3370_v36 = vsel %vm3235_vm15, %v3306_v53, 0.0  ;;  %v9889_v26 = vld [vmem:[%s14155_s5 + $0x50] ss:$8 sps:$4 sm:$0xff]  }
  0xfe   : > { %v10804_v62 = vmul.f32 %v10294_v38, %v10497_v21  ;;  %v3565_v63 = vsel %vm3477_vm2, %v3442_v30, 0.0  ;;  %v3441_v58 = vmul.f32 %v10375_v52, %v3370_v36  ;;  %v1253_v12 = vpack.c.bf16 %v1145_v29, %v1143_v11  ;;  %v9890_v30 = vld [vmem:[%s14155_s5 + $0x64] ss:$8 sps:$4 sm:$0xff]   ;;  %2263 = vmatpush1.bf16.msra.mxu1 %v9889_v26 }
  0xff   : > { %v10813_v61 = vmul.f32 %v10300_v40, %v10497_v21  ;;  %v10817_v41 = vmul.f32 %v10294_v38, %v10514_v45  ;;  %3566 = vadd.xlane.f32.xlu0 %v3565_v63  ;;  %v1256_v54 = vpack.c.bf16 %v1150_v2, %v1148_v3  ;;  %v3174_v32 = vadd.f32 %v10332_v5, %v3103_v25  ;;  %v10836_v3 = vpop.permute.xlu1 %745 }
 0x100   : > { %v10825_v53 = vmul.f32 %v10300_v40, %v10514_v45  ;;  %v3104_v21 = vmul.f32 %v10315_v51, %v10546_v33  ;;  %v3562_v13 = vsel %vm3477_vm2, %v3441_v58, 0.0  ;;  %1626 = vmatmul.mubr.bf16.gmra.mrb[36].mxu0 %v1253_v12  ;;  %v3173_v11 = vadd.f32 %v10332_v5, %v3102_v17  ;;  %v10846_v63 = vpop.permute.xlu0 %750  ;;  %v9892_v58 = vld [vmem:[%s14155_s5 + $0x60] ss:$8 sps:$4 sm:$0xff]   ;;  %2264 = vmatprep.subr.bf16.mxu1 %v9890_v30 }
 0x101   : > { %v10833_v29 = vmul.f32 %v10294_v38, %v10516_v47  ;;  %3563 = vadd.xlane.f32.xlu1 %v3562_v13  ;;  %1635 = vmatprep.mubr.bf16.mxu0 %v1256_v54  ;;  %vm3238_vm0 = vcmp.gt.f32.partialorder %v3174_v32, 0.0  ;;  %v3309_v25 = vadd.f32 %v10347_v19, %v3174_v32  ;;  %v3176_v45 = vadd.f32 %v10332_v5, %v3105_v24  ;;  %v9893_v54 = vld [vmem:[%s14155_s5 + $0x74] ss:$8 sps:$4 sm:$0xff]  }
 0x102   : > { %v10841_v2 = vmul.f32 %v10300_v40, %v10516_v47  ;;  %v3107_v17 = vmul.f32 %v10315_v51, %v10583_v35  ;;  %vm3237_vm1 = vcmp.gt.f32.partialorder %v3173_v11, 0.0  ;;  %v3308_v36 = vadd.f32 %v10347_v19, %v3173_v11  ;;  %14253 = vst [vmem:[#allocation16_spill] sm:$0xff] %v10846_v63  ;;  %2265 = vmatpush1.bf16.msra.mxu1 %v9892_v58 }
 0x103   : > { %v3106_v24 = vmul.f32 %v10315_v51, %v10563_v1  ;;  %v3373_v12 = vsel %vm3238_vm0, %v3309_v25, 0.0  ;;  %vm3240_vm3 = vcmp.gt.f32.partialorder %v3176_v45, 0.0  ;;  %v3311_v47 = vadd.f32 %v10347_v19, %v3176_v45  ;;  %2266 = vmatprep.subr.bf16.mxu1 %v9893_v54  ;;  %v10893_v54 = vld [vmem:[%s14158_s8] ss:$0 sm:$0xff] }
 0x104   : > { %v3444_v32 = vmul.f32 %v10375_v52, %v3373_v12  ;;  %v3372_v13 = vsel %vm3237_vm1, %v3308_v36, 0.0  ;;  %v3175_v26 = vadd.f32 %v10332_v5, %v3104_v21  ;;  %v1019_v11 = vadd.f32 %v10303_v43, %v10659_v7  ;;  %v9895_v5 = vld [vmem:[%s14155_s5 + $0x70] ss:$8 sps:$4 sm:$0xff]   ;;  %v10875_v12 = vpop.permute.xlu1 %755 }
 0x105   : > { %v3443_v28 = vmul.f32 %v10375_v52, %v3372_v13  ;;  %v3375_v51 = vsel %vm3240_vm3, %v3311_v47, 0.0  ;;  %v1021_v25 = vadd.f32 %v10303_v43, %v10638_v56  ;;  %v1024_v30 = vadd.f32 %v10308_v46, %v10721_v42  ;;  %14254 = vst [vmem:[#allocation17_spill] sm:$0xff] %v10875_v12 }
 0x106   : > { %v3571_v45 = vsel %vm3477_vm2, %v3444_v32, 0.0  ;;  %v3446_v31 = vmul.f32 %v10375_v52, %v3375_v51  ;;  %vm3239_vm4 = vcmp.gt.f32.partialorder %v3175_v26, 0.0  ;;  %v3310_v36 = vadd.f32 %v10347_v19, %v3175_v26  ;;  %2267 = vmatpush1.bf16.msra.mxu1 %v9895_v5 }
 0x107   : > { %3572 = vadd.xlane.f32.xlu0 %v3571_v45  ;;  %v3568_v7 = vsel %vm3477_vm2, %v3443_v28, 0.0  ;;  %v1147_v21 = vmax.f32 %v1019_v11, 0.0  ;;  %v1149_v56 = vmax.f32 %v1021_v25, 0.0  ;;  %v1026_v42 = vadd.f32 %v10308_v46, %v10707_v15  ;;  %v10885_v28 = vpop.permute.xlu0 %760  ;;  %v9896_v15 = vld [vmem:[%s14155_s5 + $0x84] ss:$8 sps:$4 sm:$0xff]  }
 0x108   : > { %v10879_v47 = vmul.f32 %v10294_v38, %v10532_v27  ;;  %v10883_v19 = vmul.f32 %v10300_v40, %v10532_v27  ;;  %3569 = vadd.xlane.f32.xlu1 %v3568_v7  ;;  %v3374_v58 = vsel %vm3239_vm4, %v3310_v36, 0.0  ;;  %v1152_v32 = vmax.f32 %v1024_v30, 0.0  ;;  %14255 = vst [vmem:[#allocation18_spill] sm:$0xff] %v10885_v28  ;;  %v10910_v45 = vld [vmem:[%s14159_s9] ss:$0 sm:$0xff]  ;;  %2268 = vmatprep.subr.bf16.mxu1 %v9896_v15 }
 0x109   : > { %v3109_v13 = vmul.f32 %v10893_v54, %v10613_v14  ;;  %v3445_v27 = vmul.f32 %v10375_v52, %v3374_v58  ;;  %v1255_v26 = vpack.c.bf16 %v1149_v56, %v1147_v21  ;;  %v1154_v11 = vmax.f32 %v1026_v42, 0.0  ;;  %v9898_v52 = vld [vmem:[%s14155_s5 + $0x80] ss:$8 sps:$4 sm:$0xff]  }
 0x10a   : > { %v10900_v51 = vmul.f32 %v10294_v38, %v10527_v10  ;;  %v10904_v25 = vmul.f32 %v10300_v40, %v10527_v10  ;;  %v3577_v30 = vsel %vm3477_vm2, %v3446_v31, 0.0  ;;  %v3178_v36 = vadd.f32 %v10910_v45, %v3107_v17  ;;  %v9899_v17 = vld [vmem:[%s14155_s5 + $0x94] ss:$8 sps:$4 sm:$0xff]   ;;  %v10934_v42 = vld [vmem:[%s14162_s12] ss:$0 sm:$0xff]  ;;  %2269 = vmatpush1.bf16.msra.mxu1 %v9898_v52 }
 0x10b   : > { %v10918_v7 = vmul.f32 %v10294_v38, %v10559_v57  ;;  %3578 = vadd.xlane.f32.xlu0 %v3577_v30  ;;  %v3574_v10 = vsel %vm3477_vm2, %v3445_v27, 0.0  ;;  %1636 = vmatmul.mubr.bf16.gmra.mrb[40].mxu0 %v1255_v26  ;;  %v1258_v31 = vpack.c.bf16 %v1154_v11, %v1152_v32  ;;  %v3177_v21 = vadd.f32 %v10910_v45, %v3106_v24  ;;  %v10942_v32 = vpop.permute.xlu1 %765  ;;  %v9902_v52 = vld [vmem:[%s14155_s5 + $0xa4] ss:$8 sps:$4 sm:$0xff]  }
 0x10c   : > { %v10927_v5 = vmul.f32 %v10300_v40, %v10559_v57  ;;  %v3108_v56 = vmul.f32 %v10893_v54, %v10590_v39  ;;  %3575 = vadd.xlane.f32.xlu1 %v3574_v10  ;;  %vm3242_vm5 = vcmp.gt.f32.partialorder %v3178_v36, 0.0  ;;  %v3313_v24 = vadd.f32 %v10934_v42, %v3178_v36  ;;  %14259 = vst [vmem:[#allocation22_spill] sm:$0xff] %v10942_v32  ;;  %v10953_v36 = vpop.permute.xlu0 %770  ;;  %v9901_v10 = vld [vmem:[%s14155_s5 + $0x90] ss:$8 sps:$4 sm:$0xff]  }
 0x10d   : > { %14256 = vst [vmem:[#allocation19_spill] sm:$0xff] %v10918_v7  ;;  %v10939_v58 = vmul.f32 %v10294_v38, %v10546_v33  ;;  %1645 = vmatprep.mubr.bf16.mxu0 %v1258_v31  ;;  %vm3241_vm6 = vcmp.gt.f32.partialorder %v3177_v21, 0.0  ;;  %v3312_v57 = vadd.f32 %v10934_v42, %v3177_v21  ;;  %v3180_v27 = vadd.f32 %v10910_v45, %v3109_v13  ;;  %v10961_v13 = vld [vmem:[%s14160_s10] ss:$0 sm:$0xff] }
 0x10e   : > { %14257 = vst [vmem:[#allocation20_spill] sm:$0xff] %v10927_v5  ;;  %v10947_v26 = vmul.f32 %v10300_v40, %v10546_v33  ;;  %v3111_v11 = vmul.f32 %v10893_v54, %v10655_v6  ;;  %v3110_v15 = vmul.f32 %v10893_v54, %v10618_v22  ;;  %v3377_v30 = vsel %vm3242_vm5, %v3313_v24, 0.0  ;;  %14260 = vst [vmem:[#allocation23_spill] sm:$0xff] %v10953_v36 }
 0x10f   : > { %14258 = vst [vmem:[#allocation21_spill] sm:$0xff] %v10939_v58  ;;  %v3448_v33 = vmul.f32 %v10961_v13, %v3377_v30  ;;  %v3376_v31 = vsel %vm3241_vm6, %v3312_v57, 0.0  ;;  %vm3244_vm7 = vcmp.gt.f32.partialorder %v3180_v27, 0.0  ;;  %v3315_v21 = vadd.f32 %v10934_v42, %v3180_v27  ;;  %2270 = vmatprep.subr.bf16.mxu1 %v9899_v17  ;;  %v10982_v5 = vpop.permute.xlu1 %775 }
 0x110   : > { %v3447_v24 = vmul.f32 %v10961_v13, %v3376_v31  ;;  %v3179_v37 = vadd.f32 %v10910_v45, %v3108_v56  ;;  %v1023_v34 = vadd.f32 %v10303_v43, %v10717_v23  ;;  %v1025_v7 = vadd.f32 %v10303_v43, %v10703_v55  ;;  %2271 = vmatpush1.bf16.msra.mxu1 %v9901_v10  ;;  %v10997_v10 = vpop.permute.xlu0 %780 }
 0x111   : > { %v3583_v57 = vsel %vm3477_vm2, %v3448_v33, 0.0  ;;  %v3379_v30 = vsel %vm3244_vm7, %v3315_v21, 0.0  ;;  %v1028_v17 = vadd.f32 %v10308_v46, %v10759_v20  ;;  %v1030_v27 = vadd.f32 %v10308_v46, %v10736_v59  ;;  %14261 = vst [vmem:[#allocation24_spill] sm:$0xff] %v10982_v5  ;;  %2272 = vmatprep.subr.bf16.mxu1 %v9902_v52  ;;  %v9904_v59 = vld [vmem:[%s14155_s5 + $0xa0] ss:$8 sps:$4 sm:$0xff]  }
 0x112   : > { %3584 = vadd.xlane.f32.xlu0 %v3583_v57  ;;  %v3580_v31 = vsel %vm3477_vm2, %v3447_v24, 0.0  ;;  %v3450_v56 = vmul.f32 %v10961_v13, %v3379_v30  ;;  %vm3243_vm8 = vcmp.gt.f32.partialorder %v3179_v37, 0.0  ;;  %v3314_v23 = vadd.f32 %v10934_v42, %v3179_v37 }
 0x113   : > { %3581 = vadd.xlane.f32.xlu1 %v3580_v31  ;;  %v1151_v55 = vmax.f32 %v1023_v34, 0.0  ;;  %v1153_v58 = vmax.f32 %v1025_v7, 0.0  ;;  %v1156_v33 = vmax.f32 %v1028_v17, 0.0  ;;  %v1158_v21 = vmax.f32 %v1030_v27, 0.0 }
 0x114   : > { %v10989_v20 = vmul.f32 %v10294_v38, %v10583_v35  ;;  %v10993_v37 = vmul.f32 %v10300_v40, %v10583_v35  ;;  %v3113_v34 = vmul.f32 %v10893_v54, %v10695_v0  ;;  %v3378_v7 = vsel %vm3243_vm8, %v3314_v23, 0.0  ;;  %v9905_v35 = vld [vmem:[%s14155_s5 + $0xb4] ss:$8 sps:$4 sm:$0xff]   ;;  %2273 = vmatpush1.bf16.msra.mxu1 %v9904_v59 }
 0x115   : > { %v11001_v52 = vmul.f32 %v10294_v38, %v10563_v1  ;;  %v3589_v24 = vsel %vm3477_vm2, %v3450_v56, 0.0  ;;  %v3449_v57 = vmul.f32 %v10961_v13, %v3378_v7  ;;  %v1257_v30 = vpack.c.bf16 %v1153_v58, %v1151_v55  ;;  %v9907_v7 = vld [vmem:[%s14155_s5 + $0xb0] ss:$8 sps:$4 sm:$0xff]   ;;  %2274 = vmatprep.subr.bf16.mxu1 %v9905_v35  ;;  %v9910_v35 = vld [vmem:[%s14155_s5 + $0xc0] ss:$8 sps:$4 sm:$0xff]  }
 0x116   : > { %v11010_v17 = vmul.f32 %v10300_v40, %v10563_v1  ;;  %v11014_v27 = vmul.f32 %v10294_v38, %v10613_v14  ;;  %3590 = vadd.xlane.f32.xlu0 %v3589_v24  ;;  %v1260_v31 = vpack.c.bf16 %v1158_v21, %v1156_v33  ;;  %v3182_v23 = vadd.f32 %v10910_v45, %v3111_v11 }
 0x117   : > { %v11019_v56 = vmul.f32 %v10300_v40, %v10613_v14  ;;  %v3112_v58 = vmul.f32 %v10893_v54, %v10663_v9  ;;  %v3586_v55 = vsel %vm3477_vm2, %v3449_v57, 0.0  ;;  %1646 = vmatmul.mubr.bf16.gmra.mrb[44].mxu0 %v1257_v30  ;;  %v3181_v1 = vadd.f32 %v10910_v45, %v3110_v15  ;;  %v9908_v15 = vld [vmem:[%s14155_s5 + $0xc4] ss:$8 sps:$4 sm:$0xff]   ;;  %v11044_v57 = vpop.permute.xlu1 %785 }
 0x118   : > { %v11030_v11 = vmul.f32 %v10294_v38, %v10590_v39  ;;  %3587 = vadd.xlane.f32.xlu1 %v3586_v55  ;;  %1655 = vmatprep.mubr.bf16.mxu0 %v1260_v31  ;;  %vm3246_vm9 = vcmp.gt.f32.partialorder %v3182_v23, 0.0  ;;  %v3317_v14 = vadd.f32 %v10934_v42, %v3182_v23  ;;  %v3184_v33 = vadd.f32 %v10910_v45, %v3113_v34  ;;  %v11049_v23 = vpop.permute.xlu0 %790 }
 0x119   : > { %v11039_v21 = vmul.f32 %v10300_v40, %v10590_v39  ;;  %v3115_v59 = vmul.f32 %v10893_v54, %v10741_v48  ;;  %vm3245_vm10 = vcmp.gt.f32.partialorder %v3181_v1, 0.0  ;;  %v3316_v24 = vadd.f32 %v10934_v42, %v3181_v1  ;;  %2275 = vmatpush1.bf16.msra.mxu1 %v9907_v7 }
 0x11a   : > { %v3114_v34 = vmul.f32 %v10893_v54, %v10699_v49  ;;  %v3381_v30 = vsel %vm3246_vm9, %v3317_v14, 0.0  ;;  %vm3248_vm11 = vcmp.gt.f32.partialorder %v3184_v33, 0.0  ;;  %v3319_v31 = vadd.f32 %v10934_v42, %v3184_v33  ;;  %2276 = vmatprep.subr.bf16.mxu1 %v9908_v15 }
 0x11b   : > { %v3452_v39 = vmul.f32 %v10961_v13, %v3381_v30  ;;  %v3380_v55 = vsel %vm3245_vm10, %v3316_v24, 0.0  ;;  %v3183_v48 = vadd.f32 %v10910_v45, %v3112_v58  ;;  %v1027_v1 = vadd.f32 %v10303_v43, %v10748_v18  ;;  %v9911_v58 = vld [vmem:[%s14155_s5 + $0xd4] ss:$8 sps:$4 sm:$0xff]  }
 0x11c   : > { %v3451_v14 = vmul.f32 %v10961_v13, %v3380_v55  ;;  %v3383_v49 = vsel %vm3248_vm11, %v3319_v31, 0.0  ;;  %v1029_v33 = vadd.f32 %v10303_v43, %v10730_v44  ;;  %v1032_v30 = vadd.f32 %v10308_v46, %v10813_v61  ;;  %v11088_v0 = vpop.permute.xlu0 %800 }
 0x11d   : > { %v3595_v18 = vsel %vm3477_vm2, %v3452_v39, 0.0  ;;  %v3454_v7 = vmul.f32 %v10961_v13, %v3383_v49  ;;  %vm3247_vm12 = vcmp.gt.f32.partialorder %v3183_v48, 0.0  ;;  %v3318_v24 = vadd.f32 %v10934_v42, %v3183_v48  ;;  %v11080_v48 = vpop.permute.xlu1 %795  ;;  %2277 = vmatpush1.bf16.msra.mxu1 %v9910_v35 }
 0x11e   : > { %3596 = vadd.xlane.f32.xlu0 %v3595_v18  ;;  %v3592_v31 = vsel %vm3477_vm2, %v3451_v14, 0.0  ;;  %v1155_v55 = vmax.f32 %v1027_v1, 0.0  ;;  %v1157_v44 = vmax.f32 %v1029_v33, 0.0  ;;  %v1034_v61 = vadd.f32 %v10308_v46, %v10798_v50  ;;  %v9913_v1 = vld [vmem:[%s14155_s5 + $0xd0] ss:$8 sps:$4 sm:$0xff]   ;;  %2278 = vmatprep.subr.bf16.mxu1 %v9911_v58 }
 0x11f   : > { %v11074_v15 = vmul.f32 %v10300_v40, %v10655_v6  ;;  %v11078_v39 = vmul.f32 %v10300_v40, %v10618_v22  ;;  %3593 = vadd.xlane.f32.xlu1 %v3592_v31  ;;  %v3382_v49 = vsel %vm3247_vm12, %v3318_v24, 0.0  ;;  %v1160_v9 = vmax.f32 %v1032_v30, 0.0  ;;  %v9914_v30 = vld [vmem:[%s14155_s5 + $0xe4] ss:$8 sps:$4 sm:$0xff]  }
 0x120   : > { %v3117_v50 = vmul.f32 %v10893_v54, %v10785_v60  ;;  %v3453_v14 = vmul.f32 %v10961_v13, %v3382_v49  ;;  %v1259_v33 = vpack.c.bf16 %v1157_v44, %v1155_v55  ;;  %v1162_v18 = vmax.f32 %v1034_v61, 0.0 }
 0x121   : > { %v3116_v35 = vmul.f32 %v10893_v54, %v10752_v16  ;;  %v11097_v24 = vmul.f32 %v10893_v54, %v10836_v3  ;;  %v3601_v31 = vsel %vm3477_vm2, %v3454_v7, 0.0  ;;  %v3186_v49 = vadd.f32 %v10910_v45, %v3115_v59  ;;  %2279 = vmatpush1.bf16.msra.mxu1 %v9913_v1 }
 0x122   : > { %v11103_v55 = vmul.f32 %v10893_v54, %v10790_v8  ;;  %3602 = vadd.xlane.f32.xlu0 %v3601_v31  ;;  %v3598_v58 = vsel %vm3477_vm2, %v3453_v14, 0.0  ;;  %1656 = vmatmul.mubr.bf16.gmra.mrb[48].mxu0 %v1259_v33  ;;  %v1262_v44 = vpack.c.bf16 %v1162_v18, %v1160_v9  ;;  %v3185_v61 = vadd.f32 %v10910_v45, %v3114_v34  ;;  %v9916_v14 = vld [vmem:[%s14155_s5 + $0xe0] ss:$8 sps:$4 sm:$0xff]   ;;  %v9917_v18 = vld [vmem:[%s14155_s5 + $0xf4] ss:$8 sps:$4 sm:$0xff]  }
 0x123   : > { %v11109_v16 = vmul.f32 %v10893_v54, %v10875_v12  ;;  %v11113_v7 = vmul.f32 %v10893_v54, %v10846_v63  ;;  %3599 = vadd.xlane.f32.xlu1 %v3598_v58  ;;  %vm3250_vm13 = vcmp.gt.f32.partialorder %v3186_v49, 0.0  ;;  %v3321_v59 = vadd.f32 %v10934_v42, %v3186_v49  ;;  %2280 = vmatprep.subr.bf16.mxu1 %v9914_v30 }
 0x124   : > { %v11121_v9 = vmul.f32 %v10893_v54, %v10942_v32  ;;  %1665 = vmatprep.mubr.bf16.mxu0 %v1262_v44  ;;  %vm3249_vm14 = vcmp.gt.f32.partialorder %v3185_v61, 0.0  ;;  %v3320_v34 = vadd.f32 %v10934_v42, %v3185_v61  ;;  %v3188_v33 = vadd.f32 %v10910_v45, %v3117_v50  ;;  %v11140_v44 = vpop.permute.xlu1 %805  ;;  %v11144_v32 = vpop.permute.xlu0 %810 }
 0x125   : > { %v11130_v1 = vmul.f32 %v10893_v54, %v10885_v28  ;;  %v11134_v31 = vmul.f32 %v10893_v54, %v10982_v5  ;;  %v11138_v49 = vmul.f32 %v10893_v54, %v10953_v36  ;;  %v3385_v58 = vsel %vm3250_vm13, %v3321_v59, 0.0  ;;  %14262 = vst [vmem:[#allocation25_spill] sm:$0xff] %v11144_v32  ;;  %2281 = vmatpush1.bf16.msra.mxu1 %v9916_v14 }
 0x126   : > { %v3456_v50 = vmul.f32 %v10961_v13, %v3385_v58  ;;  %v3384_v30 = vsel %vm3249_vm14, %v3320_v34, 0.0  ;;  %vm3252_vm15 = vcmp.gt.f32.partialorder %v3188_v33, 0.0  ;;  %v3323_v61 = vadd.f32 %v10934_v42, %v3188_v33  ;;  %v9919_v34 = vld [vmem:[%s14155_s5 + $0xf0] ss:$8 sps:$4 sm:$0xff]   ;;  %2282 = vmatprep.subr.bf16.mxu1 %v9917_v18 }
 0x127   : > { %v3455_v28 = vmul.f32 %v10961_v13, %v3384_v30  ;;  %v3187_v5 = vadd.f32 %v10910_v45, %v3116_v35  ;;  %v1031_v63 = vadd.f32 %v10303_v43, %v10804_v62  ;;  %v1033_v59 = vadd.f32 %v10303_v43, %v10794_v4 }
 0x128   : > { %v3607_v58 = vsel %vm3477_vm2, %v3456_v50, 0.0  ;;  %v3387_v33 = vsel %vm3252_vm15, %v3323_v61, 0.0  ;;  %v1036_v36 = vadd.f32 %v10308_v46, %v10841_v2  ;;  %v1038_v35 = vadd.f32 %v10308_v46, %v10825_v53 }
 0x129   : > { %3608 = vadd.xlane.f32.xlu0 %v3607_v58  ;;  %v3604_v62 = vsel %vm3477_vm2, %v3455_v28, 0.0  ;;  %v3458_v4 = vmul.f32 %v10961_v13, %v3387_v33  ;;  %vm3251_vm0 = vcmp.gt.f32.partialorder %v3187_v5, 0.0  ;;  %v3322_v14 = vadd.f32 %v10934_v42, %v3187_v5  ;;  %v11175_v58 = vpop.permute.xlu1 %815  ;;  %2283 = vmatpush1.bf16.msra.mxu1 %v9919_v34  ;;  %v11183_v33 = vpop.permute.xlu0 %820 }
 0x12a   : > { %3605 = vadd.xlane.f32.xlu1 %v3604_v62  ;;  %v1159_v30 = vmax.f32 %v1031_v63, 0.0  ;;  %v1161_v12 = vmax.f32 %v1033_v59, 0.0  ;;  %v1164_v50 = vmax.f32 %v1036_v36, 0.0  ;;  %v1166_v61 = vmax.f32 %v1038_v35, 0.0  ;;  %14263 = vst [vmem:[#allocation26_spill] sm:$0xff] %v11175_v58  ;;  %14264 = vst [vmem:[#allocation27_spill] sm:$0xff] %v11183_v33 }
 0x12b   : > { %v11165_v2 = vmul.f32 %v10893_v54, %v11044_v57  ;;  %v11169_v53 = vmul.f32 %v10893_v54, %v10997_v10  ;;  %v11173_v28 = vmul.f32 %v10893_v54, %v11080_v48  ;;  %v3386_v18 = vsel %vm3251_vm0, %v3322_v14, 0.0 }
 0x12c   : > { %v11179_v63 = vmul.f32 %v10893_v54, %v11049_v23  ;;  %v3613_v5 = vsel %vm3477_vm2, %v3458_v4, 0.0  ;;  %v3457_v36 = vmul.f32 %v10961_v13, %v3386_v18  ;;  %v1261_v59 = vpack.c.bf16 %v1161_v12, %v1159_v30 }
 0x12d   : > { %v11187_v35 = vmul.f32 %v10893_v54, %v11140_v44  ;;  %3614 = vadd.xlane.f32.xlu0 %v3613_v5  ;;  %v11191_v62 = vmul.f32 %v10893_v54, %v11088_v0  ;;  %v1264_v34 = vpack.c.bf16 %v1166_v61, %v1164_v50  ;;  %v3190_v14 = vadd.f32 %v10910_v45, %v11097_v24 }
 0x12e   : > { %v3610_v4 = vsel %vm3477_vm2, %v3457_v36, 0.0  ;;  %1666 = vmatmul.mubr.bf16.gmra.mrb[52].mxu0 %v1261_v59  ;;  %v11198_v12 = vmul.f32 %v10893_v54, %v11175_v58  ;;  %v3189_v30 = vadd.f32 %v10910_v45, %v11103_v55  ;;  %v3192_v18 = vadd.f32 %v10910_v45, %v11109_v16 }
 0x12f   : > { %3611 = vadd.xlane.f32.xlu1 %v3610_v4  ;;  %1675 = vmatprep.mubr.bf16.mxu0 %v1264_v34  ;;  %vm3254_vm1 = vcmp.gt.f32.partialorder %v3190_v14, 0.0  ;;  %v3325_v50 = vadd.f32 %v10934_v42, %v3190_v14  ;;  %v11207_v24 = vmul.f32 %v10893_v54, %v11144_v32  ;;  %v11211_v61 = vmul.f32 %v10893_v54, %v11183_v33 }
 0x130   : > { %vm3253_vm3 = vcmp.gt.f32.partialorder %v3189_v30, 0.0  ;;  %v3324_v5 = vadd.f32 %v10934_v42, %v3189_v30  ;;  %vm3256_vm4 = vcmp.gt.f32.partialorder %v3192_v18, 0.0  ;;  %v3327_v55 = vadd.f32 %v10934_v42, %v3192_v18 }
 0x131   : > { %v3389_v16 = vsel %vm3254_vm1, %v3325_v50, 0.0  ;;  %v3191_v36 = vadd.f32 %v10910_v45, %v11113_v7  ;;  %v1035_v59 = vadd.f32 %v10303_v43, %v10833_v29  ;;  %v1037_v34 = vadd.f32 %v10303_v43, %v10817_v41 }
 0x132   : > { %v3460_v14 = vmul.f32 %v10961_v13, %v3389_v16  ;;  %v3388_v54 = vsel %vm3253_vm3, %v3324_v5, 0.0  ;;  %v3391_v4 = vsel %vm3256_vm4, %v3327_v55, 0.0  ;;  %v1040_v30 = vadd.f32 %v10308_v46, %v10904_v25 }
 0x133   : > { %v3459_v33 = vmul.f32 %v10961_v13, %v3388_v54  ;;  %v3462_v18 = vmul.f32 %v10961_v13, %v3391_v4  ;;  %vm3255_vm5 = vcmp.gt.f32.partialorder %v3191_v36, 0.0  ;;  %v3326_v7 = vadd.f32 %v10934_v42, %v3191_v36 }
 0x134   : > { %v3619_v50 = vsel %vm3477_vm2, %v3460_v14, 0.0  ;;  %v1163_v29 = vmax.f32 %v1035_v59, 0.0  ;;  %v1165_v32 = vmax.f32 %v1037_v34, 0.0  ;;  %v1042_v41 = vadd.f32 %v10308_v46, %v10883_v19 }
 0x135   : > { %3620 = vadd.xlane.f32.xlu0 %v3619_v50  ;;  %v3616_v5 = vsel %vm3477_vm2, %v3459_v33, 0.0  ;;  %v3625_v55 = vsel %vm3477_vm2, %v3462_v18, 0.0  ;;  %v3390_v25 = vsel %vm3255_vm5, %v3326_v7, 0.0  ;;  %v1168_v16 = vmax.f32 %v1040_v30, 0.0 }
 0x136   : > { %3617 = vadd.xlane.f32.xlu1 %v3616_v5  ;;  %v3461_v54 = vmul.f32 %v10961_v13, %v3390_v25  ;;  %v1263_v4 = vpack.c.bf16 %v1165_v32, %v1163_v29  ;;  %v1170_v58 = vmax.f32 %v1042_v41, 0.0  ;;  %v3194_v36 = vadd.f32 %v10910_v45, %v11121_v9 }
 0x137   : > { %v3193_v59 = vadd.f32 %v10910_v45, %v11130_v1  ;;  %v3196_v19 = vadd.f32 %v10910_v45, %v11134_v31  ;;  %v3195_v33 = vadd.f32 %v10910_v45, %v11138_v49  ;;  %v1039_v34 = vadd.f32 %v10303_v43, %v10900_v51 }
 0x138   : > { %v3622_v14 = vsel %vm3477_vm2, %v3461_v54, 0.0  ;;  %1676 = vmatmul.mubr.bf16.gmra.mrb[56].mxu0 %v1263_v4  ;;  %v1266_v32 = vpack.c.bf16 %v1170_v58, %v1168_v16  ;;  %vm3258_vm6 = vcmp.gt.f32.partialorder %v3194_v36, 0.0  ;;  %v3329_v30 = vadd.f32 %v10934_v42, %v3194_v36  ;;  %v14265_v4 = vld [vmem:[#allocation20_spill] sm:$0xff] }
 0x139   : > { %3626 = vadd.xlane.f32.xlu0 %v3625_v55  ;;  %vm3257_vm7 = vcmp.gt.f32.partialorder %v3193_v59, 0.0  ;;  %v3328_v9 = vadd.f32 %v10934_v42, %v3193_v59  ;;  %vm3260_vm8 = vcmp.gt.f32.partialorder %v3196_v19, 0.0  ;;  %v3331_v1 = vadd.f32 %v10934_v42, %v3196_v19 }
 0x13a   : > { %3623 = vadd.xlane.f32.xlu1 %v3622_v14  ;;  %1685 = vmatprep.mubr.bf16.mxu0 %v1266_v32  ;;  %v3393_v31 = vsel %vm3258_vm6, %v3329_v30, 0.0  ;;  %vm3259_vm9 = vcmp.gt.f32.partialorder %v3195_v33, 0.0  ;;  %v3330_v51 = vadd.f32 %v10934_v42, %v3195_v33  ;;  %v1041_v49 = vadd.f32 %v10303_v43, %v10879_v47 }
 0x13b   : > { %v3464_v58 = vmul.f32 %v10961_v13, %v3393_v31  ;;  %v3392_v18 = vsel %vm3257_vm7, %v3328_v9, 0.0  ;;  %v3395_v7 = vsel %vm3260_vm8, %v3331_v1, 0.0  ;;  %v1167_v50 = vmax.f32 %v1039_v34, 0.0 }
 0x13c   : > { %v3463_v29 = vmul.f32 %v10961_v13, %v3392_v18  ;;  %v3466_v41 = vmul.f32 %v10961_v13, %v3395_v7  ;;  %v3394_v5 = vsel %vm3259_vm9, %v3330_v51, 0.0  ;;  %v1169_v55 = vmax.f32 %v1041_v49, 0.0  ;;  %v14266_v49 = vld [vmem:[#allocation21_spill] sm:$0xff] }
 0x13d   : > { %v3631_v25 = vsel %vm3477_vm2, %v3464_v58, 0.0  ;;  %v3465_v16 = vmul.f32 %v10961_v13, %v3394_v5  ;;  %v1044_v54 = vadd.f32 %v10308_v46, %v10947_v26  ;;  %v1046_v47 = vadd.f32 %v10308_v46, %v14265_v4 }
 0x13e   : > { %3632 = vadd.xlane.f32.xlu0 %v3631_v25  ;;  %v3628_v36 = vsel %vm3477_vm2, %v3463_v29, 0.0  ;;  %v3637_v59 = vsel %vm3477_vm2, %v3466_v41, 0.0  ;;  %v1265_v19 = vpack.c.bf16 %v1169_v55, %v1167_v50  ;;  %v3198_v33 = vadd.f32 %v10910_v45, %v11165_v2  ;;  %v14267_v50 = vld [vmem:[#allocation19_spill] sm:$0xff] }
 0x13f   : > { %3629 = vadd.xlane.f32.xlu1 %v3628_v36  ;;  %v3634_v14 = vsel %vm3477_vm2, %v3465_v16, 0.0  ;;  %v1172_v32 = vmax.f32 %v1044_v54, 0.0  ;;  %v1174_v30 = vmax.f32 %v1046_v47, 0.0  ;;  %v3197_v26 = vadd.f32 %v10910_v45, %v11169_v53 }
 0x140   : > { %1686 = vmatmul.mubr.bf16.gmra.mrb[60].mxu0 %v1265_v19  ;;  %vm3262_vm10 = vcmp.gt.f32.partialorder %v3198_v33, 0.0  ;;  %v3333_v9 = vadd.f32 %v10934_v42, %v3198_v33  ;;  %v3200_v1 = vadd.f32 %v10910_v45, %v11173_v28  ;;  %v3199_v2 = vadd.f32 %v10910_v45, %v11179_v63 }
 0x141   : > { %v1268_v31 = vpack.c.bf16 %v1174_v30, %v1172_v32  ;;  %vm3261_vm11 = vcmp.gt.f32.partialorder %v3197_v26, 0.0  ;;  %v3332_v51 = vadd.f32 %v10934_v42, %v3197_v26  ;;  %v1043_v58 = vadd.f32 %v10303_v43, %v14266_v49 }
 0x142   : > { %3638 = vadd.xlane.f32.xlu0 %v3637_v59  ;;  %v3397_v18 = vsel %vm3262_vm10, %v3333_v9, 0.0  ;;  %vm3264_vm12 = vcmp.gt.f32.partialorder %v3200_v1, 0.0  ;;  %v3335_v53 = vadd.f32 %v10934_v42, %v3200_v1  ;;  %vm3263_vm13 = vcmp.gt.f32.partialorder %v3199_v2, 0.0 }
 0x143   : > { %3635 = vadd.xlane.f32.xlu1 %v3634_v14  ;;  %1695 = vmatprep.mubr.bf16.mxu0 %v1268_v31  ;;  %v3468_v28 = vmul.f32 %v10961_v13, %v3397_v18  ;;  %v3396_v7 = vsel %vm3261_vm11, %v3332_v51, 0.0  ;;  %v3334_v63 = vadd.f32 %v10934_v42, %v3199_v2  ;;  %v1045_v29 = vadd.f32 %v10303_v43, %v14267_v50 }
 0x144   : > { %v3467_v41 = vmul.f32 %v10961_v13, %v3396_v7  ;;  %v3399_v5 = vsel %vm3264_vm12, %v3335_v53, 0.0  ;;  %v1171_v55 = vmax.f32 %v1043_v58, 0.0  ;;  %v1048_v25 = vadd.f32 %v10308_v46, %v11010_v17 }
 0x145   : > { %v3643_v54 = vsel %vm3477_vm2, %v3468_v28, 0.0  ;;  %v3470_v4 = vmul.f32 %v10961_v13, %v3399_v5  ;;  %v3398_v47 = vsel %vm3263_vm13, %v3334_v63, 0.0  ;;  %v1173_v36 = vmax.f32 %v1045_v29, 0.0 }
 0x146   : > { %3644 = vadd.xlane.f32.xlu0 %v3643_v54  ;;  %v3640_v59 = vsel %vm3477_vm2, %v3467_v41, 0.0  ;;  %v3469_v19 = vmul.f32 %v10961_v13, %v3398_v47  ;;  %v1050_v33 = vadd.f32 %v10308_v46, %v10993_v37  ;;  %v1176_v14 = vmax.f32 %v1048_v25, 0.0 }
 0x147   : > { %3641 = vadd.xlane.f32.xlu1 %v3640_v59  ;;  %v3649_v17 = vsel %vm3477_vm2, %v3470_v4, 0.0  ;;  %v1267_v32 = vpack.c.bf16 %v1173_v36, %v1171_v55  ;;  %v3202_v30 = vadd.f32 %v10910_v45, %v11187_v35  ;;  %v3201_v26 = vadd.f32 %v10910_v45, %v11191_v62 }
 0x148   : > { %v3646_v9 = vsel %vm3477_vm2, %v3469_v19, 0.0  ;;  %v1178_v1 = vmax.f32 %v1050_v33, 0.0  ;;  %v3204_v2 = vadd.f32 %v10910_v45, %v11198_v12  ;;  %v3203_v37 = vadd.f32 %v10910_v45, %v11207_v24 }
 0x149   : > { %1696 = vmatmul.mubr.bf16.gmra.mrb[64].mxu0 %v1267_v32  ;;  %vm3266_vm14 = vcmp.gt.f32.partialorder %v3202_v30, 0.0  ;;  %v3337_v31 = vadd.f32 %v10934_v42, %v3202_v30  ;;  %vm3265_vm15 = vcmp.gt.f32.partialorder %v3201_v26, 0.0  ;;  %v3336_v51 = vadd.f32 %v10934_v42, %v3201_v26 }
 0x14a   : > { %v11263_v34 = vpop.xlane.xlu1 %3479  ;;  %3650 = vadd.xlane.f32.xlu0 %v3649_v17  ;;  %v1270_v35 = vpack.c.bf16 %v1178_v1, %v1176_v14  ;;  %vm3268_vm0 = vcmp.gt.f32.partialorder %v3204_v2, 0.0  ;;  %v3339_v62 = vadd.f32 %v10934_v42, %v3204_v2  ;;  %vm3267_vm1 = vcmp.gt.f32.partialorder %v3203_v37, 0.0  ;;  %v14269_v2 = vld [vmem:[#allocation11_spill] sm:$0xff] }
 0x14b   : > { %3647 = vadd.xlane.f32.xlu1 %v3646_v9  ;;  %v3401_v12 = vsel %vm3266_vm14, %v3337_v31, 0.0  ;;  %v3400_v58 = vsel %vm3265_vm15, %v3336_v51, 0.0  ;;  %v3338_v24 = vadd.f32 %v10934_v42, %v3203_v37  ;;  %v1047_v18 = vadd.f32 %v10303_v43, %v11001_v52  ;;  %v14268_v9 = vld [vmem:[#allocation12_spill] sm:$0xff] }
 0x14c   : > { %1705 = vmatprep.mubr.bf16.mxu0 %v1270_v35  ;;  %v3472_v53 = vmul.f32 %v10961_v13, %v3401_v12  ;;  %v3471_v28 = vmul.f32 %v10961_v13, %v3400_v58  ;;  %v3403_v7 = vsel %vm3268_vm0, %v3339_v62, 0.0  ;;  %v1049_v63 = vadd.f32 %v10303_v43, %v10989_v20 }
 0x14d   : > { %v3474_v50 = vmul.f32 %v10961_v13, %v3403_v7  ;;  %v3402_v29 = vsel %vm3267_vm1, %v3338_v24, 0.0  ;;  %v1175_v41 = vmax.f32 %v1047_v18, 0.0  ;;  %v1052_v5 = vadd.f32 %v10308_v46, %v11039_v21 }
 0x14e   : > { %v11284_v16 = vpop.xlane.xlu1 %3485  ;;  %v3655_v55 = vsel %vm3477_vm2, %v3472_v53, 0.0  ;;  %v3652_v52 = vsel %vm3477_vm2, %v3471_v28, 0.0  ;;  %v3473_v25 = vmul.f32 %v10961_v13, %v3402_v29  ;;  %v1177_v54 = vmax.f32 %v1049_v63, 0.0  ;;  %v14272_v63 = vld [vmem:[#allocation14_spill] sm:$0xff]  ;;  %v14273_v29 = vld [vmem:[#allocation13_spill] sm:$0xff] }
 0x14f   : > { %3656 = vadd.xlane.f32.xlu0 %v3655_v55  ;;  %3653 = vadd.xlane.f32.xlu1 %v3652_v52  ;;  %v1054_v4 = vadd.f32 %v10308_v46, %v11019_v56  ;;  %v1180_v20 = vmax.f32 %v1052_v5, 0.0  ;;  %v3205_v47 = vadd.f32 %v10910_v45, %v11211_v61  ;;  %v1051_v21 = vadd.f32 %v10303_v43, %v11030_v11 }
 0x150   : > { %v1269_v36 = vpack.c.bf16 %v1177_v54, %v1175_v41  ;;  %v1053_v59 = vadd.f32 %v10303_v43, %v11014_v27  ;;  %v1056_v56 = vadd.f32 %v10308_v46, %v11078_v39  ;;  %v3661_v17 = vsel %vm3477_vm2, %v3474_v50, 0.0 }
 0x151   : > { %v1182_v33 = vmax.f32 %v1054_v4, 0.0  ;;  %vm3269_vm3 = vcmp.gt.f32.partialorder %v3205_v47, 0.0  ;;  %v3340_v14 = vadd.f32 %v10934_v42, %v3205_v47  ;;  %v3658_v45 = vsel %vm3477_vm2, %v3473_v25, 0.0 }
 0x152   : > { %v11305_v49 = vpop.xlane.xlu1 %3491  ;;  %1706 = vmatmul.mubr.bf16.gmra.mrb[68].mxu0 %v1269_v36  ;;  %v1058_v11 = vadd.f32 %v10308_v46, %v11074_v15  ;;  %v917_v27 = vmul.f32 %v10294_v38, %v10655_v6  ;;  %v915_v42 = vmul.f32 %v10294_v38, %v10618_v22  ;;  %v1179_v30 = vmax.f32 %v1051_v21, 0.0 }
 0x153   : > { %3662 = vadd.xlane.f32.xlu0 %v3661_v17  ;;  %3659 = vadd.xlane.f32.xlu1 %v3658_v45  ;;  %v1272_v61 = vpack.c.bf16 %v1182_v33, %v1180_v20  ;;  %v3404_v32 = vsel %vm3269_vm3, %v3340_v14, 0.0  ;;  %v1181_v26 = vmax.f32 %v1053_v59, 0.0  ;;  %v922_v1 = vmul.f32 %v10300_v40, %v14268_v9  ;;  %v14275_v17 = vld [vmem:[#allocation15_spill] sm:$0xff] }
 0x154   : > { %v3475_v39 = vmul.f32 %v10961_v13, %v3404_v32  ;;  %v920_v15 = vmul.f32 %v10300_v40, %v14269_v2  ;;  %v1184_v37 = vmax.f32 %v1056_v56, 0.0  ;;  %v1186_v6 = vmax.f32 %v1058_v11, 0.0  ;;  %v506_v11 = vld [vmem:[%s10135_s25 + $0x1f8] sm:$0xff]  ;;  %s9928_s25 = scalar_lea.vmem %s14110_s18, 64 }
 0x155   : > { %1715 = vmatprep.mubr.bf16.mxu0 %v1272_v61  ;;  %v1271_v35 = vpack.c.bf16 %v1181_v26, %v1179_v30  ;;  %v1055_v22 = vadd.f32 %v10303_v43, %v915_v42  ;;  %v1057_v13 = vadd.f32 %v10303_v43, %v917_v27  ;;  %v1062_v58 = vadd.f32 %v10308_v46, %v922_v1  ;;  %v3734_v26 = vld [vmem:[#allocation2] sm:$0x1]  ;;  %p9929_p11 = scmp.ne.s32.totalorder %s14110_s18, %s9928_s25  ;;  %p9936_p1 = scmp.lt.s32.totalorder %s9934_s14, %s9928_s25 }
 0x156   : > { %v11328_v19 = vpop.xlane.xlu1 %3497  ;;  %v3664_v51 = vsel %vm3477_vm2, %v3475_v39, 0.0  ;;  %v1274_v62 = vpack.c.bf16 %v1186_v6, %v1184_v37  ;;  %v1060_v12 = vadd.f32 %v10308_v46, %v920_v15  ;;  %v921_v18 = vmul.f32 %v10294_v38, %v14268_v9 }
 0x157   : > { %3665 = vadd.xlane.f32.xlu1 %v3664_v51  ;;  %v919_v53 = vmul.f32 %v10294_v38, %v14269_v2  ;;  %v1183_v28 = vmax.f32 %v1055_v22, 0.0  ;;  %v1185_v7 = vmax.f32 %v1057_v13, 0.0  ;;  %v926_v50 = vmul.f32 %v10300_v40, %v14272_v63  ;;  %p9930_p12 = pnand %p9929_p11, %p10103_p5  ;;  %p9937_p2 = por %p9936_p1, %p9935_p0 }
 0x158   : > { %v924_v41 = vmul.f32 %v10300_v40, %v14273_v29  ;;  %v1188_v5 = vmax.f32 %v1060_v12, 0.0  ;;  %v1190_v55 = vmax.f32 %v1062_v58, 0.0  ;;  %v1061_v54 = vadd.f32 %v10303_v43, %v921_v18 }
 0x159   : > { %v1273_v52 = vpack.c.bf16 %v1185_v7, %v1183_v28  ;;  %v1059_v25 = vadd.f32 %v10303_v43, %v919_v53  ;;  %v1066_v47 = vadd.f32 %v10308_v46, %v926_v50  ;;  %v925_v21 = vmul.f32 %v10294_v38, %v14272_v63  ;;  %v1331_v53 = vld [vmem:[%s14154_s4] sm:$0x3]  ;;  %p9931_p13 = pneg %p9930_p12 }
 0x15a   : > { %v11346_v31 = vpop.xlane.xlu1 %3503  ;;  %1716 = vmatmul.mubr.bf16.gmra.mrb[72].mxu0 %v1271_v35  ;;  %v1276_v4 = vpack.c.bf16 %v1190_v55, %v1188_v5  ;;  %v1064_v20 = vadd.f32 %v10308_v46, %v924_v41  ;;  %v923_v59 = vmul.f32 %v10294_v38, %v14273_v29  ;;  %v1189_v14 = vmax.f32 %v1061_v54, 0.0  ;;  %v14279_v41 = vld [vmem:[#allocation9_spill] sm:$0xff]  ;;  %v14280_v54 = vld [vmem:[#allocation10_spill] sm:$0xff] }
 0x15b   : > { %14270 = vst [vmem:[#allocation20_spill] sm:$0xff] %v11346_v31  ;;  %1725 = vmatprep.mubr.bf16.mxu0 %v1274_v62  ;;  %v1187_v33 = vmax.f32 %v1059_v25, 0.0  ;;  %v930_v56 = vmul.f32 %v10300_v40, %v10785_v60  ;;  %v928_v45 = vmul.f32 %v10300_v40, %v14275_v17  ;;  %v1194_v61 = vmax.f32 %v1066_v47, 0.0  ;;  %p9938_p3 = pnand %p9937_p2, %p9931_p13 }
 0x15c   : > { %v1192_v27 = vmax.f32 %v1064_v20, 0.0  ;;  %v1063_v39 = vadd.f32 %v10303_v43, %v923_v59  ;;  %v1065_v30 = vadd.f32 %v10303_v43, %v925_v21  ;;  %v929_v15 = vmul.f32 %v10294_v38, %v10785_v60  ;;  %v14281_v20 = vld [vmem:[#allocation17_spill] sm:$0xff]  ;;  %v14282_v21 = vld [vmem:[#allocation16_spill] sm:$0xff] }
 0x15d   : > { %v1275_v42 = vpack.c.bf16 %v1189_v14, %v1187_v33  ;;  %v1068_v1 = vadd.f32 %v10308_v46, %v928_v45  ;;  %v1070_v2 = vadd.f32 %v10308_v46, %v930_v56  ;;  %v927_v37 = vmul.f32 %v10294_v38, %v14275_v17 }
 0x15e   : > { %v11353_v24 = vpop.xlane.xlu1 %3509  ;;  %v1278_v9 = vpack.c.bf16 %v1194_v61, %v1192_v27  ;;  %v1191_v6 = vmax.f32 %v1063_v39, 0.0  ;;  %v1193_v51 = vmax.f32 %v1065_v30, 0.0  ;;  %v934_v22 = vmul.f32 %v10300_v40, %v10836_v3 }
 0x15f   : > { %14271 = vst [vmem:[#allocation21_spill] sm:$0xff] %v11353_v24  ;;  %v932_v13 = vmul.f32 %v10300_v40, %v10790_v8  ;;  %v1196_v62 = vmax.f32 %v1068_v1, 0.0  ;;  %v1198_v12 = vmax.f32 %v1070_v2, 0.0  ;;  %v1067_v18 = vadd.f32 %v10303_v43, %v927_v37 }
 0x160   : > { %v1277_v58 = vpack.c.bf16 %v1193_v51, %v1191_v6  ;;  %v1069_v60 = vadd.f32 %v10303_v43, %v929_v15  ;;  %v1074_v63 = vadd.f32 %v10308_v46, %v934_v22  ;;  %v933_v29 = vmul.f32 %v10294_v38, %v10836_v3  ;;  %v14284_v6 = vld [vmem:[#allocation22_spill] sm:$0xff] }
 0x161   : > { %v1280_v28 = vpack.c.bf16 %v1198_v12, %v1196_v62  ;;  %v1072_v7 = vadd.f32 %v10308_v46, %v932_v13  ;;  %v11406_v5 = vrot.slane %v1331_v53, %v14279_v41  ;;  %v931_v55 = vmul.f32 %v10294_v38, %v10790_v8 }
 0x162   : > { %v11367_v36 = vpop.xlane.xlu1 %3515  ;;  %1726 = vmatmul.mubr.bf16.gmra.mrb[76].mxu0 %v1273_v52  ;;  %v1195_v52 = vmax.f32 %v1067_v18, 0.0  ;;  %v1197_v25 = vmax.f32 %v1069_v60, 0.0  ;;  %v938_v47 = vmul.f32 %v10300_v40, %v14281_v20  ;;  %v936_v59 = vmul.f32 %v10300_v40, %v14282_v21  ;;  %v14285_v60 = vld [vmem:[#allocation18_spill] sm:$0xff] }
 0x163   : > { %14274 = vst [vmem:[#allocation19_spill] sm:$0xff] %v11367_v36  ;;  %1735 = vmatprep.mubr.bf16.mxu0 %v1276_v4  ;;  %v11411_v4 = vrot.slane %v1331_v53, %v14280_v54  ;;  %v1200_v33 = vmax.f32 %v1072_v7, 0.0  ;;  %v1202_v3 = vmax.f32 %v1074_v63, 0.0  ;;  %v1071_v8 = vadd.f32 %v10303_v43, %v931_v55 }
 0x164   : > { %v1279_v45 = vpack.c.bf16 %v1197_v25, %v1195_v52  ;;  %v1076_v30 = vadd.f32 %v10308_v46, %v936_v59  ;;  %v937_v2 = vmul.f32 %v10294_v38, %v14281_v20  ;;  %v935_v37 = vmul.f32 %v10294_v38, %v14282_v21 }
 0x165   : > { %v1282_v39 = vpack.c.bf16 %v1202_v3, %v1200_v33  ;;  %v942_v51 = vmul.f32 %v10300_v40, %v14284_v6  ;;  %v1199_v62 = vmax.f32 %v1071_v8, 0.0  ;;  %v940_v53 = vmul.f32 %v10300_v40, %v14285_v60 }
 0x166   : > { %v1075_v21 = vadd.f32 %v10303_v43, %v935_v37  ;;  %v1077_v59 = vadd.f32 %v10303_v43, %v937_v2  ;;  %vm9266_vm5 = vcmask 195712   ;;  %vm9273_vm6 = vcmask 261312  }
 0x167   : > { %v11378_v32 = vpop.xlane.xlu1 %3521  ;;  %vm9280_vm7 = vcmask 326912   ;;  %vm9287_vm8 = vcmask 392512   ;;  %vm9294_vm9 = vcmask 458112   ;;  %vm9301_vm10 = vcmask 523712  }
 0x168   : > { %14276 = vst [vmem:[#allocation12_spill] sm:$0xff] %v11378_v32  ;;  %825 = vperm.xlu1 %9823, %v506_v11   ;;  %v1073_v11 = vadd.f32 %v10303_v43, %v933_v29  ;;  %v1203_v2 = vmax.f32 %v1075_v21, 0.0  ;;  %vm9308_vm11 = vcmask 589312   ;;  %vm9315_vm12 = vcmask 654912  }
 0x169   : > { %vm9322_vm13 = vcmask 720512   ;;  %vm9329_vm14 = vcmask 786112   ;;  %vm9336_vm15 = vcmask 851712   ;;  %vm9343_vm0 = vcmask 917312  }
 0x16a   : > { %1736 = vmatmul.mubr.bf16.gmra.mrb[80].mxu0 %v1275_v42  ;;  %v1201_v12 = vmax.f32 %v1073_v11, 0.0  ;;  %v941_v11 = vmul.f32 %v10294_v38, %v14284_v6  ;;  %vm9350_vm1 = vcmask 982912   ;;  %vm9357_vm3 = vcmask 1048512  }
 0x16b   : > { %1745 = vmatprep.mubr.bf16.mxu0 %v1278_v9  ;;  %v11388_v35 = vpop.xlane.xlu1 %3527 }
 0x16c   : > { %3737 = vperm.xlu1 %9823, %v3734_v26   ;;  %14277 = vst [vmem:[#allocation11_spill] sm:$0xff] %v11388_v35  ;;  %v1078_v26 = vadd.f32 %v10308_v46, %v938_v47  ;;  %v1281_v47 = vpack.c.bf16 %v1201_v12, %v1199_v62 }
 0x16e   : > { %v1206_v7 = vmax.f32 %v1078_v26, 0.0 }
 0x172   : > { %1746 = vmatmul.mubr.bf16.gmra.mrb[84].mxu0 %v1277_v58  ;;  %v11401_v50 = vpop.xlane.xlu1 %3533 }
 0x173   : > { %14278 = vst [vmem:[#allocation14_spill] sm:$0xff] %v11401_v50  ;;  %1755 = vmatprep.mubr.bf16.mxu0 %v1280_v28  ;;  %v1204_v28 = vmax.f32 %v1076_v30, 0.0 }
 0x177   : > { %v11420_v27 = vpop.xlane.xlu1 %3539 }
 0x178   : > { %14283 = vst [vmem:[#allocation13_spill] sm:$0xff] %v11420_v27 }
 0x17a   : > { %1756 = vmatmul.mubr.bf16.gmra.mrb[88].mxu0 %v1279_v45 }
 0x17b   : > { %1765 = vmatprep.mubr.bf16.mxu0 %v1282_v39  ;;  %v14287_v39 = vld [vmem:[#allocation24_spill] sm:$0xff] }
 0x17c   : > { %v946_v30 = vmul.f32 %v10300_v40, %v14287_v39 }
 0x17e   : > { %v11435_v29 = vpop.xlane.xlu1 %3545 }
 0x17f   : > { %14286 = vst [vmem:[#allocation15_spill] sm:$0xff] %v11435_v29 }
 0x181   : > { %v1537_v14 = vpop.f32.mrb[0].mxu0 }
 0x182   : > { %v1538_v56 = vadd.f32 %v1537_v14, %v11406_v5  ;;  %v1539_v17 = vpop.f32.mrb[1].mxu0  ;;  %v1284_v14 = vpack.c.bf16 %v1206_v7, %v1204_v28  ;;  %1766 = vmatmul.mubr.bf16.gmra.mrb[92].mxu0 %v1281_v47  ;;  %v11451_v26 = vpop.xlane.xlu1 %3551  ;;  %v1086_v47 = vadd.f32 %v10308_v46, %v946_v30 }
 0x183   : > { %v1540_v61 = vadd.f32 %v1539_v17, %v11411_v4  ;;  %v1541_v42 = vpop.f32.mrb[2].mxu0  ;;  %v1082_v17 = vadd.f32 %v10308_v46, %v942_v51  ;;  %14288 = vst [vmem:[#allocation9_spill] sm:$0xff] %v11451_v26 }
 0x184   : > { %v1542_v9 = vadd.f32 %v1541_v42, %v11406_v5  ;;  %v1543_v1 = vpop.f32.mrb[3].mxu0  ;;  %v1856_v22 = vmax.f32 %v1538_v56, 0.0  ;;  %v1080_v56 = vadd.f32 %v10308_v46, %v940_v53  ;;  %v939_v42 = vmul.f32 %v10294_v38, %v14285_v60  ;;  %1775 = vmatprep.mubr.bf16.mxu0 %v1284_v14 }
 0x185   : > { %v1544_v15 = vadd.f32 %v1543_v1, %v11411_v4  ;;  %v1857_v58 = vmax.f32 %v1540_v61, 0.0  ;;  %v1210_v62 = vmax.f32 %v1082_v17, 0.0  ;;  %v950_v17 = vmul.f32 %v10300_v40, %v11044_v57 }
 0x186   : > { %v1858_v13 = vmax.f32 %v1542_v9, 0.0  ;;  %v1079_v7 = vadd.f32 %v10303_v43, %v939_v42 }
 0x187   : > { %v1859_v18 = vmax.f32 %v1544_v15, 0.0  ;;  %v1205_v15 = vmax.f32 %v1077_v59, 0.0 }
 0x188   : > { %v1984_v63 = vpack.c.bf16 %v1858_v13, %v1856_v22  ;;  %v14289_v22 = vld [vmem:[#allocation23_spill] sm:$0xff]  ;;  %v1208_v13 = vmax.f32 %v1080_v56, 0.0 }
 0x189   : > { %v1547_v55 = vpop.f32.mrb[4].mxu0  ;;  %v1985_v52 = vpack.c.bf16 %v1859_v18, %v1857_v58  ;;  %v944_v6 = vmul.f32 %v10300_v40, %v14289_v22  ;;  %v1283_v28 = vpack.c.bf16 %v1205_v15, %v1203_v2  ;;  %v11461_v21 = vpop.xlane.xlu1 %3557  ;;  %v943_v56 = vmul.f32 %v10294_v38, %v14289_v22 }
 0x18a   : > { %v1548_v25 = vadd.f32 %v1547_v55, %v11406_v5  ;;  %v1549_v20 = vpop.f32.mrb[5].mxu0  ;;  %14290 = vst [vmem:[#allocation10_spill] sm:$0xff] %v11461_v21 }
 0x18b   : > { %v1550_v33 = vadd.f32 %v1549_v20, %v11411_v4  ;;  %v1551_v3 = vpop.f32.mrb[6].mxu0  ;;  %2284 = vmatprep.mubr.bf16.mxu1 %v1985_v52  ;;  %v1084_v20 = vadd.f32 %v10308_v46, %v944_v6  ;;  %1776 = vmatmul.mubr.bf16.gmra.mrb[96].mxu0 %v1283_v28  ;;  %v1090_v28 = vadd.f32 %v10308_v46, %v950_v17 }
 0x18c   : > { %v1552_v45 = vadd.f32 %v1551_v3, %v11406_v5  ;;  %v1553_v8 = vpop.f32.mrb[7].mxu0  ;;  %2285 = vmatmul.mubr.bf16.vlgmr.msra.gmra.mrb[0].mxu1 %v1984_v63  ;;  %v1860_v9 = vmax.f32 %v1548_v25, 0.0  ;;  %v1081_v63 = vadd.f32 %v10303_v43, %v941_v11  ;;  %v1286_v25 = vpack.c.bf16 %v1210_v62, %v1208_v13 }
 0x18d   : > { %v1554_v61 = vadd.f32 %v1553_v8, %v11411_v4  ;;  %v1861_v37 = vmax.f32 %v1550_v33, 0.0  ;;  %v945_v3 = vmul.f32 %v10294_v38, %v14287_v39  ;;  %v1207_v11 = vmax.f32 %v1079_v7, 0.0 }
 0x18e   : > { %v1862_v1 = vmax.f32 %v1552_v45, 0.0  ;;  %1785 = vmatprep.mubr.bf16.mxu0 %v1286_v25  ;;  %v1212_v39 = vmax.f32 %v1084_v20, 0.0  ;;  %v1083_v62 = vadd.f32 %v10303_v43, %v943_v56  ;;  %v947_v25 = vmul.f32 %v10294_v38, %v10997_v10 }
 0x18f   : > { %v1863_v51 = vmax.f32 %v1554_v61, 0.0  ;;  %v1209_v61 = vmax.f32 %v1081_v63, 0.0  ;;  %v954_v20 = vmul.f32 %v10300_v40, %v11080_v48  ;;  %v952_v17 = vmul.f32 %v10300_v40, %v11049_v23 }
 0x190   : > { %v1986_v12 = vpack.c.bf16 %v1862_v1, %v1860_v9  ;;  %v948_v9 = vmul.f32 %v10300_v40, %v10997_v10  ;;  %v1214_v1 = vmax.f32 %v1086_v47, 0.0 }
 0x191   : > { %v1987_v58 = vpack.c.bf16 %v1863_v51, %v1861_v37  ;;  %v1557_v18 = vpop.f32.mrb[8].mxu0  ;;  %v11473_v51 = vpop.xlane.xlu1 %3563  ;;  %v1285_v13 = vpack.c.bf16 %v1209_v61, %v1207_v11 }
 0x192   : > { %v1558_v60 = vadd.f32 %v1557_v18, %v11406_v5  ;;  %v1559_v53 = vpop.f32.mrb[9].mxu0  ;;  %14291 = vst [vmem:[#allocation17_spill] sm:$0xff] %v11473_v51 }
 0x193   : > { %v1560_v55 = vadd.f32 %v1559_v53, %v11411_v4  ;;  %v1561_v52 = vpop.f32.mrb[10].mxu0  ;;  %2294 = vmatprep.mubr.bf16.mxu1 %v1987_v58  ;;  %v1088_v53 = vadd.f32 %v10308_v46, %v948_v9  ;;  %1786 = vmatmul.mubr.bf16.gmra.mrb[100].mxu0 %v1285_v13 }
 0x194   : > { %v1562_v59 = vadd.f32 %v1561_v52, %v11406_v5  ;;  %v1563_v33 = vpop.f32.mrb[11].mxu0  ;;  %2295 = vmatmul.mubr.bf16.gmra.mrb[4].mxu1 %v1986_v12  ;;  %v1864_v45 = vmax.f32 %v1558_v60, 0.0  ;;  %v1085_v12 = vadd.f32 %v10303_v43, %v945_v3  ;;  %v1288_v60 = vpack.c.bf16 %v1214_v1, %v1212_v39 }
 0x195   : > { %v1564_v14 = vadd.f32 %v1563_v33, %v11411_v4  ;;  %v1865_v42 = vmax.f32 %v1560_v55, 0.0  ;;  %v949_v55 = vmul.f32 %v10294_v38, %v11044_v57  ;;  %v1211_v33 = vmax.f32 %v1083_v62, 0.0 }
 0x196   : > { %v1866_v8 = vmax.f32 %v1562_v59, 0.0  ;;  %1795 = vmatprep.mubr.bf16.mxu0 %v1288_v60  ;;  %v1213_v3 = vmax.f32 %v1085_v12, 0.0  ;;  %v1216_v57 = vmax.f32 %v1088_v53, 0.0  ;;  %v1092_v39 = vadd.f32 %v10308_v46, %v952_v17 }
 0x197   : > { %v1867_v30 = vmax.f32 %v1564_v14, 0.0  ;;  %v1094_v1 = vadd.f32 %v10308_v46, %v954_v20  ;;  %v958_v62 = vmul.f32 %v10300_v40, %v11140_v44  ;;  %v956_v53 = vmul.f32 %v10300_v40, %v11088_v0 }
 0x198   : > { %v1988_v2 = vpack.c.bf16 %v1866_v8, %v1864_v45  ;;  %v1218_v45 = vmax.f32 %v1090_v28, 0.0  ;;  %v11491_v8 = vpop.xlane.xlu1 %3569  ;;  %v1287_v10 = vpack.c.bf16 %v1213_v3, %v1211_v33  ;;  %v1220_v28 = vmax.f32 %v1092_v39, 0.0  ;;  %v14296_v39 = vld [vmem:[#allocation25_spill] sm:$0xff] }
 0x199   : > { %v1989_v15 = vpack.c.bf16 %v1867_v30, %v1865_v42  ;;  %v1567_v37 = vpop.f32.mrb[12].mxu0  ;;  %14292 = vst [vmem:[#allocation16_spill] sm:$0xff] %v11491_v8  ;;  %v1087_v42 = vadd.f32 %v10303_v43, %v947_v25  ;;  %v1089_v30 = vadd.f32 %v10303_v43, %v949_v55  ;;  %v1098_v17 = vadd.f32 %v10308_v46, %v958_v62 }
 0x19a   : > { %v1568_v22 = vadd.f32 %v1567_v37, %v11406_v5  ;;  %v1569_v6 = vpop.f32.mrb[13].mxu0  ;;  %v1290_v9 = vpack.c.bf16 %v1218_v45, %v1216_v57  ;;  %v953_v37 = vmul.f32 %v10294_v38, %v11080_v48  ;;  %v1222_v48 = vmax.f32 %v1094_v1, 0.0 }
 0x19b   : > { %v1570_v58 = vadd.f32 %v1569_v6, %v11411_v4  ;;  %v1571_v18 = vpop.f32.mrb[14].mxu0  ;;  %2304 = vmatprep.mubr.bf16.mxu1 %v1989_v15  ;;  %1796 = vmatmul.mubr.bf16.gmra.mrb[104].mxu0 %v1287_v10  ;;  %v1215_v12 = vmax.f32 %v1087_v42, 0.0  ;;  %v960_v1 = vmul.f32 %v10300_v40, %v14296_v39 }
 0x19c   : > { %v1572_v7 = vadd.f32 %v1571_v18, %v11406_v5  ;;  %v1573_v63 = vpop.f32.mrb[15].mxu0  ;;  %2305 = vmatmul.mubr.bf16.gmra.mrb[8].mxu1 %v1988_v2  ;;  %v1868_v47 = vmax.f32 %v1568_v22, 0.0  ;;  %v11497_v2 = vpop.xlane.xlu1 %3575  ;;  %v951_v22 = vmul.f32 %v10294_v38, %v11049_v23  ;;  %1805 = vmatprep.mubr.bf16.mxu0 %v1290_v9 }
 0x19d   : > { %v1574_v52 = vadd.f32 %v1573_v63, %v11411_v4  ;;  %v1869_v14 = vmax.f32 %v1570_v58, 0.0  ;;  %14293 = vst [vmem:[#allocation22_spill] sm:$0xff] %v11497_v2  ;;  %v1217_v58 = vmax.f32 %v1089_v30, 0.0  ;;  %v14295_v30 = vld [vmem:[#allocation26_spill] sm:$0xff] }
 0x19e   : > { %v1870_v59 = vmax.f32 %v1572_v7, 0.0  ;;  %v1091_v55 = vadd.f32 %v10303_v43, %v951_v22  ;;  %v962_v9 = vmul.f32 %v10300_v40, %v14295_v30 }
 0x19f   : > { %v1871_v56 = vmax.f32 %v1574_v52, 0.0  ;;  %v1289_v20 = vpack.c.bf16 %v1217_v58, %v1215_v12 }
 0x1a0   : > { %v1990_v11 = vpack.c.bf16 %v1870_v59, %v1868_v47  ;;  %v11512_v47 = vpop.xlane.xlu1 %3581  ;;  %v1093_v59 = vadd.f32 %v10303_v43, %v953_v37  ;;  %v1219_v10 = vmax.f32 %v1091_v55, 0.0  ;;  %v1226_v37 = vmax.f32 %v1098_v17, 0.0 }
 0x1a1   : > { %v1991_v61 = vpack.c.bf16 %v1871_v56, %v1869_v14  ;;  %v1577_v15 = vpop.f32.mrb[16].mxu0  ;;  %14294 = vst [vmem:[#allocation18_spill] sm:$0xff] %v11512_v47  ;;  %v1292_v14 = vpack.c.bf16 %v1222_v48, %v1220_v28  ;;  %v1096_v56 = vadd.f32 %v10308_v46, %v956_v53  ;;  %v1100_v48 = vadd.f32 %v10308_v46, %v960_v1 }
 0x1a2   : > { %v1578_v6 = vadd.f32 %v1577_v15, %v11406_v5  ;;  %v1579_v13 = vpop.f32.mrb[17].mxu0  ;;  %v1221_v42 = vmax.f32 %v1093_v59, 0.0  ;;  %v959_v59 = vmul.f32 %v10294_v38, %v14296_v39 }
 0x1a3   : > { %2314 = vmatprep.mubr.bf16.mxu1 %v1991_v61  ;;  %v1580_v18 = vadd.f32 %v1579_v13, %v11411_v4  ;;  %v1581_v60 = vpop.f32.mrb[18].mxu0  ;;  %1806 = vmatmul.mubr.bf16.gmra.mrb[108].mxu0 %v1289_v20  ;;  %v955_v61 = vmul.f32 %v10294_v38, %v11088_v0  ;;  %v1224_v15 = vmax.f32 %v1096_v56, 0.0  ;;  %v1228_v17 = vmax.f32 %v1100_v48, 0.0 }
 0x1a4   : > { %2315 = vmatmul.mubr.bf16.gmra.mrb[12].mxu1 %v1990_v11  ;;  %v1582_v7 = vadd.f32 %v1581_v60, %v11406_v5  ;;  %v1583_v23 = vpop.f32.mrb[19].mxu0  ;;  %v1872_v52 = vmax.f32 %v1578_v6, 0.0  ;;  %1815 = vmatprep.mubr.bf16.mxu0 %v1292_v14  ;;  %v957_v11 = vmul.f32 %v10294_v38, %v11140_v44  ;;  %v1291_v12 = vpack.c.bf16 %v1221_v42, %v1219_v10 }
 0x1a5   : > { %v1584_v63 = vadd.f32 %v1583_v23, %v11411_v4  ;;  %v1873_v33 = vmax.f32 %v1580_v18, 0.0  ;;  %v11525_v6 = vpop.xlane.xlu1 %3587  ;;  %v1095_v58 = vadd.f32 %v10303_v43, %v955_v61  ;;  %v1294_v28 = vpack.c.bf16 %v1226_v37, %v1224_v15 }
 0x1a6   : > { %v1874_v25 = vmax.f32 %v1582_v7, 0.0  ;;  %14297 = vst [vmem:[#allocation24_spill] sm:$0xff] %v11525_v6  ;;  %v1097_v18 = vadd.f32 %v10303_v43, %v957_v11  ;;  %v1102_v7 = vadd.f32 %v10308_v46, %v962_v9  ;;  %v1099_v61 = vadd.f32 %v10303_v43, %v959_v59 }
 0x1a7   : > { %v1875_v3 = vmax.f32 %v1584_v63, 0.0 }
 0x1a8   : > { %v1992_v57 = vpack.c.bf16 %v1874_v25, %v1872_v52  ;;  %v961_v52 = vmul.f32 %v10294_v38, %v14295_v30  ;;  %v1225_v14 = vmax.f32 %v1097_v18, 0.0 }
 0x1a9   : > { %v1993_v45 = vpack.c.bf16 %v1875_v3, %v1873_v33  ;;  %v1587_v22 = vpop.f32.mrb[20].mxu0  ;;  %v1223_v3 = vmax.f32 %v1095_v58, 0.0 }
 0x1aa   : > { %v1588_v44 = vadd.f32 %v1587_v22, %v11406_v5  ;;  %v1589_v13 = vpop.f32.mrb[21].mxu0  ;;  %v1101_v10 = vadd.f32 %v10303_v43, %v961_v52 }
 0x1ab   : > { %2324 = vmatprep.mubr.bf16.mxu1 %v1993_v45  ;;  %v1590_v0 = vadd.f32 %v1589_v13, %v11411_v4  ;;  %v1591_v62 = vpop.f32.mrb[22].mxu0  ;;  %1816 = vmatmul.mubr.bf16.gmra.mrb[112].mxu0 %v1291_v12  ;;  %v1293_v11 = vpack.c.bf16 %v1225_v14, %v1223_v3  ;;  %v1227_v13 = vmax.f32 %v1099_v61, 0.0 }
 0x1ac   : > { %2325 = vmatmul.mubr.bf16.gmra.mrb[16].mxu1 %v1992_v57  ;;  %v1592_v60 = vadd.f32 %v1591_v62, %v11406_v5  ;;  %v1593_v53 = vpop.f32.mrb[23].mxu0  ;;  %v1876_v63 = vmax.f32 %v1588_v44, 0.0  ;;  %1825 = vmatprep.mubr.bf16.mxu0 %v1294_v28  ;;  %v11539_v33 = vpop.xlane.xlu1 %3593  ;;  %v1230_v57 = vmax.f32 %v1102_v7, 0.0 }
 0x1ad   : > { %v1594_v23 = vadd.f32 %v1593_v53, %v11411_v4  ;;  %v1877_v25 = vmax.f32 %v1590_v0, 0.0  ;;  %14298 = vst [vmem:[#allocation23_spill] sm:$0xff] %v11539_v33  ;;  %v1229_v0 = vmax.f32 %v1101_v10, 0.0 }
 0x1ae   : > { %v1878_v55 = vmax.f32 %v1592_v60, 0.0  ;;  %v1296_v30 = vpack.c.bf16 %v1230_v57, %v1228_v17 }
 0x1af   : > { %v1879_v20 = vmax.f32 %v1594_v23, 0.0  ;;  %v1295_v48 = vpack.c.bf16 %v1229_v0, %v1227_v13 }
 0x1b0   : > { %v1994_v56 = vpack.c.bf16 %v1878_v55, %v1876_v63  ;;  %v11543_v9 = vpop.xlane.xlu1 %3599 }
 0x1b1   : > { %v1995_v45 = vpack.c.bf16 %v1879_v20, %v1877_v25  ;;  %v1597_v42 = vpop.f32.mrb[24].mxu0  ;;  %14299 = vst [vmem:[#allocation26_spill] sm:$0xff] %v11543_v9 }
 0x1b2   : > { %v1598_v39 = vadd.f32 %v1597_v42, %v11406_v5  ;;  %v1599_v1 = vpop.f32.mrb[25].mxu0 }
 0x1b3   : > { %2334 = vmatprep.mubr.bf16.mxu1 %v1995_v45  ;;  %1826 = vmatmul.mubr.bf16.gmra.mrb[116].mxu0 %v1293_v11  ;;  %v1600_v15 = vadd.f32 %v1599_v1, %v11411_v4  ;;  %v1601_v37 = vpop.f32.mrb[26].mxu0 }
 0x1b4   : > { %2335 = vmatmul.mubr.bf16.gmra.mrb[20].mxu1 %v1994_v56  ;;  %1835 = vmatprep.mubr.bf16.mxu0 %v1296_v30  ;;  %v1602_v22 = vadd.f32 %v1601_v37, %v11406_v5  ;;  %v1603_v44 = vpop.f32.mrb[27].mxu0  ;;  %v1880_v12 = vmax.f32 %v1598_v39, 0.0 }
 0x1b5   : > { %v1604_v62 = vadd.f32 %v1603_v44, %v11411_v4  ;;  %v1881_v18 = vmax.f32 %v1600_v15, 0.0 }
 0x1b6   : > { %v1882_v58 = vmax.f32 %v1602_v22, 0.0 }
 0x1b7   : > { %v1883_v60 = vmax.f32 %v1604_v62, 0.0  ;;  %v11549_v53 = vpop.xlane.xlu1 %3605 }
 0x1b8   : > { %14300 = vst [vmem:[#allocation25_spill] sm:$0xff] %v11549_v53  ;;  %v1996_v28 = vpack.c.bf16 %v1882_v58, %v1880_v12 }
 0x1b9   : > { %v1997_v7 = vpack.c.bf16 %v1883_v60, %v1881_v18 }
 0x1bb   : > { %1836 = vmatmul.mubr.bf16.gmra.mrb[120].mxu0 %v1295_v48  ;;  %2344 = vmatprep.mubr.bf16.mxu1 %v1997_v7 }
 0x1bc   : > { %2345 = vmatmul.mubr.bf16.gmra.mrb[24].mxu1 %v1996_v28  ;;  %v1607_v23 = vpop.f32.mrb[28].mxu0  ;;  %v11551_v63 = vpop.xlane.xlu1 %3611 }
 0x1bd   : > { %14301 = vst [vmem:[#allocation28_spill] sm:$0xff] %v11551_v63  ;;  %v1608_v55 = vadd.f32 %v1607_v23, %v11406_v5  ;;  %v1609_v52 = vpop.f32.mrb[29].mxu0 }
 0x1be   : > { %v1610_v25 = vadd.f32 %v1609_v52, %v11411_v4  ;;  %v1611_v20 = vpop.f32.mrb[30].mxu0 }
 0x1bf   : > { %v1612_v59 = vadd.f32 %v1611_v20, %v11406_v5  ;;  %v1613_v3 = vpop.f32.mrb[31].mxu0  ;;  %v1884_v56 = vmax.f32 %v1608_v55, 0.0 }
 0x1c0   : > { %v1614_v14 = vadd.f32 %v1613_v3, %v11411_v4  ;;  %v1885_v57 = vmax.f32 %v1610_v25, 0.0 }
 0x1c1   : > { %v1886_v17 = vmax.f32 %v1612_v59, 0.0 }
 0x1c2   : > { %v1887_v45 = vmax.f32 %v1614_v14, 0.0 }
 0x1c3   : > { %v11557_v11 = vpop.xlane.xlu1 %3617  ;;  %v1998_v61 = vpack.c.bf16 %v1886_v17, %v1884_v56 }
 0x1c4   : > { %14302 = vst [vmem:[#allocation29_spill] sm:$0xff] %v11557_v11  ;;  %v1999_v10 = vpack.c.bf16 %v1887_v45, %v1885_v57 }
 0x1c6   : > { %2354 = vmatprep.mubr.bf16.mxu1 %v1999_v10 }
 0x1c7   : > { %v11559_v42 = vpop.xlane.xlu1 %3623  ;;  %v1617_v30 = vpop.f32.mrb[32].mxu0  ;;  %2355 = vmatmul.mubr.bf16.gmra.mrb[28].mxu1 %v1998_v61 }
 0x1c8   : > { %14303 = vst [vmem:[#allocation30_spill] sm:$0xff] %v11559_v42  ;;  %v1618_v39 = vadd.f32 %v1617_v30, %v11406_v5  ;;  %v1619_v1 = vpop.f32.mrb[33].mxu0 }
 0x1c9   : > { %v1620_v15 = vadd.f32 %v1619_v1, %v11411_v4  ;;  %v1621_v37 = vpop.f32.mrb[34].mxu0 }
 0x1ca   : > { %v1622_v22 = vadd.f32 %v1621_v37, %v11406_v5  ;;  %v1623_v44 = vpop.f32.mrb[35].mxu0  ;;  %v1888_v62 = vmax.f32 %v1618_v39, 0.0 }
 0x1cb   : > { %v1624_v13 = vadd.f32 %v1623_v44, %v11411_v4  ;;  %v1889_v58 = vmax.f32 %v1620_v15, 0.0 }
 0x1cc   : > { %v11565_v0 = vpop.xlane.xlu1 %3629  ;;  %v1890_v12 = vmax.f32 %v1622_v22, 0.0 }
 0x1cd   : > { %14304 = vst [vmem:[#allocation31_spill] sm:$0xff] %v11565_v0  ;;  %v1891_v18 = vmax.f32 %v1624_v13, 0.0 }
 0x1ce   : > { %v2000_v60 = vpack.c.bf16 %v1890_v12, %v1888_v62 }
 0x1cf   : > { %v2001_v28 = vpack.c.bf16 %v1891_v18, %v1889_v58  ;;  %v14310_v18 = vld [vmem:[#allocation27_spill] sm:$0xff] }
 0x1d0   : > { %v11567_v48 = vpop.xlane.xlu1 %3635 }
 0x1d1   : > { %14305 = vst [vmem:[#allocation32_spill] sm:$0xff] %v11567_v48  ;;  %2364 = vmatprep.mubr.bf16.mxu1 %v2001_v28  ;;  %v964_v28 = vmul.f32 %v10300_v40, %v14310_v18 }
 0x1d2   : > { %2365 = vmatmul.mubr.bf16.gmra.mrb[32].mxu1 %v2000_v60  ;;  %v963_v60 = vmul.f32 %v10294_v38, %v14310_v18 }
 0x1d3   : > { %v1627_v7 = vpop.f32.mrb[36].mxu0 }
 0x1d4   : > { %v11569_v23 = vpop.xlane.xlu1 %3641  ;;  %v1628_v55 = vadd.f32 %v1627_v7, %v11406_v5  ;;  %v1629_v52 = vpop.f32.mrb[37].mxu0 }
 0x1d5   : > { %14306 = vst [vmem:[#allocation33_spill] sm:$0xff] %v11569_v23  ;;  %v1630_v25 = vadd.f32 %v1629_v52, %v11411_v4  ;;  %v1631_v20 = vpop.f32.mrb[38].mxu0 }
 0x1d6   : > { %v1632_v59 = vadd.f32 %v1631_v20, %v11406_v5  ;;  %v1633_v3 = vpop.f32.mrb[39].mxu0  ;;  %v1892_v17 = vmax.f32 %v1628_v55, 0.0 }
 0x1d7   : > { %v1634_v14 = vadd.f32 %v1633_v3, %v11411_v4  ;;  %v1893_v45 = vmax.f32 %v1630_v25, 0.0 }
 0x1d8   : > { %v11575_v56 = vpop.xlane.xlu1 %3647  ;;  %v1894_v57 = vmax.f32 %v1632_v59, 0.0 }
 0x1d9   : > { %14307 = vst [vmem:[#allocation34_spill] sm:$0xff] %v11575_v56  ;;  %v1895_v61 = vmax.f32 %v1634_v14, 0.0 }
 0x1da   : > { %v2002_v10 = vpack.c.bf16 %v1894_v57, %v1892_v17  ;;  %v1104_v17 = vadd.f32 %v10308_v46, %v964_v28  ;;  %v1103_v57 = vadd.f32 %v10303_v43, %v963_v60 }
 0x1db   : > { %v2003_v30 = vpack.c.bf16 %v1895_v61, %v1893_v45 }
 0x1dc   : > { %v11577_v39 = vpop.xlane.xlu1 %3653 }
 0x1dd   : > { %14308 = vst [vmem:[#allocation35_spill] sm:$0xff] %v11577_v39  ;;  %2374 = vmatprep.mubr.bf16.mxu1 %v2003_v30 }
 0x1de   : > { %v1637_v1 = vpop.f32.mrb[40].mxu0  ;;  %2375 = vmatmul.mubr.bf16.gmra.mrb[36].mxu1 %v2002_v10  ;;  %v9924_v10 = vld [vmem:[%s14158_s8] ss:$0 sm:$0xff] }
 0x1df   : > { %v1639_v15 = vpop.f32.mrb[41].mxu0  ;;  %v1638_v22 = vadd.f32 %v1637_v1, %v11406_v5 }
 0x1e0   : > { %v11579_v37 = vpop.xlane.xlu1 %3659  ;;  %v1640_v44 = vadd.f32 %v1639_v15, %v11411_v4  ;;  %v1641_v13 = vpop.f32.mrb[42].mxu0 }
 0x1e1   : > { %14309 = vst [vmem:[#allocation36_spill] sm:$0xff] %v11579_v37  ;;  %v1642_v62 = vadd.f32 %v1641_v13, %v11406_v5  ;;  %v1643_v12 = vpop.f32.mrb[43].mxu0  ;;  %v1896_v55 = vmax.f32 %v1638_v22, 0.0 }
 0x1e2   : > { %v1644_v58 = vadd.f32 %v1643_v12, %v11411_v4  ;;  %v1897_v25 = vmax.f32 %v1640_v44, 0.0  ;;  %v9925_v44 = vld [vmem:[%s14159_s9] ss:$0 sm:$0xff] }
 0x1e3   : > { %v1898_v52 = vmax.f32 %v1642_v62, 0.0  ;;  %v1232_v62 = vmax.f32 %v1104_v17, 0.0 }
 0x1e4   : > { %v11589_v7 = vpop.xlane.xlu1 %3665  ;;  %v1899_v20 = vmax.f32 %v1644_v58, 0.0 }
 0x1e5   : > { %14311 = vst [vmem:[#allocation27_spill] sm:$0xff] %v11589_v7  ;;  %v2004_v59 = vpack.c.bf16 %v1898_v52, %v1896_v55 }
 0x1e6   : > { %v2005_v3 = vpack.c.bf16 %v1899_v20, %v1897_v25 }
 0x1e8   : > { %v826_v14 = vpop.permute.xlu1 %825  ;;  %2384 = vmatprep.mubr.bf16.mxu1 %v2005_v3 }
 0x1e9   : > { %v965_v45 = vmul.f32 %v10294_v38, %v826_v14  ;;  %v966_v61 = vmul.f32 %v10300_v40, %v826_v14  ;;  %v3135_v30 = vmul.f32 %v9924_v10, %v826_v14  ;;  %2385 = vmatmul.mubr.bf16.gmra.mrb[40].mxu1 %v2004_v59  ;;  %v1231_v40 = vmax.f32 %v1103_v57, 0.0  ;;  %v9927_v57 = vld [vmem:[%s14160_s10] ss:$0 sm:$0xff] }
 0x1ea   : > { %v1647_v1 = vpop.f32.mrb[44].mxu0 }
 0x1eb   : > { %v1106_v15 = vadd.f32 %v10308_v46, %v966_v61  ;;  %v1105_v22 = vadd.f32 %v10303_v43, %v965_v45  ;;  %v3206_v13 = vadd.f32 %v9925_v44, %v3135_v30  ;;  %v1649_v38 = vpop.f32.mrb[45].mxu0  ;;  %v1648_v12 = vadd.f32 %v1647_v1, %v11406_v5  ;;  %v9926_v43 = vld [vmem:[%s14162_s12] ss:$0 sm:$0xff] }
 0x1ec   : > { %v1651_v58 = vpop.f32.mrb[46].mxu0  ;;  %v1650_v28 = vadd.f32 %v1649_v38, %v11411_v4 }
 0x1ed   : > { %v1234_v18 = vmax.f32 %v1106_v15, 0.0  ;;  %v1233_v60 = vmax.f32 %v1105_v22, 0.0  ;;  %vm3270_vm4 = vcmp.gt.f32.partialorder %v3206_v13, 0.0  ;;  %v1653_v55 = vpop.f32.mrb[47].mxu0  ;;  %v3341_v46 = vadd.f32 %v9926_v43, %v3206_v13 }
 0x1ee   : > { %v1652_v52 = vadd.f32 %v1651_v58, %v11406_v5  ;;  %v1654_v59 = vadd.f32 %v1653_v55, %v11411_v4  ;;  %v1900_v14 = vmax.f32 %v1648_v12, 0.0  ;;  %v1901_v61 = vmax.f32 %v1650_v28, 0.0 }
 0x1ef   : > { %v1298_v25 = vpack.c.bf16 %v1234_v18, %v1232_v62  ;;  %v1297_v20 = vpack.c.bf16 %v1233_v60, %v1231_v40  ;;  %v3405_v3 = vsel %vm3270_vm4, %v3341_v46, 0.0 }
 0x1f0   : > { %v1902_v17 = vmax.f32 %v1652_v52, 0.0  ;;  %v3476_v45 = vmul.f32 %v9927_v57, %v3405_v3  ;;  %v1903_v10 = vmax.f32 %v1654_v59, 0.0 }
 0x1f1   : > { %1845 = vmatprep.mubr.bf16.mxu0 %v1298_v25 }
 0x1f2   : > { %1846 = vmatmul.mubr.bf16.gmra.mrb[124].mxu0 %v1297_v20  ;;  %v2006_v30 = vpack.c.bf16 %v1902_v17, %v1900_v14  ;;  %v3667_v1 = vsel %vm3477_vm2, %v3476_v45, 0.0  ;;  %v2007_v15 = vpack.c.bf16 %v1903_v10, %v1901_v61  ;;  %vm9259_vm2 = vcmask 130112  }
 0x1f3   : > { %3668 = vadd.xlane.f32.xlu0 %v3667_v1 }
 0x1f4   : > { %2394 = vmatprep.mubr.bf16.mxu1 %v2007_v15 }
 0x1f5   : > { %v1657_v22 = vpop.f32.mrb[48].mxu0  ;;  %2395 = vmatmul.mubr.bf16.gmra.mrb[44].mxu1 %v2006_v30 }
 0x1f6   : > { %v1658_v44 = vadd.f32 %v1657_v22, %v11406_v5  ;;  %v1659_v13 = vpop.f32.mrb[49].mxu0 }
 0x1f7   : > { %v1660_v38 = vadd.f32 %v1659_v13, %v11411_v4  ;;  %v1661_v62 = vpop.f32.mrb[50].mxu0 }
 0x1f8   : > { %v1662_v40 = vadd.f32 %v1661_v62, %v11406_v5  ;;  %v1663_v12 = vpop.f32.mrb[51].mxu0  ;;  %v1904_v18 = vmax.f32 %v1658_v44, 0.0 }
 0x1f9   : > { %v1664_v58 = vadd.f32 %v1663_v12, %v11411_v4  ;;  %v1905_v28 = vmax.f32 %v1660_v38, 0.0 }
 0x1fa   : > { %v1906_v60 = vmax.f32 %v1662_v40, 0.0 }
 0x1fb   : > { %v1907_v55 = vmax.f32 %v1664_v58, 0.0 }
 0x1fc   : > { %v2008_v43 = vpack.c.bf16 %v1906_v60, %v1904_v18 }
 0x1fd   : > { %v2009_v46 = vpack.c.bf16 %v1907_v55, %v1905_v28 }
 0x1ff   : > { %2404 = vmatprep.mubr.bf16.mxu1 %v2009_v46 }
 0x200   : > { %2405 = vmatmul.mubr.bf16.gmra.mrb[48].mxu1 %v2008_v43 }
 0x201   : > { %v1667_v52 = vpop.f32.mrb[52].mxu0 }
 0x202   : > { %v1668_v25 = vadd.f32 %v1667_v52, %v11406_v5  ;;  %v1669_v20 = vpop.f32.mrb[53].mxu0 }
 0x203   : > { %v1670_v59 = vadd.f32 %v1669_v20, %v11411_v4  ;;  %v1671_v3 = vpop.f32.mrb[54].mxu0 }
 0x204   : > { %v1672_v14 = vadd.f32 %v1671_v3, %v11406_v5  ;;  %v1673_v17 = vpop.f32.mrb[55].mxu0  ;;  %v1908_v45 = vmax.f32 %v1668_v25, 0.0 }
 0x205   : > { %v1674_v57 = vadd.f32 %v1673_v17, %v11411_v4  ;;  %v1909_v10 = vmax.f32 %v1670_v59, 0.0 }
 0x206   : > { %v1910_v61 = vmax.f32 %v1672_v14, 0.0 }
 0x207   : > { %v1911_v30 = vmax.f32 %v1674_v57, 0.0 }
 0x208   : > { %v2010_v1 = vpack.c.bf16 %v1910_v61, %v1908_v45 }
 0x209   : > { %v2011_v15 = vpack.c.bf16 %v1911_v30, %v1909_v10 }
 0x20b   : > { %v1677_v22 = vpop.f32.mrb[56].mxu0  ;;  %2414 = vmatprep.mubr.bf16.mxu1 %v2011_v15 }
 0x20c   : > { %v1678_v44 = vadd.f32 %v1677_v22, %v11406_v5  ;;  %v1679_v13 = vpop.f32.mrb[57].mxu0  ;;  %2415 = vmatmul.mubr.bf16.gmra.mrb[52].mxu1 %v2010_v1 }
 0x20d   : > { %v1680_v38 = vadd.f32 %v1679_v13, %v11411_v4  ;;  %v1681_v62 = vpop.f32.mrb[58].mxu0 }
 0x20e   : > { %v1682_v40 = vadd.f32 %v1681_v62, %v11406_v5  ;;  %v1683_v12 = vpop.f32.mrb[59].mxu0  ;;  %v1912_v18 = vmax.f32 %v1678_v44, 0.0 }
 0x20f   : > { %v1684_v58 = vadd.f32 %v1683_v12, %v11411_v4  ;;  %v1913_v28 = vmax.f32 %v1680_v38, 0.0 }
 0x210   : > { %v1914_v60 = vmax.f32 %v1682_v40, 0.0 }
 0x211   : > { %v1915_v55 = vmax.f32 %v1684_v58, 0.0 }
 0x212   : > { %v2012_v43 = vpack.c.bf16 %v1914_v60, %v1912_v18 }
 0x213   : > { %v2013_v46 = vpack.c.bf16 %v1915_v55, %v1913_v28  ;;  %v1687_v52 = vpop.f32.mrb[60].mxu0 }
 0x214   : > { %v1688_v25 = vadd.f32 %v1687_v52, %v11406_v5  ;;  %v1689_v20 = vpop.f32.mrb[61].mxu0 }
 0x215   : > { %v1690_v59 = vadd.f32 %v1689_v20, %v11411_v4  ;;  %v1691_v3 = vpop.f32.mrb[62].mxu0  ;;  %2424 = vmatprep.mubr.bf16.mxu1 %v2013_v46 }
 0x216   : > { %v1692_v14 = vadd.f32 %v1691_v3, %v11406_v5  ;;  %v1693_v17 = vpop.f32.mrb[63].mxu0  ;;  %2425 = vmatmul.mubr.bf16.gmra.mrb[56].mxu1 %v2012_v43  ;;  %v1916_v45 = vmax.f32 %v1688_v25, 0.0 }
 0x217   : > { %v1694_v57 = vadd.f32 %v1693_v17, %v11411_v4  ;;  %v1917_v10 = vmax.f32 %v1690_v59, 0.0 }
 0x218   : > { %v1918_v61 = vmax.f32 %v1692_v14, 0.0 }
 0x219   : > { %v1919_v30 = vmax.f32 %v1694_v57, 0.0 }
 0x21a   : > { %v2014_v1 = vpack.c.bf16 %v1918_v61, %v1916_v45 }
 0x21b   : > { %v2015_v15 = vpack.c.bf16 %v1919_v30, %v1917_v10 }
 0x21c   : > { %v1697_v22 = vpop.f32.mrb[64].mxu0 }
 0x21d   : > { %v1698_v44 = vadd.f32 %v1697_v22, %v11406_v5  ;;  %v1699_v13 = vpop.f32.mrb[65].mxu0  ;;  %2434 = vmatprep.mubr.bf16.mxu1 %v2015_v15 }
 0x21e   : > { %v1700_v38 = vadd.f32 %v1699_v13, %v11411_v4  ;;  %v1701_v62 = vpop.f32.mrb[66].mxu0  ;;  %2435 = vmatmul.mubr.bf16.gmra.mrb[60].mxu1 %v2014_v1 }
 0x21f   : > { %v1702_v40 = vadd.f32 %v1701_v62, %v11406_v5  ;;  %v1703_v12 = vpop.f32.mrb[67].mxu0  ;;  %v1920_v18 = vmax.f32 %v1698_v44, 0.0 }
 0x220   : > { %v1704_v58 = vadd.f32 %v1703_v12, %v11411_v4  ;;  %v1921_v28 = vmax.f32 %v1700_v38, 0.0 }
 0x221   : > { %v1922_v60 = vmax.f32 %v1702_v40, 0.0 }
 0x222   : > { %v1923_v55 = vmax.f32 %v1704_v58, 0.0 }
 0x223   : > { %v2016_v43 = vpack.c.bf16 %v1922_v60, %v1920_v18 }
 0x224   : > { %v2017_v46 = vpack.c.bf16 %v1923_v55, %v1921_v28 }
 0x225   : > { %v1707_v52 = vpop.f32.mrb[68].mxu0 }
 0x226   : > { %v1708_v25 = vadd.f32 %v1707_v52, %v11406_v5  ;;  %v1709_v20 = vpop.f32.mrb[69].mxu0  ;;  %2444 = vmatprep.mubr.bf16.mxu1 %v2017_v46 }
 0x227   : > { %v1710_v59 = vadd.f32 %v1709_v20, %v11411_v4  ;;  %v1711_v3 = vpop.f32.mrb[70].mxu0  ;;  %2445 = vmatmul.mubr.bf16.gmra.mrb[64].mxu1 %v2016_v43 }
 0x228   : > { %v1712_v14 = vadd.f32 %v1711_v3, %v11406_v5  ;;  %v1713_v17 = vpop.f32.mrb[71].mxu0  ;;  %v1924_v45 = vmax.f32 %v1708_v25, 0.0 }
 0x229   : > { %v1714_v57 = vadd.f32 %v1713_v17, %v11411_v4  ;;  %v1925_v10 = vmax.f32 %v1710_v59, 0.0 }
 0x22a   : > { %v1926_v61 = vmax.f32 %v1712_v14, 0.0 }
 0x22b   : > { %v1927_v30 = vmax.f32 %v1714_v57, 0.0 }
 0x22c   : > { %v2018_v1 = vpack.c.bf16 %v1926_v61, %v1924_v45 }
 0x22d   : > { %v2019_v15 = vpack.c.bf16 %v1927_v30, %v1925_v10  ;;  %v1717_v22 = vpop.f32.mrb[72].mxu0 }
 0x22e   : > { %v1718_v44 = vadd.f32 %v1717_v22, %v11406_v5  ;;  %v1719_v13 = vpop.f32.mrb[73].mxu0 }
 0x22f   : > { %v1720_v38 = vadd.f32 %v1719_v13, %v11411_v4  ;;  %v1721_v62 = vpop.f32.mrb[74].mxu0  ;;  %2454 = vmatprep.mubr.bf16.mxu1 %v2019_v15 }
 0x230   : > { %v1722_v40 = vadd.f32 %v1721_v62, %v11406_v5  ;;  %v1723_v12 = vpop.f32.mrb[75].mxu0  ;;  %2455 = vmatmul.mubr.bf16.gmra.mrb[68].mxu1 %v2018_v1  ;;  %v1928_v18 = vmax.f32 %v1718_v44, 0.0 }
 0x231   : > { %v1724_v58 = vadd.f32 %v1723_v12, %v11411_v4  ;;  %v1929_v28 = vmax.f32 %v1720_v38, 0.0 }
 0x232   : > { %v1930_v60 = vmax.f32 %v1722_v40, 0.0 }
 0x233   : > { %v1931_v55 = vmax.f32 %v1724_v58, 0.0 }
 0x234   : > { %v2020_v43 = vpack.c.bf16 %v1930_v60, %v1928_v18  ;;  %v11650_v18 = vpop.xlane.xlu0 %3482 }
 0x235   : > { %v2021_v46 = vpack.c.bf16 %v1931_v55, %v1929_v28  ;;  %v1727_v52 = vpop.f32.mrb[76].mxu0 }
 0x236   : > { %v1728_v25 = vadd.f32 %v1727_v52, %v11406_v5  ;;  %v1729_v20 = vpop.f32.mrb[77].mxu0 }
 0x237   : > { %v1730_v59 = vadd.f32 %v1729_v20, %v11411_v4  ;;  %v1731_v3 = vpop.f32.mrb[78].mxu0  ;;  %2464 = vmatprep.mubr.bf16.mxu1 %v2021_v46 }
 0x238   : > { %v1732_v14 = vadd.f32 %v1731_v3, %v11406_v5  ;;  %v1733_v17 = vpop.f32.mrb[79].mxu0  ;;  %2465 = vmatmul.mubr.bf16.gmra.mrb[72].mxu1 %v2020_v43  ;;  %v1932_v45 = vmax.f32 %v1728_v25, 0.0 }
 0x239   : > { %v1734_v57 = vadd.f32 %v1733_v17, %v11411_v4  ;;  %v1933_v10 = vmax.f32 %v1730_v59, 0.0  ;;  %v11654_v17 = vpop.xlane.xlu0 %3488 }
 0x23a   : > { %v1934_v61 = vmax.f32 %v1732_v14, 0.0 }
 0x23b   : > { %v1935_v30 = vmax.f32 %v1734_v57, 0.0 }
 0x23c   : > { %v2022_v1 = vpack.c.bf16 %v1934_v61, %v1932_v45 }
 0x23d   : > { %v2023_v15 = vpack.c.bf16 %v1935_v30, %v1933_v10  ;;  %v1737_v22 = vpop.f32.mrb[80].mxu0 }
 0x23e   : > { %v1738_v44 = vadd.f32 %v1737_v22, %v11406_v5  ;;  %v1739_v13 = vpop.f32.mrb[81].mxu0 }
 0x23f   : > { %v1740_v38 = vadd.f32 %v1739_v13, %v11411_v4  ;;  %v1741_v62 = vpop.f32.mrb[82].mxu0  ;;  %2474 = vmatprep.mubr.bf16.mxu1 %v2023_v15 }
 0x240   : > { %v1742_v40 = vadd.f32 %v1741_v62, %v11406_v5  ;;  %v1743_v12 = vpop.f32.mrb[83].mxu0  ;;  %2475 = vmatmul.mubr.bf16.gmra.mrb[76].mxu1 %v2022_v1  ;;  %v1936_v60 = vmax.f32 %v1738_v44, 0.0 }
 0x241   : > { %v1744_v58 = vadd.f32 %v1743_v12, %v11411_v4  ;;  %v1937_v55 = vmax.f32 %v1740_v38, 0.0  ;;  %v11658_v38 = vpop.xlane.xlu0 %3494  ;;  %v2080_v12 = vld [vmem:[%s14156_s6] sm:$0x3] }
 0x242   : > { %v1938_v28 = vmax.f32 %v1742_v40, 0.0 }
 0x243   : > { %v1939_v43 = vmax.f32 %v1744_v58, 0.0 }
 0x244   : > { %v2024_v46 = vpack.c.bf16 %v1938_v28, %v1936_v60 }
 0x245   : > { %v2025_v52 = vpack.c.bf16 %v1939_v43, %v1937_v55  ;;  %v1747_v25 = vpop.f32.mrb[84].mxu0 }
 0x246   : > { %v1748_v20 = vadd.f32 %v1747_v25, %v11406_v5  ;;  %v1749_v59 = vpop.f32.mrb[85].mxu0 }
 0x247   : > { %v1750_v3 = vadd.f32 %v1749_v59, %v11411_v4  ;;  %v1751_v14 = vpop.f32.mrb[86].mxu0  ;;  %2484 = vmatprep.mubr.bf16.mxu1 %v2025_v52  ;;  %v11674_v59 = vrot.slane %v2080_v12, %v14280_v54 }
 0x248   : > { %v1752_v57 = vadd.f32 %v1751_v14, %v11406_v5  ;;  %v1753_v45 = vpop.f32.mrb[87].mxu0  ;;  %2485 = vmatmul.mubr.bf16.gmra.mrb[80].mxu1 %v2024_v46  ;;  %v1940_v10 = vmax.f32 %v1748_v20, 0.0  ;;  %v11668_v46 = vrot.slane %v2080_v12, %v14279_v41  ;;  %v2733_v20 = vld [vmem:[%s14157_s7] sm:$0x3] }
 0x249   : > { %v1754_v61 = vadd.f32 %v1753_v45, %v11411_v4  ;;  %v1941_v1 = vmax.f32 %v1750_v3, 0.0 }
 0x24a   : > { %v1942_v30 = vmax.f32 %v1752_v57, 0.0  ;;  %v11676_v57 = vpop.xlane.xlu0 %3500 }
 0x24b   : > { %v1943_v15 = vmax.f32 %v1754_v61, 0.0 }
 0x24c   : > { %v2026_v22 = vpack.c.bf16 %v1942_v30, %v1940_v10 }
 0x24d   : > { %v2027_v44 = vpack.c.bf16 %v1943_v15, %v1941_v1  ;;  %v1757_v13 = vpop.f32.mrb[88].mxu0  ;;  %v11680_v15 = vrot.slane %v2733_v20, %v14279_v41 }
 0x24e   : > { %v1758_v62 = vadd.f32 %v1757_v13, %v11406_v5  ;;  %v1759_v40 = vpop.f32.mrb[89].mxu0 }
 0x24f   : > { %v1760_v58 = vadd.f32 %v1759_v40, %v11411_v4  ;;  %v1761_v60 = vpop.f32.mrb[90].mxu0  ;;  %2494 = vmatprep.mubr.bf16.mxu1 %v2027_v44  ;;  %v11685_v40 = vrot.slane %v2733_v20, %v14280_v54 }
 0x250   : > { %v1762_v28 = vadd.f32 %v1761_v60, %v11406_v5  ;;  %v1763_v55 = vpop.f32.mrb[91].mxu0  ;;  %2495 = vmatmul.mubr.bf16.gmra.mrb[84].mxu1 %v2026_v22  ;;  %v1944_v52 = vmax.f32 %v1758_v62, 0.0 }
 0x251   : > { %v1764_v43 = vadd.f32 %v1763_v55, %v11411_v4  ;;  %v1945_v3 = vmax.f32 %v1760_v58, 0.0 }
 0x252   : > { %v1946_v25 = vmax.f32 %v1762_v28, 0.0 }
 0x253   : > { %v1947_v14 = vmax.f32 %v1764_v43, 0.0 }
 0x254   : > { %v2028_v45 = vpack.c.bf16 %v1946_v25, %v1944_v52 }
 0x255   : > { %v2029_v10 = vpack.c.bf16 %v1947_v14, %v1945_v3  ;;  %v1767_v30 = vpop.f32.mrb[92].mxu0 }
 0x256   : > { %v1768_v44 = vadd.f32 %v1767_v30, %v11406_v5  ;;  %v1769_v13 = vpop.f32.mrb[93].mxu0 }
 0x257   : > { %v1770_v58 = vadd.f32 %v1769_v13, %v11411_v4  ;;  %v1771_v60 = vpop.f32.mrb[94].mxu0  ;;  %2504 = vmatprep.mubr.bf16.mxu1 %v2029_v10 }
 0x258   : > { %v1772_v52 = vadd.f32 %v1771_v60, %v11406_v5  ;;  %v1773_v25 = vpop.f32.mrb[95].mxu0  ;;  %2505 = vmatmul.mubr.bf16.gmra.mrb[88].mxu1 %v2028_v45  ;;  %v11695_v60 = vpop.xlane.xlu0 %3506 }
 0x259   : > { %v1949_v7 = vmax.f32 %v1770_v58, 0.0  ;;  %14312 = vst [vmem:[#allocation37_spill] sm:$0xff] %v11695_v60 }
 0x25a   : > { %v1950_v13 = vmax.f32 %v1772_v52, 0.0 }
 0x25e   : > { %v1777_v56 = vpop.f32.mrb[96].mxu0 }
 0x25f   : > { %v2286_v61 = vpop.f32.mrb[0].mxu1  ;;  %v1779_v52 = vpop.f32.mrb[97].mxu0 }
 0x260   : > { %v2287_v1 = vadd.f32 %v2286_v61, %v11668_v46  ;;  %v2288_v22 = vpop.f32.mrb[1].mxu1  ;;  %v1774_v61 = vadd.f32 %v1773_v25, %v11411_v4 }
 0x261   : > { %v2289_v62 = vadd.f32 %v2288_v22, %v11674_v59  ;;  %v2290_v12 = vpop.f32.mrb[2].mxu1  ;;  %v1948_v22 = vmax.f32 %v1768_v44, 0.0 }
 0x262   : > { %v2605_v28 = vmax.f32 %v2287_v1, 0.0  ;;  %v2291_v55 = vadd.f32 %v2290_v12, %v11668_v46  ;;  %v2292_v43 = vpop.f32.mrb[3].mxu1  ;;  %v1951_v12 = vmax.f32 %v1774_v61, 0.0  ;;  %v1780_v61 = vadd.f32 %v1779_v52, %v11411_v4 }
 0x263   : > { %v2606_v3 = vmax.f32 %v2289_v62, 0.0  ;;  %v2293_v14 = vadd.f32 %v2292_v43, %v11674_v59  ;;  %v2030_v45 = vpack.c.bf16 %v1950_v13, %v1948_v22 }
 0x264   : > { %v2745_v20 = vmul.f32 %v11680_v15, %v2605_v28  ;;  %v2607_v30 = vmax.f32 %v2291_v55, 0.0  ;;  %v2031_v25 = vpack.c.bf16 %v1951_v12, %v1949_v7  ;;  %v1778_v55 = vadd.f32 %v1777_v56, %v11406_v5 }
 0x265   : > { %v2746_v10 = vmul.f32 %v11685_v40, %v2606_v3  ;;  %v2608_v1 = vmax.f32 %v2293_v14, 0.0 }
 0x266   : > { %v2747_v37 = vmul.f32 %v11680_v15, %v2607_v30  ;;  %v1781_v30 = vpop.f32.mrb[98].mxu0  ;;  %2514 = vmatprep.mubr.bf16.mxu1 %v2031_v25 }
 0x267   : > { %v2748_v62 = vmul.f32 %v11685_v40, %v2608_v1  ;;  %v2296_v43 = vpop.f32.mrb[4].mxu1  ;;  %v2873_v39 = vadd.f32 %v2746_v10, %v2745_v20  ;;  %v1782_v13 = vadd.f32 %v1781_v30, %v11406_v5  ;;  %v1783_v10 = vpop.f32.mrb[99].mxu0  ;;  %2515 = vmatmul.mubr.bf16.gmra.mrb[92].mxu1 %v2030_v45 }
 0x268   : > { %v2297_v28 = vadd.f32 %v2296_v43, %v11668_v46  ;;  %v2298_v44 = vpop.f32.mrb[5].mxu1  ;;  %v1784_v12 = vadd.f32 %v1783_v10, %v11411_v4  ;;  %v11709_v30 = vpop.xlane.xlu0 %3512 }
 0x269   : > { %v2299_v58 = vadd.f32 %v2298_v44, %v11674_v59  ;;  %v2300_v3 = vpop.f32.mrb[6].mxu1  ;;  %2874 = vadd.xlane.f32.xlu0 %v2873_v39  ;;  %v2876_v14 = vadd.f32 %v2748_v62, %v2747_v37  ;;  %v1952_v62 = vmax.f32 %v1778_v55, 0.0  ;;  %v1954_v43 = vmax.f32 %v1782_v13, 0.0  ;;  %14313 = vst [vmem:[#allocation38_spill] sm:$0xff] %v11709_v30  ;;  %v1787_v23 = vpop.f32.mrb[100].mxu0 }
 0x26a   : > { %v2609_v22 = vmax.f32 %v2297_v28, 0.0  ;;  %v2301_v20 = vadd.f32 %v2300_v3, %v11668_v46  ;;  %v2302_v7 = vpop.f32.mrb[7].mxu1  ;;  %v1953_v44 = vmax.f32 %v1780_v61, 0.0  ;;  %v1955_v52 = vmax.f32 %v1784_v12, 0.0  ;;  %v1789_v13 = vpop.f32.mrb[101].mxu0 }
 0x26b   : > { %v2610_v1 = vmax.f32 %v2299_v58, 0.0  ;;  %v2303_v56 = vadd.f32 %v2302_v7, %v11674_v59  ;;  %2877 = vadd.xlane.f32.xlu1 %v2876_v14  ;;  %v2032_v45 = vpack.c.bf16 %v1954_v43, %v1952_v62  ;;  %v1790_v12 = vadd.f32 %v1789_v13, %v11411_v4 }
 0x26c   : > { %v2749_v39 = vmul.f32 %v11680_v15, %v2609_v22  ;;  %v2611_v37 = vmax.f32 %v2301_v20, 0.0  ;;  %v2033_v10 = vpack.c.bf16 %v1955_v52, %v1953_v44  ;;  %v1788_v20 = vadd.f32 %v1787_v23, %v11406_v5 }
 0x26d   : > { %v2750_v25 = vmul.f32 %v11685_v40, %v2610_v1  ;;  %v2612_v28 = vmax.f32 %v2303_v56, 0.0 }
 0x26e   : > { %v2751_v3 = vmul.f32 %v11680_v15, %v2611_v37  ;;  %v1791_v37 = vpop.f32.mrb[102].mxu0  ;;  %2524 = vmatprep.mubr.bf16.mxu1 %v2033_v10 }
 0x26f   : > { %v2752_v58 = vmul.f32 %v11685_v40, %v2612_v28  ;;  %v2306_v14 = vpop.f32.mrb[8].mxu1  ;;  %v2879_v7 = vadd.f32 %v2750_v25, %v2749_v39  ;;  %v1792_v25 = vadd.f32 %v1791_v37, %v11406_v5  ;;  %v1793_v28 = vpop.f32.mrb[103].mxu0  ;;  %2525 = vmatmul.mubr.bf16.gmra.mrb[96].mxu1 %v2032_v45 }
 0x270   : > { %v2307_v22 = vadd.f32 %v2306_v14, %v11668_v46  ;;  %v2308_v55 = vpop.f32.mrb[9].mxu1  ;;  %v1794_v52 = vadd.f32 %v1793_v28, %v11411_v4  ;;  %v11723_v37 = vpop.xlane.xlu0 %3518 }
 0x271   : > { %v2309_v61 = vadd.f32 %v2308_v55, %v11674_v59  ;;  %v2310_v1 = vpop.f32.mrb[10].mxu1  ;;  %2880 = vadd.xlane.f32.xlu0 %v2879_v7  ;;  %v2882_v56 = vadd.f32 %v2752_v58, %v2751_v3  ;;  %v1956_v58 = vmax.f32 %v1788_v20, 0.0  ;;  %v1958_v7 = vmax.f32 %v1792_v25, 0.0  ;;  %14314 = vst [vmem:[#allocation39_spill] sm:$0xff] %v11723_v37 }
 0x272   : > { %v2613_v62 = vmax.f32 %v2307_v22, 0.0  ;;  %v2311_v39 = vadd.f32 %v2310_v1, %v11668_v46  ;;  %v2312_v43 = vpop.f32.mrb[11].mxu1  ;;  %v1957_v55 = vmax.f32 %v1790_v12, 0.0  ;;  %v1959_v13 = vmax.f32 %v1794_v52, 0.0 }
 0x273   : > { %v2614_v44 = vmax.f32 %v2309_v61, 0.0  ;;  %v2313_v23 = vadd.f32 %v2312_v43, %v11674_v59  ;;  %v2034_v45 = vpack.c.bf16 %v1958_v7, %v1956_v58 }
 0x274   : > { %v2753_v14 = vmul.f32 %v11680_v15, %v2613_v62  ;;  %v2615_v3 = vmax.f32 %v2311_v39, 0.0  ;;  %v2035_v48 = vpack.c.bf16 %v1959_v13, %v1957_v55  ;;  %v1797_v62 = vpop.f32.mrb[104].mxu0 }
 0x275   : > { %v2754_v10 = vmul.f32 %v11685_v40, %v2614_v44  ;;  %v2616_v22 = vmax.f32 %v2313_v23, 0.0  ;;  %2883 = vadd.xlane.f32.xlu0 %v2882_v56  ;;  %v1798_v25 = vadd.f32 %v1797_v62, %v11406_v5  ;;  %v1799_v44 = vpop.f32.mrb[105].mxu0 }
 0x276   : > { %v2755_v1 = vmul.f32 %v11680_v15, %v2615_v3  ;;  %v1800_v52 = vadd.f32 %v1799_v44, %v11411_v4  ;;  %v1801_v3 = vpop.f32.mrb[106].mxu0  ;;  %2534 = vmatprep.mubr.bf16.mxu1 %v2035_v48 }
 0x277   : > { %v2756_v61 = vmul.f32 %v11685_v40, %v2616_v22  ;;  %v2316_v43 = vpop.f32.mrb[12].mxu1  ;;  %v2885_v28 = vadd.f32 %v2754_v10, %v2753_v14  ;;  %v1802_v10 = vadd.f32 %v1801_v3, %v11406_v5  ;;  %v1803_v22 = vpop.f32.mrb[107].mxu0  ;;  %2535 = vmatmul.mubr.bf16.gmra.mrb[100].mxu1 %v2034_v45 }
 0x278   : > { %v2317_v20 = vadd.f32 %v2316_v43, %v11668_v46  ;;  %v2318_v39 = vpop.f32.mrb[13].mxu1  ;;  %v1804_v43 = vadd.f32 %v1803_v22, %v11411_v4  ;;  %v1807_v22 = vpop.f32.mrb[108].mxu0 }
 0x279   : > { %v2319_v56 = vadd.f32 %v2318_v39, %v11674_v59  ;;  %v2320_v12 = vpop.f32.mrb[14].mxu1  ;;  %2886 = vadd.xlane.f32.xlu1 %v2885_v28  ;;  %v2888_v23 = vadd.f32 %v2756_v61, %v2755_v1  ;;  %v1960_v28 = vmax.f32 %v1798_v25, 0.0  ;;  %v1962_v62 = vmax.f32 %v1802_v10, 0.0 }
 0x27a   : > { %v2617_v58 = vmax.f32 %v2317_v20, 0.0  ;;  %v2321_v14 = vadd.f32 %v2320_v12, %v11668_v46  ;;  %v2322_v7 = vpop.f32.mrb[15].mxu1  ;;  %v1961_v39 = vmax.f32 %v1800_v52, 0.0  ;;  %v1963_v44 = vmax.f32 %v1804_v43, 0.0 }
 0x27b   : > { %v2618_v55 = vmax.f32 %v2319_v56, 0.0  ;;  %v2323_v13 = vadd.f32 %v2322_v7, %v11674_v59  ;;  %2889 = vadd.xlane.f32.xlu0 %v2888_v23  ;;  %v2036_v3 = vpack.c.bf16 %v1962_v62, %v1960_v28  ;;  %v11738_v7 = vpop.xlane.xlu0 %3524 }
 0x27c   : > { %v2757_v1 = vmul.f32 %v11680_v15, %v2617_v58  ;;  %v2619_v61 = vmax.f32 %v2321_v14, 0.0  ;;  %14315 = vst [vmem:[#allocation40_spill] sm:$0xff] %v11738_v7  ;;  %v2037_v23 = vpack.c.bf16 %v1963_v44, %v1961_v39  ;;  %v1808_v58 = vadd.f32 %v1807_v22, %v11406_v5  ;;  %v1809_v14 = vpop.f32.mrb[109].mxu0 }
 0x27d   : > { %v2758_v48 = vmul.f32 %v11685_v40, %v2618_v55  ;;  %v2620_v20 = vmax.f32 %v2323_v13, 0.0  ;;  %v1810_v10 = vadd.f32 %v1809_v14, %v11411_v4  ;;  %v1811_v55 = vpop.f32.mrb[110].mxu0 }
 0x27e   : > { %v2759_v12 = vmul.f32 %v11680_v15, %v2619_v61  ;;  %2544 = vmatprep.mubr.bf16.mxu1 %v2037_v23  ;;  %v1812_v52 = vadd.f32 %v1811_v55, %v11406_v5  ;;  %v1813_v13 = vpop.f32.mrb[111].mxu0  ;;  %v1964_v62 = vmax.f32 %v1808_v58, 0.0 }
 0x27f   : > { %v2760_v45 = vmul.f32 %v11685_v40, %v2620_v20  ;;  %v2891_v56 = vadd.f32 %v2758_v48, %v2757_v1  ;;  %2545 = vmatmul.mubr.bf16.gmra.mrb[104].mxu1 %v2036_v3  ;;  %v2326_v43 = vpop.f32.mrb[16].mxu1  ;;  %v1814_v1 = vadd.f32 %v1813_v13, %v11411_v4  ;;  %v11746_v44 = vpop.xlane.xlu0 %3530 }
 0x280   : > { %v2327_v61 = vadd.f32 %v2326_v43, %v11668_v46  ;;  %v2328_v28 = vpop.f32.mrb[17].mxu1  ;;  %v1966_v48 = vmax.f32 %v1812_v52, 0.0  ;;  %14316 = vst [vmem:[#allocation41_spill] sm:$0xff] %v11746_v44  ;;  %v1817_v13 = vpop.f32.mrb[112].mxu0 }
 0x281   : > { %2892 = vadd.xlane.f32.xlu1 %v2891_v56  ;;  %v2894_v25 = vadd.f32 %v2760_v45, %v2759_v12  ;;  %v2329_v20 = vadd.f32 %v2328_v28, %v11674_v59  ;;  %v2330_v39 = vpop.f32.mrb[18].mxu1  ;;  %v1965_v12 = vmax.f32 %v1810_v10, 0.0  ;;  %v1967_v45 = vmax.f32 %v1814_v1, 0.0  ;;  %v1819_v28 = vpop.f32.mrb[113].mxu0 }
 0x282   : > { %v2621_v56 = vmax.f32 %v2327_v61, 0.0  ;;  %v2331_v23 = vadd.f32 %v2330_v39, %v11668_v46  ;;  %v2332_v3 = vpop.f32.mrb[19].mxu1  ;;  %v2038_v22 = vpack.c.bf16 %v1966_v48, %v1964_v62  ;;  %v1818_v43 = vadd.f32 %v1817_v13, %v11406_v5  ;;  %v1821_v61 = vpop.f32.mrb[114].mxu0 }
 0x283   : > { %2895 = vadd.xlane.f32.xlu0 %v2894_v25  ;;  %v2622_v14 = vmax.f32 %v2329_v20, 0.0  ;;  %v2333_v25 = vadd.f32 %v2332_v3, %v11674_v59  ;;  %v2039_v55 = vpack.c.bf16 %v1967_v45, %v1965_v12  ;;  %v1820_v1 = vadd.f32 %v1819_v28, %v11411_v4  ;;  %v1823_v20 = vpop.f32.mrb[115].mxu0  ;;  %v11757_v45 = vpop.xlane.xlu0 %3536 }
 0x284   : > { %v2761_v58 = vmul.f32 %v11680_v15, %v2621_v56  ;;  %v2623_v52 = vmax.f32 %v2331_v23, 0.0  ;;  %v1822_v48 = vadd.f32 %v1821_v61, %v11406_v5  ;;  %14317 = vst [vmem:[#allocation42_spill] sm:$0xff] %v11757_v45  ;;  %v1824_v56 = vadd.f32 %v1823_v20, %v11411_v4 }
 0x285   : > { %v2762_v0 = vmul.f32 %v11685_v40, %v2622_v14  ;;  %v2624_v10 = vmax.f32 %v2333_v25, 0.0  ;;  %2554 = vmatprep.mubr.bf16.mxu1 %v2039_v55  ;;  %v1968_v23 = vmax.f32 %v1818_v43, 0.0  ;;  %v1969_v25 = vmax.f32 %v1820_v1, 0.0 }
 0x286   : > { %v2763_v62 = vmul.f32 %v11680_v15, %v2623_v52  ;;  %v1970_v3 = vmax.f32 %v1822_v48, 0.0  ;;  %v1971_v13 = vmax.f32 %v1824_v56, 0.0  ;;  %v1827_v42 = vpop.f32.mrb[116].mxu0 }
 0x287   : > { %2555 = vmatmul.mubr.bf16.gmra.mrb[108].mxu1 %v2038_v22  ;;  %v2764_v39 = vmul.f32 %v11685_v40, %v2624_v10  ;;  %v2897_v12 = vadd.f32 %v2762_v0, %v2761_v58  ;;  %v2336_v55 = vpop.f32.mrb[20].mxu1  ;;  %v1828_v10 = vadd.f32 %v1827_v42, %v11406_v5  ;;  %v1829_v20 = vpop.f32.mrb[117].mxu0 }
 0x288   : > { %v2040_v28 = vpack.c.bf16 %v1970_v3, %v1968_v23  ;;  %v2337_v52 = vadd.f32 %v2336_v55, %v11668_v46  ;;  %v2338_v61 = vpop.f32.mrb[21].mxu1  ;;  %v2041_v22 = vpack.c.bf16 %v1971_v13, %v1969_v25  ;;  %v11764_v1 = vpop.xlane.xlu0 %3542 }
 0x289   : > { %2898 = vadd.xlane.f32.xlu1 %v2897_v12  ;;  %v2900_v14 = vadd.f32 %v2764_v39, %v2763_v62  ;;  %v2339_v0 = vadd.f32 %v2338_v61, %v11674_v59  ;;  %v2340_v58 = vpop.f32.mrb[22].mxu1  ;;  %14318 = vst [vmem:[#allocation43_spill] sm:$0xff] %v11764_v1  ;;  %v1830_v39 = vadd.f32 %v1829_v20, %v11411_v4  ;;  %v1831_v12 = vpop.f32.mrb[118].mxu0  ;;  %v1972_v61 = vmax.f32 %v1828_v10, 0.0 }
 0x28a   : > { %v2625_v43 = vmax.f32 %v2337_v52, 0.0  ;;  %v2341_v48 = vadd.f32 %v2340_v58, %v11668_v46  ;;  %v2342_v62 = vpop.f32.mrb[23].mxu1  ;;  %2564 = vmatprep.mubr.bf16.mxu1 %v2041_v22  ;;  %v1832_v3 = vadd.f32 %v1831_v12, %v11406_v5 }
 0x28b   : > { %2901 = vadd.xlane.f32.xlu0 %v2900_v14  ;;  %v2626_v56 = vmax.f32 %v2339_v0, 0.0  ;;  %v2343_v23 = vadd.f32 %v2342_v62, %v11674_v59  ;;  %v1833_v14 = vpop.f32.mrb[119].mxu0  ;;  %v1973_v22 = vmax.f32 %v1830_v39, 0.0 }
 0x28c   : > { %v2765_v42 = vmul.f32 %v11680_v15, %v2625_v43  ;;  %v2627_v25 = vmax.f32 %v2341_v48, 0.0  ;;  %v1834_v13 = vadd.f32 %v1833_v14, %v11411_v4  ;;  %v1974_v58 = vmax.f32 %v1832_v3, 0.0  ;;  %v11774_v63 = vpop.xlane.xlu0 %3548 }
 0x28d   : > { %v2766_v55 = vmul.f32 %v11685_v40, %v2626_v56  ;;  %v2628_v52 = vmax.f32 %v2343_v23, 0.0  ;;  %14319 = vst [vmem:[#allocation44_spill] sm:$0xff] %v11774_v63 }
 0x28e   : > { %v2767_v20 = vmul.f32 %v11680_v15, %v2627_v25  ;;  %v1975_v0 = vmax.f32 %v1834_v13, 0.0  ;;  %v2042_v12 = vpack.c.bf16 %v1974_v58, %v1972_v61  ;;  %v1837_v43 = vpop.f32.mrb[120].mxu0 }
 0x28f   : > { %2565 = vmatmul.mubr.bf16.gmra.mrb[112].mxu1 %v2040_v28  ;;  %v2768_v62 = vmul.f32 %v11685_v40, %v2628_v52  ;;  %v2903_v11 = vadd.f32 %v2766_v55, %v2765_v42  ;;  %v1838_v14 = vadd.f32 %v1837_v43, %v11406_v5  ;;  %v1839_v56 = vpop.f32.mrb[121].mxu0  ;;  %v2346_v23 = vpop.f32.mrb[24].mxu1 }
 0x290   : > { %v2043_v28 = vpack.c.bf16 %v1975_v0, %v1973_v22  ;;  %v1840_v10 = vadd.f32 %v1839_v56, %v11411_v4  ;;  %v1841_v3 = vpop.f32.mrb[122].mxu0  ;;  %v2347_v39 = vadd.f32 %v2346_v23, %v11668_v46  ;;  %v2348_v25 = vpop.f32.mrb[25].mxu1 }
 0x291   : > { %2904 = vadd.xlane.f32.xlu1 %v2903_v11  ;;  %v2906_v48 = vadd.f32 %v2768_v62, %v2767_v20  ;;  %v1842_v42 = vadd.f32 %v1841_v3, %v11406_v5  ;;  %v1843_v13 = vpop.f32.mrb[123].mxu0  ;;  %v2349_v55 = vadd.f32 %v2348_v25, %v11674_v59  ;;  %v2350_v11 = vpop.f32.mrb[26].mxu1  ;;  %v1976_v22 = vmax.f32 %v1838_v14, 0.0 }
 0x292   : > { %2574 = vmatprep.mubr.bf16.mxu1 %v2043_v28  ;;  %v1844_v52 = vadd.f32 %v1843_v13, %v11411_v4  ;;  %v2629_v61 = vmax.f32 %v2347_v39, 0.0  ;;  %v2351_v58 = vadd.f32 %v2350_v11, %v11668_v46  ;;  %v2352_v20 = vpop.f32.mrb[27].mxu1  ;;  %v1977_v43 = vmax.f32 %v1840_v10, 0.0 }
 0x293   : > { %2907 = vadd.xlane.f32.xlu0 %v2906_v48  ;;  %v1978_v0 = vmax.f32 %v1842_v42, 0.0  ;;  %v2630_v62 = vmax.f32 %v2349_v55, 0.0  ;;  %v2353_v28 = vadd.f32 %v2352_v20, %v11674_v59 }
 0x294   : > { %v1979_v48 = vmax.f32 %v1844_v52, 0.0  ;;  %v2769_v56 = vmul.f32 %v11680_v15, %v2629_v61  ;;  %v2631_v23 = vmax.f32 %v2351_v58, 0.0 }
 0x295   : > { %v2044_v3 = vpack.c.bf16 %v1978_v0, %v1976_v22  ;;  %v2770_v25 = vmul.f32 %v11685_v40, %v2630_v62  ;;  %v2632_v13 = vmax.f32 %v2353_v28, 0.0 }
 0x296   : > { %v2045_v39 = vpack.c.bf16 %v1979_v48, %v1977_v43  ;;  %v2771_v11 = vmul.f32 %v11680_v15, %v2631_v23 }
 0x297   : > { %2575 = vmatmul.mubr.bf16.gmra.mrb[116].mxu1 %v2042_v12  ;;  %v11785_v12 = vpop.xlane.xlu0 %3554  ;;  %v2772_v14 = vmul.f32 %v11685_v40, %v2632_v13  ;;  %v2909_v42 = vadd.f32 %v2770_v25, %v2769_v56 }
 0x298   : > { %14320 = vst [vmem:[#allocation45_spill] sm:$0xff] %v11785_v12  ;;  %2584 = vmatprep.mubr.bf16.mxu1 %v2045_v39 }
 0x299   : > { %2910 = vadd.xlane.f32.xlu1 %v2909_v42  ;;  %v2912_v10 = vadd.f32 %v2772_v14, %v2771_v11 }
 0x29a   : > { %v2356_v52 = vpop.f32.mrb[28].mxu1 }
 0x29b   : > { %v11790_v55 = vpop.xlane.xlu0 %3560  ;;  %2913 = vadd.xlane.f32.xlu0 %v2912_v10  ;;  %v2357_v61 = vadd.f32 %v2356_v52, %v11668_v46  ;;  %v2358_v58 = vpop.f32.mrb[29].mxu1 }
 0x29c   : > { %14321 = vst [vmem:[#allocation46_spill] sm:$0xff] %v11790_v55  ;;  %v2359_v20 = vadd.f32 %v2358_v58, %v11674_v59  ;;  %v2360_v22 = vpop.f32.mrb[30].mxu1 }
 0x29d   : > { %v2633_v0 = vmax.f32 %v2357_v61, 0.0  ;;  %v2361_v62 = vadd.f32 %v2360_v22, %v11668_v46  ;;  %v2362_v28 = vpop.f32.mrb[31].mxu1 }
 0x29e   : > { %v2634_v43 = vmax.f32 %v2359_v20, 0.0  ;;  %v2363_v48 = vadd.f32 %v2362_v28, %v11674_v59 }
 0x29f   : > { %2585 = vmatmul.mubr.bf16.gmra.mrb[120].mxu1 %v2044_v3  ;;  %v2773_v56 = vmul.f32 %v11680_v15, %v2633_v0  ;;  %v2635_v23 = vmax.f32 %v2361_v62, 0.0  ;;  %v11797_v3 = vpop.xlane.xlu0 %3566 }
 0x2a0   : > { %14322 = vst [vmem:[#allocation47_spill] sm:$0xff] %v11797_v3  ;;  %v2774_v25 = vmul.f32 %v11685_v40, %v2634_v43  ;;  %v2636_v13 = vmax.f32 %v2363_v48, 0.0 }
 0x2a1   : > { %v2775_v39 = vmul.f32 %v11680_v15, %v2635_v23 }
 0x2a2   : > { %v2776_v11 = vmul.f32 %v11685_v40, %v2636_v13  ;;  %v2915_v14 = vadd.f32 %v2774_v25, %v2773_v56 }
 0x2a3   : > { %v11802_v52 = vpop.xlane.xlu0 %3572 }
 0x2a4   : > { %2916 = vadd.xlane.f32.xlu1 %v2915_v14  ;;  %v2918_v42 = vadd.f32 %v2776_v11, %v2775_v39  ;;  %14323 = vst [vmem:[#allocation48_spill] sm:$0xff] %v11802_v52 }
 0x2a5   : > { %v2366_v10 = vpop.f32.mrb[32].mxu1 }
 0x2a6   : > { %v2367_v61 = vadd.f32 %v2366_v10, %v11668_v46  ;;  %v2368_v58 = vpop.f32.mrb[33].mxu1  ;;  %2919 = vadd.xlane.f32.xlu0 %v2918_v42 }
 0x2a7   : > { %v2369_v20 = vadd.f32 %v2368_v58, %v11674_v59  ;;  %v2370_v22 = vpop.f32.mrb[34].mxu1  ;;  %v11810_v39 = vpop.xlane.xlu0 %3578 }
 0x2a8   : > { %v2637_v0 = vmax.f32 %v2367_v61, 0.0  ;;  %v2371_v62 = vadd.f32 %v2370_v22, %v11668_v46  ;;  %v2372_v28 = vpop.f32.mrb[35].mxu1  ;;  %14324 = vst [vmem:[#allocation49_spill] sm:$0xff] %v11810_v39 }
 0x2a9   : > { %v2638_v43 = vmax.f32 %v2369_v20, 0.0  ;;  %v2373_v48 = vadd.f32 %v2372_v28, %v11674_v59 }
 0x2aa   : > { %v2777_v56 = vmul.f32 %v11680_v15, %v2637_v0  ;;  %v2639_v23 = vmax.f32 %v2371_v62, 0.0 }
 0x2ab   : > { %v2778_v25 = vmul.f32 %v11685_v40, %v2638_v43  ;;  %v2640_v13 = vmax.f32 %v2373_v48, 0.0  ;;  %v11814_v58 = vpop.xlane.xlu0 %3584 }
 0x2ac   : > { %v2779_v11 = vmul.f32 %v11680_v15, %v2639_v23  ;;  %14325 = vst [vmem:[#allocation50_spill] sm:$0xff] %v11814_v58 }
 0x2ad   : > { %v2780_v14 = vmul.f32 %v11685_v40, %v2640_v13  ;;  %v2921_v42 = vadd.f32 %v2778_v25, %v2777_v56 }
 0x2af   : > { %2922 = vadd.xlane.f32.xlu1 %v2921_v42  ;;  %v2924_v10 = vadd.f32 %v2780_v14, %v2779_v11  ;;  %v11822_v42 = vpop.xlane.xlu0 %3590 }
 0x2b0   : > { %14326 = vst [vmem:[#allocation51_spill] sm:$0xff] %v11822_v42 }
 0x2b1   : > { %v2376_v61 = vpop.f32.mrb[36].mxu1  ;;  %2925 = vadd.xlane.f32.xlu0 %v2924_v10 }
 0x2b2   : > { %v2377_v20 = vadd.f32 %v2376_v61, %v11668_v46  ;;  %v2378_v22 = vpop.f32.mrb[37].mxu1 }
 0x2b3   : > { %v2379_v0 = vadd.f32 %v2378_v22, %v11674_v59  ;;  %v2380_v62 = vpop.f32.mrb[38].mxu1 }
 0x2b4   : > { %v2641_v28 = vmax.f32 %v2377_v20, 0.0  ;;  %v2381_v43 = vadd.f32 %v2380_v62, %v11668_v46  ;;  %v2382_v48 = vpop.f32.mrb[39].mxu1 }
 0x2b5   : > { %v2642_v23 = vmax.f32 %v2379_v0, 0.0  ;;  %v2383_v13 = vadd.f32 %v2382_v48, %v11674_v59  ;;  %v11826_v0 = vpop.xlane.xlu0 %3596 }
 0x2b6   : > { %v2781_v56 = vmul.f32 %v11680_v15, %v2641_v28  ;;  %v2643_v25 = vmax.f32 %v2381_v43, 0.0  ;;  %14327 = vst [vmem:[#allocation52_spill] sm:$0xff] %v11826_v0 }
 0x2b7   : > { %v2782_v11 = vmul.f32 %v11685_v40, %v2642_v23  ;;  %v2644_v14 = vmax.f32 %v2383_v13, 0.0 }
 0x2b8   : > { %v2783_v10 = vmul.f32 %v11680_v15, %v2643_v25 }
 0x2b9   : > { %v2784_v61 = vmul.f32 %v11685_v40, %v2644_v14  ;;  %v2927_v22 = vadd.f32 %v2782_v11, %v2781_v56 }
 0x2bb   : > { %2928 = vadd.xlane.f32.xlu1 %v2927_v22  ;;  %v2930_v20 = vadd.f32 %v2784_v61, %v2783_v10  ;;  %v11834_v22 = vpop.xlane.xlu0 %3602 }
 0x2bc   : > { %v2386_v62 = vpop.f32.mrb[40].mxu1  ;;  %14328 = vst [vmem:[#allocation53_spill] sm:$0xff] %v11834_v22 }
 0x2bd   : > { %2931 = vadd.xlane.f32.xlu0 %v2930_v20  ;;  %v2387_v48 = vadd.f32 %v2386_v62, %v11668_v46  ;;  %v2388_v28 = vpop.f32.mrb[41].mxu1 }
 0x2be   : > { %v2389_v43 = vadd.f32 %v2388_v28, %v11674_v59  ;;  %v2390_v23 = vpop.f32.mrb[42].mxu1 }
 0x2bf   : > { %v2645_v13 = vmax.f32 %v2387_v48, 0.0  ;;  %v2391_v53 = vadd.f32 %v2390_v23, %v11668_v46  ;;  %v2392_v9 = vpop.f32.mrb[43].mxu1 }
 0x2c0   : > { %v2646_v25 = vmax.f32 %v2389_v43, 0.0  ;;  %v2393_v14 = vadd.f32 %v2392_v9, %v11674_v59 }
 0x2c1   : > { %v2785_v56 = vmul.f32 %v11680_v15, %v2645_v13  ;;  %v2647_v11 = vmax.f32 %v2391_v53, 0.0 }
 0x2c2   : > { %v2786_v10 = vmul.f32 %v11685_v40, %v2646_v25  ;;  %v2648_v61 = vmax.f32 %v2393_v14, 0.0 }
 0x2c3   : > { %v2787_v20 = vmul.f32 %v11680_v15, %v2647_v11  ;;  %v11842_v11 = vpop.xlane.xlu0 %3608 }
 0x2c4   : > { %v2788_v28 = vmul.f32 %v11685_v40, %v2648_v61  ;;  %v2933_v48 = vadd.f32 %v2786_v10, %v2785_v56  ;;  %14329 = vst [vmem:[#allocation54_spill] sm:$0xff] %v11842_v11 }
 0x2c5   : > { %v1847_v62 = vpop.f32.mrb[124].mxu0 }
 0x2c6   : > { %v1848_v23 = vadd.f32 %v1847_v62, %v11406_v5  ;;  %v1849_v0 = vpop.f32.mrb[125].mxu0  ;;  %2934 = vadd.xlane.f32.xlu1 %v2933_v48  ;;  %v2936_v13 = vadd.f32 %v2788_v28, %v2787_v20 }
 0x2c7   : > { %v1850_v43 = vadd.f32 %v1849_v0, %v11411_v4  ;;  %v1851_v9 = vpop.f32.mrb[126].mxu0 }
 0x2c8   : > { %v1852_v53 = vadd.f32 %v1851_v9, %v11406_v5  ;;  %v1853_v25 = vpop.f32.mrb[127].mxu0  ;;  %v2396_v22 = vpop.f32.mrb[44].mxu1  ;;  %2937 = vadd.xlane.f32.xlu0 %v2936_v13  ;;  %v1980_v33 = vmax.f32 %v1848_v23, 0.0 }
 0x2c9   : > { %v1854_v14 = vadd.f32 %v1853_v25, %v11411_v4  ;;  %v2397_v56 = vadd.f32 %v2396_v22, %v11668_v46  ;;  %v2398_v10 = vpop.f32.mrb[45].mxu1  ;;  %v1981_v62 = vmax.f32 %v1850_v43, 0.0 }
 0x2ca   : > { %v1982_v61 = vmax.f32 %v1852_v53, 0.0  ;;  %v2399_v0 = vadd.f32 %v2398_v10, %v11674_v59  ;;  %v2400_v48 = vpop.f32.mrb[46].mxu1 }
 0x2cb   : > { %v1983_v42 = vmax.f32 %v1854_v14, 0.0  ;;  %v2649_v28 = vmax.f32 %v2397_v56, 0.0  ;;  %v2401_v5 = vadd.f32 %v2400_v48, %v11668_v46  ;;  %v2402_v9 = vpop.f32.mrb[47].mxu1  ;;  %v11850_v14 = vpop.xlane.xlu0 %3614 }
 0x2cc   : > { %v2046_v20 = vpack.c.bf16 %v1982_v61, %v1980_v33  ;;  %v2650_v25 = vmax.f32 %v2399_v0, 0.0  ;;  %v2403_v13 = vadd.f32 %v2402_v9, %v11674_v59  ;;  %14330 = vst [vmem:[#allocation55_spill] sm:$0xff] %v11850_v14  ;;  %v14340_v14 = vld [vmem:[#allocation8_spill] sm:$0xff] }
 0x2cd   : > { %v2047_v4 = vpack.c.bf16 %v1983_v42, %v1981_v62  ;;  %v2789_v23 = vmul.f32 %v11680_v15, %v2649_v28  ;;  %v2651_v53 = vmax.f32 %v2401_v5, 0.0  ;;  %v11931_v11 = vsub.s32 2, %v14340_v14 }
 0x2ce   : > { %v2790_v22 = vmul.f32 %v11685_v40, %v2650_v25  ;;  %v2652_v43 = vmax.f32 %v2403_v13, 0.0 }
 0x2cf   : > { %2594 = vmatprep.mubr.bf16.mxu1 %v2047_v4  ;;  %v2791_v33 = vmul.f32 %v11680_v15, %v2651_v53  ;;  %v11856_v5 = vpop.xlane.xlu0 %3620 }
 0x2d0   : > { %2595 = vmatmul.mubr.bf16.gmra.mrb[124].mxu1 %v2046_v20  ;;  %v2792_v61 = vmul.f32 %v11685_v40, %v2652_v43  ;;  %v2939_v56 = vadd.f32 %v2790_v22, %v2789_v23  ;;  %14331 = vst [vmem:[#allocation56_spill] sm:$0xff] %v11856_v5 }
 0x2d2   : > { %2940 = vadd.xlane.f32.xlu1 %v2939_v56  ;;  %v2942_v42 = vadd.f32 %v2792_v61, %v2791_v33 }
 0x2d3   : > { %v2406_v10 = vpop.f32.mrb[48].mxu1 }
 0x2d4   : > { %v2407_v62 = vadd.f32 %v2406_v10, %v11668_v46  ;;  %v2408_v0 = vpop.f32.mrb[49].mxu1  ;;  %2943 = vadd.xlane.f32.xlu0 %v2942_v42  ;;  %v11864_v10 = vpop.xlane.xlu0 %3626 }
 0x2d5   : > { %v2409_v48 = vadd.f32 %v2408_v0, %v11674_v59  ;;  %v2410_v28 = vpop.f32.mrb[50].mxu1  ;;  %14332 = vst [vmem:[#allocation57_spill] sm:$0xff] %v11864_v10 }
 0x2d6   : > { %v2653_v9 = vmax.f32 %v2407_v62, 0.0  ;;  %v2411_v20 = vadd.f32 %v2410_v28, %v11668_v46  ;;  %v2412_v4 = vpop.f32.mrb[51].mxu1 }
 0x2d7   : > { %v2654_v25 = vmax.f32 %v2409_v48, 0.0  ;;  %v2413_v13 = vadd.f32 %v2412_v4, %v11674_v59 }
 0x2d8   : > { %v2793_v23 = vmul.f32 %v11680_v15, %v2653_v9  ;;  %v2655_v53 = vmax.f32 %v2411_v20, 0.0  ;;  %v11868_v20 = vpop.xlane.xlu0 %3632 }
 0x2d9   : > { %v2794_v22 = vmul.f32 %v11685_v40, %v2654_v25  ;;  %v2656_v43 = vmax.f32 %v2413_v13, 0.0  ;;  %14333 = vst [vmem:[#allocation58_spill] sm:$0xff] %v11868_v20 }
 0x2da   : > { %v2795_v33 = vmul.f32 %v11680_v15, %v2655_v53 }
 0x2db   : > { %v2796_v61 = vmul.f32 %v11685_v40, %v2656_v43  ;;  %v2945_v56 = vadd.f32 %v2794_v22, %v2793_v23 }
 0x2dd   : > { %2946 = vadd.xlane.f32.xlu1 %v2945_v56  ;;  %v2948_v42 = vadd.f32 %v2796_v61, %v2795_v33 }
 0x2df   : > { %v2416_v62 = vpop.f32.mrb[52].mxu1  ;;  %2949 = vadd.xlane.f32.xlu0 %v2948_v42 }
 0x2e0   : > { %v2417_v0 = vadd.f32 %v2416_v62, %v11668_v46  ;;  %v2418_v48 = vpop.f32.mrb[53].mxu1 }
 0x2e1   : > { %v2419_v28 = vadd.f32 %v2418_v48, %v11674_v59  ;;  %v2420_v9 = vpop.f32.mrb[54].mxu1  ;;  %v11876_v48 = vpop.xlane.xlu0 %3638 }
 0x2e2   : > { %v2657_v4 = vmax.f32 %v2417_v0, 0.0  ;;  %v2421_v25 = vadd.f32 %v2420_v9, %v11668_v46  ;;  %v2422_v13 = vpop.f32.mrb[55].mxu1  ;;  %14334 = vst [vmem:[#allocation59_spill] sm:$0xff] %v11876_v48 }
 0x2e3   : > { %v2658_v53 = vmax.f32 %v2419_v28, 0.0  ;;  %v2423_v23 = vadd.f32 %v2422_v13, %v11674_v59 }
 0x2e4   : > { %v2797_v22 = vmul.f32 %v11680_v15, %v2657_v4  ;;  %v2659_v43 = vmax.f32 %v2421_v25, 0.0 }
 0x2e5   : > { %v2798_v33 = vmul.f32 %v11685_v40, %v2658_v53  ;;  %v2660_v61 = vmax.f32 %v2423_v23, 0.0 }
 0x2e6   : > { %v2799_v56 = vmul.f32 %v11680_v15, %v2659_v43 }
 0x2e7   : > { %v2800_v42 = vmul.f32 %v11685_v40, %v2660_v61  ;;  %v2951_v62 = vadd.f32 %v2798_v33, %v2797_v22  ;;  %v11882_v22 = vpop.xlane.xlu0 %3644 }
 0x2e8   : > { %14335 = vst [vmem:[#allocation60_spill] sm:$0xff] %v11882_v22 }
 0x2e9   : > { %v2426_v0 = vpop.f32.mrb[56].mxu1  ;;  %2952 = vadd.xlane.f32.xlu1 %v2951_v62  ;;  %v2954_v9 = vadd.f32 %v2800_v42, %v2799_v56 }
 0x2ea   : > { %v2427_v28 = vadd.f32 %v2426_v0, %v11668_v46  ;;  %v2428_v20 = vpop.f32.mrb[57].mxu1 }
 0x2eb   : > { %v2429_v13 = vadd.f32 %v2428_v20, %v11674_v59  ;;  %v2430_v4 = vpop.f32.mrb[58].mxu1  ;;  %2955 = vadd.xlane.f32.xlu0 %v2954_v9  ;;  %v11890_v10 = vpop.xlane.xlu0 %3650 }
 0x2ec   : > { %v2661_v25 = vmax.f32 %v2427_v28, 0.0  ;;  %v2431_v53 = vadd.f32 %v2430_v4, %v11668_v46  ;;  %v2432_v23 = vpop.f32.mrb[59].mxu1  ;;  %14336 = vst [vmem:[#allocation61_spill] sm:$0xff] %v11890_v10 }
 0x2ed   : > { %v2662_v43 = vmax.f32 %v2429_v13, 0.0  ;;  %v2433_v61 = vadd.f32 %v2432_v23, %v11674_v59 }
 0x2ee   : > { %v2801_v33 = vmul.f32 %v11680_v15, %v2661_v25  ;;  %v2663_v62 = vmax.f32 %v2431_v53, 0.0 }
 0x2ef   : > { %v2802_v56 = vmul.f32 %v11685_v40, %v2662_v43  ;;  %v2664_v42 = vmax.f32 %v2433_v61, 0.0 }
 0x2f0   : > { %v2803_v0 = vmul.f32 %v11680_v15, %v2663_v62 }
 0x2f1   : > { %v2804_v20 = vmul.f32 %v11685_v40, %v2664_v42  ;;  %v2436_v9 = vpop.f32.mrb[60].mxu1  ;;  %v2957_v28 = vadd.f32 %v2802_v56, %v2801_v33 }
 0x2f2   : > { %v2437_v4 = vadd.f32 %v2436_v9, %v11668_v46  ;;  %v2438_v48 = vpop.f32.mrb[61].mxu1 }
 0x2f3   : > { %v2439_v13 = vadd.f32 %v2438_v48, %v11674_v59  ;;  %v2440_v23 = vpop.f32.mrb[62].mxu1  ;;  %2958 = vadd.xlane.f32.xlu1 %v2957_v28  ;;  %v2960_v22 = vadd.f32 %v2804_v20, %v2803_v0  ;;  %v11898_v28 = vpop.xlane.xlu0 %3656 }
 0x2f4   : > { %v2665_v25 = vmax.f32 %v2437_v4, 0.0  ;;  %v2441_v53 = vadd.f32 %v2440_v23, %v11668_v46  ;;  %v2442_v43 = vpop.f32.mrb[63].mxu1  ;;  %14337 = vst [vmem:[#allocation62_spill] sm:$0xff] %v11898_v28 }
 0x2f5   : > { %v2666_v61 = vmax.f32 %v2439_v13, 0.0  ;;  %v2443_v62 = vadd.f32 %v2442_v43, %v11674_v59  ;;  %2961 = vadd.xlane.f32.xlu0 %v2960_v22 }
 0x2f6   : > { %v2805_v33 = vmul.f32 %v11680_v15, %v2665_v25  ;;  %v2667_v56 = vmax.f32 %v2441_v53, 0.0 }
 0x2f7   : > { %v2806_v42 = vmul.f32 %v11685_v40, %v2666_v61  ;;  %v2668_v9 = vmax.f32 %v2443_v62, 0.0  ;;  %v11905_v28 = vpop.xlane.xlu0 %3662 }
 0x2f8   : > { %v2807_v48 = vmul.f32 %v11680_v15, %v2667_v56  ;;  %14338 = vst [vmem:[#allocation63_spill] sm:$0xff] %v11905_v28 }
 0x2f9   : > { %v2808_v0 = vmul.f32 %v11685_v40, %v2668_v9  ;;  %v2963_v20 = vadd.f32 %v2806_v42, %v2805_v33 }
 0x2fa   : > { %v2446_v4 = vpop.f32.mrb[64].mxu1 }
 0x2fb   : > { %v2447_v23 = vadd.f32 %v2446_v4, %v11668_v46  ;;  %v2448_v13 = vpop.f32.mrb[65].mxu1  ;;  %2964 = vadd.xlane.f32.xlu1 %v2963_v20  ;;  %v2966_v43 = vadd.f32 %v2808_v0, %v2807_v48 }
 0x2fc   : > { %v2449_v22 = vadd.f32 %v2448_v13, %v11674_v59  ;;  %v2450_v25 = vpop.f32.mrb[66].mxu1 }
 0x2fd   : > { %v2669_v53 = vmax.f32 %v2447_v23, 0.0  ;;  %v2451_v61 = vadd.f32 %v2450_v25, %v11668_v46  ;;  %v2452_v62 = vpop.f32.mrb[67].mxu1  ;;  %2967 = vadd.xlane.f32.xlu0 %v2966_v43  ;;  %v11910_v25 = vpop.xlane.xlu0 %3668 }
 0x2fe   : > { %v2670_v56 = vmax.f32 %v2449_v22, 0.0  ;;  %v2453_v9 = vadd.f32 %v2452_v62, %v11674_v59  ;;  %14339 = vst [vmem:[#allocation64_spill] sm:$0xff] %v11910_v25 }
 0x2ff   : > { %v2809_v33 = vmul.f32 %v11680_v15, %v2669_v53  ;;  %v2671_v42 = vmax.f32 %v2451_v61, 0.0 }
 0x300   : > { %v2810_v4 = vmul.f32 %v11685_v40, %v2670_v56  ;;  %v2672_v20 = vmax.f32 %v2453_v9, 0.0 }
 0x301   : > { %v2811_v48 = vmul.f32 %v11680_v15, %v2671_v42  ;;  %v3738_v42 = vpop.permute.xlu1 %3737  ;;  %v2875_v25 = vpop.xlane.xlu0 %2874 }
 0x302   : > { %v2812_v0 = vmul.f32 %v11685_v40, %v2672_v20  ;;  %v2969_v23 = vadd.f32 %v2810_v4, %v2809_v33 }
 0x303   : > { %v2456_v13 = vpop.f32.mrb[68].mxu1 }
 0x304   : > { %v2457_v43 = vadd.f32 %v2456_v13, %v11668_v46  ;;  %v2458_v22 = vpop.f32.mrb[69].mxu1  ;;  %2970 = vadd.xlane.f32.xlu1 %v2969_v23  ;;  %v2972_v62 = vadd.f32 %v2812_v0, %v2811_v48 }
 0x305   : > { %v2459_v53 = vadd.f32 %v2458_v22, %v11674_v59  ;;  %v2460_v61 = vpop.f32.mrb[70].mxu1 }
 0x306   : > { %v2673_v28 = vmax.f32 %v2457_v43, 0.0  ;;  %v2461_v56 = vadd.f32 %v2460_v61, %v11668_v46  ;;  %v2462_v9 = vpop.f32.mrb[71].mxu1  ;;  %2973 = vadd.xlane.f32.xlu0 %v2972_v62  ;;  %v3670_v61 = vadd.f32 %v11263_v34, %v2875_v25  ;;  %v2878_v62 = vpop.xlane.xlu1 %2877 }
 0x307   : > { %v2674_v10 = vmax.f32 %v2459_v53, 0.0  ;;  %v2463_v33 = vadd.f32 %v2462_v9, %v11674_v59  ;;  %v11923_v9 = vrot.slane %v3738_v42, %v14279_v41 }
 0x308   : > { %v2813_v4 = vmul.f32 %v11680_v15, %v2673_v28  ;;  %v2675_v20 = vmax.f32 %v2461_v56, 0.0 }
 0x309   : > { %v2814_v13 = vmul.f32 %v11685_v40, %v2674_v10  ;;  %v2676_v23 = vmax.f32 %v2463_v33, 0.0  ;;  %v3744_v42 = vadd.f32 %v11923_v9, %v3670_v61  ;;  %v11945_v61 = vsub.s32 6, %v14340_v14 }
 0x30a   : > { %v2815_v48 = vmul.f32 %v11680_v15, %v2675_v20 }
 0x30b   : > { %v2816_v0 = vmul.f32 %v11685_v40, %v2676_v23  ;;  %v2466_v43 = vpop.f32.mrb[72].mxu1  ;;  %v2975_v22 = vadd.f32 %v2814_v13, %v2813_v4  ;;  %v3671_v4 = vadd.f32 %v11650_v18, %v2878_v62  ;;  %v9993_v13 = vmov 1966171168  }
 0x30c   : > { %v2467_v53 = vadd.f32 %v2466_v43, %v11668_v46  ;;  %v2468_v5 = vpop.f32.mrb[73].mxu1  ;;  %v5925_v34 = vunpack.c.l.s4 %v9993_v13  ;;  %v3879_v6 = vrot.slane %v3744_v42, %v14280_v54 }
 0x30d   : > { %v2469_v28 = vadd.f32 %v2468_v5, %v11674_v59  ;;  %v2470_v56 = vpop.f32.mrb[74].mxu1  ;;  %2976 = vadd.xlane.f32.xlu1 %v2975_v22  ;;  %v2978_v10 = vadd.f32 %v2816_v0, %v2815_v48  ;;  %v11935_v0 = vsub.s32 3, %v14340_v14  ;;  %v11938_v22 = vsub.s32 4, %v14340_v14 }
 0x30e   : > { %v2677_v33 = vmax.f32 %v2467_v53, 0.0  ;;  %v2471_v20 = vadd.f32 %v2470_v56, %v11668_v46  ;;  %v2472_v23 = vpop.f32.mrb[75].mxu1  ;;  %v11942_v53 = vsub.s32 5, %v14340_v14  ;;  %v11949_v56 = vadd.f32 %v11923_v9, %v3671_v4 }
 0x30f   : > { %v2678_v25 = vmax.f32 %v2469_v28, 0.0  ;;  %v2473_v43 = vadd.f32 %v2472_v23, %v11674_v59  ;;  %2979 = vadd.xlane.f32.xlu0 %v2978_v10  ;;  %v11952_v10 = vsub.s32 7, %v14340_v14  ;;  %v3887_v4 = vrot.slane %v3744_v42, %v11935_v0 }
 0x310   : > { %v2817_v5 = vmul.f32 %v11680_v15, %v2677_v33  ;;  %v2679_v48 = vmax.f32 %v2471_v20, 0.0  ;;  %v5926_v33 = vunpack.c.0.s8 %v5925_v34  ;;  %v3891_v39 = vrot.slane %v3744_v42, %v11938_v22 }
 0x311   : > { %v2818_v18 = vmul.f32 %v11685_v40, %v2678_v25  ;;  %v2680_v62 = vmax.f32 %v2473_v43, 0.0  ;;  %v2881_v25 = vpop.xlane.xlu0 %2880  ;;  %v3875_v43 = vrot.slane %v3744_v42, %v14279_v41  ;;  %v3903_v51 = vrot.slane %v3744_v42, %v11952_v10 }
 0x312   : > { %v2819_v28 = vmul.f32 %v11680_v15, %v2679_v48  ;;  %v3883_v48 = vrot.slane %v3744_v42, %v11931_v11  ;;  %v3672_v3 = vadd.f32 %v11284_v16, %v2881_v25 }
 0x313   : > { %v2820_v20 = vmul.f32 %v11685_v40, %v2680_v62  ;;  %v2476_v23 = vpop.f32.mrb[76].mxu1  ;;  %v2981_v13 = vadd.f32 %v2818_v18, %v2817_v5  ;;  %v3895_v5 = vrot.slane %v3744_v42, %v11942_v53  ;;  %v3899_v18 = vrot.slane %v3744_v42, %v11945_v61 }
 0x314   : > { %v2477_v58 = vadd.f32 %v2476_v23, %v11668_v46  ;;  %v2478_v47 = vpop.f32.mrb[77].mxu1  ;;  %v11975_v12 = vcombine.low %v3883_v48, %v3887_v4  ;;  %v11981_v25 = vadd.f32 %v11923_v9, %v3672_v3  ;;  %v3923_v3 = vrot.slane %v11949_v56, %v11938_v22 }
 0x315   : > { %v2479_v34 = vadd.f32 %v2478_v47, %v11674_v59  ;;  %v2480_v2 = vpop.f32.mrb[78].mxu1  ;;  %2982 = vadd.xlane.f32.xlu1 %v2981_v13  ;;  %v2984_v62 = vadd.f32 %v2820_v20, %v2819_v28  ;;  %v11969_v28 = vcombine.low %v3875_v43, %v3879_v6  ;;  %v11972_v20 = vsub.s32 %v5926_v33, %v14340_v14 }
 0x316   : > { %v2681_v52 = vmax.f32 %v2477_v58, 0.0  ;;  %v2481_v8 = vadd.f32 %v2480_v2, %v11668_v46  ;;  %v2482_v23 = vpop.f32.mrb[79].mxu1  ;;  %v11977_v16 = vcombine.low %v3891_v39, %v3895_v5  ;;  %v3927_v48 = vrot.slane %v11949_v56, %v11942_v53 }
 0x317   : > { %v2682_v55 = vmax.f32 %v2479_v34, 0.0  ;;  %v2483_v21 = vadd.f32 %v2482_v23, %v11674_v59  ;;  %2985 = vadd.xlane.f32.xlu0 %v2984_v62  ;;  %v11983_v34 = vcombine.low %v3899_v18, %v3903_v51  ;;  %v3919_v51 = vrot.slane %v11949_v56, %v11935_v0 }
 0x318   : > { %v2821_v47 = vmul.f32 %v11680_v15, %v2681_v52  ;;  %v2683_v13 = vmax.f32 %v2481_v8, 0.0  ;;  %v3907_v8 = vrot.slane %v11949_v56, %v14279_v41  ;;  %v3931_v18 = vrot.slane %v11949_v56, %v11945_v61 }
 0x319   : > { %v2822_v58 = vmul.f32 %v11685_v40, %v2682_v55  ;;  %v2684_v2 = vmax.f32 %v2483_v21, 0.0  ;;  %v3911_v21 = vrot.slane %v11949_v56, %v14280_v54  ;;  %v3915_v55 = vrot.slane %v11949_v56, %v11931_v11 }
 0x31a   : > { %v2823_v42 = vmul.f32 %v11680_v15, %v2683_v13  ;;  %v3935_v23 = vrot.slane %v11949_v56, %v11952_v10  ;;  %v5951_v56 = vrot.slane %v11983_v34, %v11972_v20  ;;  %v5971_v29 = vcombine.low %v3923_v3, %v3927_v48 }
 0x31b   : > { %v2824_v6 = vmul.f32 %v11685_v40, %v2684_v2  ;;  %v2486_v52 = vpop.f32.mrb[80].mxu1  ;;  %v2987_v33 = vadd.f32 %v2822_v58, %v2821_v47  ;;  %v5930_v2 = vrot.slane %v11969_v28, %v11972_v20  ;;  %v5970_v26 = vcombine.low %v3915_v55, %v3919_v51 }
 0x31c   : > { %v2487_v39 = vadd.f32 %v2486_v52, %v11668_v46  ;;  %v2488_v43 = vpop.f32.mrb[81].mxu1  ;;  %v5937_v52 = vrot.slane %v11975_v12, %v11972_v20  ;;  %v5972_v12 = vcombine.low %v3931_v18, %v3935_v23  ;;  %v3947_v34 = vrot.slane %v11981_v25, %v11931_v11 }
 0x31d   : > { %v2489_v4 = vadd.f32 %v2488_v43, %v11674_v59  ;;  %v2490_v62 = vpop.f32.mrb[82].mxu1  ;;  %2988 = vadd.xlane.f32.xlu1 %v2987_v33  ;;  %v2990_v5 = vadd.f32 %v2824_v6, %v2823_v42  ;;  %v5944_v42 = vrot.slane %v11977_v16, %v11972_v20  ;;  %v3943_v16 = vrot.slane %v11981_v25, %v14280_v54 }
 0x31e   : > { %v2685_v47 = vmax.f32 %v2487_v39, 0.0  ;;  %v2491_v13 = vadd.f32 %v2490_v62, %v11668_v46  ;;  %v2492_v58 = vpop.f32.mrb[83].mxu1  ;;  %v5969_v62 = vcombine.low %v3907_v8, %v3911_v21  ;;  %v3951_v55 = vrot.slane %v11981_v25, %v11935_v0 }
 0x31f   : > { %v2686_v43 = vmax.f32 %v2489_v4, 0.0  ;;  %v2493_v33 = vadd.f32 %v2492_v58, %v11674_v59  ;;  %2991 = vadd.xlane.f32.xlu0 %v2990_v5  ;;  %v3939_v5 = vrot.slane %v11981_v25, %v14279_v41  ;;  %v3955_v51 = vrot.slane %v11981_v25, %v11938_v22 }
 0x320   : > { %v2825_v6 = vmul.f32 %v11680_v15, %v2685_v47  ;;  %v2687_v39 = vmax.f32 %v2491_v13, 0.0  ;;  %v3959_v18 = vrot.slane %v11981_v25, %v11942_v53  ;;  %v3963_v23 = vrot.slane %v11981_v25, %v11945_v61 }
 0x321   : > { %v2826_v28 = vmul.f32 %v11685_v40, %v2686_v43  ;;  %v2688_v63 = vmax.f32 %v2493_v33, 0.0  ;;  %v5979_v43 = vrot.slane %v5969_v62, %v11972_v20  ;;  %v5986_v33 = vrot.slane %v5970_v26, %v11972_v20 }
 0x322   : > { %v2827_v4 = vmul.f32 %v11680_v15, %v2687_v39  ;;  %v5993_v1 = vrot.slane %v5971_v29, %v11972_v20  ;;  %v6000_v27 = vrot.slane %v5972_v12, %v11972_v20  ;;  %v6019_v50 = vcombine.low %v3947_v34, %v3951_v55 }
 0x323   : > { %v2828_v47 = vmul.f32 %v11685_v40, %v2688_v63  ;;  %v2496_v8 = vpop.f32.mrb[84].mxu1  ;;  %v2993_v21 = vadd.f32 %v2826_v28, %v2825_v6  ;;  %v3967_v63 = vrot.slane %v11981_v25, %v11952_v10  ;;  %v6020_v44 = vcombine.low %v3955_v51, %v3959_v18 }
 0x324   : > { %v2497_v3 = vadd.f32 %v2496_v8, %v11668_v46  ;;  %v2498_v48 = vpop.f32.mrb[85].mxu1  ;;  %v5953_v35 = vcombine.low %v5944_v42, %v5951_v56  ;;  %v6001_v29 = vcombine.low %v5979_v43, %v5986_v33  ;;  %v6002_v7 = vcombine.low %v5993_v1, %v6000_v27 }
 0x325   : > { %v2499_v13 = vadd.f32 %v2498_v48, %v11674_v59  ;;  %v2500_v58 = vpop.f32.mrb[86].mxu1  ;;  %2994 = vadd.xlane.f32.xlu1 %v2993_v21  ;;  %v12038_v6 = vadd.f32 %v2828_v47, %v2827_v4  ;;  %v6018_v48 = vcombine.low %v3939_v5, %v3943_v16  ;;  %v6021_v26 = vcombine.low %v3963_v23, %v3967_v63 }
 0x326   : > { %v2689_v39 = vmax.f32 %v2497_v3, 0.0  ;;  %v2501_v28 = vadd.f32 %v2500_v58, %v11668_v46  ;;  %v2502_v8 = vpop.f32.mrb[87].mxu1  ;;  %v5952_v58 = vcombine.low %v5930_v2, %v5937_v52  ;;  %v6035_v51 = vrot.slane %v6019_v50, %v11972_v20 }
 0x327   : > { %v2690_v45 = vmax.f32 %v2499_v13, 0.0  ;;  %v2503_v25 = vadd.f32 %v2502_v8, %v11674_v59  ;;  %v6028_v5 = vrot.slane %v6018_v48, %v11972_v20  ;;  %v6049_v18 = vrot.slane %v6021_v26, %v11972_v20 }
 0x328   : > { %v2829_v21 = vmul.f32 %v11680_v15, %v2689_v39  ;;  %v2691_v62 = vmax.f32 %v2501_v28, 0.0  ;;  %v5960_v1 = vrot.slane %v5952_v58, %v11972_v20  ;;  %v5967_v23 = vrot.slane %v5953_v35, %v11972_v20 }
 0x329   : > { %v2830_v4 = vmul.f32 %v11685_v40, %v2690_v45  ;;  %v2692_v47 = vmax.f32 %v2503_v25, 0.0  ;;  %v6042_v45 = vrot.slane %v6020_v44, %v11972_v20  ;;  %v6009_v44 = vrot.slane %v6001_v29, %v11972_v20 }
 0x32a   : > { %v2831_v3 = vmul.f32 %v11680_v15, %v2691_v62  ;;  %v6016_v39 = vrot.slane %v6002_v7, %v11972_v20  ;;  %v6050_v28 = vcombine.low %v6028_v5, %v6035_v51  ;;  %v5968_v26 = vcombine.low %v5960_v1, %v5967_v23 }
 0x32b   : > { %v2832_v12 = vmul.f32 %v11685_v40, %v2692_v47  ;;  %v2506_v13 = vpop.f32.mrb[88].mxu1  ;;  %v12049_v16 = vadd.f32 %v2830_v4, %v2829_v21  ;;  %v6051_v8 = vcombine.low %v6042_v45, %v6049_v18 }
 0x32c   : > { %v2507_v34 = vadd.f32 %v2506_v13, %v11668_v46  ;;  %v2508_v55 = vpop.f32.mrb[89].mxu1  ;;  %v6058_v58 = vrot.slane %v6050_v28, %v11972_v20 }
 0x32d   : > { %v2509_v2 = vadd.f32 %v2508_v55, %v11674_v59  ;;  %v2510_v52 = vpop.f32.mrb[90].mxu1  ;;  %v12056_v42 = vadd.f32 %v2832_v12, %v2831_v3  ;;  %v6017_v3 = vcombine.low %v6009_v44, %v6016_v39  ;;  %v6065_v29 = vrot.slane %v6051_v8, %v11972_v20 }
 0x32e   : > { %v2693_v56 = vmax.f32 %v2507_v34, 0.0  ;;  %v2512_v27 = vpop.f32.mrb[91].mxu1  ;;  %v2511_v43 = vadd.f32 %v2510_v52, %v11668_v46 }
 0x32f   : > { %v2694_v63 = vmax.f32 %v2509_v2, 0.0  ;;  %v2513_v50 = vadd.f32 %v2512_v27, %v11674_v59  ;;  %v6066_v45 = vcombine.low %v6058_v58, %v6065_v29 }
 0x330   : > { %v2833_v33 = vmul.f32 %v11680_v15, %v2693_v56  ;;  %v2695_v48 = vmax.f32 %v2511_v43, 0.0 }
 0x331   : > { %v2834_v25 = vmul.f32 %v11685_v40, %v2694_v63  ;;  %v2696_v21 = vmax.f32 %v2513_v50, 0.0 }
 0x332   : > { %v2835_v34 = vmul.f32 %v11680_v15, %v2695_v48 }
 0x333   : > { %v12066_v35 = vadd.f32 %v2834_v25, %v2833_v33  ;;  %v2836_v55 = vmul.f32 %v11685_v40, %v2696_v21  ;;  %v2884_v33 = vpop.xlane.xlu0 %2883 }
 0x334   : > { %v3673_v21 = vadd.f32 %v11654_v17, %v2884_v33 }
 0x335   : > { %9057 = vperm.xlu0 %9822, %v5968_v26   ;;  %v12076_v56 = vadd.f32 %v2836_v55, %v2835_v34 }
 0x336   : > { %9060 = vperm.xlu1 %9823, %v6017_v3   ;;  %v3747_v29 = vadd.f32 %v11923_v9, %v3673_v21 }
 0x337   : > { %14341 = vst [vmem:[#allocation8_spill] sm:$0xff] %v12076_v56 }
 0x33a   : > { %v2516_v62 = vpop.f32.mrb[92].mxu1  ;;  %9063 = vperm.xlu1 %9823, %v6066_v45   ;;  %v3971_v45 = vrot.slane %v3747_v29, %v14279_v41 }
 0x33b   : > { %v2517_v4 = vadd.f32 %v2516_v62, %v11668_v46  ;;  %v2518_v47 = vpop.f32.mrb[93].mxu1 }
 0x33c   : > { %v2519_v7 = vadd.f32 %v2518_v47, %v11674_v59  ;;  %v2520_v12 = vpop.f32.mrb[94].mxu1 }
 0x33d   : > { %v2697_v13 = vmax.f32 %v2517_v4, 0.0  ;;  %v2522_v5 = vpop.f32.mrb[95].mxu1  ;;  %v2521_v39 = vadd.f32 %v2520_v12, %v11668_v46 }
 0x33e   : > { %v2698_v51 = vmax.f32 %v2519_v7, 0.0  ;;  %v2523_v28 = vadd.f32 %v2522_v5, %v11674_v59  ;;  %v2887_v7 = vpop.xlane.xlu1 %2886 }
 0x33f   : > { %v2837_v18 = vmul.f32 %v11680_v15, %v2697_v13  ;;  %v2699_v62 = vmax.f32 %v2521_v39, 0.0 }
 0x340   : > { %v2838_v2 = vmul.f32 %v11685_v40, %v2698_v51  ;;  %v2700_v26 = vmax.f32 %v2523_v28, 0.0  ;;  %v3674_v51 = vadd.f32 %v11305_v49, %v2887_v7  ;;  %v3987_v28 = vrot.slane %v3747_v29, %v11938_v22 }
 0x341   : > { %v2839_v13 = vmul.f32 %v11680_v15, %v2699_v62  ;;  %v3995_v49 = vrot.slane %v3747_v29, %v11945_v61 }
 0x342   : > { %v2526_v52 = vpop.f32.mrb[96].mxu1  ;;  %v12078_v63 = vadd.f32 %v2838_v2, %v2837_v18  ;;  %v2840_v5 = vmul.f32 %v11685_v40, %v2700_v26  ;;  %v3975_v18 = vrot.slane %v3747_v29, %v14280_v54  ;;  %v3979_v2 = vrot.slane %v3747_v29, %v11931_v11 }
 0x343   : > { %v2528_v27 = vpop.f32.mrb[97].mxu1  ;;  %v2527_v8 = vadd.f32 %v2526_v52, %v11668_v46  ;;  %v3983_v52 = vrot.slane %v3747_v29, %v11935_v0  ;;  %v3748_v21 = vadd.f32 %v11923_v9, %v3674_v51 }
 0x344   : > { %v2530_v1 = vpop.f32.mrb[98].mxu1  ;;  %14342 = vst [vmem:[#allocation65_spill] sm:$0xff] %v12078_v63  ;;  %v2529_v25 = vadd.f32 %v2528_v27, %v11674_v59  ;;  %v12107_v27 = vadd.f32 %v2840_v5, %v2839_v13 }
 0x345   : > { %v2532_v23 = vpop.f32.mrb[99].mxu1  ;;  %v2701_v4 = vmax.f32 %v2527_v8, 0.0  ;;  %v3991_v8 = vrot.slane %v3747_v29, %v11942_v53  ;;  %v6068_v7 = vcombine.low %v3979_v2, %v3983_v52  ;;  %v4015_v51 = vrot.slane %v3748_v21, %v11935_v0 }
 0x346   : > { %v2702_v47 = vmax.f32 %v2529_v25, 0.0  ;;  %14343 = vst [vmem:[#allocation66_spill] sm:$0xff] %v12107_v27  ;;  %v3999_v25 = vrot.slane %v3747_v29, %v11952_v10  ;;  %v4011_v29 = vrot.slane %v3748_v21, %v11931_v11  ;;  %v4019_v32 = vrot.slane %v3748_v21, %v11938_v22 }
 0x347   : > { %v2841_v34 = vmul.f32 %v11680_v15, %v2701_v4  ;;  %v6069_v13 = vcombine.low %v3987_v28, %v3991_v8  ;;  %v4027_v37 = vrot.slane %v3748_v21, %v11945_v61  ;;  %v4031_v36 = vrot.slane %v3748_v21, %v11952_v10 }
 0x348   : > { %v2842_v17 = vmul.f32 %v11685_v40, %v2702_v47  ;;  %v6067_v47 = vcombine.low %v3971_v45, %v3975_v18  ;;  %v6070_v5 = vcombine.low %v3995_v49, %v3999_v25  ;;  %v6084_v2 = vrot.slane %v6068_v7, %v11972_v20 }
 0x349   : > { %v6091_v52 = vrot.slane %v6069_v13, %v11972_v20  ;;  %v2531_v8 = vadd.f32 %v2530_v1, %v11668_v46  ;;  %v2533_v49 = vadd.f32 %v2532_v23, %v11674_v59  ;;  %v6119_v7 = vcombine.low %v4027_v37, %v4031_v36 }
 0x34a   : > { %v2536_v43 = vpop.f32.mrb[100].mxu1  ;;  %v12109_v33 = vadd.f32 %v2842_v17, %v2841_v34  ;;  %v4003_v34 = vrot.slane %v3748_v21, %v14279_v41  ;;  %v4007_v17 = vrot.slane %v3748_v21, %v14280_v54  ;;  %v6077_v18 = vrot.slane %v6067_v47, %v11972_v20 }
 0x34b   : > { %v2538_v50 = vpop.f32.mrb[101].mxu1  ;;  %v6098_v28 = vrot.slane %v6070_v5, %v11972_v20  ;;  %v2537_v25 = vadd.f32 %v2536_v43, %v11668_v46  ;;  %v6117_v47 = vcombine.low %v4011_v29, %v4015_v51  ;;  %v2703_v5 = vmax.f32 %v2531_v8, 0.0 }
 0x34c   : > { %v12080_v44 = vpop.f32.mrb[102].mxu1  ;;  %14344 = vst [vmem:[#allocation67_spill] sm:$0xff] %v12109_v33  ;;  %v2539_v30 = vadd.f32 %v2538_v50, %v11674_v59  ;;  %v6116_v27 = vcombine.low %v4003_v34, %v4007_v17  ;;  %v6099_v13 = vcombine.low %v6077_v18, %v6084_v2  ;;  %v2704_v23 = vmax.f32 %v2533_v49, 0.0 }
 0x34d   : > { %v12086_v48 = vpop.f32.mrb[103].mxu1  ;;  %v6100_v1 = vcombine.low %v6091_v52, %v6098_v28  ;;  %v2705_v63 = vmax.f32 %v2537_v25, 0.0  ;;  %v6133_v56 = vrot.slane %v6117_v47, %v11972_v20  ;;  %v6147_v34 = vrot.slane %v6119_v7, %v11972_v20 }
 0x34e   : > { %v2706_v43 = vmax.f32 %v2539_v30, 0.0  ;;  %v6126_v50 = vrot.slane %v6116_v27, %v11972_v20  ;;  %v6107_v36 = vrot.slane %v6099_v13, %v11972_v20  ;;  %v2844_v17 = vmul.f32 %v11685_v40, %v2704_v23  ;;  %v2893_v23 = vpop.xlane.xlu1 %2892 }
 0x34f   : > { %v6114_v37 = vrot.slane %v6100_v1, %v11972_v20  ;;  %v2845_v30 = vmul.f32 %v11680_v15, %v2705_v63  ;;  %v2541_v63 = vadd.f32 %v12080_v44, %v11668_v46  ;;  %v2543_v25 = vadd.f32 %v12086_v48, %v11674_v59 }
 0x350   : > { %v2846_v27 = vmul.f32 %v11685_v40, %v2706_v43 }
 0x351   : > { %v6115_v2 = vcombine.low %v6107_v36, %v6114_v37  ;;  %v2707_v44 = vmax.f32 %v2541_v63, 0.0  ;;  %v2708_v43 = vmax.f32 %v2543_v25, 0.0 }
 0x352   : > { %v12089_v3 = vpop.f32.mrb[104].mxu1  ;;  %v12170_v28 = vadd.f32 %v2846_v27, %v2845_v30  ;;  %v12192_v37 = vpop.xlane.xlu1 %2898 }
 0x353   : > { %v12091_v58 = vpop.f32.mrb[105].mxu1  ;;  %v2547_v47 = vadd.f32 %v12089_v3, %v11668_v46  ;;  %v2847_v3 = vmul.f32 %v11680_v15, %v2707_v44 }
 0x354   : > { %v12094_v12 = vpop.f32.mrb[106].mxu1  ;;  %2997 = vadd.xlane.f32.xlu0 %v12038_v6  ;;  %v4023_v6 = vrot.slane %v3748_v21, %v11942_v53  ;;  %v2549_v7 = vadd.f32 %v12091_v58, %v11674_v59  ;;  %v2848_v58 = vmul.f32 %v11685_v40, %v2708_v43 }
 0x355   : > { %v12100_v55 = vpop.f32.mrb[107].mxu1 }
 0x356   : > { %v6118_v24 = vcombine.low %v4019_v32, %v4023_v6  ;;  %v2710_v36 = vmax.f32 %v2549_v7, 0.0  ;;  %v12200_v27 = vpop.xlane.xlu1 %2904 }
 0x358   : > { %v6140_v31 = vrot.slane %v6118_v24, %v11972_v20  ;;  %v6148_v24 = vcombine.low %v6126_v50, %v6133_v56  ;;  %v2850_v30 = vmul.f32 %v11685_v40, %v2710_v36 }
 0x35a   : > { %v12111_v39 = vpop.f32.mrb[108].mxu1  ;;  %v6149_v6 = vcombine.low %v6140_v31, %v6147_v34  ;;  %v6156_v8 = vrot.slane %v6148_v24, %v11972_v20  ;;  %v2890_v31 = vpop.xlane.xlu0 %2889  ;;  %v2709_v34 = vmax.f32 %v2547_v47, 0.0  ;;  %v12202_v24 = vadd.f32 %v2848_v58, %v2847_v3 }
 0x35b   : > { %v12118_v62 = vpop.f32.mrb[109].mxu1  ;;  %v2557_v63 = vadd.f32 %v12111_v39, %v11668_v46  ;;  %v12216_v47 = vpop.xlane.xlu1 %2910  ;;  %v3675_v36 = vadd.f32 %v11658_v38, %v2890_v31 }
 0x35c   : > { %v12121_v26 = vpop.f32.mrb[110].mxu1  ;;  %v6163_v49 = vrot.slane %v6149_v6, %v11972_v20  ;;  %14345 = vst [vmem:[#allocation68_spill] sm:$0xff] %v12202_v24  ;;  %v2559_v25 = vadd.f32 %v12118_v62, %v11674_v59 }
 0x35d   : > { %v12123_v4 = vpop.f32.mrb[111].mxu1  ;;  %v2713_v43 = vmax.f32 %v2557_v63, 0.0 }
 0x35e   : > { %3000 = vadd.xlane.f32.xlu1 %v12049_v16  ;;  %v2843_v16 = vmul.f32 %v11680_v15, %v2703_v5  ;;  %v6164_v5 = vcombine.low %v6156_v8, %v6163_v49  ;;  %v12190_v48 = vpop.xlane.xlu0 %2895  ;;  %v2551_v8 = vadd.f32 %v12094_v12, %v11668_v46  ;;  %v2553_v49 = vadd.f32 %v12100_v55, %v11674_v59 }
 0x35f   : > { %v12221_v12 = vpop.xlane.xlu1 %2916  ;;  %v2853_v62 = vmul.f32 %v11680_v15, %v2713_v43  ;;  %v2563_v38 = vadd.f32 %v12123_v4, %v11674_v59 }
 0x360   : > { %v12168_v52 = vadd.f32 %v2844_v17, %v2843_v16  ;;  %v2849_v17 = vmul.f32 %v11680_v15, %v2709_v34  ;;  %v2712_v44 = vmax.f32 %v2553_v49, 0.0  ;;  %v2714_v34 = vmax.f32 %v2559_v25, 0.0 }
 0x361   : > { %v3676_v25 = vadd.f32 %v11328_v19, %v2893_v23 }
 0x362   : > { %v12133_v45 = vpop.f32.mrb[112].mxu1  ;;  %v12196_v16 = vpop.xlane.xlu0 %2901  ;;  %v2852_v39 = vmul.f32 %v11685_v40, %v2712_v44  ;;  %v2854_v58 = vmul.f32 %v11685_v40, %v2714_v34 }
 0x363   : > { %v12143_v33 = vpop.f32.mrb[113].mxu1  ;;  %v2567_v49 = vadd.f32 %v12133_v45, %v11668_v46 }
 0x364   : > { %v12145_v21 = vpop.f32.mrb[114].mxu1  ;;  %v2569_v63 = vadd.f32 %v12143_v33, %v11674_v59  ;;  %v12245_v44 = vadd.f32 %v2854_v58, %v2853_v62 }
 0x365   : > { %v12147_v60 = vpop.f32.mrb[115].mxu1  ;;  %v2717_v23 = vmax.f32 %v2567_v49, 0.0  ;;  %v2571_v24 = vadd.f32 %v12145_v21, %v11668_v46 }
 0x366   : > { %v12204_v6 = vpop.xlane.xlu0 %2907  ;;  %14351 = vst [vmem:[#allocation74_spill] sm:$0xff] %v12245_v44 }
 0x367   : > { %v2857_v49 = vmul.f32 %v11680_v15, %v2717_v23 }
 0x36a   : > { %v12154_v32 = vpop.f32.mrb[116].mxu1  ;;  %9066 = vperm.xlu0 %9822, %v6115_v2   ;;  %v12206_v2 = vadd.f32 %v2850_v30, %v2849_v17  ;;  %v12218_v7 = vpop.xlane.xlu0 %2913  ;;  %v3749_v17 = vadd.f32 %v11923_v9, %v3675_v36 }
 0x36b   : > { %v12162_v29 = vpop.f32.mrb[117].mxu1  ;;  %v12230_v30 = vpop.xlane.xlu1 %2922 }
 0x36c   : > { %v12164_v51 = vpop.f32.mrb[118].mxu1  ;;  %14346 = vst [vmem:[#allocation69_spill] sm:$0xff] %v12206_v2  ;;  %14348 = vst [vmem:[#allocation71_spill] sm:$0xff] %v12230_v30  ;;  %v4039_v4 = vrot.slane %v3749_v17, %v14280_v54  ;;  %v4043_v34 = vrot.slane %v3749_v17, %v11931_v11  ;;  %v4047_v36 = vrot.slane %v3749_v17, %v11935_v0 }
 0x36d   : > { %v12166_v18 = vpop.f32.mrb[119].mxu1  ;;  %v4051_v33 = vrot.slane %v3749_v17, %v11938_v22  ;;  %v4055_v19 = vrot.slane %v3749_v17, %v11942_v53  ;;  %v4059_v62 = vrot.slane %v3749_v17, %v11945_v61  ;;  %v4063_v58 = vrot.slane %v3749_v17, %v11952_v10 }
 0x36e   : > { %v12223_v3 = vpop.xlane.xlu0 %2919  ;;  %v6166_v30 = vcombine.low %v4043_v34, %v4047_v36 }
 0x36f   : > { %9069 = vperm.xlu1 %9823, %v6164_v5   ;;  %v2711_v5 = vmax.f32 %v2551_v8, 0.0  ;;  %14347 = vst [vmem:[#allocation70_spill] sm:$0xff] %v12223_v3  ;;  %v2561_v8 = vadd.f32 %v12121_v26, %v11668_v46  ;;  %v12247_v43 = vpop.xlane.xlu1 %2928  ;;  %v4035_v26 = vrot.slane %v3749_v17, %v14279_v41  ;;  %v6167_v3 = vcombine.low %v4051_v33, %v4055_v19 }
 0x370   : > { %14352 = vst [vmem:[#allocation75_spill] sm:$0xff] %v12247_v43  ;;  %v3750_v43 = vadd.f32 %v11923_v9, %v3676_v25  ;;  %v6168_v17 = vcombine.low %v4059_v62, %v4063_v58  ;;  %v6182_v23 = vrot.slane %v6166_v30, %v11972_v20  ;;  %v2577_v30 = vadd.f32 %v12154_v32, %v11668_v46 }
 0x371   : > { %v2851_v55 = vmul.f32 %v11680_v15, %v2711_v5  ;;  %v2715_v45 = vmax.f32 %v2561_v8, 0.0  ;;  %v6189_v62 = vrot.slane %v6167_v3, %v11972_v20  ;;  %v2579_v3 = vadd.f32 %v12162_v29, %v11674_v59 }
 0x372   : > { %v12178_v56 = vpop.f32.mrb[120].mxu1  ;;  %v12236_v31 = vpop.xlane.xlu0 %2925  ;;  %v4067_v25 = vrot.slane %v3750_v43, %v14279_v41  ;;  %v4095_v34 = vrot.slane %v3750_v43, %v11952_v10  ;;  %v6196_v58 = vrot.slane %v6168_v17, %v11972_v20  ;;  %v2719_v17 = vmax.f32 %v2571_v24, 0.0 }
 0x373   : > { %v12184_v13 = vpop.f32.mrb[121].mxu1  ;;  %14349 = vst [vmem:[#allocation72_spill] sm:$0xff] %v12236_v31  ;;  %v12243_v5 = vadd.f32 %v2852_v39, %v2851_v55  ;;  %v2716_v31 = vmax.f32 %v2563_v38, 0.0  ;;  %v2718_v55 = vmax.f32 %v2569_v63, 0.0  ;;  %v12261_v44 = vpop.xlane.xlu1 %2934  ;;  %v2855_v8 = vmul.f32 %v11680_v15, %v2715_v45 }
 0x374   : > { %v12186_v1 = vpop.f32.mrb[122].mxu1  ;;  %14354 = vst [vmem:[#allocation77_spill] sm:$0xff] %v12261_v44  ;;  %v4075_v44 = vrot.slane %v3750_v43, %v11931_v11  ;;  %v4079_v45 = vrot.slane %v3750_v43, %v11935_v0  ;;  %v2722_v29 = vmax.f32 %v2579_v3, 0.0 }
 0x375   : > { %v12188_v50 = vpop.f32.mrb[123].mxu1  ;;  %14350 = vst [vmem:[#allocation73_spill] sm:$0xff] %v12243_v5  ;;  %v2856_v38 = vmul.f32 %v11685_v40, %v2716_v31  ;;  %v6165_v5 = vcombine.low %v4035_v26, %v4039_v4  ;;  %v2858_v63 = vmul.f32 %v11685_v40, %v2718_v55  ;;  %v4083_v31 = vrot.slane %v3750_v43, %v11938_v22 }
 0x376   : > { %v12255_v39 = vpop.xlane.xlu0 %2931  ;;  %v4087_v26 = vrot.slane %v3750_v43, %v11942_v53  ;;  %v4091_v4 = vrot.slane %v3750_v43, %v11945_v61 }
 0x377   : > { %14353 = vst [vmem:[#allocation76_spill] sm:$0xff] %v12255_v39  ;;  %v12273_v2 = vpop.xlane.xlu1 %2940  ;;  %v12279_v36 = vadd.f32 %v2856_v38, %v2855_v8  ;;  %v6175_v19 = vrot.slane %v6165_v5, %v11972_v20  ;;  %v12285_v55 = vadd.f32 %v2858_v63, %v2857_v49  ;;  %v6198_v63 = vcombine.low %v6189_v62, %v6196_v58 }
 0x378   : > { %14356 = vst [vmem:[#allocation79_spill] sm:$0xff] %v12273_v2  ;;  %v6216_v38 = vcombine.low %v4083_v31, %v4087_v26  ;;  %v6217_v5 = vcombine.low %v4091_v4, %v4095_v34  ;;  %v2721_v31 = vmax.f32 %v2577_v30, 0.0  ;;  %v2862_v62 = vmul.f32 %v11685_v40, %v2722_v29 }
 0x379   : > { %v6212_v4 = vrot.slane %v6198_v63, %v11972_v20 }
 0x37a   : > { %v12267_v39 = vpop.xlane.xlu0 %2937  ;;  %v6245_v32 = vrot.slane %v6217_v5, %v11972_v20 }
 0x37b   : > { %14355 = vst [vmem:[#allocation78_spill] sm:$0xff] %v12267_v39  ;;  %v6215_v39 = vcombine.low %v4075_v44, %v4079_v45  ;;  %v12293_v8 = vpop.xlane.xlu1 %2946  ;;  %v6197_v44 = vcombine.low %v6175_v19, %v6182_v23  ;;  %v6238_v45 = vrot.slane %v6216_v38, %v11972_v20  ;;  %v2861_v23 = vmul.f32 %v11680_v15, %v2721_v31 }
 0x37d   : > { %v6247_v19 = vcombine.low %v6238_v45, %v6245_v32  ;;  %v2587_v45 = vadd.f32 %v12178_v56, %v11668_v46  ;;  %v2589_v32 = vadd.f32 %v12184_v13, %v11674_v59 }
 0x37e   : > { %v12281_v33 = vpop.xlane.xlu0 %2943 }
 0x37f   : > { %v6261_v30 = vrot.slane %v6247_v19, %v11972_v20  ;;  %v2726_v19 = vmax.f32 %v2589_v32, 0.0  ;;  %v2591_v32 = vadd.f32 %v12186_v1, %v11668_v46 }
 0x382   : > { %v12300_v49 = vpop.xlane.xlu0 %2949 }
 0x386   : > { %v12308_v26 = vpop.xlane.xlu0 %2955 }
 0x389   : > { %3003 = vadd.xlane.f32.xlu0 %v12056_v42  ;;  %v4071_v42 = vrot.slane %v3750_v43, %v14280_v54  ;;  %v2573_v43 = vadd.f32 %v12147_v60, %v11674_v59  ;;  %v6231_v60 = vrot.slane %v6215_v39, %v11972_v20 }
 0x38a   : > { %v12318_v58 = vpop.xlane.xlu0 %2961 }
 0x38b   : > { %v6214_v2 = vcombine.low %v4067_v25, %v4071_v42  ;;  %v2720_v25 = vmax.f32 %v2573_v43, 0.0  ;;  %v12304_v42 = vpop.xlane.xlu1 %2952 }
 0x38d   : > { %v6224_v21 = vrot.slane %v6214_v2, %v11972_v20  ;;  %v2859_v2 = vmul.f32 %v11680_v15, %v2719_v17  ;;  %v2860_v39 = vmul.f32 %v11685_v40, %v2720_v25 }
 0x38e   : > { %v12328_v63 = vpop.xlane.xlu0 %2967 }
 0x38f   : > { %v12314_v24 = vpop.xlane.xlu1 %2958  ;;  %v6246_v34 = vcombine.low %v6224_v21, %v6231_v60  ;;  %v12324_v3 = vadd.f32 %v2860_v39, %v2859_v2  ;;  %v2581_v21 = vadd.f32 %v12164_v51, %v11668_v46  ;;  %v2583_v60 = vadd.f32 %v12166_v18, %v11674_v59 }
 0x391   : > { %v6254_v5 = vrot.slane %v6246_v34, %v11972_v20  ;;  %14357 = vst [vmem:[#allocation80_spill] sm:$0xff] %v12324_v3  ;;  %v2723_v51 = vmax.f32 %v2581_v21, 0.0  ;;  %v2724_v2 = vmax.f32 %v2583_v60, 0.0  ;;  %v2725_v34 = vmax.f32 %v2587_v45, 0.0 }
 0x393   : > { %3006 = vadd.xlane.f32.xlu1 %v12066_v35  ;;  %v6205_v35 = vrot.slane %v6197_v44, %v11972_v20  ;;  %v12320_v38 = vpop.xlane.xlu1 %2964  ;;  %v12326_v44 = vadd.f32 %v2862_v62, %v2861_v23  ;;  %v6262_v25 = vcombine.low %v6254_v5, %v6261_v30  ;;  %v12340_v29 = vpop.xlane.xlu0 %2973  ;;  %v2863_v56 = vmul.f32 %v11680_v15, %v2723_v51 }
 0x394   : > { %14359 = vst [vmem:[#allocation82_spill] sm:$0xff] %v12340_v29  ;;  %v2864_v13 = vmul.f32 %v11685_v40, %v2724_v2  ;;  %v2866_v5 = vmul.f32 %v11685_v40, %v2726_v19  ;;  %v14363_v30 = vlaneseq  ;;  %v2593_v51 = vadd.f32 %v12188_v50, %v11674_v59 }
 0x395   : > { %v6213_v43 = vcombine.low %v6205_v35, %v6212_v4  ;;  %14358 = vst [vmem:[#allocation81_spill] sm:$0xff] %v12326_v44 }
 0x396   : > { %v12357_v21 = vand.u32 127, %v14363_v30  ;;  %v12363_v45 = vadd.f32 %v2864_v13, %v2863_v56  ;;  %v2727_v13 = vmax.f32 %v2591_v32, 0.0 }
 0x397   : > { %v12334_v17 = vpop.xlane.xlu1 %2970 }
 0x398   : > { %14366 = vst [vmem:[#allocation88_spill] sm:$0xff] %v12363_v45  ;;  %v9254_v2 = vadd.s32 4294967288, %v12357_v21  ;;  %v9261_v56 = vadd.s32 4294967280, %v12357_v21  ;;  %v2728_v45 = vmax.f32 %v2593_v51, 0.0  ;;  %v12381_v1 = vsub.s32 %v12357_v21, %v14340_v14 }
 0x399   : > { %v2867_v51 = vmul.f32 %v11680_v15, %v2727_v13 }
 0x39a   : > { %14370 = vst [vmem:[#allocation92_spill] sm:$0xff] %v12381_v1  ;;  %v12384_v50 = vsub.s32 %v9254_v2, %v14340_v14  ;;  %v12391_v32 = vsub.s32 %v9261_v56, %v14340_v14 }
 0x39b   : > { %v12344_v39 = vpop.xlane.xlu1 %2976 }
 0x39c   : > { %14360 = vst [vmem:[#allocation83_spill] sm:$0xff] %v12344_v39  ;;  %v12348_v23 = vpop.xlane.xlu0 %2979  ;;  %14371 = vst [vmem:[#allocation93_spill] sm:$0xff] %v12384_v50 }
 0x39d   : > { %14361 = vst [vmem:[#allocation84_spill] sm:$0xff] %v12348_v23  ;;  %v14377_v23 = vld [vmem:[#allocation65_spill] sm:$0xff] }
 0x39f   : > { %9072 = vperm.xlu0 %9822, %v6213_v43   ;;  %v2865_v43 = vmul.f32 %v11680_v15, %v2725_v34 }
 0x3a1   : > { %v12370_v34 = vadd.f32 %v2866_v5, %v2865_v43 }
 0x3a2   : > { %v12352_v62 = vpop.xlane.xlu1 %2982 }
 0x3a3   : > { %v2596_v31 = vpop.f32.mrb[124].mxu1  ;;  %14362 = vst [vmem:[#allocation85_spill] sm:$0xff] %v12352_v62  ;;  %14367 = vst [vmem:[#allocation89_spill] sm:$0xff] %v12370_v34  ;;  %v14372_v34 = vld [vmem:[#allocation20_spill] sm:$0xff] }
 0x3a4   : > { %v2598_v35 = vpop.f32.mrb[125].mxu1  ;;  %9075 = vperm.xlu1 %9823, %v6262_v25   ;;  %v12359_v60 = vpop.xlane.xlu0 %2985  ;;  %v2597_v19 = vadd.f32 %v2596_v31, %v11668_v46  ;;  %v3677_v31 = vadd.f32 %v11676_v57, %v12190_v48  ;;  %14373 = vst [vmem:[#allocation20_spill] sm:$0xff] %v12391_v32 }
 0x3a5   : > { %v12342_v4 = vpop.f32.mrb[126].mxu1  ;;  %14364 = vst [vmem:[#allocation86_spill] sm:$0xff] %v12359_v60  ;;  %v2599_v30 = vadd.f32 %v2598_v35, %v11674_v59 }
 0x3a6   : > { %v12346_v18 = vpop.f32.mrb[127].mxu1  ;;  %v2729_v43 = vmax.f32 %v2597_v19, 0.0  ;;  %v3751_v57 = vadd.f32 %v11923_v9, %v3677_v31 }
 0x3a7   : > { %v2730_v35 = vmax.f32 %v2599_v30, 0.0 }
 0x3a8   : > { %v2869_v48 = vmul.f32 %v11680_v15, %v2729_v43  ;;  %v4107_v31 = vrot.slane %v3751_v57, %v11931_v11 }
 0x3a9   : > { %v2870_v30 = vmul.f32 %v11685_v40, %v2730_v35  ;;  %v4115_v35 = vrot.slane %v3751_v57, %v11938_v22 }
 0x3aa   : > { %v12361_v25 = vpop.xlane.xlu1 %2988 }
 0x3ab   : > { %14365 = vst [vmem:[#allocation87_spill] sm:$0xff] %v12361_v25  ;;  %v2868_v25 = vmul.f32 %v11685_v40, %v2728_v45  ;;  %v4099_v45 = vrot.slane %v3751_v57, %v14279_v41 }
 0x3ac   : > { %v12374_v44 = vpop.xlane.xlu0 %2991 }
 0x3ad   : > { %14368 = vst [vmem:[#allocation90_spill] sm:$0xff] %v12374_v44  ;;  %v12403_v13 = vadd.f32 %v2868_v25, %v2867_v51  ;;  %v4123_v25 = vrot.slane %v3751_v57, %v11945_v61  ;;  %v4127_v51 = vrot.slane %v3751_v57, %v11952_v10 }
 0x3af   : > { %14374 = vst [vmem:[#allocation94_spill] sm:$0xff] %v12403_v13 }
 0x3b2   : > { %v12376_v60 = vpop.xlane.xlu1 %2994 }
 0x3b3   : > { %14369 = vst [vmem:[#allocation91_spill] sm:$0xff] %v12376_v60  ;;  %v3678_v60 = vadd.f32 %v14372_v34, %v12192_v37 }
 0x3b4   : > { %v9058_v5 = vpop.permute.xlu0 %9057 }
 0x3b5   : > { %v9253_v2 = vrot.slane %v9058_v5, %v12381_v1  ;;  %v3752_v19 = vadd.f32 %v11923_v9, %v3678_v60  ;;  %v12408_v5 = vadd.f32 %v2870_v30, %v2869_v48  ;;  %v4119_v60 = vrot.slane %v3751_v57, %v11942_v53 }
 0x3b6   : > { %v9061_v44 = vpop.permute.xlu1 %9060  ;;  %v6266_v30 = vcombine.low %v4123_v25, %v4127_v51 }
 0x3b7   : > { %v9258_v62 = vrot.slane %v9061_v44, %v12384_v50  ;;  %v4103_v44 = vrot.slane %v3751_v57, %v14280_v54  ;;  %14375 = vst [vmem:[#allocation95_spill] sm:$0xff] %v12408_v5  ;;  %v4131_v48 = vrot.slane %v3752_v19, %v14279_v41  ;;  %v4143_v5 = vrot.slane %v3752_v19, %v11935_v0 }
 0x3b8   : > { %v4147_v50 = vrot.slane %v3752_v19, %v11938_v22  ;;  %v4155_v1 = vrot.slane %v3752_v19, %v11945_v61 }
 0x3b9   : > { %v9260_v37 = vsel %vm9259_vm2, %v9258_v62, %v9253_v2  ;;  %v4111_v62 = vrot.slane %v3751_v57, %v11935_v0  ;;  %v14376_v2 = vld [vmem:[#allocation8_spill] sm:$0xff]  ;;  %v4159_v57 = vrot.slane %v3752_v19, %v11952_v10 }
 0x3ba   : > { %v9064_v34 = vpop.permute.xlu1 %9063 }
 0x3bb   : > { %v9265_v56 = vrot.slane %v9064_v34, %v12391_v32  ;;  %v6263_v34 = vcombine.low %v4099_v45, %v4103_v44  ;;  %v6264_v13 = vcombine.low %v4107_v31, %v4111_v62  ;;  %v6265_v32 = vcombine.low %v4115_v35, %v4119_v60 }
 0x3bc   : > { %v6294_v62 = vrot.slane %v6266_v30, %v11972_v20  ;;  %v6315_v51 = vcombine.low %v4155_v1, %v4159_v57 }
 0x3bd   : > { %v9267_v43 = vsel %vm9266_vm5, %v9265_v56, %v9260_v37  ;;  %v4135_v37 = vrot.slane %v3752_v19, %v14280_v54  ;;  %v4139_v56 = vrot.slane %v3752_v19, %v11931_v11  ;;  %v6273_v45 = vrot.slane %v6263_v34, %v11972_v20 }
 0x3be   : > { %3009 = vadd.xlane.f32.xlu0 %v14376_v2  ;;  %v4151_v2 = vrot.slane %v3752_v19, %v11942_v53  ;;  %v6280_v44 = vrot.slane %v6264_v13, %v11972_v20  ;;  %v6287_v31 = vrot.slane %v6265_v32, %v11972_v20  ;;  %v6343_v13 = vrot.slane %v6315_v51, %v11972_v20  ;;  %v14384_v51 = vld [vmem:[#allocation21_spill] sm:$0xff] }
 0x3bf   : > { %v6312_v35 = vcombine.low %v4131_v48, %v4135_v37  ;;  %v6313_v60 = vcombine.low %v4139_v56, %v4143_v5  ;;  %v2601_v56 = vadd.f32 %v12342_v4, %v11668_v46  ;;  %v14381_v46 = vld [vmem:[#allocation37_spill] sm:$0xff] }
 0x3c0   : > { %v6314_v25 = vcombine.low %v4147_v50, %v4151_v2  ;;  %v6295_v39 = vcombine.low %v6273_v45, %v6280_v44  ;;  %v6296_v29 = vcombine.low %v6287_v31, %v6294_v62  ;;  %v2603_v2 = vadd.f32 %v12346_v18, %v11674_v59 }
 0x3c1   : > { %v6322_v3 = vrot.slane %v6312_v35, %v11972_v20  ;;  %v6329_v19 = vrot.slane %v6313_v60, %v11972_v20  ;;  %v2731_v57 = vmax.f32 %v2601_v56, 0.0  ;;  %v3679_v4 = vadd.f32 %v14381_v46, %v12196_v16 }
 0x3c2   : > { %v6336_v34 = vrot.slane %v6314_v25, %v11972_v20  ;;  %v6303_v32 = vrot.slane %v6295_v39, %v11972_v20  ;;  %v6310_v30 = vrot.slane %v6296_v29, %v11972_v20  ;;  %v2732_v39 = vmax.f32 %v2603_v2, 0.0 }
 0x3c3   : > { %v6344_v48 = vcombine.low %v6322_v3, %v6329_v19  ;;  %v9268_v29 = vadd.s32 4294967272, %v12357_v21  ;;  %v2871_v3 = vmul.f32 %v11680_v15, %v2731_v57  ;;  %v9275_v59 = vadd.s32 4294967264, %v12357_v21 }
 0x3c4   : > { %v6345_v5 = vcombine.low %v6336_v34, %v6343_v13  ;;  %v6311_v50 = vcombine.low %v6303_v32, %v6310_v30  ;;  %v2872_v45 = vmul.f32 %v11685_v40, %v2732_v39  ;;  %v3753_v15 = vadd.f32 %v11923_v9, %v3679_v4 }
 0x3c5   : > { %v6352_v1 = vrot.slane %v6344_v48, %v11972_v20  ;;  %v12448_v31 = vsub.s32 %v9268_v29, %v14340_v14  ;;  %v12461_v25 = vsub.s32 %v9275_v59, %v14340_v14  ;;  %v3680_v19 = vadd.f32 %v14384_v51, %v12200_v27 }
 0x3c6   : > { %v12450_v62 = vadd.f32 %v2872_v45, %v2871_v3  ;;  %v4163_v13 = vrot.slane %v3753_v15, %v14279_v41  ;;  %v4167_v32 = vrot.slane %v3753_v15, %v14280_v54  ;;  %v4171_v30 = vrot.slane %v3753_v15, %v11931_v11 }
 0x3c7   : > { %14379 = vst [vmem:[#allocation65_spill] sm:$0xff] %v12448_v31  ;;  %14383 = vst [vmem:[#allocation97_spill] sm:$0xff] %v12461_v25  ;;  %v4175_v48 = vrot.slane %v3753_v15, %v11935_v0  ;;  %v4187_v27 = vrot.slane %v3753_v15, %v11945_v61 }
 0x3c8   : > { %3012 = vadd.xlane.f32.xlu1 %v14377_v23  ;;  %v6359_v23 = vrot.slane %v6345_v5, %v11972_v20  ;;  %14380 = vst [vmem:[#allocation96_spill] sm:$0xff] %v12450_v62  ;;  %v6361_v56 = vcombine.low %v4163_v13, %v4167_v32 }
 0x3c9   : > { %v6362_v2 = vcombine.low %v4171_v30, %v4175_v48  ;;  %v14386_v30 = vld [vmem:[#allocation67_spill] sm:$0xff] }
 0x3ca   : > { %v6360_v37 = vcombine.low %v6352_v1, %v6359_v23  ;;  %v4191_v1 = vrot.slane %v3753_v15, %v11952_v10  ;;  %v3754_v23 = vadd.f32 %v11923_v9, %v3680_v19 }
 0x3cc   : > { %v6364_v39 = vcombine.low %v4187_v27, %v4191_v1  ;;  %v4195_v29 = vrot.slane %v3754_v23, %v14279_v41  ;;  %v4199_v3 = vrot.slane %v3754_v23, %v14280_v54  ;;  %v4203_v45 = vrot.slane %v3754_v23, %v11931_v11 }
 0x3cd   : > { %v4207_v46 = vrot.slane %v3754_v23, %v11935_v0  ;;  %v4211_v4 = vrot.slane %v3754_v23, %v11938_v22  ;;  %v4215_v59 = vrot.slane %v3754_v23, %v11942_v53 }
 0x3ce   : > { %v6392_v19 = vrot.slane %v6364_v39, %v11972_v20 }
 0x3cf   : > { %v6412_v13 = vcombine.low %v4211_v4, %v4215_v59 }
 0x3d1   : > { %v6434_v1 = vrot.slane %v6412_v13, %v11972_v20 }
 0x3d4   : > { %9078 = vperm.xlu0 %9822, %v6311_v50   ;;  %v4183_v50 = vrot.slane %v3753_v15, %v11942_v53 }
 0x3d9   : > { %9081 = vperm.xlu1 %9823, %v6360_v37   ;;  %v14385_v37 = vld [vmem:[#allocation66_spill] sm:$0xff] }
 0x3e1   : > { %v12445_v44 = vpop.xlane.xlu0 %2997 }
 0x3e2   : > { %14378 = vst [vmem:[#allocation8_spill] sm:$0xff] %v12445_v44 }
 0x3e9   : > { %v9067_v18 = vpop.permute.xlu0 %9066 }
 0x3ea   : > { %v9272_v35 = vrot.slane %v9067_v18, %v12448_v31  ;;  %v4219_v18 = vrot.slane %v3754_v23, %v11945_v61 }
 0x3eb   : > { %v12456_v60 = vpop.xlane.xlu1 %3000 }
 0x3ec   : > { %14382 = vst [vmem:[#allocation37_spill] sm:$0xff] %v12456_v60  ;;  %v9274_v40 = vsel %vm9273_vm6, %v9272_v35, %v9267_v43  ;;  %v4179_v43 = vrot.slane %v3753_v15, %v11938_v22  ;;  %v4223_v35 = vrot.slane %v3754_v23, %v11952_v10  ;;  %v6371_v15 = vrot.slane %v6361_v56, %v11972_v20 }
 0x3ee   : > { %v6363_v57 = vcombine.low %v4179_v43, %v4183_v50  ;;  %v6413_v32 = vcombine.low %v4219_v18, %v4223_v35  ;;  %v14389_v18 = vld [vmem:[#allocation38_spill] sm:$0xff] }
 0x3ef   : > { %v9070_v16 = vpop.permute.xlu1 %9069  ;;  %v3681_v35 = vadd.f32 %v14389_v18, %v12204_v6 }
 0x3f0   : > { %v9279_v34 = vrot.slane %v9070_v16, %v12461_v25  ;;  %v6385_v51 = vrot.slane %v6363_v57, %v11972_v20  ;;  %v6410_v16 = vcombine.low %v4195_v29, %v4199_v3  ;;  %v6441_v23 = vrot.slane %v6413_v32, %v11972_v20  ;;  %v14392_v32 = vld [vmem:[#allocation19_spill] sm:$0xff] }
 0x3f2   : > { %v9281_v5 = vsel %vm9280_vm7, %v9279_v34, %v9274_v40  ;;  %v6378_v40 = vrot.slane %v6362_v2, %v11972_v20  ;;  %v6411_v34 = vcombine.low %v4203_v45, %v4207_v46  ;;  %v6394_v43 = vcombine.low %v6385_v51, %v6392_v19 }
 0x3f3   : > { %3015 = vadd.xlane.f32.xlu0 %v14385_v37  ;;  %v6420_v50 = vrot.slane %v6410_v16, %v11972_v20  ;;  %v6443_v57 = vcombine.low %v6434_v1, %v6441_v23  ;;  %v9282_v46 = vadd.s32 4294967256, %v12357_v21  ;;  %v3755_v16 = vadd.f32 %v11923_v9, %v3681_v35 }
 0x3f4   : > { %v6393_v48 = vcombine.low %v6371_v15, %v6378_v40  ;;  %v6427_v27 = vrot.slane %v6411_v34, %v11972_v20  ;;  %v6408_v56 = vrot.slane %v6394_v43, %v11972_v20  ;;  %v9289_v15 = vadd.s32 4294967248, %v12357_v21 }
 0x3f5   : > { %v6457_v3 = vrot.slane %v6443_v57, %v11972_v20  ;;  %v12502_v59 = vsub.s32 %v9282_v46, %v14340_v14  ;;  %v4227_v43 = vrot.slane %v3755_v16, %v14279_v41  ;;  %v4239_v1 = vrot.slane %v3755_v16, %v11935_v0 }
 0x3f6   : > { %v6401_v37 = vrot.slane %v6393_v48, %v11972_v20  ;;  %v6442_v2 = vcombine.low %v6420_v50, %v6427_v27  ;;  %v12513_v13 = vsub.s32 %v9289_v15, %v14340_v14  ;;  %v4231_v50 = vrot.slane %v3755_v16, %v14280_v54 }
 0x3f7   : > { %14388 = vst [vmem:[#allocation66_spill] sm:$0xff] %v12502_v59  ;;  %v4235_v27 = vrot.slane %v3755_v16, %v11931_v11 }
 0x3f8   : > { %v6409_v39 = vcombine.low %v6401_v37, %v6408_v56  ;;  %v6450_v29 = vrot.slane %v6442_v2, %v11972_v20  ;;  %14391 = vst [vmem:[#allocation38_spill] sm:$0xff] %v12513_v13  ;;  %v4247_v37 = vrot.slane %v3755_v16, %v11942_v53  ;;  %v4255_v56 = vrot.slane %v3755_v16, %v11952_v10 }
 0x3f9   : > { %v6459_v57 = vcombine.low %v4227_v43, %v4231_v50 }
 0x3fa   : > { %v6458_v45 = vcombine.low %v6450_v29, %v6457_v3 }
 0x3fd   : > { %3018 = vadd.xlane.f32.xlu1 %v14386_v30  ;;  %v3682_v30 = vadd.f32 %v14392_v32, %v12216_v47  ;;  %v4251_v47 = vrot.slane %v3755_v16, %v11945_v61 }
 0x3ff   : > { %v3756_v2 = vadd.f32 %v11923_v9, %v3682_v30  ;;  %v6462_v3 = vcombine.low %v4251_v47, %v4255_v56 }
 0x401   : > { %v4263_v46 = vrot.slane %v3756_v2, %v14280_v54  ;;  %v4267_v18 = vrot.slane %v3756_v2, %v11931_v11  ;;  %v4271_v35 = vrot.slane %v3756_v2, %v11935_v0  ;;  %v4275_v15 = vrot.slane %v3756_v2, %v11938_v22 }
 0x402   : > { %v6490_v30 = vrot.slane %v6462_v3, %v11972_v20 }
 0x409   : > { %9084 = vperm.xlu0 %9822, %v6409_v39   ;;  %v6460_v39 = vcombine.low %v4235_v27, %v4239_v1 }
 0x40e   : > { %9087 = vperm.xlu1 %9823, %v6458_v45   ;;  %v4259_v45 = vrot.slane %v3756_v2, %v14279_v41 }
 0x416   : > { %v12499_v4 = vpop.xlane.xlu0 %3003 }
 0x417   : > { %14387 = vst [vmem:[#allocation21_spill] sm:$0xff] %v12499_v4 }
 0x41e   : > { %v9073_v40 = vpop.permute.xlu0 %9072 }
 0x41f   : > { %v9286_v51 = vrot.slane %v9073_v40, %v12502_v59  ;;  %v4279_v40 = vrot.slane %v3756_v2, %v11942_v53 }
 0x420   : > { %v12508_v19 = vpop.xlane.xlu1 %3006 }
 0x421   : > { %14390 = vst [vmem:[#allocation67_spill] sm:$0xff] %v12508_v19  ;;  %v9288_v34 = vsel %vm9287_vm8, %v9286_v51, %v9281_v5  ;;  %v4243_v5 = vrot.slane %v3755_v16, %v11938_v22  ;;  %v4283_v51 = vrot.slane %v3756_v2, %v11945_v61  ;;  %v6469_v16 = vrot.slane %v6459_v57, %v11972_v20 }
 0x422   : > { %v6510_v43 = vcombine.low %v4275_v15, %v4279_v40  ;;  %v9303_v40 = vadd.s32 4294967232, %v12357_v21 }
 0x423   : > { %v6461_v29 = vcombine.low %v4243_v5, %v4247_v37 }
 0x424   : > { %v9076_v6 = vpop.permute.xlu1 %9075  ;;  %v6532_v47 = vrot.slane %v6510_v43, %v11972_v20  ;;  %v14398_v43 = vld [vmem:[#allocation12_spill] sm:$0xff] }
 0x425   : > { %v9293_v48 = vrot.slane %v9076_v6, %v12513_v13  ;;  %v6483_v32 = vrot.slane %v6461_v29, %v11972_v20  ;;  %v6508_v6 = vcombine.low %v4259_v45, %v4263_v46 }
 0x427   : > { %v9295_v23 = vsel %vm9294_vm9, %v9293_v48, %v9288_v34  ;;  %v6476_v34 = vrot.slane %v6460_v39, %v11972_v20  ;;  %v6509_v48 = vcombine.low %v4267_v18, %v4271_v35  ;;  %v6492_v1 = vcombine.low %v6483_v32, %v6490_v30 }
 0x428   : > { %3021 = vadd.xlane.f32.xlu0 %v12168_v52  ;;  %v4287_v52 = vrot.slane %v3756_v2, %v11952_v10  ;;  %v6518_v5 = vrot.slane %v6508_v6, %v11972_v20  ;;  %v9296_v18 = vadd.s32 4294967240, %v12357_v21  ;;  %v12564_v6 = vsub.s32 %v9303_v40, %v14340_v14 }
 0x429   : > { %v6491_v27 = vcombine.low %v6469_v16, %v6476_v34  ;;  %v6525_v37 = vrot.slane %v6509_v48, %v11972_v20  ;;  %v6506_v57 = vrot.slane %v6492_v1, %v11972_v20 }
 0x42a   : > { %v6511_v50 = vcombine.low %v4283_v51, %v4287_v52  ;;  %v12554_v15 = vsub.s32 %v9296_v18, %v14340_v14  ;;  %v14395_v51 = vld [vmem:[#allocation39_spill] sm:$0xff]  ;;  %14397 = vst [vmem:[#allocation99_spill] sm:$0xff] %v12564_v6 }
 0x42b   : > { %v6499_v2 = vrot.slane %v6491_v27, %v11972_v20  ;;  %v6540_v39 = vcombine.low %v6518_v5, %v6525_v37  ;;  %v3683_v52 = vadd.f32 %v14395_v51, %v12218_v7 }
 0x42c   : > { %v6539_v56 = vrot.slane %v6511_v50, %v11972_v20  ;;  %14394 = vst [vmem:[#allocation98_spill] sm:$0xff] %v12554_v15  ;;  %v3684_v50 = vadd.f32 %v14398_v43, %v12221_v12 }
 0x42d   : > { %v6507_v3 = vcombine.low %v6499_v2, %v6506_v57  ;;  %v6548_v45 = vrot.slane %v6540_v39, %v11972_v20  ;;  %v3757_v48 = vadd.f32 %v11923_v9, %v3683_v52  ;;  %v14399_v57 = vld [vmem:[#allocation68_spill] sm:$0xff] }
 0x42e   : > { %v6541_v29 = vcombine.low %v6532_v47, %v6539_v56  ;;  %v3758_v1 = vadd.f32 %v11923_v9, %v3684_v50 }
 0x42f   : > { %v4291_v5 = vrot.slane %v3757_v48, %v14279_v41  ;;  %v4295_v37 = vrot.slane %v3757_v48, %v14280_v54  ;;  %v4303_v56 = vrot.slane %v3757_v48, %v11935_v0  ;;  %v4307_v2 = vrot.slane %v3757_v48, %v11938_v22 }
 0x430   : > { %v4311_v12 = vrot.slane %v3757_v48, %v11942_v53  ;;  %v4315_v39 = vrot.slane %v3757_v48, %v11945_v61  ;;  %v4327_v40 = vrot.slane %v3758_v1, %v14280_v54  ;;  %v4331_v51 = vrot.slane %v3758_v1, %v11931_v11 }
 0x431   : > { %v4335_v52 = vrot.slane %v3758_v1, %v11935_v0 }
 0x432   : > { %3024 = vadd.xlane.f32.xlu1 %v12170_v28  ;;  %v6555_v28 = vrot.slane %v6541_v29, %v11972_v20  ;;  %v4319_v29 = vrot.slane %v3757_v48, %v11952_v10 }
 0x434   : > { %v6556_v46 = vcombine.low %v6548_v45, %v6555_v28  ;;  %v6559_v28 = vcombine.low %v4307_v2, %v4311_v12  ;;  %v6560_v18 = vcombine.low %v4315_v39, %v4319_v29  ;;  %v14400_v2 = vld [vmem:[#allocation69_spill] sm:$0xff] }
 0x43e   : > { %9090 = vperm.xlu0 %9822, %v6507_v3   ;;  %v6557_v3 = vcombine.low %v4291_v5, %v4295_v37  ;;  %v6607_v37 = vcombine.low %v4331_v51, %v4335_v52 }
 0x440   : > { %v6567_v43 = vrot.slane %v6557_v3, %v11972_v20 }
 0x443   : > { %9093 = vperm.xlu1 %9823, %v6556_v46   ;;  %v4323_v46 = vrot.slane %v3758_v1, %v14279_v41 }
 0x445   : > { %v6606_v5 = vcombine.low %v4323_v46, %v4327_v40 }
 0x447   : > { %v6616_v39 = vrot.slane %v6606_v5, %v11972_v20 }
 0x44b   : > { %v12551_v35 = vpop.xlane.xlu0 %3009 }
 0x44c   : > { %14393 = vst [vmem:[#allocation19_spill] sm:$0xff] %v12551_v35 }
 0x453   : > { %v9079_v16 = vpop.permute.xlu0 %9078 }
 0x454   : > { %v9300_v34 = vrot.slane %v9079_v16, %v12554_v15  ;;  %v4339_v16 = vrot.slane %v3758_v1, %v11938_v22  ;;  %v14439_v15 = vld [vmem:[#allocation16_spill] sm:$0xff] }
 0x455   : > { %v12560_v32 = vpop.xlane.xlu1 %3012  ;;  %v3700_v13 = vadd.f32 %v14439_v15, %v12320_v38 }
 0x456   : > { %14396 = vst [vmem:[#allocation39_spill] sm:$0xff] %v12560_v32  ;;  %v9302_v30 = vsel %vm9301_vm10, %v9300_v34, %v9295_v23  ;;  %v4299_v23 = vrot.slane %v3757_v48, %v11931_v11  ;;  %v4343_v34 = vrot.slane %v3758_v1, %v11942_v53  ;;  %v4351_v48 = vrot.slane %v3758_v1, %v11952_v10 }
 0x458   : > { %v6558_v45 = vcombine.low %v4299_v23, %v4303_v56  ;;  %v6608_v23 = vcombine.low %v4339_v16, %v4343_v34  ;;  %v9310_v34 = vadd.s32 4294967224, %v12357_v21 }
 0x459   : > { %v9082_v27 = vpop.permute.xlu1 %9081 }
 0x45a   : > { %v9307_v7 = vrot.slane %v9082_v27, %v12564_v6  ;;  %v6574_v50 = vrot.slane %v6558_v45, %v11972_v20  ;;  %v6581_v27 = vrot.slane %v6559_v28, %v11972_v20  ;;  %v6630_v29 = vrot.slane %v6608_v23, %v11972_v20 }
 0x45c   : > { %v9309_v47 = vsel %vm9308_vm11, %v9307_v7, %v9302_v30  ;;  %v4347_v30 = vrot.slane %v3758_v1, %v11945_v61  ;;  %v6588_v7 = vrot.slane %v6560_v18, %v11972_v20  ;;  %v6589_v12 = vcombine.low %v6567_v43, %v6574_v50  ;;  %v14403_v50 = vld [vmem:[#allocation70_spill] sm:$0xff] }
 0x45d   : > { %3027 = vadd.xlane.f32.xlu0 %v14399_v57  ;;  %v6623_v1 = vrot.slane %v6607_v37, %v11972_v20  ;;  %v9317_v43 = vadd.s32 4294967216, %v12357_v21 }
 0x45e   : > { %v6609_v56 = vcombine.low %v4347_v30, %v4351_v48  ;;  %v6590_v57 = vcombine.low %v6581_v27, %v6588_v7  ;;  %v6597_v45 = vrot.slane %v6589_v12, %v11972_v20  ;;  %v12606_v48 = vsub.s32 %v9310_v34, %v14340_v14  ;;  %v14404_v27 = vld [vmem:[#allocation40_spill] sm:$0xff] }
 0x45f   : > { %v6638_v46 = vcombine.low %v6616_v39, %v6623_v1  ;;  %v3685_v7 = vadd.f32 %v14404_v27, %v14403_v50  ;;  %v14408_v39 = vld [vmem:[#allocation11_spill] sm:$0xff] }
 0x460   : > { %v6637_v3 = vrot.slane %v6609_v56, %v11972_v20  ;;  %v6604_v28 = vrot.slane %v6590_v57, %v11972_v20  ;;  %14402 = vst [vmem:[#allocation68_spill] sm:$0xff] %v12606_v48  ;;  %v14407_v57 = vld [vmem:[#allocation71_spill] sm:$0xff] }
 0x461   : > { %v6646_v51 = vrot.slane %v6638_v46, %v11972_v20  ;;  %v3759_v12 = vadd.f32 %v11923_v9, %v3685_v7  ;;  %v3686_v1 = vadd.f32 %v14408_v39, %v14407_v57 }
 0x462   : > { %v6639_v18 = vcombine.low %v6630_v29, %v6637_v3  ;;  %v6605_v40 = vcombine.low %v6597_v45, %v6604_v28 }
 0x463   : > { %v3760_v45 = vadd.f32 %v11923_v9, %v3686_v1  ;;  %v4355_v28 = vrot.slane %v3759_v12, %v14279_v41  ;;  %v4359_v46 = vrot.slane %v3759_v12, %v14280_v54  ;;  %v4379_v34 = vrot.slane %v3759_v12, %v11945_v61 }
 0x464   : > { %v6653_v52 = vrot.slane %v6639_v18, %v11972_v20 }
 0x465   : > { %v6655_v50 = vcombine.low %v4355_v28, %v4359_v46  ;;  %v4395_v57 = vrot.slane %v3760_v45, %v11931_v11  ;;  %v4399_v39 = vrot.slane %v3760_v45, %v11935_v0  ;;  %v4403_v1 = vrot.slane %v3760_v45, %v11938_v22 }
 0x466   : > { %v6654_v16 = vcombine.low %v6646_v51, %v6653_v52  ;;  %v4371_v51 = vrot.slane %v3759_v12, %v11938_v22  ;;  %v4375_v52 = vrot.slane %v3759_v12, %v11942_v53 }
 0x467   : > { %3030 = vadd.xlane.f32.xlu1 %v14400_v2  ;;  %v12616_v2 = vsub.s32 %v9317_v43, %v14340_v14  ;;  %v4383_v43 = vrot.slane %v3759_v12, %v11952_v10  ;;  %v6665_v28 = vrot.slane %v6655_v50, %v11972_v20 }
 0x468   : > { %v6657_v7 = vcombine.low %v4371_v51, %v4375_v52  ;;  %v6705_v52 = vcombine.low %v4395_v57, %v4399_v39 }
 0x469   : > { %14406 = vst [vmem:[#allocation70_spill] sm:$0xff] %v12616_v2 }
 0x473   : > { %9096 = vperm.xlu0 %9822, %v6605_v40   ;;  %v4367_v40 = vrot.slane %v3759_v12, %v11935_v0 }
 0x478   : > { %9099 = vperm.xlu1 %9823, %v6654_v16   ;;  %v14409_v16 = vld [vmem:[#allocation73_spill] sm:$0xff] }
 0x480   : > { %v12603_v30 = vpop.xlane.xlu0 %3015 }
 0x481   : > { %14401 = vst [vmem:[#allocation12_spill] sm:$0xff] %v12603_v30 }
 0x488   : > { %v9085_v5 = vpop.permute.xlu0 %9084 }
 0x489   : > { %v9314_v37 = vrot.slane %v9085_v5, %v12606_v48  ;;  %v4387_v5 = vrot.slane %v3760_v45, %v14279_v41 }
 0x48a   : > { %v12612_v23 = vpop.xlane.xlu1 %3018 }
 0x48b   : > { %14405 = vst [vmem:[#allocation69_spill] sm:$0xff] %v12612_v23  ;;  %v9316_v56 = vsel %vm9315_vm12, %v9314_v37, %v9309_v47  ;;  %v4363_v47 = vrot.slane %v3759_v12, %v11931_v11  ;;  %v6658_v37 = vcombine.low %v4379_v34, %v4383_v43  ;;  %v4415_v12 = vrot.slane %v3760_v45, %v11952_v10  ;;  %v14410_v43 = vld [vmem:[#allocation74_spill] sm:$0xff] }
 0x48d   : > { %v6656_v27 = vcombine.low %v4363_v47, %v4367_v40  ;;  %v6679_v47 = vrot.slane %v6657_v7, %v11972_v20  ;;  %v6686_v40 = vrot.slane %v6658_v37, %v11972_v20 }
 0x48e   : > { %v9088_v29 = vpop.permute.xlu1 %9087 }
 0x48f   : > { %v9321_v3 = vrot.slane %v9088_v29, %v12616_v2  ;;  %v4407_v29 = vrot.slane %v3760_v45, %v11942_v53  ;;  %v6672_v46 = vrot.slane %v6656_v27, %v11972_v20  ;;  %v6688_v48 = vcombine.low %v6679_v47, %v6686_v40 }
 0x491   : > { %v9323_v18 = vsel %vm9322_vm13, %v9321_v3, %v9316_v56  ;;  %v4391_v56 = vrot.slane %v3760_v45, %v14280_v54  ;;  %v4411_v3 = vrot.slane %v3760_v45, %v11945_v61  ;;  %v6687_v2 = vcombine.low %v6665_v28, %v6672_v46  ;;  %v14414_v46 = vld [vmem:[#allocation41_spill] sm:$0xff] }
 0x492   : > { %3033 = vadd.xlane.f32.xlu0 %v14409_v16  ;;  %v6706_v16 = vcombine.low %v4403_v1, %v4407_v29  ;;  %v6721_v45 = vrot.slane %v6705_v52, %v11972_v20  ;;  %v6702_v37 = vrot.slane %v6688_v48, %v11972_v20 }
 0x493   : > { %v6704_v51 = vcombine.low %v4387_v5, %v4391_v56  ;;  %v6707_v34 = vcombine.low %v4411_v3, %v4415_v12  ;;  %v6695_v7 = vrot.slane %v6687_v2, %v11972_v20  ;;  %v9324_v3 = vadd.s32 4294967208, %v12357_v21  ;;  %v14413_v2 = vld [vmem:[#allocation72_spill] sm:$0xff] }
 0x494   : > { %v6728_v50 = vrot.slane %v6706_v16, %v11972_v20  ;;  %v3687_v48 = vadd.f32 %v14414_v46, %v14413_v2 }
 0x495   : > { %v6714_v6 = vrot.slane %v6704_v51, %v11972_v20  ;;  %v6735_v27 = vrot.slane %v6707_v34, %v11972_v20  ;;  %v6703_v57 = vcombine.low %v6695_v7, %v6702_v37  ;;  %v12658_v28 = vsub.s32 %v9324_v3, %v14340_v14 }
 0x496   : > { %v3761_v52 = vadd.f32 %v11923_v9, %v3687_v48 }
 0x497   : > { %v6736_v5 = vcombine.low %v6714_v6, %v6721_v45  ;;  %v6737_v56 = vcombine.low %v6728_v50, %v6735_v27  ;;  %14412 = vst [vmem:[#allocation71_spill] sm:$0xff] %v12658_v28  ;;  %v9331_v6 = vadd.s32 4294967200, %v12357_v21  ;;  %v14418_v45 = vld [vmem:[#allocation14_spill] sm:$0xff] }
 0x498   : > { %v4419_v37 = vrot.slane %v3761_v52, %v14279_v41  ;;  %v4447_v3 = vrot.slane %v3761_v52, %v11952_v10 }
 0x499   : > { %v6744_v39 = vrot.slane %v6736_v5, %v11972_v20  ;;  %v6751_v1 = vrot.slane %v6737_v56, %v11972_v20  ;;  %v12669_v34 = vsub.s32 %v9331_v6, %v14340_v14  ;;  %v4423_v5 = vrot.slane %v3761_v52, %v14280_v54 }
 0x49a   : > { %v4427_v56 = vrot.slane %v3761_v52, %v11931_v11 }
 0x49b   : > { %v6752_v29 = vcombine.low %v6744_v39, %v6751_v1  ;;  %14416 = vst [vmem:[#allocation73_spill] sm:$0xff] %v12669_v34  ;;  %v4439_v1 = vrot.slane %v3761_v52, %v11942_v53  ;;  %v6753_v46 = vcombine.low %v4419_v37, %v4423_v5 }
 0x49c   : > { %3036 = vadd.xlane.f32.xlu1 %v14410_v43  ;;  %v14417_v43 = vld [vmem:[#allocation75_spill] sm:$0xff] }
 0x49d   : > { %v3688_v50 = vadd.f32 %v14418_v45, %v14417_v43 }
 0x49f   : > { %v3762_v2 = vadd.f32 %v11923_v9, %v3688_v50 }
 0x4a1   : > { %v4455_v43 = vrot.slane %v3762_v2, %v14280_v54  ;;  %v4463_v45 = vrot.slane %v3762_v2, %v11935_v0  ;;  %v4475_v50 = vrot.slane %v3762_v2, %v11945_v61 }
 0x4a8   : > { %9102 = vperm.xlu0 %9822, %v6703_v57   ;;  %v4431_v57 = vrot.slane %v3761_v52, %v11935_v0 }
 0x4aa   : > { %v6754_v48 = vcombine.low %v4427_v56, %v4431_v57 }
 0x4ac   : > { %v6770_v37 = vrot.slane %v6754_v48, %v11972_v20 }
 0x4ad   : > { %9105 = vperm.xlu1 %9823, %v6752_v29   ;;  %v4443_v29 = vrot.slane %v3761_v52, %v11945_v61 }
 0x4b5   : > { %v12655_v12 = vpop.xlane.xlu0 %3021 }
 0x4b6   : > { %14411 = vst [vmem:[#allocation40_spill] sm:$0xff] %v12655_v12 }
 0x4bd   : > { %v9091_v47 = vpop.permute.xlu0 %9090 }
 0x4be   : > { %v9328_v40 = vrot.slane %v9091_v47, %v12658_v28  ;;  %v6756_v47 = vcombine.low %v4443_v29, %v4447_v3 }
 0x4bf   : > { %v12664_v51 = vpop.xlane.xlu1 %3024 }
 0x4c0   : > { %14415 = vst [vmem:[#allocation11_spill] sm:$0xff] %v12664_v51  ;;  %v9330_v16 = vsel %vm9329_vm14, %v9328_v40, %v9323_v18  ;;  %v4435_v18 = vrot.slane %v3761_v52, %v11938_v22  ;;  %v4451_v40 = vrot.slane %v3762_v2, %v14279_v41  ;;  %v4471_v52 = vrot.slane %v3762_v2, %v11942_v53 }
 0x4c1   : > { %v6784_v56 = vrot.slane %v6756_v47, %v11972_v20 }
 0x4c2   : > { %v6755_v6 = vcombine.low %v4435_v18, %v4439_v1  ;;  %v6802_v57 = vcombine.low %v4451_v40, %v4455_v43 }
 0x4c3   : > { %v9094_v27 = vpop.permute.xlu1 %9093 }
 0x4c4   : > { %v9335_v7 = vrot.slane %v9094_v27, %v12669_v34  ;;  %v4467_v27 = vrot.slane %v3762_v2, %v11938_v22  ;;  %v6777_v5 = vrot.slane %v6755_v6, %v11972_v20  ;;  %v6812_v28 = vrot.slane %v6802_v57, %v11972_v20  ;;  %v14424_v57 = vld [vmem:[#allocation43_spill] sm:$0xff] }
 0x4c6   : > { %v12680_v39 = vsel %vm9336_vm15, %v9335_v7, %v9330_v16  ;;  %v4459_v16 = vrot.slane %v3762_v2, %v11931_v11  ;;  %v6763_v7 = vrot.slane %v6753_v46, %v11972_v20  ;;  %v6804_v1 = vcombine.low %v4467_v27, %v4471_v52  ;;  %v14419_v52 = vld [vmem:[#allocation76_spill] sm:$0xff] }
 0x4c7   : > { %3039 = vadd.xlane.f32.xlu0 %v12279_v36  ;;  %v4479_v36 = vrot.slane %v3762_v2, %v11952_v10  ;;  %v6786_v34 = vcombine.low %v6777_v5, %v6784_v56  ;;  %v14423_v56 = vld [vmem:[#allocation78_spill] sm:$0xff] }
 0x4c8   : > { %v6803_v18 = vcombine.low %v4459_v16, %v4463_v45  ;;  %v6785_v3 = vcombine.low %v6763_v7, %v6770_v37  ;;  %v6826_v46 = vrot.slane %v6804_v1, %v11972_v20  ;;  %v14421_v7 = vld [vmem:[#allocation77_spill] sm:$0xff] }
 0x4c9   : > { %v6805_v29 = vcombine.low %v4475_v50, %v4479_v36  ;;  %v6800_v47 = vrot.slane %v6786_v34, %v11972_v20  ;;  %v14420_v50 = vld [vmem:[#allocation42_spill] sm:$0xff]  ;;  %v14422_v37 = vld [vmem:[#allocation13_spill] sm:$0xff]  ;;  %v14425_v34 = vld [vmem:[#allocation79_spill] sm:$0xff] }
 0x4ca   : > { %v6819_v2 = vrot.slane %v6803_v18, %v11972_v20  ;;  %v6793_v6 = vrot.slane %v6785_v3, %v11972_v20  ;;  %v3689_v36 = vadd.f32 %v14420_v50, %v14419_v52  ;;  %v3690_v5 = vadd.f32 %v14422_v37, %v14421_v7  ;;  %v14435_v37 = vld [vmem:[#allocation47_spill] sm:$0xff] }
 0x4cb   : > { %v6833_v48 = vrot.slane %v6805_v29, %v11972_v20  ;;  %v3691_v18 = vadd.f32 %v14424_v57, %v14423_v56  ;;  %v14427_v29 = vld [vmem:[#allocation44_spill] sm:$0xff] }
 0x4cc   : > { %v6834_v40 = vcombine.low %v6812_v28, %v6819_v2  ;;  %v6801_v16 = vcombine.low %v6793_v6, %v6800_v47  ;;  %v14426_v28 = vld [vmem:[#allocation15_spill] sm:$0xff]  ;;  %v3693_v3 = vadd.f32 %v14427_v29, %v12281_v33  ;;  %v14428_v2 = vld [vmem:[#allocation9_spill] sm:$0xff]  ;;  %v14430_v47 = vld [vmem:[#allocation10_spill] sm:$0xff] }
 0x4cd   : > { %v6835_v43 = vcombine.low %v6826_v46, %v6833_v48  ;;  %v3692_v1 = vadd.f32 %v14426_v28, %v14425_v34  ;;  %v3694_v46 = vadd.f32 %v14428_v2, %v12293_v8  ;;  %v14429_v48 = vld [vmem:[#allocation45_spill] sm:$0xff]  ;;  %v12730_v33 = vadd.f32 %v11923_v9, %v3691_v18 }
 0x4ce   : > { %v6842_v45 = vrot.slane %v6834_v40, %v11972_v20  ;;  %v3695_v6 = vadd.f32 %v14429_v48, %v12300_v49  ;;  %v3696_v40 = vadd.f32 %v14430_v47, %v12304_v42  ;;  %v12736_v49 = vadd.f32 %v11923_v9, %v3693_v3 }
 0x4cf   : > { %v12733_v8 = vadd.f32 %v11923_v9, %v3692_v1  ;;  %v12739_v42 = vadd.f32 %v11923_v9, %v3694_v46  ;;  %v9345_v48 = vadd.s32 4294967184, %v12357_v21 }
 0x4d0   : > { %v12745_v52 = vadd.f32 %v11923_v9, %v3696_v40 }
 0x4d1   : > { %3042 = vadd.xlane.f32.xlu1 %v12285_v55  ;;  %v6849_v55 = vrot.slane %v6835_v43, %v11972_v20  ;;  %v14431_v43 = vld [vmem:[#allocation46_spill] sm:$0xff] }
 0x4d2   : > { %v4731_v35 = vrot.slane %v12745_v52, %v11945_v61 }
 0x4d3   : > { %v6850_v27 = vcombine.low %v6842_v45, %v6849_v55  ;;  %v3763_v45 = vadd.f32 %v11923_v9, %v3689_v36  ;;  %v3764_v55 = vadd.f32 %v11923_v9, %v3690_v5  ;;  %v14434_v36 = vld [vmem:[#allocation17_spill] sm:$0xff]  ;;  %v3699_v5 = vadd.f32 %v14435_v37, %v12318_v58 }
 0x4d4   : > { %v3698_v7 = vadd.f32 %v14434_v36, %v12314_v24 }
 0x4d5   : > { %v4483_v57 = vrot.slane %v3763_v45, %v14279_v41  ;;  %v4487_v18 = vrot.slane %v3763_v45, %v14280_v54  ;;  %v4491_v34 = vrot.slane %v3763_v45, %v11931_v11  ;;  %v4495_v1 = vrot.slane %v3763_v45, %v11935_v0 }
 0x4d6   : > { %v4499_v29 = vrot.slane %v3763_v45, %v11938_v22  ;;  %v4503_v24 = vrot.slane %v3763_v45, %v11942_v53  ;;  %v4507_v3 = vrot.slane %v3763_v45, %v11945_v61  ;;  %v4511_v58 = vrot.slane %v3763_v45, %v11952_v10 }
 0x4d7   : > { %v4515_v2 = vrot.slane %v3764_v55, %v14279_v41  ;;  %v4519_v46 = vrot.slane %v3764_v55, %v14280_v54  ;;  %v4527_v47 = vrot.slane %v3764_v55, %v11935_v0  ;;  %v4531_v40 = vrot.slane %v3764_v55, %v11938_v22 }
 0x4d8   : > { %v4543_v45 = vrot.slane %v3764_v55, %v11952_v10  ;;  %v12777_v36 = vadd.f32 %v11923_v9, %v3698_v7  ;;  %v12780_v37 = vadd.f32 %v11923_v9, %v3699_v5  ;;  %v6851_v51 = vcombine.low %v4483_v57, %v4487_v18 }
 0x4d9   : > { %v6852_v31 = vcombine.low %v4491_v34, %v4495_v1  ;;  %v6853_v12 = vcombine.low %v4499_v29, %v4503_v24  ;;  %v12792_v7 = vsub.s32 %v9345_v48, %v14340_v14  ;;  %v6854_v5 = vcombine.low %v4507_v3, %v4511_v58  ;;  %v14443_v29 = vld [vmem:[#allocation22_spill] sm:$0xff] }
 0x4da   : > { %14438 = vst [vmem:[#allocation14_spill] sm:$0xff] %v12780_v37  ;;  %v6900_v23 = vcombine.low %v4515_v2, %v4519_v46  ;;  %v4567_v18 = vrot.slane %v12730_v33, %v11942_v53  ;;  %v4571_v34 = vrot.slane %v12730_v33, %v11945_v61  ;;  %v4575_v1 = vrot.slane %v12730_v33, %v11952_v10 }
 0x4db   : > { %14442 = vst [vmem:[#allocation42_spill] sm:$0xff] %v12792_v7  ;;  %v3702_v24 = vadd.f32 %v14443_v29, %v12334_v17  ;;  %v6861_v58 = vrot.slane %v6851_v51, %v11972_v20  ;;  %v6868_v2 = vrot.slane %v6852_v31, %v11972_v20  ;;  %v6875_v46 = vrot.slane %v6853_v12, %v11972_v20  ;;  %v14444_v31 = vld [vmem:[#allocation80_spill] sm:$0xff] }
 0x4dc   : > { %v6882_v48 = vrot.slane %v6854_v5, %v11972_v20  ;;  %v12825_v51 = vadd.f32 %v11923_v9, %v3700_v13  ;;  %v14447_v5 = vld [vmem:[#allocation49_spill] sm:$0xff]  ;;  %v14451_v13 = vld [vmem:[#allocation50_spill] sm:$0xff]  ;;  %v4771_v44 = vrot.slane %v12777_v36, %v14279_v41 }
 0x4dd   : > { %9108 = vperm.xlu0 %9822, %v6801_v16   ;;  %v3697_v16 = vadd.f32 %v14431_v43, %v12308_v26  ;;  %v12742_v26 = vadd.f32 %v11923_v9, %v3695_v6  ;;  %v4523_v6 = vrot.slane %v3764_v55, %v11931_v11 }
 0x4df   : > { %14432 = vst [vmem:[#allocation74_spill] sm:$0xff] %v12742_v26  ;;  %v12748_v50 = vadd.f32 %v11923_v9, %v3697_v16  ;;  %v4535_v16 = vrot.slane %v3764_v55, %v11942_v53  ;;  %v6901_v30 = vcombine.low %v4523_v6, %v4527_v47  ;;  %v6910_v6 = vrot.slane %v6900_v23, %v11972_v20 }
 0x4e1   : > { %14433 = vst [vmem:[#allocation72_spill] sm:$0xff] %v12748_v50  ;;  %v6902_v38 = vcombine.low %v4531_v40, %v4535_v16  ;;  %v6917_v47 = vrot.slane %v6901_v30, %v11972_v20  ;;  %v12832_v30 = vadd.f32 %v11923_v9, %v3702_v24 }
 0x4e2   : > { %9111 = vperm.xlu1 %9823, %v6850_v27   ;;  %v9338_v27 = vadd.s32 4294967192, %v12357_v21 }
 0x4e4   : > { %v12760_v28 = vsub.s32 %v9338_v27, %v14340_v14  ;;  %v4539_v27 = vrot.slane %v3764_v55, %v11945_v61 }
 0x4e6   : > { %14437 = vst [vmem:[#allocation75_spill] sm:$0xff] %v12760_v28  ;;  %v6903_v15 = vcombine.low %v4539_v27, %v4543_v45  ;;  %v6952_v45 = vcombine.low %v4571_v34, %v4575_v1  ;;  %v4579_v1 = vrot.slane %v12733_v8, %v14279_v41 }
 0x4e8   : > { %v6931_v17 = vrot.slane %v6903_v15, %v11972_v20  ;;  %v14449_v15 = vld [vmem:[#allocation18_spill] sm:$0xff] }
 0x4ea   : > { %v12754_v56 = vpop.xlane.xlu0 %3027 }
 0x4eb   : > { %14436 = vst [vmem:[#allocation41_spill] sm:$0xff] %v12754_v56  ;;  %v14440_v56 = vld [vmem:[#allocation48_spill] sm:$0xff] }
 0x4ec   : > { %v3701_v62 = vadd.f32 %v14440_v56, %v12328_v63  ;;  %v4551_v63 = vrot.slane %v12730_v33, %v14280_v54  ;;  %v4555_v56 = vrot.slane %v12730_v33, %v11931_v11 }
 0x4ee   : > { %v12829_v23 = vadd.f32 %v11923_v9, %v3701_v62 }
 0x4f0   : > { %14445 = vst [vmem:[#allocation77_spill] sm:$0xff] %v12829_v23 }
 0x4f2   : > { %v9097_v43 = vpop.permute.xlu0 %9096 }
 0x4f3   : > { %v9342_v59 = vrot.slane %v9097_v43, %v12760_v28  ;;  %v4547_v43 = vrot.slane %v12730_v33, %v14279_v41  ;;  %v4723_v28 = vrot.slane %v12745_v52, %v11938_v22 }
 0x4f4   : > { %v12787_v25 = vpop.xlane.xlu1 %3030 }
 0x4f5   : > { %14441 = vst [vmem:[#allocation76_spill] sm:$0xff] %v12787_v25  ;;  %v9344_v55 = vsel %vm9343_vm0, %v9342_v59, %v12680_v39  ;;  %v4559_v59 = vrot.slane %v12730_v33, %v11935_v0  ;;  %v4563_v39 = vrot.slane %v12730_v33, %v11938_v22  ;;  %v6924_v33 = vrot.slane %v6902_v38, %v11972_v20 }
 0x4f6   : > { %v6949_v16 = vcombine.low %v4547_v43, %v4551_v63  ;;  %v14450_v63 = vld [vmem:[#allocation84_spill] sm:$0xff]  ;;  %v4727_v25 = vrot.slane %v12745_v52, %v11942_v53 }
 0x4f7   : > { %v6950_v12 = vcombine.low %v4555_v56, %v4559_v59  ;;  %v6951_v27 = vcombine.low %v4563_v39, %v4567_v18  ;;  %v3705_v29 = vadd.f32 %v14451_v13, %v14450_v63  ;;  %v6883_v59 = vcombine.low %v6861_v58, %v6868_v2 }
 0x4f8   : > { %v9100_v57 = vpop.permute.xlu1 %9099  ;;  %v6884_v39 = vcombine.low %v6875_v46, %v6882_v48  ;;  %v6932_v18 = vcombine.low %v6910_v6, %v6917_v47  ;;  %v6933_v62 = vcombine.low %v6924_v33, %v6931_v17  ;;  %v6959_v34 = vrot.slane %v6949_v16, %v11972_v20  ;;  %v14455_v47 = vld [vmem:[#allocation86_spill] sm:$0xff]  ;;  %v14456_v33 = vld [vmem:[#allocation51_spill] sm:$0xff] }
 0x4f9   : > { %v9349_v3 = vrot.slane %v9100_v57, %v12792_v7  ;;  %v14448_v57 = vld [vmem:[#allocation83_spill] sm:$0xff]  ;;  %v6966_v24 = vrot.slane %v6950_v12, %v11972_v20  ;;  %v4587_v58 = vrot.slane %v12733_v8, %v11931_v11  ;;  %v4591_v2 = vrot.slane %v12733_v8, %v11935_v0 }
 0x4fa   : > { %v3704_v43 = vadd.f32 %v14449_v15, %v14448_v57  ;;  %v4583_v57 = vrot.slane %v12733_v8, %v14280_v54  ;;  %v4595_v46 = vrot.slane %v12733_v8, %v11938_v22  ;;  %v4599_v48 = vrot.slane %v12733_v8, %v11942_v53 }
 0x4fb   : > { %v12820_v40 = vsel %vm9350_vm1, %v9349_v3, %v9344_v55  ;;  %v14446_v55 = vld [vmem:[#allocation82_spill] sm:$0xff]  ;;  %v14452_v3 = vld [vmem:[#allocation85_spill] sm:$0xff]  ;;  %v3707_v17 = vadd.f32 %v14456_v33, %v14455_v47  ;;  %v6891_v16 = vrot.slane %v6883_v59, %v11972_v20  ;;  %v6898_v12 = vrot.slane %v6884_v39, %v11972_v20  ;;  %v14460_v47 = vld [vmem:[#allocation23_spill] sm:$0xff] }
 0x4fc   : > { %3045 = vadd.xlane.f32.xlu0 %v14444_v31  ;;  %v3703_v38 = vadd.f32 %v14447_v5, %v14446_v55  ;;  %v14453_v31 = vld [vmem:[#allocation24_spill] sm:$0xff]  ;;  %v6973_v55 = vrot.slane %v6951_v27, %v11972_v20  ;;  %v6980_v5 = vrot.slane %v6952_v45, %v11972_v20  ;;  %v12866_v27 = vadd.f32 %v11923_v9, %v3704_v43 }
 0x4fd   : > { %v3706_v56 = vadd.f32 %v14453_v31, %v14452_v3  ;;  %v12869_v45 = vadd.f32 %v11923_v9, %v3705_v29  ;;  %v6940_v63 = vrot.slane %v6932_v18, %v11972_v20  ;;  %v12876_v13 = vcombine.low %v6959_v34, %v6966_v24  ;;  %v14459_v18 = vld [vmem:[#allocation87_spill] sm:$0xff]  ;;  %v14461_v34 = vld [vmem:[#allocation90_spill] sm:$0xff]  ;;  %v14462_v24 = vld [vmem:[#allocation52_spill] sm:$0xff] }
 0x4fe   : > { %v12859_v6 = vadd.f32 %v11923_v9, %v3703_v38  ;;  %v6947_v38 = vrot.slane %v6933_v62, %v11972_v20  ;;  %v12878_v3 = vcombine.low %v6973_v55, %v6980_v5  ;;  %v4603_v31 = vrot.slane %v12733_v8, %v11945_v61  ;;  %v14463_v5 = vld [vmem:[#allocation81_spill] sm:$0xff] }
 0x4ff   : > { %14457 = vst [vmem:[#allocation78_spill] sm:$0xff] %v12869_v45  ;;  %v12872_v15 = vadd.f32 %v11923_v9, %v3706_v56  ;;  %v4607_v43 = vrot.slane %v12733_v8, %v11952_v10  ;;  %v6998_v59 = vcombine.low %v4579_v1, %v4583_v57  ;;  %v6999_v29 = vcombine.low %v4587_v58, %v4591_v2  ;;  %v14464_v2 = vld [vmem:[#allocation91_spill] sm:$0xff] }
 0x500   : > { %14454 = vst [vmem:[#allocation13_spill] sm:$0xff] %v12859_v6  ;;  %v12884_v39 = vcombine.low %v4595_v46, %v4599_v48  ;;  %v12887_v56 = vadd.f32 %v11923_v9, %v3707_v17  ;;  %v12891_v62 = vadd.f32 %v14460_v47, %v14459_v18  ;;  %v12895_v55 = vadd.f32 %v14462_v24, %v14461_v34  ;;  %v14465_v46 = vld [vmem:[#allocation26_spill] sm:$0xff] }
 0x501   : > { %v6899_v33 = vcombine.low %v6891_v16, %v6898_v12  ;;  %v4611_v8 = vrot.slane %v12736_v49, %v14279_v41  ;;  %v4615_v1 = vrot.slane %v12736_v49, %v14280_v54  ;;  %v4619_v57 = vrot.slane %v12736_v49, %v11931_v11 }
 0x502   : > { %14458 = vst [vmem:[#allocation43_spill] sm:$0xff] %v12887_v56  ;;  %v4623_v58 = vrot.slane %v12736_v49, %v11935_v0  ;;  %v12908_v48 = vadd.f32 %v14465_v46, %v14464_v2  ;;  %v6948_v17 = vcombine.low %v6940_v63, %v6947_v38  ;;  %v12914_v18 = vcombine.low %v4603_v31, %v4607_v43 }
 0x503   : > { %v7008_v47 = vrot.slane %v6998_v59, %v11972_v20  ;;  %v7015_v34 = vrot.slane %v6999_v29, %v11972_v20  ;;  %v4631_v63 = vrot.slane %v12736_v49, %v11942_v53  ;;  %v4635_v38 = vrot.slane %v12736_v49, %v11945_v61 }
 0x504   : > { %v4639_v31 = vrot.slane %v12736_v49, %v11952_v10  ;;  %v12928_v43 = vcombine.low %v4611_v8, %v4615_v1  ;;  %v7048_v59 = vcombine.low %v4619_v57, %v4623_v58  ;;  %v4643_v29 = vrot.slane %v12739_v42, %v14279_v41 }
 0x505   : > { %v4647_v2 = vrot.slane %v12739_v42, %v14280_v54  ;;  %v4651_v46 = vrot.slane %v12739_v42, %v11931_v11  ;;  %v4655_v24 = vrot.slane %v12739_v42, %v11935_v0  ;;  %v4659_v16 = vrot.slane %v12739_v42, %v11938_v22 }
 0x506   : > { %3048 = vadd.xlane.f32.xlu1 %v14463_v5  ;;  %v4627_v5 = vrot.slane %v12736_v49, %v11938_v22  ;;  %v4663_v49 = vrot.slane %v12739_v42, %v11942_v53  ;;  %v4667_v8 = vrot.slane %v12739_v42, %v11945_v61  ;;  %v4671_v1 = vrot.slane %v12739_v42, %v11952_v10 }
 0x507   : > { %v4707_v57 = vrot.slane %v12745_v52, %v14279_v41  ;;  %v4711_v58 = vrot.slane %v12745_v52, %v14280_v54  ;;  %v4715_v12 = vrot.slane %v12745_v52, %v11931_v11  ;;  %v4719_v7 = vrot.slane %v12745_v52, %v11935_v0 }
 0x508   : > { %v7029_v42 = vrot.slane %v12914_v18, %v11972_v20  ;;  %v12960_v32 = vcombine.low %v7008_v47, %v7015_v34  ;;  %v4735_v56 = vrot.slane %v12745_v52, %v11952_v10  ;;  %v7049_v19 = vcombine.low %v4627_v5, %v4631_v63 }
 0x509   : > { %v7050_v45 = vcombine.low %v4635_v38, %v4639_v31  ;;  %v7057_v4 = vrot.slane %v12928_v43, %v11972_v20  ;;  %v7064_v6 = vrot.slane %v7048_v59, %v11972_v20  ;;  %v7096_v23 = vcombine.low %v4643_v29, %v4647_v2 }
 0x50a   : > { %v7097_v37 = vcombine.low %v4651_v46, %v4655_v24  ;;  %v7098_v50 = vcombine.low %v4659_v16, %v4663_v49  ;;  %v7099_v26 = vcombine.low %v4667_v8, %v4671_v1  ;;  %v7194_v18 = vcombine.low %v4707_v57, %v4711_v58 }
 0x50b   : > { %v7195_v47 = vcombine.low %v4715_v12, %v4719_v7  ;;  %v7196_v34 = vcombine.low %v4723_v28, %v4727_v25  ;;  %v7197_v60 = vcombine.low %v4731_v35, %v4735_v56  ;;  %v4775_v52 = vrot.slane %v12777_v36, %v14280_v54 }
 0x50c   : > { %v4779_v5 = vrot.slane %v12777_v36, %v11931_v11  ;;  %v4783_v63 = vrot.slane %v12777_v36, %v11935_v0  ;;  %v7071_v16 = vrot.slane %v7049_v19, %v11972_v20  ;;  %v4787_v25 = vrot.slane %v12777_v36, %v11938_v22 }
 0x50d   : > { %v4791_v28 = vrot.slane %v12777_v36, %v11942_v53  ;;  %v7106_v35 = vrot.slane %v7096_v23, %v11972_v20  ;;  %v7113_v7 = vrot.slane %v7097_v37, %v11972_v20  ;;  %v4795_v56 = vrot.slane %v12777_v36, %v11945_v61 }
 0x50e   : > { %v4799_v12 = vrot.slane %v12777_v36, %v11952_v10  ;;  %v7120_v19 = vrot.slane %v7098_v50, %v11972_v20  ;;  %v7204_v24 = vrot.slane %v7194_v18, %v11972_v20  ;;  %v7211_v38 = vrot.slane %v7195_v47, %v11972_v20 }
 0x50f   : > { %v7218_v31 = vrot.slane %v7196_v34, %v11972_v20  ;;  %v7225_v23 = vrot.slane %v7197_v60, %v11972_v20  ;;  %v7292_v37 = vcombine.low %v4771_v44, %v4775_v52  ;;  %v7293_v43 = vcombine.low %v4779_v5, %v4783_v63 }
 0x510   : > { %v12997_v59 = vadd.f32 %v11923_v9, %v12891_v62  ;;  %v13001_v50 = vadd.f32 %v11923_v9, %v12895_v55  ;;  %v7294_v36 = vcombine.low %v4787_v25, %v4791_v28  ;;  %v14467_v44 = vrot.slane %v12876_v13, %v11972_v20 }
 0x511   : > { %v14468_v62 = vrot.slane %v12884_v39, %v11972_v20  ;;  %v7295_v2 = vcombine.low %v4795_v56, %v4799_v12  ;;  %v13026_v49 = vcombine.low %v7106_v35, %v7113_v7  ;;  %v13030_v13 = vcombine.low %v7204_v24, %v7211_v38 }
 0x512   : > { %9114 = vperm.xlu0 %9822, %v6899_v33   ;;  %v7078_v33 = vrot.slane %v7050_v45, %v11972_v20  ;;  %v7127_v45 = vrot.slane %v7099_v26, %v11972_v20  ;;  %v13005_v26 = vadd.f32 %v11923_v9, %v12908_v48  ;;  %v13022_v48 = vcombine.low %v7057_v4, %v7064_v6 }
 0x513   : > { %v13018_v29 = vcombine.low %v14468_v62, %v7029_v42  ;;  %v13032_v8 = vcombine.low %v7218_v31, %v7225_v23  ;;  %v7302_v39 = vrot.slane %v7292_v37, %v11972_v20  ;;  %v7309_v1 = vrot.slane %v7293_v43, %v11972_v20 }
 0x514   : > { %v13024_v46 = vcombine.low %v7071_v16, %v7078_v33  ;;  %v7316_v57 = vrot.slane %v7294_v36, %v11972_v20  ;;  %v4835_v4 = vrot.slane %v12825_v51, %v14279_v41  ;;  %v4839_v6 = vrot.slane %v12825_v51, %v14280_v54 }
 0x515   : > { %v4843_v58 = vrot.slane %v12825_v51, %v11931_v11  ;;  %v7323_v42 = vrot.slane %v7295_v2, %v11972_v20  ;;  %v4847_v18 = vrot.slane %v12825_v51, %v11935_v0  ;;  %v4851_v47 = vrot.slane %v12825_v51, %v11938_v22 }
 0x516   : > { %v4855_v34 = vrot.slane %v12825_v51, %v11942_v53  ;;  %v7045_v52 = vrot.slane %v13018_v29, %v11972_v20  ;;  %v13064_v35 = vcombine.low %v7302_v39, %v7309_v1  ;;  %v9352_v7 = vadd.s32 4294967176, %v12357_v21 }
 0x517   : > { %9117 = vperm.xlu1 %9823, %v6948_v17   ;;  %v14466_v17 = vrot.slane %v12878_v3, %v11972_v20  ;;  %v13028_v3 = vcombine.low %v7120_v19, %v7127_v45  ;;  %v4859_v56 = vrot.slane %v12825_v51, %v11945_v61  ;;  %v4863_v12 = vrot.slane %v12825_v51, %v11952_v10 }
 0x518   : > { %v13071_v19 = vcombine.low %v4835_v4, %v4839_v6  ;;  %v13073_v45 = vcombine.low %v7316_v57, %v7323_v42  ;;  %v13075_v24 = vcombine.low %v4843_v58, %v4847_v18  ;;  %v13077_v38 = vcombine.low %v4851_v47, %v4855_v34 }
 0x519   : > { %v13013_v60 = vcombine.low %v14467_v44, %v14466_v17  ;;  %v4899_v31 = vrot.slane %v12832_v30, %v14279_v41  ;;  %v4903_v21 = vrot.slane %v12832_v30, %v14280_v54  ;;  %v4907_v23 = vrot.slane %v12832_v30, %v11931_v11 }
 0x51a   : > { %v4911_v51 = vrot.slane %v12832_v30, %v11935_v0  ;;  %v4915_v37 = vrot.slane %v12832_v30, %v11938_v22  ;;  %v4919_v36 = vrot.slane %v12832_v30, %v11942_v53  ;;  %v4923_v17 = vrot.slane %v12832_v30, %v11945_v61 }
 0x51b   : > { %v4927_v44 = vrot.slane %v12832_v30, %v11952_v10  ;;  %v4963_v62 = vrot.slane %v12866_v27, %v14279_v41  ;;  %v13100_v2 = vsub.s32 %v9352_v7, %v14340_v14  ;;  %v4967_v39 = vrot.slane %v12866_v27, %v14280_v54 }
 0x51c   : > { %v4971_v1 = vrot.slane %v12866_v27, %v11931_v11  ;;  %v4975_v57 = vrot.slane %v12866_v27, %v11935_v0  ;;  %v4979_v4 = vrot.slane %v12866_v27, %v11938_v22  ;;  %v4983_v30 = vrot.slane %v12866_v27, %v11942_v53 }
 0x51d   : > { %14470 = vst [vmem:[#allocation15_spill] sm:$0xff] %v13100_v2  ;;  %v4987_v6 = vrot.slane %v12866_v27, %v11945_v61  ;;  %v4991_v14 = vrot.slane %v12866_v27, %v11952_v10  ;;  %v7332_v58 = vrot.slane %v13064_v35, %v11972_v20  ;;  %v7339_v42 = vrot.slane %v13073_v45, %v11972_v20 }
 0x51e   : > { %v7393_v18 = vcombine.low %v4859_v56, %v4863_v12  ;;  %v7400_v47 = vrot.slane %v13071_v19, %v11972_v20  ;;  %v7407_v7 = vrot.slane %v13075_v24, %v11972_v20  ;;  %v7488_v25 = vcombine.low %v4899_v31, %v4903_v21 }
 0x51f   : > { %v13089_v43 = vpop.xlane.xlu0 %3033  ;;  %v7489_v28 = vcombine.low %v4907_v23, %v4911_v51  ;;  %v7490_v27 = vcombine.low %v4915_v37, %v4919_v36  ;;  %v7491_v33 = vcombine.low %v4923_v17, %v4927_v44  ;;  %v7586_v5 = vcombine.low %v4963_v62, %v4967_v39 }
 0x520   : > { %14469 = vst [vmem:[#allocation79_spill] sm:$0xff] %v13089_v43  ;;  %v7587_v35 = vcombine.low %v4971_v1, %v4975_v57  ;;  %v7588_v63 = vcombine.low %v4979_v4, %v4983_v30  ;;  %v7589_v55 = vcombine.low %v4987_v6, %v4991_v14  ;;  %v5027_v56 = vrot.slane %v12872_v15, %v14279_v41 }
 0x521   : > { %v5031_v19 = vrot.slane %v12872_v15, %v14280_v54  ;;  %v5035_v45 = vrot.slane %v12872_v15, %v11931_v11  ;;  %v5039_v24 = vrot.slane %v12872_v15, %v11935_v0  ;;  %v5043_v31 = vrot.slane %v12872_v15, %v11938_v22 }
 0x522   : > { %v5047_v21 = vrot.slane %v12872_v15, %v11942_v53  ;;  %v5051_v23 = vrot.slane %v12872_v15, %v11945_v61  ;;  %v7421_v51 = vrot.slane %v7393_v18, %v11972_v20  ;;  %v7498_v37 = vrot.slane %v7488_v25, %v11972_v20  ;;  %v14479_v18 = vld [vmem:[#allocation88_spill] sm:$0xff] }
 0x523   : > { %v7505_v36 = vrot.slane %v7489_v28, %v11972_v20  ;;  %v7512_v17 = vrot.slane %v7490_v27, %v11972_v20  ;;  %v7519_v44 = vrot.slane %v7491_v33, %v11972_v20  ;;  %v7596_v62 = vrot.slane %v7586_v5, %v11972_v20 }
 0x524   : > { %v7603_v39 = vrot.slane %v7587_v35, %v11972_v20  ;;  %v7610_v1 = vrot.slane %v7588_v63, %v11972_v20  ;;  %v7684_v57 = vcombine.low %v5027_v56, %v5031_v19  ;;  %v14472_v25 = vrot.slane %v12960_v32, %v11972_v20 }
 0x525   : > { %v14473_v33 = vrot.slane %v13024_v46, %v11972_v20  ;;  %v14474_v5 = vrot.slane %v13022_v48, %v11972_v20  ;;  %v7686_v63 = vcombine.low %v5043_v31, %v5047_v21  ;;  %v14475_v30 = vrot.slane %v13028_v3, %v11972_v20 }
 0x526   : > { %v13162_v28 = vcombine.low %v14472_v25, %v7045_v52  ;;  %v14476_v29 = vrot.slane %v13026_v49, %v11972_v20  ;;  %v14477_v32 = vrot.slane %v13032_v8, %v11972_v20  ;;  %v14478_v46 = vrot.slane %v13030_v13, %v11972_v20 }
 0x527   : > { %v9103_v34 = vpop.permute.xlu0 %9102  ;;  %v13170_v4 = vcombine.low %v14474_v5, %v14473_v33  ;;  %v13188_v48 = vcombine.low %v7332_v58, %v7339_v42  ;;  %v7422_v14 = vcombine.low %v7400_v47, %v7407_v7  ;;  %v7520_v3 = vcombine.low %v7498_v37, %v7505_v36  ;;  %v14480_v7 = vld [vmem:[#allocation37_spill] sm:$0xff]  ;;  %v14482_v36 = vld [vmem:[#allocation8_spill] sm:$0xff] }
 0x528   : > { %v9356_v16 = vrot.slane %v9103_v34, %v13100_v2  ;;  %v13178_v6 = vcombine.low %v14476_v29, %v14475_v30  ;;  %v13186_v52 = vcombine.low %v14478_v46, %v14477_v32  ;;  %v7521_v27 = vcombine.low %v7512_v17, %v7519_v44  ;;  %v14483_v17 = vld [vmem:[#allocation53_spill] sm:$0xff] }
 0x529   : > { %v7618_v35 = vcombine.low %v7596_v62, %v7603_v39  ;;  %v7694_v56 = vrot.slane %v7684_v57, %v11972_v20  ;;  %v5091_v8 = vrot.slane %v12997_v59, %v14279_v41  ;;  %v7708_v13 = vrot.slane %v7686_v63, %v11972_v20 }
 0x52a   : > { %v13129_v12 = vsel %vm9357_vm3, %v9356_v16, %v12820_v40  ;;  %v5055_v40 = vrot.slane %v12872_v15, %v11952_v10  ;;  %v7414_v16 = vrot.slane %v13077_v38, %v11972_v20  ;;  %v7617_v15 = vrot.slane %v7589_v55, %v11972_v20 }
 0x52b   : > { %14471 = vst [vmem:[#allocation44_spill] sm:$0xff] %v13129_v12  ;;  %v7685_v38 = vcombine.low %v5035_v45, %v5039_v24  ;;  %v5095_v42 = vrot.slane %v12997_v59, %v14280_v54  ;;  %v5099_v47 = vrot.slane %v12997_v59, %v11931_v11  ;;  %v14481_v45 = vld [vmem:[#allocation25_spill] sm:$0xff]  ;;  %v5103_v31 = vrot.slane %v12997_v59, %v11935_v0 }
 0x52c   : > { %v7687_v55 = vcombine.low %v5051_v23, %v5055_v40  ;;  %v7423_v34 = vcombine.low %v7414_v16, %v7421_v51  ;;  %v7619_v49 = vcombine.low %v7610_v1, %v7617_v15  ;;  %v3712_v24 = vadd.f32 %v14481_v45, %v14480_v7 }
 0x52d   : > { %v7701_v19 = vrot.slane %v7685_v38, %v11972_v20  ;;  %v5107_v21 = vrot.slane %v12997_v59, %v11938_v22  ;;  %v5111_v23 = vrot.slane %v12997_v59, %v11942_v53  ;;  %v7430_v40 = vrot.slane %v7422_v14, %v11972_v20 }
 0x52e   : > { %v7715_v58 = vrot.slane %v7687_v55, %v11972_v20  ;;  %v7437_v16 = vrot.slane %v7423_v34, %v11972_v20  ;;  %v5115_v51 = vrot.slane %v12997_v59, %v11945_v61  ;;  %v5119_v37 = vrot.slane %v12997_v59, %v11952_v10 }
 0x52f   : > { %v3711_v44 = vadd.f32 %v14483_v17, %v14482_v36  ;;  %v7528_v62 = vrot.slane %v7520_v3, %v11972_v20  ;;  %v7535_v39 = vrot.slane %v7521_v27, %v11972_v20  ;;  %v7626_v1 = vrot.slane %v7618_v35, %v11972_v20  ;;  %v14484_v27 = vld [vmem:[#allocation89_spill] sm:$0xff]  ;;  %v14485_v17 = vld [vmem:[#allocation74_spill] sm:$0xff] }
 0x530   : > { %v7633_v15 = vrot.slane %v7619_v49, %v11972_v20  ;;  %v13221_v57 = vcombine.low %v7694_v56, %v7701_v19  ;;  %v13223_v38 = vcombine.low %v7708_v13, %v7715_v58  ;;  %v7782_v25 = vcombine.low %v5091_v8, %v5095_v42 }
 0x531   : > { %3051 = vadd.xlane.f32.xlu0 %v14479_v18  ;;  %v3786_v33 = vadd.f32 %v11923_v9, %v3712_v24  ;;  %v7783_v5 = vcombine.low %v5099_v47, %v5103_v31  ;;  %v7784_v59 = vcombine.low %v5107_v21, %v5111_v23  ;;  %v5155_v63 = vrot.slane %v13005_v26, %v14279_v41 }
 0x532   : > { %v7785_v55 = vcombine.low %v5115_v51, %v5119_v37  ;;  %v5159_v30 = vrot.slane %v13005_v26, %v14280_v54  ;;  %v5163_v29 = vrot.slane %v13005_v26, %v11931_v11  ;;  %v5167_v32 = vrot.slane %v13005_v26, %v11935_v0 }
 0x533   : > { %v5171_v46 = vrot.slane %v13005_v26, %v11938_v22  ;;  %v5175_v14 = vrot.slane %v13005_v26, %v11942_v53  ;;  %v5179_v18 = vrot.slane %v13005_v26, %v11945_v61  ;;  %v5183_v34 = vrot.slane %v13005_v26, %v11952_v10 }
 0x534   : > { %v13243_v3 = vadd.f32 %v11923_v9, %v3711_v44  ;;  %v13246_v35 = vcombine.low %v7430_v40, %v7437_v16  ;;  %v13248_v49 = vcombine.low %v7528_v62, %v7535_v39  ;;  %v13250_v56 = vcombine.low %v7626_v1, %v7633_v15 }
 0x535   : > { %v7731_v8 = vrot.slane %v13223_v38, %v11972_v20  ;;  %v7792_v13 = vrot.slane %v7782_v25, %v11972_v20  ;;  %v7799_v26 = vrot.slane %v7783_v5, %v11972_v20  ;;  %v7806_v58 = vrot.slane %v7784_v59, %v11972_v20 }
 0x536   : > { %v7813_v42 = vrot.slane %v7785_v55, %v11972_v20  ;;  %v7880_v47 = vcombine.low %v5155_v63, %v5159_v30  ;;  %v7881_v7 = vcombine.low %v5163_v29, %v5167_v32  ;;  %v7882_v45 = vcombine.low %v5171_v46, %v5175_v14 }
 0x537   : > { %v7883_v24 = vcombine.low %v5179_v18, %v5183_v34  ;;  %v5219_v31 = vrot.slane %v3786_v33, %v14279_v41  ;;  %v5223_v21 = vrot.slane %v3786_v33, %v14280_v54  ;;  %v5227_v23 = vrot.slane %v3786_v33, %v11931_v11 }
 0x538   : > { %v5231_v40 = vrot.slane %v3786_v33, %v11935_v0  ;;  %v5235_v16 = vrot.slane %v3786_v33, %v11938_v22  ;;  %v5239_v51 = vrot.slane %v3786_v33, %v11942_v53  ;;  %v5243_v37 = vrot.slane %v3786_v33, %v11945_v61 }
 0x539   : > { %v5247_v36 = vrot.slane %v3786_v33, %v11952_v10  ;;  %v4675_v44 = vrot.slane %v14485_v17, %v14279_v41  ;;  %v4679_v62 = vrot.slane %v14485_v17, %v14280_v54  ;;  %v4683_v39 = vrot.slane %v14485_v17, %v11931_v11 }
 0x53a   : > { %v4687_v1 = vrot.slane %v14485_v17, %v11935_v0  ;;  %v4691_v15 = vrot.slane %v14485_v17, %v11938_v22  ;;  %v4695_v25 = vrot.slane %v14485_v17, %v11942_v53  ;;  %v7814_v5 = vcombine.low %v7792_v13, %v7799_v26 }
 0x53b   : > { %3054 = vadd.xlane.f32.xlu1 %v14484_v27  ;;  %v7815_v33 = vcombine.low %v7806_v58, %v7813_v42  ;;  %v4699_v59 = vrot.slane %v14485_v17, %v11945_v61  ;;  %v4703_v63 = vrot.slane %v14485_v17, %v11952_v10  ;;  %v7890_v55 = vrot.slane %v7880_v47, %v11972_v20  ;;  %v14486_v58 = vld [vmem:[#allocation72_spill] sm:$0xff] }
 0x53c   : > { %v7897_v30 = vrot.slane %v7881_v7, %v11972_v20  ;;  %v7904_v29 = vrot.slane %v7882_v45, %v11972_v20  ;;  %v7911_v32 = vrot.slane %v7883_v24, %v11972_v20  ;;  %v7978_v46 = vcombine.low %v5219_v31, %v5223_v21 }
 0x53d   : > { %v7979_v14 = vcombine.low %v5227_v23, %v5231_v40  ;;  %v7980_v18 = vcombine.low %v5235_v16, %v5239_v51  ;;  %v7981_v34 = vcombine.low %v5243_v37, %v5247_v36  ;;  %v7145_v27 = vcombine.low %v4675_v44, %v4679_v62 }
 0x53e   : > { %v7146_v13 = vcombine.low %v4683_v39, %v4687_v1  ;;  %v7147_v26 = vcombine.low %v4691_v15, %v4695_v25  ;;  %v4739_v42 = vrot.slane %v14486_v58, %v14279_v41  ;;  %v7148_v19 = vcombine.low %v4699_v59, %v4703_v63  ;;  %v14487_v63 = vld [vmem:[#allocation14_spill] sm:$0xff] }
 0x53f   : > { %v4743_v47 = vrot.slane %v14486_v58, %v14280_v54  ;;  %v4747_v7 = vrot.slane %v14486_v58, %v11931_v11  ;;  %v4751_v45 = vrot.slane %v14486_v58, %v11935_v0  ;;  %v4755_v24 = vrot.slane %v14486_v58, %v11938_v22 }
 0x540   : > { %v4759_v31 = vrot.slane %v14486_v58, %v11942_v53  ;;  %v4763_v21 = vrot.slane %v14486_v58, %v11945_v61  ;;  %v4767_v23 = vrot.slane %v14486_v58, %v11952_v10  ;;  %v7822_v40 = vrot.slane %v7814_v5, %v11972_v20 }
 0x541   : > { %v7829_v16 = vrot.slane %v7815_v33, %v11972_v20  ;;  %v13307_v51 = vcombine.low %v7890_v55, %v7897_v30  ;;  %v13309_v37 = vcombine.low %v7904_v29, %v7911_v32  ;;  %v7995_v36 = vrot.slane %v7979_v14, %v11972_v20 }
 0x542   : > { %v8002_v17 = vrot.slane %v7980_v18, %v11972_v20  ;;  %v8009_v44 = vrot.slane %v7981_v34, %v11972_v20  ;;  %v7155_v62 = vrot.slane %v7145_v27, %v11972_v20  ;;  %v7162_v39 = vrot.slane %v7146_v13, %v11972_v20 }
 0x543   : > { %v7169_v1 = vrot.slane %v7147_v26, %v11972_v20  ;;  %v7176_v15 = vrot.slane %v7148_v19, %v11972_v20  ;;  %v7243_v25 = vcombine.low %v4739_v42, %v4743_v47  ;;  %v7244_v5 = vcombine.low %v4747_v7, %v4751_v45 }
 0x544   : > { %v7245_v33 = vcombine.low %v4755_v24, %v4759_v31  ;;  %v7246_v59 = vcombine.low %v4763_v21, %v4767_v23  ;;  %v4803_v55 = vrot.slane %v14487_v63, %v14279_v41  ;;  %v4807_v30 = vrot.slane %v14487_v63, %v14280_v54 }
 0x545   : > { %v4811_v29 = vrot.slane %v14487_v63, %v11931_v11  ;;  %v4815_v32 = vrot.slane %v14487_v63, %v11935_v0  ;;  %v4819_v19 = vrot.slane %v14487_v63, %v11938_v22  ;;  %v4831_v14 = vrot.slane %v14487_v63, %v11952_v10 }
 0x546   : > { %v8011_v34 = vcombine.low %v8002_v17, %v8009_v44  ;;  %v7177_v27 = vcombine.low %v7155_v62, %v7162_v39  ;;  %v7178_v13 = vcombine.low %v7169_v1, %v7176_v15  ;;  %v7253_v26 = vrot.slane %v7243_v25, %v11972_v20  ;;  %v14490_v62 = vld [vmem:[#allocation77_spill] sm:$0xff]  ;;  %v13366_v39 = vpop.xlane.xlu1 %3036 }
 0x547   : > { %9120 = vperm.xlu0 %9822, %v13013_v60   ;;  %v7988_v60 = vrot.slane %v7978_v46, %v11972_v20  ;;  %v4823_v46 = vrot.slane %v14487_v63, %v11942_v53  ;;  %v7260_v58 = vrot.slane %v7244_v5, %v11972_v20  ;;  %v7267_v42 = vrot.slane %v7245_v33, %v11972_v20 }
 0x548   : > { %v7274_v47 = vrot.slane %v7246_v59, %v11972_v20  ;;  %v14488_v7 = vrot.slane %v13221_v57, %v11972_v20  ;;  %v13348_v24 = vcombine.low %v7822_v40, %v7829_v16  ;;  %v7341_v31 = vcombine.low %v4803_v55, %v4807_v30  ;;  %14491 = vst [vmem:[#allocation45_spill] sm:$0xff] %v13366_v39  ;;  %v14506_v39 = vld [vmem:[#allocation94_spill] sm:$0xff] }
 0x549   : > { %v8010_v18 = vcombine.low %v7988_v60, %v7995_v36  ;;  %v7342_v21 = vcombine.low %v4811_v29, %v4815_v32  ;;  %v7920_v23 = vrot.slane %v13307_v51, %v11972_v20  ;;  %v7927_v60 = vrot.slane %v13309_v37, %v11972_v20  ;;  %v14492_v32 = vld [vmem:[#allocation13_spill] sm:$0xff] }
 0x54a   : > { %v13346_v45 = vcombine.low %v14488_v7, %v7731_v8  ;;  %14489 = vst [vmem:[#allocation9_spill] sm:$0xff] %v13348_v24  ;;  %v7343_v36 = vcombine.low %v4819_v19, %v4823_v46  ;;  %v8025_v38 = vrot.slane %v8011_v34, %v11972_v20  ;;  %v7185_v57 = vrot.slane %v7177_v27, %v11972_v20  ;;  %v14495_v7 = vld [vmem:[#allocation54_spill] sm:$0xff] }
 0x54b   : > { %v8018_v44 = vrot.slane %v8010_v18, %v11972_v20  ;;  %v7192_v8 = vrot.slane %v7178_v13, %v11972_v20  ;;  %v13358_v40 = vcombine.low %v7253_v26, %v7260_v58  ;;  %v13360_v16 = vcombine.low %v7267_v42, %v7274_v47  ;;  %v14494_v47 = vld [vmem:[#allocation21_spill] sm:$0xff] }
 0x54c   : > { %9123 = vperm.xlu1 %9823, %v13162_v28   ;;  %v4827_v28 = vrot.slane %v14487_v63, %v11945_v61  ;;  %v4867_v51 = vrot.slane %v14490_v62, %v14279_v41  ;;  %v4871_v37 = vrot.slane %v14490_v62, %v14280_v54  ;;  %v7351_v1 = vrot.slane %v7341_v31, %v11972_v20 }
 0x54d   : > { %v7358_v15 = vrot.slane %v7342_v21, %v11972_v20  ;;  %v4875_v25 = vrot.slane %v14490_v62, %v11931_v11  ;;  %v4879_v5 = vrot.slane %v14490_v62, %v11935_v0  ;;  %v7365_v33 = vrot.slane %v7343_v36, %v11972_v20 }
 0x54e   : > { %v7344_v17 = vcombine.low %v4827_v28, %v4831_v14  ;;  %v4883_v63 = vrot.slane %v14490_v62, %v11938_v22  ;;  %v4887_v55 = vrot.slane %v14490_v62, %v11942_v53  ;;  %v4891_v30 = vrot.slane %v14490_v62, %v11945_v61 }
 0x54f   : > { %v4895_v29 = vrot.slane %v14490_v62, %v11952_v10  ;;  %v4931_v19 = vrot.slane %v14492_v32, %v14279_v41  ;;  %v4935_v46 = vrot.slane %v14492_v32, %v14280_v54  ;;  %v4939_v28 = vrot.slane %v14492_v32, %v11931_v11  ;;  %v9106_v62 = vpop.permute.xlu1 %9105 }
 0x550   : > { %v7372_v59 = vrot.slane %v7344_v17, %v11972_v20  ;;  %v4943_v14 = vrot.slane %v14492_v32, %v11935_v0  ;;  %v4947_v18 = vrot.slane %v14492_v32, %v11938_v22  ;;  %v4951_v34 = vrot.slane %v14492_v32, %v11942_v53 }
 0x551   : > { %v7439_v13 = vcombine.low %v4867_v51, %v4871_v37  ;;  %v7440_v26 = vcombine.low %v4875_v25, %v4879_v5  ;;  %v4955_v58 = vrot.slane %v14492_v32, %v11945_v61  ;;  %v4959_v42 = vrot.slane %v14492_v32, %v11952_v10  ;;  %v14505_v51 = vld [vmem:[#allocation20_spill] sm:$0xff] }
 0x552   : > { %v3713_v31 = vadd.f32 %v14495_v7, %v14494_v47  ;;  %v13404_v21 = vcombine.low %v7920_v23, %v7927_v60  ;;  %v13406_v36 = vcombine.low %v8018_v44, %v8025_v38  ;;  %v7441_v17 = vcombine.low %v4883_v63, %v4887_v55  ;;  %v14499_v63 = vld [vmem:[#allocation92_spill] sm:$0xff] }
 0x553   : > { %v13408_v12 = vcombine.low %v7185_v57, %v7192_v8  ;;  %v7442_v37 = vcombine.low %v4891_v30, %v4895_v29  ;;  %v7537_v25 = vcombine.low %v4931_v19, %v4935_v46  ;;  %v13414_v32 = vcombine.low %v7351_v1, %v7358_v15  ;;  %v14500_v30 = vld [vmem:[#allocation93_spill] sm:$0xff] }
 0x554   : > { %v13396_v27 = vpop.xlane.xlu0 %3039  ;;  %14496 = vst [vmem:[#allocation46_spill] sm:$0xff] %v13404_v21  ;;  %14497 = vst [vmem:[#allocation17_spill] sm:$0xff] %v13406_v36  ;;  %v7538_v2 = vcombine.low %v4939_v28, %v4943_v14  ;;  %v7539_v47 = vcombine.low %v4947_v18, %v4951_v34  ;;  %v13416_v60 = vcombine.low %v7365_v33, %v7372_v59  ;;  %v14502_v59 = vld [vmem:[#allocation78_spill] sm:$0xff] }
 0x555   : > { %14493 = vst [vmem:[#allocation10_spill] sm:$0xff] %v13396_v27  ;;  %14498 = vst [vmem:[#allocation47_spill] sm:$0xff] %v13408_v12  ;;  %v7449_v44 = vrot.slane %v7439_v13, %v11972_v20  ;;  %v7456_v38 = vrot.slane %v7440_v26, %v11972_v20  ;;  %v7540_v57 = vcombine.low %v4955_v58, %v4959_v42 }
 0x556   : > { %v3787_v8 = vadd.f32 %v11923_v9, %v3713_v31  ;;  %v9362_v55 = vrot.slane %v9106_v62, %v14499_v63  ;;  %v7463_v19 = vrot.slane %v7441_v17, %v11972_v20  ;;  %v7470_v15 = vrot.slane %v7442_v37, %v11972_v20  ;;  %v14503_v31 = vld [vmem:[#allocation67_spill] sm:$0xff]  ;;  %v14504_v17 = vld [vmem:[#allocation28_spill] sm:$0xff] }
 0x557   : > { %v7547_v33 = vrot.slane %v7537_v25, %v11972_v20  ;;  %v4995_v46 = vrot.slane %v14502_v59, %v14279_v41  ;;  %v4999_v28 = vrot.slane %v14502_v59, %v14280_v54  ;;  %v7554_v18 = vrot.slane %v7538_v2, %v11972_v20 }
 0x558   : > { %v7561_v34 = vrot.slane %v7539_v47, %v11972_v20  ;;  %v5003_v13 = vrot.slane %v14502_v59, %v11931_v11  ;;  %v7568_v26 = vrot.slane %v7540_v57, %v11972_v20  ;;  %v5007_v58 = vrot.slane %v14502_v59, %v11935_v0 }
 0x559   : > { %v5011_v42 = vrot.slane %v14502_v59, %v11938_v22  ;;  %v5015_v7 = vrot.slane %v14502_v59, %v11942_v53  ;;  %v3714_v62 = vadd.f32 %v14504_v17, %v14503_v31  ;;  %v5251_v2 = vrot.slane %v3787_v8, %v14279_v41 }
 0x55a   : > { %v5019_v37 = vrot.slane %v14502_v59, %v11945_v61  ;;  %v5023_v25 = vrot.slane %v14502_v59, %v11952_v10  ;;  %v5259_v57 = vrot.slane %v3787_v8, %v11931_v11  ;;  %v5271_v31 = vrot.slane %v3787_v8, %v11942_v53 }
 0x55b   : > { %v5275_v17 = vrot.slane %v3787_v8, %v11945_v61  ;;  %v5279_v63 = vrot.slane %v3787_v8, %v11952_v10  ;;  %v7472_v27 = vcombine.low %v7463_v19, %v7470_v15  ;;  %v7569_v59 = vcombine.low %v7547_v33, %v7554_v18 }
 0x55c   : > { %v9109_v23 = vpop.permute.xlu0 %9108  ;;  %v7570_v12 = vcombine.low %v7561_v34, %v7568_v26  ;;  %v3788_v43 = vadd.f32 %v11923_v9, %v3714_v62  ;;  %v7635_v36 = vcombine.low %v4995_v46, %v4999_v28  ;;  %v7636_v21 = vcombine.low %v5003_v13, %v5007_v58 }
 0x55d   : > { %v9366_v29 = vrot.slane %v9109_v23, %v14500_v30  ;;  %v5255_v23 = vrot.slane %v3787_v8, %v14280_v54  ;;  %v7471_v30 = vcombine.low %v7449_v44, %v7456_v38  ;;  %v7381_v24 = vrot.slane %v13414_v32, %v11972_v20 }
 0x55e   : > { %v13424_v1 = vpop.xlane.xlu1 %3042  ;;  %v7388_v44 = vrot.slane %v13416_v60, %v11972_v20  ;;  %v7637_v19 = vcombine.low %v5011_v42, %v5015_v7  ;;  %v7638_v15 = vcombine.low %v5019_v37, %v5023_v25  ;;  %v7577_v46 = vrot.slane %v7569_v59, %v11972_v20 }
 0x55f   : > { %14501 = vst [vmem:[#allocation16_spill] sm:$0xff] %v13424_v1  ;;  %v9367_v14 = vsel %vm9259_vm2, %v9366_v29, %v9362_v55  ;;  %v5263_v55 = vrot.slane %v3787_v8, %v11935_v0  ;;  %v5267_v29 = vrot.slane %v3787_v8, %v11938_v22  ;;  %v8030_v8 = vcombine.low %v5275_v17, %v5279_v63 }
 0x560   : > { %v7479_v33 = vrot.slane %v7471_v30, %v11972_v20  ;;  %v5283_v28 = vrot.slane %v3788_v43, %v14279_v41  ;;  %v7645_v32 = vrot.slane %v7635_v36, %v11972_v20  ;;  %v7652_v60 = vrot.slane %v7636_v21, %v11972_v20  ;;  %v14507_v21 = vld [vmem:[#allocation43_spill] sm:$0xff] }
 0x561   : > { %v8029_v38 = vcombine.low %v5267_v29, %v5271_v31  ;;  %v5291_v30 = vrot.slane %v3788_v43, %v11931_v11  ;;  %v7659_v13 = vrot.slane %v7637_v19, %v11972_v20  ;;  %v7666_v26 = vrot.slane %v7638_v15, %v11972_v20 }
 0x562   : > { %v9112_v47 = vpop.permute.xlu1 %9111  ;;  %v5299_v36 = vrot.slane %v3788_v43, %v11938_v22  ;;  %v5059_v58 = vrot.slane %v14507_v21, %v14279_v41  ;;  %v5067_v42 = vrot.slane %v14507_v21, %v11931_v11  ;;  %v5303_v7 = vrot.slane %v3788_v43, %v11942_v53 }
 0x563   : > { %v9371_v5 = vrot.slane %v9112_v47, %v14505_v51  ;;  %v8027_v47 = vcombine.low %v5251_v2, %v5255_v23  ;;  %v8028_v51 = vcombine.low %v5259_v57, %v5263_v55  ;;  %v8051_v34 = vrot.slane %v8029_v38, %v11972_v20 }
 0x564   : > { %v5307_v62 = vrot.slane %v3788_v43, %v11945_v61  ;;  %v5311_v2 = vrot.slane %v3788_v43, %v11952_v10  ;;  %v5071_v23 = vrot.slane %v14507_v21, %v11935_v0  ;;  %v5075_v57 = vrot.slane %v14507_v21, %v11938_v22 }
 0x565   : > { %v13461_v1 = vsel %vm9266_vm5, %v9371_v5, %v9367_v14  ;;  %v7486_v5 = vrot.slane %v7472_v27, %v11972_v20  ;;  %v5287_v14 = vrot.slane %v3788_v43, %v14280_v54  ;;  %v8037_v63 = vrot.slane %v8027_v47, %v11972_v20 }
 0x566   : > { %3057 = vadd.xlane.f32.xlu0 %v14506_v39  ;;  %v7584_v39 = vrot.slane %v7570_v12, %v11972_v20  ;;  %v8044_v18 = vrot.slane %v8028_v51, %v11972_v20  ;;  %v5295_v27 = vrot.slane %v3788_v43, %v11935_v0  ;;  %v8058_v12 = vrot.slane %v8030_v8, %v11972_v20  ;;  %v14508_v43 = vld [vmem:[#allocation95_spill] sm:$0xff] }
 0x567   : > { %v5063_v51 = vrot.slane %v14507_v21, %v14280_v54  ;;  %v8076_v37 = vcombine.low %v5283_v28, %v5287_v14  ;;  %v5079_v55 = vrot.slane %v14507_v21, %v11942_v53  ;;  %v7667_v31 = vcombine.low %v7645_v32, %v7652_v60 }
 0x568   : > { %v8077_v25 = vcombine.low %v5291_v30, %v5295_v27  ;;  %v8059_v29 = vcombine.low %v8037_v63, %v8044_v18  ;;  %v5083_v17 = vrot.slane %v14507_v21, %v11945_v61  ;;  %v5087_v59 = vrot.slane %v14507_v21, %v11952_v10 }
 0x569   : > { %v8060_v47 = vcombine.low %v8051_v34, %v8058_v12  ;;  %v14509_v38 = vrot.slane %v13360_v16, %v11972_v20  ;;  %v14510_v8 = vrot.slane %v13358_v40, %v11972_v20  ;;  %v13513_v15 = vcombine.low %v7381_v24, %v7388_v44 }
 0x56a   : > { %v13515_v28 = vcombine.low %v7479_v33, %v7486_v5  ;;  %v8078_v14 = vcombine.low %v5299_v36, %v5303_v7  ;;  %v8079_v32 = vcombine.low %v5307_v62, %v5311_v2  ;;  %v8086_v60 = vrot.slane %v8076_v37, %v11972_v20  ;;  %v14511_v7 = vld [vmem:[#allocation19_spill] sm:$0xff] }
 0x56b   : > { %v13511_v19 = vcombine.low %v14510_v8, %v14509_v38  ;;  %v7668_v63 = vcombine.low %v7659_v13, %v7666_v26  ;;  %v8093_v18 = vrot.slane %v8077_v25, %v11972_v20  ;;  %v7733_v30 = vcombine.low %v5059_v58, %v5063_v51  ;;  %v14512_v62 = vld [vmem:[#allocation55_spill] sm:$0xff] }
 0x56c   : > { %v7734_v27 = vcombine.low %v5067_v42, %v5071_v23  ;;  %v7735_v34 = vcombine.low %v5075_v57, %v5079_v55  ;;  %v8067_v16 = vrot.slane %v8059_v29, %v11972_v20  ;;  %v13520_v12 = vcombine.low %v7577_v46, %v7584_v39 }
 0x56d   : > { %v7675_v40 = vrot.slane %v7667_v31, %v11972_v20  ;;  %v7736_v24 = vcombine.low %v5083_v17, %v5087_v59  ;;  %v5123_v44 = vrot.slane %v13001_v50, %v14279_v41  ;;  %v5127_v33 = vrot.slane %v13001_v50, %v14280_v54 }
 0x56e   : > { %v5131_v5 = vrot.slane %v13001_v50, %v11931_v11  ;;  %v5135_v13 = vrot.slane %v13001_v50, %v11935_v0  ;;  %v8074_v26 = vrot.slane %v8060_v47, %v11972_v20  ;;  %v8100_v46 = vrot.slane %v8078_v14, %v11972_v20 }
 0x56f   : > { %v8107_v39 = vrot.slane %v8079_v32, %v11972_v20  ;;  %v7682_v36 = vrot.slane %v7668_v63, %v11972_v20  ;;  %v13535_v21 = vcombine.low %v8086_v60, %v8093_v18  ;;  %v7743_v58 = vrot.slane %v7733_v30, %v11972_v20  ;;  %v14513_v30 = vld [vmem:[#allocation39_spill] sm:$0xff] }
 0x570   : > { %3060 = vadd.xlane.f32.xlu1 %v14508_v43  ;;  %v7750_v51 = vrot.slane %v7734_v27, %v11972_v20  ;;  %v7757_v42 = vrot.slane %v7735_v34, %v11972_v20  ;;  %v3715_v2 = vadd.f32 %v14512_v62, %v14511_v7  ;;  %v7764_v37 = vrot.slane %v7736_v24, %v11972_v20  ;;  %v14514_v27 = vld [vmem:[#allocation29_spill] sm:$0xff] }
 0x571   : > { %v5139_v25 = vrot.slane %v13001_v50, %v11938_v22  ;;  %v5143_v23 = vrot.slane %v13001_v50, %v11942_v53  ;;  %v5147_v57 = vrot.slane %v13001_v50, %v11945_v61  ;;  %v5151_v55 = vrot.slane %v13001_v50, %v11952_v10 }
 0x572   : > { %v7831_v29 = vcombine.low %v5123_v44, %v5127_v33  ;;  %v7832_v31 = vcombine.low %v5131_v5, %v5135_v13  ;;  %v5187_v17 = vrot.slane %v13243_v3, %v14279_v41  ;;  %v5191_v59 = vrot.slane %v13243_v3, %v14280_v54 }
 0x573   : > { %v5195_v43 = vrot.slane %v13243_v3, %v11931_v11  ;;  %v5199_v47 = vrot.slane %v13243_v3, %v11935_v0  ;;  %v5203_v38 = vrot.slane %v13243_v3, %v11938_v22  ;;  %v5207_v50 = vrot.slane %v13243_v3, %v11942_v53 }
 0x574   : > { %v5211_v8 = vrot.slane %v13243_v3, %v11945_v61  ;;  %v5215_v14 = vrot.slane %v13243_v3, %v11952_v10  ;;  %v3789_v32 = vadd.f32 %v11923_v9, %v3715_v2  ;;  %v8109_v60 = vcombine.low %v8100_v46, %v8107_v39 }
 0x575   : > { %v7765_v63 = vcombine.low %v7743_v58, %v7750_v51  ;;  %v7766_v18 = vcombine.low %v7757_v42, %v7764_v37  ;;  %v3716_v34 = vadd.f32 %v14514_v27, %v14513_v30  ;;  %v13571_v24 = vcombine.low %v8067_v16, %v8074_v26 }
 0x576   : > { %v13573_v44 = vcombine.low %v7675_v40, %v7682_v36  ;;  %v7833_v33 = vcombine.low %v5139_v25, %v5143_v23  ;;  %v7834_v5 = vcombine.low %v5147_v57, %v5151_v55  ;;  %v7841_v13 = vrot.slane %v7831_v29, %v11972_v20  ;;  %v14515_v57 = vld [vmem:[#allocation12_spill] sm:$0xff] }
 0x577   : > { %v7848_v3 = vrot.slane %v7832_v31, %v11972_v20  ;;  %v7929_v7 = vcombine.low %v5187_v17, %v5191_v59  ;;  %v8116_v46 = vrot.slane %v13535_v21, %v11972_v20  ;;  %v7930_v39 = vcombine.low %v5195_v43, %v5199_v47  ;;  %v14516_v55 = vld [vmem:[#allocation56_spill] sm:$0xff] }
 0x578   : > { %v7931_v58 = vcombine.low %v5203_v38, %v5207_v50  ;;  %v7932_v51 = vcombine.low %v5211_v8, %v5215_v14  ;;  %v8123_v42 = vrot.slane %v8109_v60, %v11972_v20  ;;  %v7773_v16 = vrot.slane %v7765_v63, %v11972_v20 }
 0x579   : > { %v7780_v40 = vrot.slane %v7766_v18, %v11972_v20  ;;  %v3790_v26 = vadd.f32 %v11923_v9, %v3716_v34  ;;  %v5319_v36 = vrot.slane %v3789_v32, %v14280_v54  ;;  %v5323_v62 = vrot.slane %v3789_v32, %v11931_v11 }
 0x57a   : > { %v5327_v2 = vrot.slane %v3789_v32, %v11935_v0  ;;  %v7855_v21 = vrot.slane %v7833_v33, %v11972_v20  ;;  %v7862_v37 = vrot.slane %v7834_v5, %v11972_v20  ;;  %v13590_v25 = vcombine.low %v7841_v13, %v7848_v3  ;;  %v14517_v13 = vld [vmem:[#allocation69_spill] sm:$0xff]  ;;  %v14518_v3 = vld [vmem:[#allocation30_spill] sm:$0xff] }
 0x57b   : > { %v7939_v23 = vrot.slane %v7929_v7, %v11972_v20  ;;  %v3717_v29 = vadd.f32 %v14516_v55, %v14515_v57  ;;  %v7946_v31 = vrot.slane %v7930_v39, %v11972_v20  ;;  %v7953_v17 = vrot.slane %v7931_v58, %v11972_v20 }
 0x57c   : > { %9126 = vperm.xlu0 %9822, %v13170_v4   ;;  %v5315_v4 = vrot.slane %v3789_v32, %v14279_v41  ;;  %v7960_v59 = vrot.slane %v7932_v51, %v11972_v20  ;;  %v5331_v43 = vrot.slane %v3789_v32, %v11938_v22  ;;  %v5339_v47 = vrot.slane %v3789_v32, %v11945_v61 }
 0x57d   : > { %v5343_v38 = vrot.slane %v3789_v32, %v11952_v10  ;;  %v8126_v8 = vcombine.low %v5323_v62, %v5327_v2  ;;  %v5347_v14 = vrot.slane %v3790_v26, %v14279_v41  ;;  %v5351_v60 = vrot.slane %v3790_v26, %v14280_v54 }
 0x57e   : > { %v8125_v50 = vcombine.low %v5315_v4, %v5319_v36  ;;  %v5355_v63 = vrot.slane %v3790_v26, %v11931_v11  ;;  %v5359_v18 = vrot.slane %v3790_v26, %v11935_v0  ;;  %v5363_v30 = vrot.slane %v3790_v26, %v11938_v22 }
 0x57f   : > { %v5367_v27 = vrot.slane %v3790_v26, %v11942_v53  ;;  %v3791_v34 = vadd.f32 %v11923_v9, %v3717_v29  ;;  %v5375_v33 = vrot.slane %v3790_v26, %v11952_v10  ;;  %v13612_v5 = vcombine.low %v7855_v21, %v7862_v37 }
 0x580   : > { %v3718_v7 = vadd.f32 %v14518_v3, %v14517_v13  ;;  %v13618_v39 = vcombine.low %v7773_v16, %v7780_v40  ;;  %v13620_v58 = vcombine.low %v7939_v23, %v7946_v31  ;;  %v8128_v4 = vcombine.low %v5339_v47, %v5343_v38  ;;  %v14520_v13 = vld [vmem:[#allocation40_spill] sm:$0xff]  ;;  %v14521_v3 = vld [vmem:[#allocation57_spill] sm:$0xff] }
 0x581   : > { %9129 = vperm.xlu1 %9823, %v13178_v6   ;;  %v5335_v6 = vrot.slane %v3789_v32, %v11942_v53  ;;  %v5371_v32 = vrot.slane %v3790_v26, %v11945_v61  ;;  %v8135_v36 = vrot.slane %v8125_v50, %v11972_v20  ;;  %v13623_v62 = vcombine.low %v7953_v17, %v7960_v59 }
 0x582   : > { %14519 = vst [vmem:[#allocation48_spill] sm:$0xff] %v13618_v39  ;;  %v8142_v26 = vrot.slane %v8126_v8, %v11972_v20  ;;  %v8174_v2 = vcombine.low %v5347_v14, %v5351_v60  ;;  %v8175_v21 = vcombine.low %v5355_v63, %v5359_v18  ;;  %v8176_v37 = vcombine.low %v5363_v30, %v5367_v27 }
 0x583   : > { %v8127_v51 = vcombine.low %v5331_v43, %v5335_v6  ;;  %v8177_v57 = vcombine.low %v5371_v32, %v5375_v33  ;;  %v5379_v16 = vrot.slane %v3791_v34, %v14279_v41  ;;  %v3792_v40 = vadd.f32 %v11923_v9, %v3718_v7 }
 0x584   : > { %v5383_v23 = vrot.slane %v3791_v34, %v14280_v54  ;;  %v5391_v55 = vrot.slane %v3791_v34, %v11935_v0  ;;  %v8156_v31 = vrot.slane %v8128_v4, %v11972_v20  ;;  %v7976_v17 = vrot.slane %v13623_v62, %v11972_v20 }
 0x585   : > { %9135 = vperm.xlu1 %9823, %v13186_v52   ;;  %v13616_v52 = vcombine.low %v8116_v46, %v8123_v42  ;;  %v7871_v46 = vrot.slane %v13590_v25, %v11972_v20  ;;  %v7878_v42 = vrot.slane %v13612_v5, %v11972_v20  ;;  %v8149_v29 = vrot.slane %v8127_v51, %v11972_v20 }
 0x586   : > { %v7969_v25 = vrot.slane %v13620_v58, %v11972_v20  ;;  %v13645_v43 = vcombine.low %v8135_v36, %v8142_v26  ;;  %v8184_v6 = vrot.slane %v8174_v2, %v11972_v20  ;;  %v8191_v47 = vrot.slane %v8175_v21, %v11972_v20  ;;  %v14522_v36 = vld [vmem:[#allocation65_spill] sm:$0xff] }
 0x587   : > { %v8198_v38 = vrot.slane %v8176_v37, %v11972_v20  ;;  %v8205_v50 = vrot.slane %v8177_v57, %v11972_v20  ;;  %v5395_v8 = vrot.slane %v3791_v34, %v11938_v22  ;;  %v5399_v14 = vrot.slane %v3791_v34, %v11942_v53 }
 0x588   : > { %v5403_v60 = vrot.slane %v3791_v34, %v11945_v61  ;;  %v5411_v63 = vrot.slane %v3792_v40, %v14279_v41  ;;  %v8223_v18 = vcombine.low %v5379_v16, %v5383_v23  ;;  %v5415_v27 = vrot.slane %v3792_v40, %v14280_v54 }
 0x589   : > { %9141 = vperm.xlu1 %9823, %v13188_v48   ;;  %v5387_v48 = vrot.slane %v3791_v34, %v11931_v11  ;;  %v13642_v59 = vpop.xlane.xlu0 %3045  ;;  %v5419_v32 = vrot.slane %v3792_v40, %v11931_v11  ;;  %v5423_v33 = vrot.slane %v3792_v40, %v11935_v0  ;;  %v5427_v5 = vrot.slane %v3792_v40, %v11938_v22 }
 0x58a   : > { %v3719_v7 = vadd.f32 %v14521_v3, %v14520_v13  ;;  %v5431_v51 = vrot.slane %v3792_v40, %v11942_v53  ;;  %v5439_v4 = vrot.slane %v3792_v40, %v11952_v10  ;;  %v8158_v26 = vcombine.low %v8149_v29, %v8156_v31 }
 0x58b   : > { %v8224_v30 = vcombine.low %v5387_v48, %v5391_v55  ;;  %v8206_v2 = vcombine.low %v8184_v6, %v8191_v47  ;;  %v8207_v21 = vcombine.low %v8198_v38, %v8205_v50  ;;  %v8225_v57 = vcombine.low %v5395_v8, %v5399_v14  ;;  %v14523_v48 = vld [vmem:[#allocation11_spill] sm:$0xff] }
 0x58c   : > { %v8233_v23 = vrot.slane %v8223_v18, %v11972_v20  ;;  %v14524_v55 = vld [vmem:[#allocation31_spill] sm:$0xff]  ;;  %v8273_v39 = vcombine.low %v5419_v32, %v5423_v33  ;;  %v3793_v29 = vadd.f32 %v11923_v9, %v3719_v7  ;;  %v8274_v31 = vcombine.low %v5427_v5, %v5431_v51  ;;  %v14527_v33 = vld [vmem:[#allocation76_spill] sm:$0xff] }
 0x58d   : > { %9147 = vperm.xlu1 %9823, %v13246_v35   ;;  %v5407_v35 = vrot.slane %v3791_v34, %v11952_v10  ;;  %v5435_v34 = vrot.slane %v3792_v40, %v11945_v61  ;;  %v3720_v13 = vadd.f32 %v14524_v55, %v14523_v48  ;;  %v8272_v40 = vcombine.low %v5411_v63, %v5415_v27  ;;  %v14528_v5 = vld [vmem:[#allocation32_spill] sm:$0xff] }
 0x58e   : > { %v13677_v47 = vcombine.low %v7871_v46, %v7878_v42  ;;  %v8165_v38 = vrot.slane %v13645_v43, %v11972_v20  ;;  %v8172_v50 = vrot.slane %v8158_v26, %v11972_v20  ;;  %v8214_v8 = vrot.slane %v8206_v2, %v11972_v20  ;;  %v14526_v42 = vld [vmem:[#allocation97_spill] sm:$0xff] }
 0x58f   : > { %v8226_v16 = vcombine.low %v5403_v60, %v5407_v35  ;;  %v8275_v6 = vcombine.low %v5435_v34, %v5439_v4  ;;  %v13683_v14 = vcombine.low %v7969_v25, %v7976_v17  ;;  %v8221_v60 = vrot.slane %v8207_v21, %v11972_v20  ;;  %v14529_v34 = vld [vmem:[#allocation96_spill] sm:$0xff] }
 0x590   : > { %v8247_v63 = vrot.slane %v8225_v57, %v11972_v20  ;;  %v3794_v46 = vadd.f32 %v11923_v9, %v3720_v13  ;;  %v8282_v43 = vrot.slane %v8272_v40, %v11972_v20  ;;  %v8296_v25 = vrot.slane %v8274_v31, %v11972_v20 }
 0x591   : > { %9153 = vperm.xlu1 %9823, %v13248_v49   ;;  %v9115_v58 = vpop.permute.xlu0 %9114  ;;  %v8240_v49 = vrot.slane %v8224_v30, %v11972_v20  ;;  %14525 = vst [vmem:[#allocation22_spill] sm:$0xff] %v13683_v14  ;;  %v8289_v30 = vrot.slane %v8273_v39, %v11972_v20  ;;  %v8303_v17 = vrot.slane %v8275_v6, %v11972_v20  ;;  %v14533_v14 = vld [vmem:[#allocation46_spill] sm:$0xff] }
 0x592   : > { %v9376_v62 = vrot.slane %v9115_v58, %v14522_v36  ;;  %v5443_v27 = vrot.slane %v3793_v29, %v14279_v41  ;;  %v5447_v32 = vrot.slane %v3793_v29, %v14280_v54  ;;  %v3722_v7 = vadd.f32 %v14528_v5, %v14527_v33  ;;  %v14531_v5 = vld [vmem:[#allocation45_spill] sm:$0xff] }
 0x593   : > { %v13667_v37 = vpop.xlane.xlu1 %3048  ;;  %v13688_v35 = vcombine.low %v8233_v23, %v8240_v49  ;;  %v5451_v51 = vrot.slane %v3793_v29, %v11931_v11  ;;  %v5455_v39 = vrot.slane %v3793_v29, %v11935_v0  ;;  %v5463_v4 = vrot.slane %v3793_v29, %v11942_v53  ;;  %v14530_v23 = vld [vmem:[#allocation9_spill] sm:$0xff] }
 0x594   : > { %v9377_v3 = vsel %vm9273_vm6, %v9376_v62, %v13461_v1  ;;  %v5467_v62 = vrot.slane %v3793_v29, %v11945_v61  ;;  %v5471_v26 = vrot.slane %v3793_v29, %v11952_v10  ;;  %v5475_v2 = vrot.slane %v3794_v46, %v14279_v41 }
 0x595   : > { %9159 = vperm.xlu1 %9823, %v13250_v56   ;;  %v8254_v56 = vrot.slane %v8226_v16, %v11972_v20  ;;  %v5479_v21 = vrot.slane %v3794_v46, %v14280_v54  ;;  %v5483_v57 = vrot.slane %v3794_v46, %v11931_v11  ;;  %v5487_v16 = vrot.slane %v3794_v46, %v11935_v0 }
 0x596   : > { %v5491_v49 = vrot.slane %v3794_v46, %v11938_v22  ;;  %v5495_v48 = vrot.slane %v3794_v46, %v11942_v53  ;;  %v5499_v55 = vrot.slane %v3794_v46, %v11945_v61  ;;  %v5503_v13 = vrot.slane %v3794_v46, %v11952_v10 }
 0x597   : > { %v9118_v1 = vpop.permute.xlu1 %9117  ;;  %v13721_v40 = vcombine.low %v8165_v38, %v8172_v50  ;;  %v13725_v31 = vcombine.low %v8247_v63, %v8254_v56  ;;  %v8304_v6 = vcombine.low %v8282_v43, %v8289_v30  ;;  %v8321_v33 = vcombine.low %v5443_v27, %v5447_v32 }
 0x598   : > { %v9381_v18 = vrot.slane %v9118_v1, %v14526_v42  ;;  %v8305_v1 = vcombine.low %v8296_v25, %v8303_v17  ;;  %v8322_v42 = vcombine.low %v5451_v51, %v5455_v39  ;;  %v8324_v46 = vcombine.low %v5467_v62, %v5471_v26 }
 0x599   : > { %9165 = vperm.xlu1 %9823, %v13346_v45   ;;  %v5459_v45 = vrot.slane %v3793_v29, %v11938_v22  ;;  %v13723_v29 = vcombine.low %v8214_v8, %v8221_v60  ;;  %v8370_v38 = vcombine.low %v5475_v2, %v5479_v21  ;;  %v8371_v50 = vcombine.low %v5483_v57, %v5487_v16  ;;  %v14535_v21 = vld [vmem:[#allocation16_spill] sm:$0xff]  ;;  %v14536_v57 = vld [vmem:[#allocation34_spill] sm:$0xff] }
 0x59a   : > { %v13702_v58 = vsel %vm9280_vm7, %v9381_v18, %v9377_v3  ;;  %v3796_v3 = vadd.f32 %v11923_v9, %v3722_v7  ;;  %v8263_v18 = vrot.slane %v13688_v35, %v11972_v20  ;;  %v8372_v8 = vcombine.low %v5491_v49, %v5495_v48 }
 0x59b   : > { %3063 = vadd.xlane.f32.xlu0 %v14529_v34  ;;  %v14532_v34 = vld [vmem:[#allocation33_spill] sm:$0xff]  ;;  %v8323_v36 = vcombine.low %v5459_v45, %v5463_v4  ;;  %v8373_v60 = vcombine.low %v5499_v55, %v5503_v13  ;;  %v8312_v7 = vrot.slane %v8304_v6, %v11972_v20  ;;  %v8319_v51 = vrot.slane %v8305_v1, %v11972_v20 }
 0x59c   : > { %v5539_v63 = vrot.slane %v3796_v3, %v14279_v41  ;;  %v5543_v56 = vrot.slane %v3796_v3, %v14280_v54  ;;  %v5547_v43 = vrot.slane %v3796_v3, %v11931_v11  ;;  %v5551_v30 = vrot.slane %v3796_v3, %v11935_v0  ;;  %v14534_v45 = vld [vmem:[#allocation17_spill] sm:$0xff] }
 0x59d   : > { %9171 = vperm.xlu1 %9823, %v14530_v23   ;;  %v3724_v23 = vadd.f32 %v14532_v34, %v14531_v5  ;;  %v5555_v25 = vrot.slane %v3796_v3, %v11938_v22  ;;  %v5559_v17 = vrot.slane %v3796_v3, %v11942_v53  ;;  %v5563_v27 = vrot.slane %v3796_v3, %v11945_v61 }
 0x59e   : > { %v8331_v39 = vrot.slane %v8321_v33, %v11972_v20  ;;  %v8380_v4 = vrot.slane %v8370_v38, %v11972_v20  ;;  %v8338_v62 = vrot.slane %v8322_v42, %v11972_v20  ;;  %v8345_v26 = vrot.slane %v8323_v36, %v11972_v20 }
 0x59f   : > { %v3798_v32 = vadd.f32 %v11923_v9, %v3724_v23  ;;  %v8352_v2 = vrot.slane %v8324_v46, %v11972_v20  ;;  %v3726_v16 = vadd.f32 %v14536_v57, %v14535_v21  ;;  %v8387_v49 = vrot.slane %v8371_v50, %v11972_v20 }
 0x5a0   : > { %v8394_v48 = vrot.slane %v8372_v8, %v11972_v20  ;;  %v8401_v55 = vrot.slane %v8373_v60, %v11972_v20  ;;  %v8468_v13 = vcombine.low %v5539_v63, %v5543_v56  ;;  %v8470_v6 = vcombine.low %v5555_v25, %v5559_v17  ;;  %v14537_v56 = vld [vmem:[#allocation41_spill] sm:$0xff] }
 0x5a1   : > { %9177 = vperm.xlu1 %9823, %v14533_v14   ;;  %v5567_v14 = vrot.slane %v3796_v3, %v11952_v10  ;;  %v8469_v3 = vcombine.low %v5547_v43, %v5551_v30  ;;  %v5603_v33 = vrot.slane %v3798_v32, %v14279_v41  ;;  %v5607_v42 = vrot.slane %v3798_v32, %v14280_v54  ;;  %v14538_v43 = vld [vmem:[#allocation58_spill] sm:$0xff] }
 0x5a2   : > { %v5611_v36 = vrot.slane %v3798_v32, %v11931_v11  ;;  %v5615_v5 = vrot.slane %v3798_v32, %v11935_v0  ;;  %v5619_v34 = vrot.slane %v3798_v32, %v11938_v22  ;;  %v5623_v23 = vrot.slane %v3798_v32, %v11942_v53 }
 0x5a3   : > { %v8471_v1 = vcombine.low %v5563_v27, %v5567_v14  ;;  %v5627_v46 = vrot.slane %v3798_v32, %v11945_v61  ;;  %v5631_v38 = vrot.slane %v3798_v32, %v11952_v10  ;;  %v3800_v50 = vadd.f32 %v11923_v9, %v3726_v16 }
 0x5a4   : > { %v8320_v8 = vcombine.low %v8312_v7, %v8319_v51  ;;  %v8270_v60 = vrot.slane %v13725_v31, %v11972_v20  ;;  %v13766_v63 = vcombine.low %v8331_v39, %v8338_v62  ;;  %v3721_v30 = vadd.f32 %v14538_v43, %v14537_v56 }
 0x5a5   : > { %9183 = vperm.xlu1 %9823, %v14534_v45   ;;  %v8403_v25 = vcombine.low %v8394_v48, %v8401_v55  ;;  %v13770_v17 = vcombine.low %v8345_v26, %v8352_v2  ;;  %v8478_v27 = vrot.slane %v8468_v13, %v11972_v20  ;;  %v8485_v14 = vrot.slane %v8469_v3, %v11972_v20 }
 0x5a6   : > { %v8492_v32 = vrot.slane %v8470_v6, %v11972_v20  ;;  %v8499_v7 = vrot.slane %v8471_v1, %v11972_v20  ;;  %v8566_v51 = vcombine.low %v5603_v33, %v5607_v42  ;;  %v8567_v39 = vcombine.low %v5611_v36, %v5615_v5  ;;  %v14539_v6 = vld [vmem:[#allocation79_spill] sm:$0xff] }
 0x5a7   : > { %v8568_v45 = vcombine.low %v5619_v34, %v5623_v23  ;;  %v8569_v62 = vcombine.low %v5627_v46, %v5631_v38  ;;  %v5667_v21 = vrot.slane %v3800_v50, %v14279_v41  ;;  %v5675_v26 = vrot.slane %v3800_v50, %v11931_v11  ;;  %v14540_v1 = vld [vmem:[#allocation59_spill] sm:$0xff] }
 0x5a8   : > { %v5679_v2 = vrot.slane %v3800_v50, %v11935_v0  ;;  %v5683_v57 = vrot.slane %v3800_v50, %v11938_v22  ;;  %v5687_v16 = vrot.slane %v3800_v50, %v11942_v53  ;;  %v13786_v48 = vadd.f32 %v11923_v9, %v3721_v30  ;;  %v14541_v42 = vld [vmem:[#allocation47_spill] sm:$0xff] }
 0x5a9   : > { %9186 = vperm.xlu1 %9823, %v13571_v24   ;;  %v8402_v24 = vcombine.low %v8380_v4, %v8387_v49  ;;  %v5671_v4 = vrot.slane %v3800_v50, %v14280_v54  ;;  %v5691_v49 = vrot.slane %v3800_v50, %v11945_v61  ;;  %v8417_v13 = vrot.slane %v8403_v25, %v11972_v20 }
 0x5aa   : > { %v8361_v3 = vrot.slane %v13766_v63, %v11972_v20  ;;  %v3723_v33 = vadd.f32 %v14540_v1, %v14539_v6  ;;  %v8500_v36 = vcombine.low %v8478_v27, %v8485_v14  ;;  %v8501_v5 = vcombine.low %v8492_v32, %v8499_v7 }
 0x5ab   : > { %v8410_v55 = vrot.slane %v8402_v24, %v11972_v20  ;;  %v8576_v34 = vrot.slane %v8566_v51, %v11972_v20  ;;  %v8583_v23 = vrot.slane %v8567_v39, %v11972_v20  ;;  %v8590_v46 = vrot.slane %v8568_v45, %v11972_v20 }
 0x5ac   : > { %v8597_v38 = vrot.slane %v8569_v62, %v11972_v20  ;;  %v8665_v56 = vcombine.low %v5675_v26, %v5679_v2  ;;  %v8666_v63 = vcombine.low %v5683_v57, %v5687_v16  ;;  %v8368_v24 = vrot.slane %v13770_v17, %v11972_v20 }
 0x5ad   : > { %9189 = vperm.xlu1 %9823, %v13616_v52   ;;  %v5695_v52 = vrot.slane %v3800_v50, %v11952_v10  ;;  %v8664_v50 = vcombine.low %v5667_v21, %v5671_v4  ;;  %v8418_v30 = vcombine.low %v8410_v55, %v8417_v13  ;;  %v5511_v25 = vrot.slane %v13786_v48, %v14280_v54  ;;  %v14543_v4 = vld [vmem:[#allocation60_spill] sm:$0xff] }
 0x5ae   : > { %v3797_v27 = vadd.f32 %v11923_v9, %v3723_v33  ;;  %v8508_v14 = vrot.slane %v8500_v36, %v11972_v20  ;;  %v8515_v32 = vrot.slane %v8501_v5, %v11972_v20  ;;  %v8598_v7 = vcombine.low %v8576_v34, %v8583_v23 }
 0x5af   : > { %v8667_v43 = vcombine.low %v5691_v49, %v5695_v52  ;;  %v8599_v51 = vcombine.low %v8590_v46, %v8597_v38  ;;  %v5515_v17 = vrot.slane %v13786_v48, %v11931_v11  ;;  %v5519_v39 = vrot.slane %v13786_v48, %v11935_v0 }
 0x5b0   : > { %v8674_v45 = vrot.slane %v8664_v50, %v11972_v20  ;;  %v8681_v62 = vrot.slane %v8665_v56, %v11972_v20  ;;  %v8688_v21 = vrot.slane %v8666_v63, %v11972_v20  ;;  %v5523_v2 = vrot.slane %v13786_v48, %v11938_v22 }
 0x5b1   : > { %9132 = vperm.xlu0 %9822, %v14541_v42   ;;  %9192 = vperm.xlu1 %9823, %v13721_v40   ;;  %v5507_v40 = vrot.slane %v13786_v48, %v14279_v41  ;;  %v5527_v57 = vrot.slane %v13786_v48, %v11942_v53  ;;  %v5531_v16 = vrot.slane %v13786_v48, %v11945_v61 }
 0x5b2   : > { %v8516_v49 = vcombine.low %v8508_v14, %v8515_v32  ;;  %v5535_v52 = vrot.slane %v13786_v48, %v11952_v10  ;;  %v5571_v55 = vrot.slane %v3797_v27, %v14279_v41  ;;  %v5575_v13 = vrot.slane %v3797_v27, %v14280_v54 }
 0x5b3   : > { %v5579_v6 = vrot.slane %v3797_v27, %v11931_v11  ;;  %v5583_v1 = vrot.slane %v3797_v27, %v11935_v0  ;;  %v5587_v33 = vrot.slane %v3797_v27, %v11938_v22  ;;  %v8606_v42 = vrot.slane %v8598_v7, %v11972_v20 }
 0x5b4   : > { %v8613_v36 = vrot.slane %v8599_v51, %v11972_v20  ;;  %v5591_v48 = vrot.slane %v3797_v27, %v11942_v53  ;;  %v5595_v23 = vrot.slane %v3797_v27, %v11945_v61  ;;  %v5599_v46 = vrot.slane %v3797_v27, %v11952_v10  ;;  %v14544_v27 = vld [vmem:[#allocation61_spill] sm:$0xff] }
 0x5b5   : > { %9138 = vperm.xlu0 %9822, %v13511_v19   ;;  %9201 = vperm.xlu1 %9823, %v8320_v8   ;;  %v8695_v19 = vrot.slane %v8667_v43, %v11972_v20  ;;  %v14542_v8 = vld [vmem:[#allocation10_spill] sm:$0xff]  ;;  %v13847_v38 = vcombine.low %v8263_v18, %v8270_v60  ;;  %v13849_v50 = vcombine.low %v8361_v3, %v8368_v24 }
 0x5b6   : > { %v3725_v26 = vadd.f32 %v14543_v4, %v14542_v8  ;;  %v8419_v56 = vcombine.low %v5507_v40, %v5511_v25  ;;  %v8420_v63 = vcombine.low %v5515_v17, %v5519_v39  ;;  %v8421_v43 = vcombine.low %v5523_v2, %v5527_v57  ;;  %v14545_v57 = vld [vmem:[#allocation35_spill] sm:$0xff] }
 0x5b7   : > { %v8697_v5 = vcombine.low %v8688_v21, %v8695_v19  ;;  %v8517_v14 = vcombine.low %v5571_v55, %v5575_v13  ;;  %v3727_v32 = vadd.f32 %v14544_v27, %v13642_v59  ;;  %v8518_v51 = vcombine.low %v5579_v6, %v5583_v1 }
 0x5b8   : > { %v3799_v34 = vadd.f32 %v11923_v9, %v3725_v26  ;;  %v8520_v35 = vcombine.low %v5595_v23, %v5599_v46  ;;  %v8436_v19 = vrot.slane %v8420_v63, %v11972_v20  ;;  %v8443_v8 = vrot.slane %v8421_v43, %v11972_v20  ;;  %v14547_v43 = vld [vmem:[#allocation48_spill] sm:$0xff] }
 0x5b9   : > { %9144 = vperm.xlu0 %9822, %v13513_v15   ;;  %9207 = vperm.xlu1 %9823, %v8418_v30   ;;  %v8696_v15 = vcombine.low %v8674_v45, %v8681_v62  ;;  %v8422_v30 = vcombine.low %v5531_v16, %v5535_v52  ;;  %v8711_v31 = vrot.slane %v8697_v5, %v11972_v20 }
 0x5ba   : > { %v8519_v45 = vcombine.low %v5587_v33, %v5591_v48  ;;  %v5635_v18 = vrot.slane %v3799_v34, %v14279_v41  ;;  %v5639_v60 = vrot.slane %v3799_v34, %v14280_v54  ;;  %v5643_v3 = vrot.slane %v3799_v34, %v11931_v11 }
 0x5bb   : > { %v8704_v7 = vrot.slane %v8696_v15, %v11972_v20  ;;  %v5647_v24 = vrot.slane %v3799_v34, %v11935_v0  ;;  %v5651_v40 = vrot.slane %v3799_v34, %v11938_v22  ;;  %v5655_v25 = vrot.slane %v3799_v34, %v11942_v53 }
 0x5bc   : > { %v5659_v17 = vrot.slane %v3799_v34, %v11945_v61  ;;  %v5663_v39 = vrot.slane %v3799_v34, %v11952_v10  ;;  %v3801_v62 = vadd.f32 %v11923_v9, %v3727_v32  ;;  %v8450_v4 = vrot.slane %v8422_v30, %v11972_v20 }
 0x5bd   : > { %9150 = vperm.xlu0 %9822, %v13515_v28   ;;  %9213 = vperm.xlu1 %9823, %v8516_v49   ;;  %v8614_v28 = vcombine.low %v8606_v42, %v8613_v36  ;;  %v8712_v21 = vcombine.low %v8704_v7, %v8711_v31  ;;  %v8527_v26 = vrot.slane %v8517_v14, %v11972_v20  ;;  %v14546_v42 = vld [vmem:[#allocation66_spill] sm:$0xff] }
 0x5be   : > { %v3052_v59 = vpop.xlane.xlu0 %3051  ;;  %v8534_v2 = vrot.slane %v8518_v51, %v11972_v20  ;;  %v3728_v16 = vadd.f32 %v14545_v57, %v13667_v37  ;;  %v8541_v49 = vrot.slane %v8519_v45, %v11972_v20  ;;  %v8548_v52 = vrot.slane %v8520_v35, %v11972_v20  ;;  %v14548_v35 = vld [vmem:[#allocation62_spill] sm:$0xff] }
 0x5bf   : > { %v8615_v13 = vcombine.low %v5635_v18, %v5639_v60  ;;  %v8616_v6 = vcombine.low %v5643_v3, %v5647_v24  ;;  %v8617_v1 = vcombine.low %v5651_v40, %v5655_v25  ;;  %v8618_v33 = vcombine.low %v5659_v17, %v5663_v39  ;;  %v14549_v24 = vld [vmem:[#allocation38_spill] sm:$0xff] }
 0x5c0   : > { %v5699_v15 = vrot.slane %v3801_v62, %v14279_v41  ;;  %v5703_v5 = vrot.slane %v3801_v62, %v14280_v54  ;;  %v5707_v37 = vrot.slane %v3801_v62, %v11931_v11  ;;  %v5715_v48 = vrot.slane %v3801_v62, %v11938_v22  ;;  %v14550_v57 = vld [vmem:[#allocation22_spill] sm:$0xff] }
 0x5c1   : > { %9156 = vperm.xlu0 %9822, %v13520_v12   ;;  %9219 = vperm.xlu1 %9823, %v8614_v28   ;;  %v8429_v12 = vrot.slane %v8419_v56, %v11972_v20  ;;  %v5719_v23 = vrot.slane %v3801_v62, %v11942_v53  ;;  %v5723_v46 = vrot.slane %v3801_v62, %v11945_v61 }
 0x5c2   : > { %v3802_v56 = vadd.f32 %v11923_v9, %v3728_v16  ;;  %v5727_v30 = vrot.slane %v3801_v62, %v11952_v10  ;;  %v8452_v27 = vcombine.low %v8443_v8, %v8450_v4  ;;  %v8549_v32 = vcombine.low %v8527_v26, %v8534_v2 }
 0x5c3   : > { %v8451_v14 = vcombine.low %v8429_v12, %v8436_v19  ;;  %v8550_v28 = vcombine.low %v8541_v49, %v8548_v52  ;;  %v8625_v7 = vrot.slane %v8615_v13, %v11972_v20  ;;  %v8632_v31 = vrot.slane %v8616_v6, %v11972_v20  ;;  %v14551_v13 = vld [vmem:[#allocation36_spill] sm:$0xff] }
 0x5c4   : > { %v8639_v51 = vrot.slane %v8617_v1, %v11972_v20  ;;  %v8646_v45 = vrot.slane %v8618_v33, %v11972_v20  ;;  %v8713_v60 = vcombine.low %v5699_v15, %v5703_v5  ;;  %v8716_v25 = vcombine.low %v5723_v46, %v5727_v30 }
 0x5c5   : > { %9162 = vperm.xlu0 %9822, %v13573_v44   ;;  %9225 = vperm.xlu1 %9823, %v8712_v21   ;;  %v5711_v44 = vrot.slane %v3801_v62, %v11935_v0  ;;  %v5731_v17 = vrot.slane %v3802_v56, %v14279_v41  ;;  %v5735_v39 = vrot.slane %v3802_v56, %v14280_v54 }
 0x5c6   : > { %v9121_v55 = vpop.permute.xlu0 %9120  ;;  %v5739_v62 = vrot.slane %v3802_v56, %v11931_v11  ;;  %v5743_v21 = vrot.slane %v3802_v56, %v11935_v0  ;;  %v5751_v19 = vrot.slane %v3802_v56, %v11942_v53  ;;  %v8459_v4 = vrot.slane %v8451_v14, %v11972_v20 }
 0x5c7   : > { %v9386_v36 = vrot.slane %v9121_v55, %v14546_v42  ;;  %v8714_v3 = vcombine.low %v5707_v37, %v5711_v44  ;;  %v8466_v26 = vrot.slane %v8452_v27, %v11972_v20  ;;  %v8557_v2 = vrot.slane %v8549_v32, %v11972_v20 }
 0x5c8   : > { %v3055_v34 = vpop.xlane.xlu1 %3054  ;;  %v8564_v16 = vrot.slane %v8550_v28, %v11972_v20  ;;  %v8647_v49 = vcombine.low %v8625_v7, %v8632_v31  ;;  %v8648_v52 = vcombine.low %v8639_v51, %v8646_v45  ;;  %v8723_v55 = vrot.slane %v8713_v60, %v11972_v20 }
 0x5c9   : > { %v9387_v63 = vsel %vm9287_vm8, %v9386_v36, %v13702_v58  ;;  %9168 = vperm.xlu0 %9822, %v14547_v43   ;;  %9195 = vperm.xlu1 %9823, %v13723_v29   ;;  %v3729_v58 = vadd.f32 %v14548_v35, %v3052_v59  ;;  %v8715_v29 = vcombine.low %v5715_v48, %v5719_v23 }
 0x5ca   : > { %v5747_v59 = vrot.slane %v3802_v56, %v11938_v22  ;;  %v3730_v6 = vadd.f32 %v14551_v13, %v3055_v34  ;;  %v8730_v1 = vrot.slane %v8714_v3, %v11972_v20  ;;  %v8744_v36 = vrot.slane %v8716_v25, %v11972_v20 }
 0x5cb   : > { %v3803_v8 = vadd.f32 %v11923_v9, %v3729_v58  ;;  %v8737_v33 = vrot.slane %v8715_v29, %v11972_v20  ;;  %v8762_v15 = vcombine.low %v5731_v17, %v5735_v39  ;;  %v8763_v5 = vcombine.low %v5739_v62, %v5743_v21 }
 0x5cc   : > { %v9124_v18 = vpop.permute.xlu1 %9123  ;;  %v8764_v37 = vcombine.low %v5747_v59, %v5751_v19  ;;  %v3804_v14 = vadd.f32 %v11923_v9, %v3730_v6  ;;  %v8467_v27 = vcombine.low %v8459_v4, %v8466_v26  ;;  %v8565_v32 = vcombine.low %v8557_v2, %v8564_v16 }
 0x5cd   : > { %v9391_v40 = vrot.slane %v9124_v18, %v14549_v24  ;;  %9174 = vperm.xlu0 %9822, %v13677_v47   ;;  %9198 = vperm.xlu1 %9823, %v13847_v38   ;;  %v5755_v47 = vrot.slane %v3802_v56, %v11945_v61  ;;  %v5759_v38 = vrot.slane %v3802_v56, %v11952_v10 }
 0x5ce   : > { %v5763_v48 = vrot.slane %v3803_v8, %v14279_v41  ;;  %v5767_v23 = vrot.slane %v3803_v8, %v14280_v54  ;;  %v5771_v46 = vrot.slane %v3803_v8, %v11931_v11  ;;  %v5775_v56 = vrot.slane %v3803_v8, %v11935_v0 }
 0x5cf   : > { %v13904_v12 = vsel %vm9294_vm9, %v9391_v40, %v9387_v63  ;;  %v8765_v44 = vcombine.low %v5755_v47, %v5759_v38  ;;  %v5779_v34 = vrot.slane %v3803_v8, %v11938_v22  ;;  %v5783_v63 = vrot.slane %v3803_v8, %v11942_v53 }
 0x5d0   : > { %v5787_v43 = vrot.slane %v3803_v8, %v11945_v61  ;;  %v5791_v30 = vrot.slane %v3803_v8, %v11952_v10  ;;  %v8655_v28 = vrot.slane %v8647_v49, %v11972_v20  ;;  %v8662_v7 = vrot.slane %v8648_v52, %v11972_v20 }
 0x5d1   : > { %9180 = vperm.xlu0 %9822, %v14550_v57   ;;  %v8745_v31 = vcombine.low %v8723_v55, %v8730_v1  ;;  %v8746_v51 = vcombine.low %v8737_v33, %v8744_v36  ;;  %v8779_v45 = vrot.slane %v8763_v5, %v11972_v20  ;;  %v8786_v35 = vrot.slane %v8764_v37, %v11972_v20 }
 0x5d2   : > { %v8793_v58 = vrot.slane %v8765_v44, %v11972_v20  ;;  %v8811_v18 = vcombine.low %v5763_v48, %v5767_v23  ;;  %v8812_v60 = vcombine.low %v5771_v46, %v5775_v56  ;;  %v8813_v3 = vcombine.low %v5779_v34, %v5783_v63 }
 0x5d3   : > { %v8814_v29 = vcombine.low %v5787_v43, %v5791_v30  ;;  %v5795_v40 = vrot.slane %v3804_v14, %v14279_v41  ;;  %v5799_v25 = vrot.slane %v3804_v14, %v14280_v54  ;;  %v5803_v17 = vrot.slane %v3804_v14, %v11931_v11 }
 0x5d4   : > { %v5807_v39 = vrot.slane %v3804_v14, %v11935_v0  ;;  %v5811_v62 = vrot.slane %v3804_v14, %v11938_v22  ;;  %v5815_v21 = vrot.slane %v3804_v14, %v11942_v53  ;;  %v5819_v59 = vrot.slane %v3804_v14, %v11945_v61 }
 0x5d5   : > { %9204 = vperm.xlu0 %9822, %v13849_v50   ;;  %v8772_v50 = vrot.slane %v8762_v15, %v11972_v20  ;;  %v5823_v19 = vrot.slane %v3804_v14, %v11952_v10  ;;  %v8663_v47 = vcombine.low %v8655_v28, %v8662_v7  ;;  %v8753_v38 = vrot.slane %v8745_v31, %v11972_v20  ;;  %v14552_v7 = vld [vmem:[#allocation63_spill] sm:$0xff] }
 0x5d6   : > { %v8760_v8 = vrot.slane %v8746_v51, %v11972_v20  ;;  %v8795_v26 = vcombine.low %v8786_v35, %v8793_v58  ;;  %v8821_v2 = vrot.slane %v8811_v18, %v11972_v20  ;;  %v8828_v57 = vrot.slane %v8812_v60, %v11972_v20 }
 0x5d7   : > { %v8794_v4 = vcombine.low %v8772_v50, %v8779_v45  ;;  %v8835_v16 = vrot.slane %v8813_v3, %v11972_v20  ;;  %v8842_v49 = vrot.slane %v8814_v29, %v11972_v20  ;;  %v8860_v52 = vcombine.low %v5795_v40, %v5799_v25 }
 0x5d8   : > { %v8861_v55 = vcombine.low %v5803_v17, %v5807_v39  ;;  %v8862_v13 = vcombine.low %v5811_v62, %v5815_v21  ;;  %v8863_v6 = vcombine.low %v5819_v59, %v5823_v19  ;;  %v8761_v1 = vcombine.low %v8753_v38, %v8760_v8  ;;  %v14553_v21 = vld [vmem:[#allocation98_spill] sm:$0xff] }
 0x5d9   : > { %9210 = vperm.xlu0 %9822, %v8467_v27   ;;  %v8802_v33 = vrot.slane %v8794_v4, %v11972_v20  ;;  %v8809_v36 = vrot.slane %v8795_v26, %v11972_v20  ;;  %v8843_v15 = vcombine.low %v8821_v2, %v8828_v57  ;;  %v8844_v5 = vcombine.low %v8835_v16, %v8842_v49  ;;  %v14554_v2 = vld [vmem:[#allocation27_spill] sm:$0xff] }
 0x5da   : > { %v8870_v37 = vrot.slane %v8860_v52, %v11972_v20  ;;  %v8877_v44 = vrot.slane %v8861_v55, %v11972_v20  ;;  %v8884_v48 = vrot.slane %v8862_v13, %v11972_v20  ;;  %v8891_v23 = vrot.slane %v8863_v6, %v11972_v20 }
 0x5db   : > { %v8810_v46 = vcombine.low %v8802_v33, %v8809_v36  ;;  %v8851_v56 = vrot.slane %v8843_v15, %v11972_v20  ;;  %v8858_v34 = vrot.slane %v8844_v5, %v11972_v20 }
 0x5dc   : > { %v8892_v63 = vcombine.low %v8870_v37, %v8877_v44  ;;  %v8893_v43 = vcombine.low %v8884_v48, %v8891_v23 }
 0x5dd   : > { %9216 = vperm.xlu0 %9822, %v8565_v32   ;;  %v8859_v30 = vcombine.low %v8851_v56, %v8858_v34 }
 0x5de   : > { %v8900_v14 = vrot.slane %v8892_v63, %v11972_v20  ;;  %v8907_v27 = vrot.slane %v8893_v43, %v11972_v20 }
 0x5e0   : > { %v8908_v32 = vcombine.low %v8900_v14, %v8907_v27 }
 0x5e1   : > { %9222 = vperm.xlu0 %9822, %v8663_v47  }
 0x5e5   : > { %9228 = vperm.xlu0 %9822, %v8761_v1   ;;  %v14555_v1 = vld [vmem:[#allocation99_spill] sm:$0xff] }
 0x5e9   : > { %9231 = vperm.xlu0 %9822, %v8810_v46  }
 0x5ed   : > { %9234 = vperm.xlu0 %9822, %v8859_v30  }
 0x5f1   : > { %9237 = vperm.xlu0 %9822, %v8908_v32  }
 0x5f3   : > { %v3058_v28 = vpop.xlane.xlu0 %3057 }
 0x5f4   : > { %v3731_v31 = vadd.f32 %v14552_v7, %v3058_v28 }
 0x5f6   : > { %v3805_v51 = vadd.f32 %v11923_v9, %v3731_v31 }
 0x5f8   : > { %v5827_v50 = vrot.slane %v3805_v51, %v14279_v41  ;;  %v5831_v45 = vrot.slane %v3805_v51, %v14280_v54  ;;  %v5835_v35 = vrot.slane %v3805_v51, %v11931_v11  ;;  %v5839_v58 = vrot.slane %v3805_v51, %v11935_v0 }
 0x5f9   : > { %v5843_v18 = vrot.slane %v3805_v51, %v11938_v22  ;;  %v5847_v60 = vrot.slane %v3805_v51, %v11942_v53  ;;  %v5851_v3 = vrot.slane %v3805_v51, %v11945_v61  ;;  %v5855_v29 = vrot.slane %v3805_v51, %v11952_v10 }
 0x5fa   : > { %v8909_v40 = vcombine.low %v5827_v50, %v5831_v45  ;;  %v8910_v25 = vcombine.low %v5835_v35, %v5839_v58  ;;  %v14556_v58 = vld [vmem:[#allocation64_spill] sm:$0xff] }
 0x5fb   : > { %v9127_v17 = vpop.permute.xlu0 %9126  ;;  %v8911_v39 = vcombine.low %v5843_v18, %v5847_v60  ;;  %v8912_v62 = vcombine.low %v5851_v3, %v5855_v29 }
 0x5fc   : > { %v9396_v59 = vrot.slane %v9127_v17, %v14553_v21  ;;  %v8919_v19 = vrot.slane %v8909_v40, %v11972_v20  ;;  %v8926_v47 = vrot.slane %v8910_v25, %v11972_v20 }
 0x5fd   : > { %v3061_v38 = vpop.xlane.xlu1 %3060  ;;  %v8933_v8 = vrot.slane %v8911_v39, %v11972_v20  ;;  %v8940_v4 = vrot.slane %v8912_v62, %v11972_v20 }
 0x5fe   : > { %v9397_v26 = vsel %vm9301_vm10, %v9396_v59, %v13904_v12  ;;  %v3732_v57 = vadd.f32 %v14554_v2, %v3061_v38  ;;  %v8941_v16 = vcombine.low %v8919_v19, %v8926_v47 }
 0x5ff   : > { %v8942_v49 = vcombine.low %v8933_v8, %v8940_v4  ;;  %v14557_v4 = vld [vmem:[#allocation68_spill] sm:$0xff] }
 0x600   : > { %v3806_v52 = vadd.f32 %v11923_v9, %v3732_v57  ;;  %v8949_v55 = vrot.slane %v8941_v16, %v11972_v20 }
 0x601   : > { %v9130_v13 = vpop.permute.xlu1 %9129  ;;  %v8956_v6 = vrot.slane %v8942_v49, %v11972_v20 }
 0x602   : > { %v9401_v33 = vrot.slane %v9130_v13, %v14555_v1  ;;  %v5859_v36 = vrot.slane %v3806_v52, %v14279_v41  ;;  %v5863_v15 = vrot.slane %v3806_v52, %v14280_v54  ;;  %v5867_v5 = vrot.slane %v3806_v52, %v11931_v11 }
 0x603   : > { %v8957_v12 = vcombine.low %v8949_v55, %v8956_v6  ;;  %v5871_v37 = vrot.slane %v3806_v52, %v11935_v0  ;;  %v5875_v44 = vrot.slane %v3806_v52, %v11938_v22  ;;  %v5879_v48 = vrot.slane %v3806_v52, %v11942_v53 }
 0x604   : > { %v9402_v23 = vsel %vm9308_vm11, %v9401_v33, %v9397_v26  ;;  %v5883_v46 = vrot.slane %v3806_v52, %v11945_v61  ;;  %v5887_v56 = vrot.slane %v3806_v52, %v11952_v10  ;;  %v8958_v34 = vcombine.low %v5859_v36, %v5863_v15  ;;  %v14559_v52 = vld [vmem:[#allocation71_spill] sm:$0xff]  ;;  %v14560_v33 = vld [vmem:[#allocation73_spill] sm:$0xff] }
 0x605   : > { %9240 = vperm.xlu0 %9822, %v8957_v12   ;;  %v8959_v63 = vcombine.low %v5867_v5, %v5871_v37  ;;  %v8960_v43 = vcombine.low %v5875_v44, %v5879_v48  ;;  %v9136_v3 = vpop.permute.xlu1 %9135  ;;  %v14561_v48 = vld [vmem:[#allocation75_spill] sm:$0xff] }
 0x606   : > { %v8961_v30 = vcombine.low %v5883_v46, %v5887_v56  ;;  %v8968_v14 = vrot.slane %v8958_v34, %v11972_v20  ;;  %v14562_v34 = vld [vmem:[#allocation42_spill] sm:$0xff] }
 0x607   : > { %v8975_v27 = vrot.slane %v8959_v63, %v11972_v20  ;;  %v8982_v32 = vrot.slane %v8960_v43, %v11972_v20 }
 0x608   : > { %v8989_v28 = vrot.slane %v8961_v30, %v11972_v20  ;;  %v14563_v30 = vld [vmem:[#allocation15_spill] sm:$0xff] }
 0x609   : > { %v8990_v7 = vcombine.low %v8968_v14, %v8975_v27 }
 0x60a   : > { %v8991_v31 = vcombine.low %v8982_v32, %v8989_v28  ;;  %v14564_v28 = vld [vmem:[#allocation44_spill] sm:$0xff] }
 0x60b   : > { %v8998_v51 = vrot.slane %v8990_v7, %v11972_v20 }
 0x60c   : > { %v9005_v50 = vrot.slane %v8991_v31, %v11972_v20 }
 0x60e   : > { %v9006_v45 = vcombine.low %v8998_v51, %v9005_v50 }
 0x610   : > { %9243 = vperm.xlu0 %9822, %v9006_v45  }
 0x628   : > { %v3064_v35 = vpop.xlane.xlu0 %3063 }
 0x629   : > { %v3733_v18 = vadd.f32 %v14556_v58, %v3064_v35 }
 0x62b   : > { %v3807_v60 = vadd.f32 %v11923_v9, %v3733_v18 }
 0x62d   : > { %v5891_v29 = vrot.slane %v3807_v60, %v14279_v41  ;;  %v5895_v40 = vrot.slane %v3807_v60, %v14280_v54  ;;  %v5899_v25 = vrot.slane %v3807_v60, %v11931_v11  ;;  %v5903_v17 = vrot.slane %v3807_v60, %v11935_v0  ;;  %v14558_v0 = vld [vmem:[#allocation70_spill] sm:$0xff] }
 0x62e   : > { %v5907_v39 = vrot.slane %v3807_v60, %v11938_v22  ;;  %v5911_v62 = vrot.slane %v3807_v60, %v11942_v53  ;;  %v5915_v59 = vrot.slane %v3807_v60, %v11945_v61  ;;  %v5919_v19 = vrot.slane %v3807_v60, %v11952_v10  ;;  %v9142_v53 = vpop.permute.xlu1 %9141 }
 0x62f   : > { %v9007_v47 = vcombine.low %v5891_v29, %v5895_v40  ;;  %v9008_v38 = vcombine.low %v5899_v25, %v5903_v17  ;;  %v9411_v2 = vrot.slane %v9136_v3, %v14558_v0  ;;  %v9421_v36 = vrot.slane %v9142_v53, %v14560_v33 }
 0x630   : > { %v9133_v9 = vpop.permute.xlu0 %9132  ;;  %v9009_v8 = vcombine.low %v5907_v39, %v5911_v62  ;;  %v9010_v26 = vcombine.low %v5915_v59, %v5919_v19 }
 0x631   : > { %v9406_v41 = vrot.slane %v9133_v9, %v14557_v4  ;;  %v9017_v54 = vrot.slane %v9007_v47, %v11972_v20  ;;  %v9024_v11 = vrot.slane %v9008_v38, %v11972_v20  ;;  %v14565_v9 = vld [vmem:[#allocation93_spill] sm:$0xff] }
 0x632   : > { %v9031_v22 = vrot.slane %v9009_v8, %v11972_v20  ;;  %v9038_v10 = vrot.slane %v9010_v26, %v11972_v20  ;;  %v9148_v44 = vpop.permute.xlu1 %9147 }
 0x633   : > { %v9407_v61 = vsel %vm9315_vm12, %v9406_v41, %v9402_v23  ;;  %v9039_v57 = vcombine.low %v9017_v54, %v9024_v11  ;;  %v9431_v63 = vrot.slane %v9148_v44, %v14562_v34  ;;  %v14566_v41 = vld [vmem:[#allocation92_spill] sm:$0xff] }
 0x634   : > { %v9412_v16 = vsel %vm9322_vm13, %v9411_v2, %v9407_v61  ;;  %v9139_v49 = vpop.permute.xlu0 %9138  ;;  %v9040_v13 = vcombine.low %v9031_v22, %v9038_v10  ;;  %v14567_v2 = vld [vmem:[#allocation65_spill] sm:$0xff]  ;;  %v14568_v61 = vld [vmem:[#allocation20_spill] sm:$0xff] }
 0x635   : > { %v9416_v55 = vrot.slane %v9139_v49, %v14559_v52  ;;  %v9047_v6 = vrot.slane %v9039_v57, %v11972_v20 }
 0x636   : > { %v9054_v5 = vrot.slane %v9040_v13, %v11972_v20  ;;  %v9154_v31 = vpop.permute.xlu1 %9153 }
 0x637   : > { %v9417_v15 = vsel %vm9329_vm14, %v9416_v55, %v9412_v16  ;;  %v9441_v26 = vrot.slane %v9154_v31, %v14566_v41  ;;  %v14569_v55 = vld [vmem:[#allocation97_spill] sm:$0xff] }
 0x638   : > { %v9422_v12 = vsel %vm9336_vm15, %v9421_v36, %v9417_v15  ;;  %v9145_v37 = vpop.permute.xlu0 %9144  ;;  %v9055_v46 = vcombine.low %v9047_v6, %v9054_v5 }
 0x639   : > { %v9426_v23 = vrot.slane %v9145_v37, %v14561_v48 }
 0x63a   : > { %9246 = vperm.xlu0 %9822, %v9055_v46   ;;  %v9160_v51 = vpop.permute.xlu1 %9159 }
 0x63b   : > { %v9427_v56 = vsel %vm9343_vm0, %v9426_v23, %v9422_v12  ;;  %v9450_v10 = vrot.slane %v9160_v51, %v14568_v61 }
 0x63c   : > { %v9151_v43 = vpop.permute.xlu0 %9150  ;;  %v9432_v27 = vsel %vm9350_vm1, %v9431_v63, %v9427_v56 }
 0x63d   : > { %v9436_v14 = vrot.slane %v9151_v43, %v14563_v30 }
 0x63e   : > { %v9166_v45 = vpop.permute.xlu1 %9165 }
 0x63f   : > { %v14027_v32 = vsel %vm9357_vm3, %v9436_v14, %v9432_v27  ;;  %v9460_v13 = vrot.slane %v9166_v45, %v14569_v55 }
 0x640   : > { %v9596_v7 = vcombine.low %v14564_v28, %v14027_v32  ;;  %v9157_v50 = vpop.permute.xlu0 %9156 }
 0x641   : > { %v9445_v8 = vrot.slane %v9157_v50, %v14565_v9 }
 0x642   : > { %v9172_v58 = vpop.permute.xlu1 %9171 }
 0x643   : > { %v9446_v11 = vsel %vm9259_vm2, %v9445_v8, %v9441_v26  ;;  %v9470_v44 = vrot.slane %v9172_v58, %v14549_v24 }
 0x644   : > { %v9163_v35 = vpop.permute.xlu0 %9162  ;;  %v9451_v57 = vsel %vm9266_vm5, %v9450_v10, %v9446_v11 }
 0x645   : > { %v9455_v22 = vrot.slane %v9163_v35, %v14567_v2 }
 0x646   : > { %v9178_v60 = vpop.permute.xlu1 %9177 }
 0x647   : > { %v9456_v16 = vsel %vm9273_vm6, %v9455_v22, %v9451_v57  ;;  %v9480_v51 = vrot.slane %v9178_v60, %v14555_v1 }
 0x648   : > { %v9169_v18 = vpop.permute.xlu0 %9168  ;;  %v9461_v15 = vsel %vm9280_vm7, %v9460_v13, %v9456_v16 }
 0x649   : > { %v9465_v49 = vrot.slane %v9169_v18, %v14546_v42 }
 0x64a   : > { %v9184_v29 = vpop.permute.xlu1 %9183 }
 0x64b   : > { %v9466_v5 = vsel %vm9287_vm8, %v9465_v49, %v9461_v15 }
 0x64c   : > { %v9175_v3 = vpop.permute.xlu0 %9174  ;;  %v9471_v56 = vsel %vm9294_vm9, %v9470_v44, %v9466_v5  ;;  %v9604_v44 = vrot.slane %v9596_v7, %v11972_v20 }
 0x64d   : > { %v9475_v12 = vrot.slane %v9175_v3, %v14553_v21 }
 0x64e   : > { %v9187_v25 = vpop.permute.xlu1 %9186 }
 0x64f   : > { %v9476_v63 = vsel %vm9301_vm10, %v9475_v12, %v9471_v56  ;;  %v9495_v8 = vrot.slane %v9187_v25, %v14559_v52 }
 0x650   : > { %v9181_v40 = vpop.permute.xlu0 %9180  ;;  %v9481_v45 = vsel %vm9308_vm11, %v9480_v51, %v9476_v63 }
 0x651   : > { %v9485_v43 = vrot.slane %v9181_v40, %v14557_v4  ;;  %v9490_v40 = vrot.slane %v9184_v29, %v14558_v0 }
 0x652   : > { %v9190_v39 = vpop.permute.xlu1 %9189 }
 0x653   : > { %v9486_v58 = vsel %vm9315_vm12, %v9485_v43, %v9481_v45  ;;  %v9500_v29 = vrot.slane %v9190_v39, %v14560_v33 }
 0x654   : > { %v9205_v17 = vpop.permute.xlu0 %9204  ;;  %v9491_v60 = vsel %vm9322_vm13, %v9490_v40, %v9486_v58 }
 0x655   : > { %v9524_v37 = vrot.slane %v9205_v17, %v14565_v9 }
 0x656   : > { %v14031_v59 = vpop.permute.xlu1 %9192 }
 0x658   : > { %v9211_v62 = vpop.permute.xlu0 %9210 }
 0x659   : > { %v9534_v27 = vrot.slane %v9211_v62, %v14567_v2 }
 0x65a   : > { %v9202_v47 = vpop.permute.xlu1 %9201 }
 0x65b   : > { %v9520_v23 = vrot.slane %v9202_v47, %v14566_v41 }
 0x65c   : > { %v9217_v19 = vpop.permute.xlu0 %9216 }
 0x65d   : > { %v9525_v14 = vsel %vm9259_vm2, %v9524_v37, %v9520_v23  ;;  %v9544_v3 = vrot.slane %v9217_v19, %v14546_v42  ;;  %v9496_v42 = vsel %vm9329_vm14, %v9495_v8, %v9491_v60 }
 0x65e   : > { %v9208_v54 = vpop.permute.xlu1 %9207  ;;  %v9501_v10 = vsel %vm9336_vm15, %v9500_v29, %v9496_v42 }
 0x65f   : > { %v9529_v50 = vrot.slane %v9208_v54, %v14568_v61 }
 0x660   : > { %v9223_v38 = vpop.permute.xlu0 %9222 }
 0x661   : > { %v9530_v35 = vsel %vm9266_vm5, %v9529_v50, %v9525_v14  ;;  %v9554_v26 = vrot.slane %v9223_v38, %v14553_v21 }
 0x662   : > { %v9214_v6 = vpop.permute.xlu1 %9213  ;;  %v9535_v18 = vsel %vm9273_vm6, %v9534_v27, %v9530_v35 }
 0x663   : > { %v9539_v17 = vrot.slane %v9214_v6, %v14569_v55 }
 0x664   : > { %v9229_v53 = vpop.permute.xlu0 %9228 }
 0x665   : > { %v9540_v9 = vsel %vm9280_vm7, %v9539_v17, %v9535_v18  ;;  %v9564_v61 = vrot.slane %v9229_v53, %v14557_v4 }
 0x666   : > { %v9220_v46 = vpop.permute.xlu1 %9219  ;;  %v9545_v41 = vsel %vm9287_vm8, %v9544_v3, %v9540_v9 }
 0x667   : > { %v9549_v54 = vrot.slane %v9220_v46, %v14549_v24  ;;  %v9505_v24 = vrot.slane %v14031_v59, %v14561_v48 }
 0x668   : > { %v9232_v36 = vpop.permute.xlu0 %9231 }
 0x669   : > { %v9550_v2 = vsel %vm9294_vm9, %v9549_v54, %v9545_v41  ;;  %v9569_v21 = vrot.slane %v9232_v36, %v14558_v0 }
 0x66a   : > { %v9226_v62 = vpop.permute.xlu1 %9225  ;;  %v9555_v22 = vsel %vm9301_vm10, %v9554_v26, %v9550_v2 }
 0x66b   : > { %v9559_v25 = vrot.slane %v9226_v62, %v14555_v1  ;;  %v9506_v1 = vsel %vm9343_vm0, %v9505_v24, %v9501_v10 }
 0x66c   : > { %v9235_v31 = vpop.permute.xlu0 %9234 }
 0x66d   : > { %v9574_v38 = vrot.slane %v9235_v31, %v14559_v52  ;;  %v9560_v57 = vsel %vm9308_vm11, %v9559_v25, %v9555_v22 }
 0x66e   : > { %v9196_v11 = vpop.permute.xlu1 %9195  ;;  %v9565_v49 = vsel %vm9315_vm12, %v9564_v61, %v9560_v57 }
 0x66f   : > { %v9510_v53 = vrot.slane %v9196_v11, %v14562_v34  ;;  %v9570_v0 = vsel %vm9322_vm13, %v9569_v21, %v9565_v49 }
 0x670   : > { %v9238_v47 = vpop.permute.xlu0 %9237  ;;  %v9575_v52 = vsel %vm9329_vm14, %v9574_v38, %v9570_v0 }
 0x671   : > { %v9579_v16 = vrot.slane %v9238_v47, %v14560_v33  ;;  %v9511_v33 = vsel %vm9350_vm1, %v9510_v53, %v9506_v1 }
 0x672   : > { %v9199_v55 = vpop.permute.xlu1 %9198 }
 0x673   : > { %v9580_v13 = vsel %vm9336_vm15, %v9579_v16, %v9575_v52 }
 0x684   : > { %v9241_v19 = vpop.permute.xlu0 %9240 }
 0x685   : > { %v9584_v4 = vrot.slane %v9241_v19, %v14561_v48  ;;  %v9515_v48 = vrot.slane %v9199_v55, %v14563_v30 }
 0x687   : > { %v9585_v36 = vsel %vm9343_vm0, %v9584_v4, %v9580_v13 }
 0x68f   : > { %v9244_v39 = vpop.permute.xlu0 %9243 }
 0x690   : > { %v9589_v59 = vrot.slane %v9244_v39, %v14562_v34  ;;  %v9516_v34 = vsel %vm9357_vm3, %v9515_v48, %v9511_v33 }
 0x692   : > { %v9590_v5 = vsel %vm9350_vm1, %v9589_v59, %v9585_v36 }
 0x6b9   : > { %v9247_v6 = vpop.permute.xlu0 %9246 }
 0x6ba   : > { %v9594_v15 = vrot.slane %v9247_v6, %v14563_v30  ;;  %v14570_v30 = vlaneseq }
 0x6bc   : > { %v9595_v12 = vsel %vm9357_vm3, %v9594_v15, %v9590_v5  ;;  %vm9623_vm4 = vcmp.lt.s32.totalorder %v14570_v30, 512 }
 0x6bd   : > { %v9597_v37 = vcombine.low %v9516_v34, %v9595_v12 }
 0x6bf   : > { %v9611_v23 = vrot.slane %v9597_v37, %v11972_v20 }
 0x6c1   : > { %v9612_v46 = vcombine.low %v9604_v44, %v9611_v23 }
 0x6c3   : > { %v9619_v56 = vrot.slane %v9612_v46, %v11972_v20 }
 0x6c5   : > { %9625 = vst.msk [vmem:[%s436_s29] sm:$0xf] %vm9623_vm4, %v9619_v56 }
 0x6c6   : > { %9941 = shalt.err (!%p9938_p3)
}
 0x6c7   : > { %s9942_s21 = scalar_lea.hbm %s14108_s17, 64  ;;  %s9946_s11 = scalar_lea.hbm %s14163_s13, 128 }
 0x6c8   : > { %p9943_p4 = scmp.ne.s32.totalorder %s14108_s17, %s9942_s21  ;;  %p9947_p9 = scmp.lt.u32.totalorder %s14108_s17, %s14163_s13 }
 0x6c9   : > { %p9948_p10 = scmp.lt.u32.totalorder %s9946_s11, %s9942_s21  ;;  %p9950_p12 = scmp.lt.u32.totalorder %s9942_s21, %s14108_s17 }
 0x6ca   : > { %p9944_p7 = pnand %p9943_p4, %p10103_p5 }
 0x6cb   : > { %p9949_p11 = por %p9948_p10, %p9947_p9 }
 0x6cc   : > { %p9945_p8 = pneg %p9944_p7 }
 0x6cd   : > { %p9951_p13 = por %p9950_p12, %p9949_p11 }
 0x6cf   : > { %p9952_p0 = pnand %p9951_p13, %p9945_p8 }
 0x6d1   : > { %9955 = shalt.err (!%p9952_p0)
}
 0x6d2   : > { %9781 = dma.vmem_to_hbm [thread:$0]  (%p10103_p5), %s14110_s18, 64, %s14108_s17, %s9627_s22  }
 0x6d3 PF: > { %p9787_p1 = scmp.ge.s32.totalorder %s9990_s30, 2  ;;  %s9653_s25 = sand.u32 1, %s9978_s27  }
 0x6d4   : > { %s9654_s24 = scalar_lea.sflag [#allocation4], %s9653_s25 }
 0x6d5   : > { %p9784_p2 = pnand %p9787_p1, %p10107_p6 }
 0x6d7   : > { %9973 = dma.done.wait (!%p9784_p2), %s9654_s24, 64  }
 0x6d8   : > { %9975 = vsyncadd (!%p9784_p2), %s9654_s24, 4294967232  ;;  %s14571_s14 = sld [smem:[#allocation6_spill]]  ;;  %s14572_s29 = sld [smem:[#allocation7_spill]] }
 0x6d9   : > { %p25_p3 = scmp.ge.s32.totalorder %s10091_s15, 4   ;;  %s14573_s27 = smov %s9982_s28 }
 0x6da   : > { %s14575_s30 = smov %s10091_s15 }
 0x6db   :  { %27 = sbr.rel (!%p25_p3) target bundleno = 6 (0x6), region = 107 }
 0x6de   : > { %s14574_s28 = smov %s14571_s14 }
 0x6e2   :  { %9659 = vsyncpa [#allocation4], 1 }
 0x6e3   :  { %9661 = vsyncpa [#allocation4 + $0x1], 1 }

</bundles_post_ra>
